<compile_context>
chip_gen: v7x
topology: tpu7x:2x2x1
jax: 0.10.0
libtpu: 0.0.40
codegen_flags: <defaults>
</compile_context>

<pallas_src>
import functools

import jax
import jax.numpy as jnp
from jax import lax
from jax.experimental import pallas as pl
from jax.experimental.pallas import tpu as pltpu


# ----------------------------------------------------------------------------
# Kernel
# ----------------------------------------------------------------------------
def _residual_bilstm_kernel(
    # inputs
    x_ref,        # (T*TB, D)  f32   row = t*TB + b_local (time-major within tile)
    wih_ref,      # (D, 8D)    bf16  [fwd i,f,o,g | bwd i,f,o,g]
    bih_ref,      # (1, 8D)    f32   (b_ih + b_hh) for both directions
    whh_f_ref,    # (D, 4D)    bf16
    whh_b_ref,    # (D, 4D)    bf16
    wproj_ref,    # (2D, D)    bf16  rows [forward ; backward]
    bproj_ref,    # (1, D)     f32
    gamma_ref,    # (1, D)     f32   LayerNorm weight
    beta_ref,     # (1, D)     f32   LayerNorm bias
    # output
    y_ref,        # (T*TB, D)  f32
    # scratch
    xg_ref,       # VMEM (T*TB, 8D) f32  precomputed x-gates, both directions
    hcat_ref,     # VMEM (T*TB, 2D) f32  hidden states [fwd | bwd]
    *,
    seq_len: int,
    batch_tile: int,
):
    T, TB = seq_len, batch_tile
    D = x_ref.shape[-1]
    D4 = 4 * D

    # ---- Stage 1: one fused x-gate GEMM for both directions (bf16 MXU, f32 acc) ----
    x_bf = x_ref[...].astype(jnp.bfloat16)
    xg_ref[...] = (
        jnp.dot(x_bf, wih_ref[...], preferred_element_type=jnp.float32)
        + bih_ref[...]
    )

    def half_cell(gates, c):
        """Gate layout [i, f, o, g]; sigmoid(x) == 0.5*tanh(0.5*x) + 0.5 (one EUP push)."""
        sg = 0.5 * jnp.tanh(0.5 * gates[:, : 3 * D]) + 0.5
        i_g = sg[:, :D]
        f_g = sg[:, D:2 * D]
        o_g = sg[:, 2 * D:]
        g_g = jnp.tanh(gates[:, 3 * D:])
        c_new = f_g * c + i_g * g_g
        h_new = o_g * jnp.tanh(c_new)
        return h_new, c_new

    zeros = jnp.zeros((TB, D), jnp.float32)

    # ---- Stage 2: merged fwd/bwd recurrence, two independent chains per step ----
    def body(t, carry):
        hf, cf, hb, cb = carry
        rf = pl.multiple_of(t * TB, TB)              # forward rows for timestep t
        rb = pl.multiple_of((T - 1 - t) * TB, TB)    # backward rows for timestep T-1-t
        # W_hh read from the ref each step (do not pin 64 vregs of RHS live).
        gf = xg_ref[pl.ds(rf, TB), 0:D4] + jnp.dot(
            hf.astype(jnp.bfloat16), whh_f_ref[...],
            preferred_element_type=jnp.float32)
        gb = xg_ref[pl.ds(rb, TB), D4:] + jnp.dot(
            hb.astype(jnp.bfloat16), whh_b_ref[...],
            preferred_element_type=jnp.float32)
        hf, cf = half_cell(gf, cf)
        hb, cb = half_cell(gb, cb)
        hcat_ref[pl.ds(rf, TB), 0:D] = hf
        hcat_ref[pl.ds(rb, TB), D:] = hb
        return hf, cf, hb, cb

    unroll = True if T <= 32 else 4
    lax.fori_loop(0, T, body, (zeros, zeros, zeros, zeros), unroll=unroll)

    # ---- Stage 3: single K=2D projection GEMM + residual + one-pass LayerNorm ----
    proj = (
        jnp.dot(hcat_ref[...].astype(jnp.bfloat16), wproj_ref[...],
                preferred_element_type=jnp.float32)
        + bproj_ref[...]
    )
    resid = proj + x_ref[...]
    mu = jnp.mean(resid, axis=-1, keepdims=True)
    ms = jnp.mean(resid * resid, axis=-1, keepdims=True)
    var = ms - mu * mu
    y = (resid - mu) * lax.rsqrt(var + 1e-5)
    y_ref[...] = (y * gamma_ref[...] + beta_ref[...]).astype(y_ref.dtype)


# ----------------------------------------------------------------------------
# Parameter prep (one-time, outside the jitted call path)
# ----------------------------------------------------------------------------
def _reorder_gates(w):
    """Reorder last-dim gate blocks from PyTorch [i,f,g,o] to kernel [i,f,o,g]."""
    d = w.shape[-1] // 4
    return jnp.concatenate([w[..., :2 * d], w[..., 3 * d:], w[..., 2 * d:3 * d]], axis=-1)


def prepare_params(p, mm_dtype=jnp.bfloat16):
    """Gate reorder, direction concat and MXU-dtype casts, done once per model."""
    wih = jnp.concatenate([_reorder_gates(p["wih_f"]), _reorder_gates(p["wih_b"])], axis=-1)
    bih = jnp.concatenate([_reorder_gates(p["b_f"]), _reorder_gates(p["b_b"])], axis=-1)
    return {
        "wih": wih.astype(mm_dtype),                          # (D, 8D)
        "bih": bih.astype(jnp.float32),                       # (1, 8D)
        "whh_f": _reorder_gates(p["whh_f"]).astype(mm_dtype), # (D, 4D)
        "whh_b": _reorder_gates(p["whh_b"]).astype(mm_dtype), # (D, 4D)
        "wproj": p["wproj"].astype(mm_dtype),                 # (2D, D), rows [fwd; bwd]
        "bproj": p["bproj"].astype(jnp.float32),              # (1, D)
        "gamma": p["gamma"].astype(jnp.float32),
        "beta": p["beta"].astype(jnp.float32),
    }


def _vmem_capacity_bytes():
    """Physical VMEM per core (v5e/v6e 128 MiB, v7x 64 MiB); conservative fallback."""
    try:
        return int(pltpu.get_tpu_info().vmem_capacity_bytes)
    except Exception:
        return 64 << 20


# ----------------------------------------------------------------------------
# Wrapper
# ----------------------------------------------------------------------------
@jax.jit
def residual_bilstm_block(x_btd, kp):
    """x_btd: (B, T, D) float32 (batch_first, like the PyTorch module)."""
    B, T, D = x_btd.shape

    # Batch tile: multiple of 8 sublanes when possible; at production size this is
    # what gets sharded across TensorCores (v7x) and double-buffered by the pipeline.
    TB = 8 if B % 8 == 0 else B
    nb = B // TB

    # Per-tile time-major slab: row = t*TB + b_local.
    x_tiles = (
        x_btd.reshape(nb, TB, T, D).transpose(0, 2, 1, 3).reshape(nb, T * TB, D)
    )

    # VMEM budget from actual resident footprint, capped by the queried capacity.
    F32B, BF16B = 4, 2
    resident = (
        2 * 2 * T * TB * D * F32B            # x & y tile blocks, double-buffered
        + D * 8 * D * BF16B                  # wih (both directions fused)
        + 2 * D * 4 * D * BF16B              # whh_f, whh_b
        + 2 * D * D * BF16B                  # wproj
        + (8 * D + 3 * D) * F32B             # biases, gamma, beta
        + T * TB * 8 * D * F32B              # xg scratch
        + T * TB * 2 * D * F32B              # h_cat scratch
    )
    cap = _vmem_capacity_bytes()
    vmem_limit = int(min(cap - (8 << 20), max(32 << 20, 2 * resident + (4 << 20))))

    def full_spec(arr):
        ndim = arr.ndim
        return pl.BlockSpec(arr.shape, lambda i, _n=ndim: (0,) * _n)

    kernel = functools.partial(_residual_bilstm_kernel, seq_len=T, batch_tile=TB)

    y_tiles = pl.pallas_call(
        kernel,
        out_shape=jax.ShapeDtypeStruct((nb, T * TB, D), jnp.float32),
        grid=(nb,),
        in_specs=[
            pl.BlockSpec((None, T * TB, D), lambda i: (i, 0, 0)),   # x tile
            full_spec(kp["wih"]),
            full_spec(kp["bih"]),
            full_spec(kp["whh_f"]),
            full_spec(kp["whh_b"]),
            full_spec(kp["wproj"]),
            full_spec(kp["bproj"]),
            full_spec(kp["gamma"]),
            full_spec(kp["beta"]),
        ],
        out_specs=pl.BlockSpec((None, T * TB, D), lambda i: (i, 0, 0)),
        scratch_shapes=[
            pltpu.VMEM((T * TB, 8 * D), jnp.float32),   # x-gates (bf16 at prod sizes)
            pltpu.VMEM((T * TB, 2 * D), jnp.float32),   # h_cat [fwd | bwd]
        ],
        compiler_params=pltpu.CompilerParams(
            dimension_semantics=("parallel",),
            vmem_limit_bytes=vmem_limit,
        ),
    )(
        x_tiles,
        kp["wih"], kp["bih"], kp["whh_f"], kp["whh_b"],
        kp["wproj"], kp["bproj"], kp["gamma"], kp["beta"],
    )

    return y_tiles.reshape(nb, T, TB, D).transpose(0, 2, 1, 3).reshape(B, T, D)


# ----------------------------------------------------------------------------
# Parameter init (PyTorch-style shapes, gate order i,f,g,o) + pure-JAX reference
# ----------------------------------------------------------------------------
def init_params(key, D):
    k1 = 1.0 / jnp.sqrt(jnp.float32(D))
    keys = jax.random.split(key, 10)

    def u(k_, shape, bound):
        return jax.random.uniform(k_, shape, jnp.float32, -bound, bound)

    wih_f = u(keys[0], (D, 4 * D), k1)
    whh_f = u(keys[1], (D, 4 * D), k1)
    b_f = u(keys[2], (1, 4 * D), k1) + u(keys[3], (1, 4 * D), k1)   # b_ih + b_hh
    wih_b = u(keys[4], (D, 4 * D), k1)
    whh_b = u(keys[5], (D, 4 * D), k1)
    b_b = u(keys[6], (1, 4 * D), k1) + u(keys[7], (1, 4 * D), k1)

    k2 = 1.0 / jnp.sqrt(jnp.float32(2 * D))
    wproj = u(keys[8], (2 * D, D), k2)       # Linear(2D, D) weight, transposed
    bproj = u(keys[9], (1, D), k2)

    return {
        "wih_f": wih_f, "whh_f": whh_f, "b_f": b_f,
        "wih_b": wih_b, "whh_b": whh_b, "b_b": b_b,
        "wproj": wproj, "bproj": bproj,
        "gamma": jnp.ones((1, D), jnp.float32),
        "beta": jnp.zeros((1, D), jnp.float32),
    }


def reference_forward(x, p, mm_dtype=jnp.float32):
    """Pure-JAX reference matching the PyTorch semantics.  mm_dtype controls the
    matmul-operand precision (f32 = exact PyTorch semantics; bf16 = matches the
    kernel's mixed-precision MXU path, with f32 accumulation either way)."""
    B, T, D = x.shape

    def mm(a, b):
        return jnp.dot(a.astype(mm_dtype), b.astype(mm_dtype),
                       preferred_element_type=jnp.float32)

    def run_dir(wih, whh, b, reverse):
        xg = mm(x.reshape(B * T, D), wih).reshape(B, T, 4 * D) + b

        def step(carry, xg_t):
            h, c = carry
            gates = xg_t + mm(h, whh)
            i = jax.nn.sigmoid(gates[:, :D])
            f = jax.nn.sigmoid(gates[:, D:2 * D])
            g = jnp.tanh(gates[:, 2 * D:3 * D])
            o = jax.nn.sigmoid(gates[:, 3 * D:])
            c = f * c + i * g
            h = o * jnp.tanh(c)
            return (h, c), h

        xs = jnp.transpose(xg, (1, 0, 2))
        if reverse:
            xs = xs[::-1]
        _, hs = lax.scan(step, (jnp.zeros((B, D)), jnp.zeros((B, D))), xs)
        if reverse:
            hs = hs[::-1]
        return jnp.transpose(hs, (1, 0, 2))   # (B, T, D)

    hf = run_dir(p["wih_f"], p["whh_f"], p["b_f"], False)
    hb = run_dir(p["wih_b"], p["whh_b"], p["b_b"], True)
    hcat = jnp.concatenate([hf, hb], axis=-1)
    out = mm(hcat.reshape(B * T, 2 * D), p["wproj"]).reshape(B, T, D) + p["bproj"][0]
    resid = out + x
    mu = resid.mean(-1, keepdims=True)
    var = ((resid - mu) ** 2).mean(-1, keepdims=True)
    return (resid - mu) / jnp.sqrt(var + 1e-5) * p["gamma"][0] + p["beta"][0]


# ----------------------------------------------------------------------------
if __name__ == "__main__":
    # Small but TPU-friendly shapes: batch a multiple of 8 sublanes, hidden = 128
    # lanes so every gate slab stays lane-aligned.
    B, T, D = 8, 16, 128
    key = jax.random.PRNGKey(0)
    k_x, k_p = jax.random.split(key)
    x = jax.random.normal(k_x, (B, T, D), jnp.float32)

    raw_params = init_params(k_p, D)
    kernel_params = prepare_params(raw_params)          # one-time, outside jit

    y = jax.block_until_ready(residual_bilstm_block(x, kernel_params))
    assert y.shape == (B, T, D)

    # Tight check: kernel logic vs. a reference using the same bf16 GEMM operands
    # (differences are only f32 accumulation order / transcendental rounding).
    y_ref_bf16 = reference_forward(x, raw_params, jnp.bfloat16)
    err_bf = float(jnp.max(jnp.abs(y - y_ref_bf16)))
    assert err_bf < 2e-3, f"kernel vs bf16-matmul reference: max abs err {err_bf}"

    # Semantics check vs. the full-f32 PyTorch reference; the residual difference is
    # purely the bf16 MXU-operand quantization requested by the perf review.
    y_ref_f32 = reference_forward(x, raw_params, jnp.float32)
    err_32 = float(jnp.max(jnp.abs(y - y_ref_f32)))
    assert err_32 < 1e-1, f"kernel vs f32 reference: max abs err {err_32}"

    print("KERNEL_OK")
</pallas_src>

<mosaic_0001>
module attributes {stable_mosaic.version = 11 : i64} {
  func.func @_residual_bilstm_kernel(%arg0: i32, %arg1: memref<1x128x128xf32, #tpu.memory_space<vmem>>, %arg2: memref<128x1024xbf16, #tpu.memory_space<vmem>>, %arg3: memref<1x1024xf32, #tpu.memory_space<vmem>>, %arg4: memref<128x512xbf16, #tpu.memory_space<vmem>>, %arg5: memref<128x512xbf16, #tpu.memory_space<vmem>>, %arg6: memref<256x128xbf16, #tpu.memory_space<vmem>>, %arg7: memref<1x128xf32, #tpu.memory_space<vmem>>, %arg8: memref<1x128xf32, #tpu.memory_space<vmem>>, %arg9: memref<1x128xf32, #tpu.memory_space<vmem>>, %arg10: memref<1x128x128xf32, #tpu.memory_space<vmem>>, %arg11: memref<128x1024xf32, #tpu.memory_space<vmem>>, %arg12: memref<128x256xf32, #tpu.memory_space<vmem>>) attributes {dimension_semantics = [#tpu.dimension_semantics<parallel>], iteration_bounds = array<i64: 1>, scalar_prefetch = 0 : i64, scratch_operands = 2 : i64, tpu.core_type = #tpu.core_type<tc>, window_params = [{transform_indices = @transform_0, window_bounds = array<i64: 1, 128, 128>}, {pipeline_mode = #tpu.pipeline_mode<synchronous>, transform_indices = @transform_1, window_bounds = array<i64: 128, 1024>}, {pipeline_mode = #tpu.pipeline_mode<synchronous>, transform_indices = @transform_2, window_bounds = array<i64: 1, 1024>}, {pipeline_mode = #tpu.pipeline_mode<synchronous>, transform_indices = @transform_3, window_bounds = array<i64: 128, 512>}, {pipeline_mode = #tpu.pipeline_mode<synchronous>, transform_indices = @transform_4, window_bounds = array<i64: 128, 512>}, {pipeline_mode = #tpu.pipeline_mode<synchronous>, transform_indices = @transform_5, window_bounds = array<i64: 256, 128>}, {pipeline_mode = #tpu.pipeline_mode<synchronous>, transform_indices = @transform_6, window_bounds = array<i64: 1, 128>}, {pipeline_mode = #tpu.pipeline_mode<synchronous>, transform_indices = @transform_7, window_bounds = array<i64: 1, 128>}, {pipeline_mode = #tpu.pipeline_mode<synchronous>, transform_indices = @transform_8, window_bounds = array<i64: 1, 128>}, {transform_indices = @transform_9, window_bounds = array<i64: 1, 128, 128>}]} {
    %c0 = arith.constant 0 : index
    %c0_0 = arith.constant 0 : index
    %c0_1 = arith.constant 0 : index
    %0 = vector.load %arg1[%c0, %c0_0, %c0_1] : memref<1x128x128xf32, #tpu.memory_space<vmem>>, vector<1x128x128xf32>
    %1 = vector.shape_cast %0 : vector<1x128x128xf32> to vector<128x128xf32>
    %2 = arith.truncf %1 : vector<128x128xf32> to vector<128x128xbf16>
    %c0_2 = arith.constant 0 : index
    %c0_3 = arith.constant 0 : index
    %3 = vector.load %arg2[%c0_2, %c0_3] : memref<128x1024xbf16, #tpu.memory_space<vmem>>, vector<128x1024xbf16>
    %cst = arith.constant dense<0.000000e+00> : vector<128x1024xf32>
    %4 = tpu.matmul %2, %3, %cst {dimension_numbers = #tpu.dot_dimension_numbers<[1], [0], [0], [1], [0, 0, 1, 1], [], []>} : vector<128x128xbf16>, vector<128x1024xbf16>, vector<128x1024xf32> -> vector<128x1024xf32>
    %c0_4 = arith.constant 0 : index
    %c0_5 = arith.constant 0 : index
    %5 = vector.load %arg3[%c0_4, %c0_5] : memref<1x1024xf32, #tpu.memory_space<vmem>>, vector<1x1024xf32>
    %6 = vector.broadcast %5 : vector<1x1024xf32> to vector<128x1024xf32>
    %7 = arith.addf %4, %6 : vector<128x1024xf32>
    %c0_6 = arith.constant 0 : index
    %c0_7 = arith.constant 0 : index
    %8 = vector.load %arg11[%c0_6, %c0_7] : memref<128x1024xf32, #tpu.memory_space<vmem>>, vector<128x1024xf32>
    tpu.vector_store %arg11[%c0_6, %c0_7], %7 {strides = array<i32>} : memref<128x1024xf32, #tpu.memory_space<vmem>>, vector<128x1024xf32>,
    %cst_8 = arith.constant 0.000000e+00 : f32
    %9 = vector.broadcast %cst_8 : f32 to vector<8x128xf32>
    %c0_i32 = arith.constant 0 : i32
    %c8_i32 = arith.constant 8 : i32
    %10 = arith.muli %c0_i32, %c8_i32 : i32
    %11 = tpu.assume_multiple %10, 8 : i32
    %c15_i32 = arith.constant 15 : i32
    %12 = arith.subi %c15_i32, %c0_i32 : i32
    %c8_i32_9 = arith.constant 8 : i32
    %13 = arith.muli %12, %c8_i32_9 : i32
    %14 = tpu.assume_multiple %13, 8 : i32
    %15 = arith.index_cast %11 : i32 to index
    %c0_10 = arith.constant 0 : index
    %16 = vector.load %arg11[%15, %c0_10] : memref<128x1024xf32, #tpu.memory_space<vmem>>, vector<8x512xf32>
    %17 = arith.truncf %9 : vector<8x128xf32> to vector<8x128xbf16>
    %c0_11 = arith.constant 0 : index
    %c0_12 = arith.constant 0 : index
    %18 = vector.load %arg4[%c0_11, %c0_12] : memref<128x512xbf16, #tpu.memory_space<vmem>>, vector<128x512xbf16>
    %cst_13 = arith.constant dense<0.000000e+00> : vector<8x512xf32>
    %19 = tpu.matmul %17, %18, %cst_13 {dimension_numbers = #tpu.dot_dimension_numbers<[1], [0], [0], [1], [0, 0, 1, 1], [], []>} : vector<8x128xbf16>, vector<128x512xbf16>, vector<8x512xf32> -> vector<8x512xf32>
    %20 = arith.addf %16, %19 : vector<8x512xf32>
    %21 = arith.index_cast %14 : i32 to index
    %c512 = arith.constant 512 : index
    %22 = vector.load %arg11[%21, %c512] : memref<128x1024xf32, #tpu.memory_space<vmem>>, vector<8x512xf32>
    %23 = arith.truncf %9 : vector<8x128xf32> to vector<8x128xbf16>
    %c0_14 = arith.constant 0 : index
    %c0_15 = arith.constant 0 : index
    %24 = vector.load %arg5[%c0_14, %c0_15] : memref<128x512xbf16, #tpu.memory_space<vmem>>, vector<128x512xbf16>
    %cst_16 = arith.constant dense<0.000000e+00> : vector<8x512xf32>
    %25 = tpu.matmul %23, %24, %cst_16 {dimension_numbers = #tpu.dot_dimension_numbers<[1], [0], [0], [1], [0, 0, 1, 1], [], []>} : vector<8x128xbf16>, vector<128x512xbf16>, vector<8x512xf32> -> vector<8x512xf32>
    %26 = arith.addf %22, %25 : vector<8x512xf32>
    %27 = vector.extract_strided_slice %20 {offsets = [0, 0], sizes = [8, 384], strides = [1, 1]} : vector<8x512xf32> to vector<8x384xf32>
    %cst_17 = arith.constant 5.000000e-01 : f32
    %28 = vector.broadcast %cst_17 : f32 to vector<8x384xf32>
    %29 = arith.mulf %28, %27 : vector<8x384xf32>
    %30 = math.tanh %29 : vector<8x384xf32>
    %cst_18 = arith.constant 5.000000e-01 : f32
    %31 = vector.broadcast %cst_18 : f32 to vector<8x384xf32>
    %32 = arith.mulf %31, %30 : vector<8x384xf32>
    %cst_19 = arith.constant 5.000000e-01 : f32
    %33 = vector.broadcast %cst_19 : f32 to vector<8x384xf32>
    %34 = arith.addf %32, %33 : vector<8x384xf32>
    %35 = vector.extract_strided_slice %34 {offsets = [0, 0], sizes = [8, 128], strides = [1, 1]} : vector<8x384xf32> to vector<8x128xf32>
    %36 = vector.extract_strided_slice %34 {offsets = [0, 128], sizes = [8, 128], strides = [1, 1]} : vector<8x384xf32> to vector<8x128xf32>
    %37 = vector.extract_strided_slice %34 {offsets = [0, 256], sizes = [8, 128], strides = [1, 1]} : vector<8x384xf32> to vector<8x128xf32>
    %38 = vector.extract_strided_slice %20 {offsets = [0, 384], sizes = [8, 128], strides = [1, 1]} : vector<8x512xf32> to vector<8x128xf32>
    %39 = math.tanh %38 : vector<8x128xf32>
    %40 = arith.mulf %36, %9 : vector<8x128xf32>
    %41 = arith.mulf %35, %39 : vector<8x128xf32>
    %42 = arith.addf %40, %41 : vector<8x128xf32>
    %43 = math.tanh %42 : vector<8x128xf32>
    %44 = arith.mulf %37, %43 : vector<8x128xf32>
    %45 = vector.extract_strided_slice %26 {offsets = [0, 0], sizes = [8, 384], strides = [1, 1]} : vector<8x512xf32> to vector<8x384xf32>
    %cst_20 = arith.constant 5.000000e-01 : f32
    %46 = vector.broadcast %cst_20 : f32 to vector<8x384xf32>
    %47 = arith.mulf %46, %45 : vector<8x384xf32>
    %48 = math.tanh %47 : vector<8x384xf32>
    %cst_21 = arith.constant 5.000000e-01 : f32
    %49 = vector.broadcast %cst_21 : f32 to vector<8x384xf32>
    %50 = arith.mulf %49, %48 : vector<8x384xf32>
    %cst_22 = arith.constant 5.000000e-01 : f32
    %51 = vector.broadcast %cst_22 : f32 to vector<8x384xf32>
    %52 = arith.addf %50, %51 : vector<8x384xf32>
    %53 = vector.extract_strided_slice %52 {offsets = [0, 0], sizes = [8, 128], strides = [1, 1]} : vector<8x384xf32> to vector<8x128xf32>
    %54 = vector.extract_strided_slice %52 {offsets = [0, 128], sizes = [8, 128], strides = [1, 1]} : vector<8x384xf32> to vector<8x128xf32>
    %55 = vector.extract_strided_slice %52 {offsets = [0, 256], sizes = [8, 128], strides = [1, 1]} : vector<8x384xf32> to vector<8x128xf32>
    %56 = vector.extract_strided_slice %26 {offsets = [0, 384], sizes = [8, 128], strides = [1, 1]} : vector<8x512xf32> to vector<8x128xf32>
    %57 = math.tanh %56 : vector<8x128xf32>
    %58 = arith.mulf %54, %9 : vector<8x128xf32>
    %59 = arith.mulf %53, %57 : vector<8x128xf32>
    %60 = arith.addf %58, %59 : vector<8x128xf32>
    %61 = math.tanh %60 : vector<8x128xf32>
    %62 = arith.mulf %55, %61 : vector<8x128xf32>
    %63 = arith.index_cast %11 : i32 to index
    %c0_23 = arith.constant 0 : index
    %64 = vector.load %arg12[%63, %c0_23] : memref<128x256xf32, #tpu.memory_space<vmem>>, vector<8x128xf32>
    tpu.vector_store %arg12[%63, %c0_23], %44 {strides = array<i32>} : memref<128x256xf32, #tpu.memory_space<vmem>>, vector<8x128xf32>,
    %65 = arith.index_cast %14 : i32 to index
    %c128 = arith.constant 128 : index
    %66 = vector.load %arg12[%65, %c128] : memref<128x256xf32, #tpu.memory_space<vmem>>, vector<8x128xf32>
    tpu.vector_store %arg12[%65, %c128], %62 {strides = array<i32>} : memref<128x256xf32, #tpu.memory_space<vmem>>, vector<8x128xf32>,
    %c1_i32 = arith.constant 1 : i32
    %c8_i32_24 = arith.constant 8 : i32
    %67 = arith.muli %c1_i32, %c8_i32_24 : i32
    %68 = tpu.assume_multiple %67, 8 : i32
    %c15_i32_25 = arith.constant 15 : i32
    %69 = arith.subi %c15_i32_25, %c1_i32 : i32
    %c8_i32_26 = arith.constant 8 : i32
    %70 = arith.muli %69, %c8_i32_26 : i32
    %71 = tpu.assume_multiple %70, 8 : i32
    %72 = arith.index_cast %68 : i32 to index
    %c0_27 = arith.constant 0 : index
    %73 = vector.load %arg11[%72, %c0_27] : memref<128x1024xf32, #tpu.memory_space<vmem>>, vector<8x512xf32>
    %74 = arith.truncf %44 : vector<8x128xf32> to vector<8x128xbf16>
    %c0_28 = arith.constant 0 : index
    %c0_29 = arith.constant 0 : index
    %75 = vector.load %arg4[%c0_28, %c0_29] : memref<128x512xbf16, #tpu.memory_space<vmem>>, vector<128x512xbf16>
    %cst_30 = arith.constant dense<0.000000e+00> : vector<8x512xf32>
    %76 = tpu.matmul %74, %75, %cst_30 {dimension_numbers = #tpu.dot_dimension_numbers<[1], [0], [0], [1], [0, 0, 1, 1], [], []>} : vector<8x128xbf16>, vector<128x512xbf16>, vector<8x512xf32> -> vector<8x512xf32>
    %77 = arith.addf %73, %76 : vector<8x512xf32>
    %78 = arith.index_cast %71 : i32 to index
    %c512_31 = arith.constant 512 : index
    %79 = vector.load %arg11[%78, %c512_31] : memref<128x1024xf32, #tpu.memory_space<vmem>>, vector<8x512xf32>
    %80 = arith.truncf %62 : vector<8x128xf32> to vector<8x128xbf16>
    %c0_32 = arith.constant 0 : index
    %c0_33 = arith.constant 0 : index
    %81 = vector.load %arg5[%c0_32, %c0_33] : memref<128x512xbf16, #tpu.memory_space<vmem>>, vector<128x512xbf16>
    %cst_34 = arith.constant dense<0.000000e+00> : vector<8x512xf32>
    %82 = tpu.matmul %80, %81, %cst_34 {dimension_numbers = #tpu.dot_dimension_numbers<[1], [0], [0], [1], [0, 0, 1, 1], [], []>} : vector<8x128xbf16>, vector<128x512xbf16>, vector<8x512xf32> -> vector<8x512xf32>
    %83 = arith.addf %79, %82 : vector<8x512xf32>
    %84 = vector.extract_strided_slice %77 {offsets = [0, 0], sizes = [8, 384], strides = [1, 1]} : vector<8x512xf32> to vector<8x384xf32>
    %cst_35 = arith.constant 5.000000e-01 : f32
    %85 = vector.broadcast %cst_35 : f32 to vector<8x384xf32>
    %86 = arith.mulf %85, %84 : vector<8x384xf32>
    %87 = math.tanh %86 : vector<8x384xf32>
    %cst_36 = arith.constant 5.000000e-01 : f32
    %88 = vector.broadcast %cst_36 : f32 to vector<8x384xf32>
    %89 = arith.mulf %88, %87 : vector<8x384xf32>
    %cst_37 = arith.constant 5.000000e-01 : f32
    %90 = vector.broadcast %cst_37 : f32 to vector<8x384xf32>
    %91 = arith.addf %89, %90 : vector<8x384xf32>
    %92 = vector.extract_strided_slice %91 {offsets = [0, 0], sizes = [8, 128], strides = [1, 1]} : vector<8x384xf32> to vector<8x128xf32>
    %93 = vector.extract_strided_slice %91 {offsets = [0, 128], sizes = [8, 128], strides = [1, 1]} : vector<8x384xf32> to vector<8x128xf32>
    %94 = vector.extract_strided_slice %91 {offsets = [0, 256], sizes = [8, 128], strides = [1, 1]} : vector<8x384xf32> to vector<8x128xf32>
    %95 = vector.extract_strided_slice %77 {offsets = [0, 384], sizes = [8, 128], strides = [1, 1]} : vector<8x512xf32> to vector<8x128xf32>
    %96 = math.tanh %95 : vector<8x128xf32>
    %97 = arith.mulf %93, %42 : vector<8x128xf32>
    %98 = arith.mulf %92, %96 : vector<8x128xf32>
    %99 = arith.addf %97, %98 : vector<8x128xf32>
    %100 = math.tanh %99 : vector<8x128xf32>
    %101 = arith.mulf %94, %100 : vector<8x128xf32>
    %102 = vector.extract_strided_slice %83 {offsets = [0, 0], sizes = [8, 384], strides = [1, 1]} : vector<8x512xf32> to vector<8x384xf32>
    %cst_38 = arith.constant 5.000000e-01 : f32
    %103 = vector.broadcast %cst_38 : f32 to vector<8x384xf32>
    %104 = arith.mulf %103, %102 : vector<8x384xf32>
    %105 = math.tanh %104 : vector<8x384xf32>
    %cst_39 = arith.constant 5.000000e-01 : f32
    %106 = vector.broadcast %cst_39 : f32 to vector<8x384xf32>
    %107 = arith.mulf %106, %105 : vector<8x384xf32>
    %cst_40 = arith.constant 5.000000e-01 : f32
    %108 = vector.broadcast %cst_40 : f32 to vector<8x384xf32>
    %109 = arith.addf %107, %108 : vector<8x384xf32>
    %110 = vector.extract_strided_slice %109 {offsets = [0, 0], sizes = [8, 128], strides = [1, 1]} : vector<8x384xf32> to vector<8x128xf32>
    %111 = vector.extract_strided_slice %109 {offsets = [0, 128], sizes = [8, 128], strides = [1, 1]} : vector<8x384xf32> to vector<8x128xf32>
    %112 = vector.extract_strided_slice %109 {offsets = [0, 256], sizes = [8, 128], strides = [1, 1]} : vector<8x384xf32> to vector<8x128xf32>
    %113 = vector.extract_strided_slice %83 {offsets = [0, 384], sizes = [8, 128], strides = [1, 1]} : vector<8x512xf32> to vector<8x128xf32>
    %114 = math.tanh %113 : vector<8x128xf32>
    %115 = arith.mulf %111, %60 : vector<8x128xf32>
    %116 = arith.mulf %110, %114 : vector<8x128xf32>
    %117 = arith.addf %115, %116 : vector<8x128xf32>
    %118 = math.tanh %117 : vector<8x128xf32>
    %119 = arith.mulf %112, %118 : vector<8x128xf32>
    %120 = arith.index_cast %68 : i32 to index
    %c0_41 = arith.constant 0 : index
    %121 = vector.load %arg12[%120, %c0_41] : memref<128x256xf32, #tpu.memory_space<vmem>>, vector<8x128xf32>
    tpu.vector_store %arg12[%120, %c0_41], %101 {strides = array<i32>} : memref<128x256xf32, #tpu.memory_space<vmem>>, vector<8x128xf32>,
    %122 = arith.index_cast %71 : i32 to index
    %c128_42 = arith.constant 128 : index
    %123 = vector.load %arg12[%122, %c128_42] : memref<128x256xf32, #tpu.memory_space<vmem>>, vector<8x128xf32>
    tpu.vector_store %arg12[%122, %c128_42], %119 {strides = array<i32>} : memref<128x256xf32, #tpu.memory_space<vmem>>, vector<8x128xf32>,
    %c2_i32 = arith.constant 2 : i32
    %c8_i32_43 = arith.constant 8 : i32
    %124 = arith.muli %c2_i32, %c8_i32_43 : i32
    %125 = tpu.assume_multiple %124, 8 : i32
    %c15_i32_44 = arith.constant 15 : i32
    %126 = arith.subi %c15_i32_44, %c2_i32 : i32
    %c8_i32_45 = arith.constant 8 : i32
    %127 = arith.muli %126, %c8_i32_45 : i32
    %128 = tpu.assume_multiple %127, 8 : i32
    %129 = arith.index_cast %125 : i32 to index
    %c0_46 = arith.constant 0 : index
    %130 = vector.load %arg11[%129, %c0_46] : memref<128x1024xf32, #tpu.memory_space<vmem>>, vector<8x512xf32>
    %131 = arith.truncf %101 : vector<8x128xf32> to vector<8x128xbf16>
    %c0_47 = arith.constant 0 : index
    %c0_48 = arith.constant 0 : index
    %132 = vector.load %arg4[%c0_47, %c0_48] : memref<128x512xbf16, #tpu.memory_space<vmem>>, vector<128x512xbf16>
    %cst_49 = arith.constant dense<0.000000e+00> : vector<8x512xf32>
    %133 = tpu.matmul %131, %132, %cst_49 {dimension_numbers = #tpu.dot_dimension_numbers<[1], [0], [0], [1], [0, 0, 1, 1], [], []>} : vector<8x128xbf16>, vector<128x512xbf16>, vector<8x512xf32> -> vector<8x512xf32>
    %134 = arith.addf %130, %133 : vector<8x512xf32>
    %135 = arith.index_cast %128 : i32 to index
    %c512_50 = arith.constant 512 : index
    %136 = vector.load %arg11[%135, %c512_50] : memref<128x1024xf32, #tpu.memory_space<vmem>>, vector<8x512xf32>
    %137 = arith.truncf %119 : vector<8x128xf32> to vector<8x128xbf16>
    %c0_51 = arith.constant 0 : index
    %c0_52 = arith.constant 0 : index
    %138 = vector.load %arg5[%c0_51, %c0_52] : memref<128x512xbf16, #tpu.memory_space<vmem>>, vector<128x512xbf16>
    %cst_53 = arith.constant dense<0.000000e+00> : vector<8x512xf32>
    %139 = tpu.matmul %137, %138, %cst_53 {dimension_numbers = #tpu.dot_dimension_numbers<[1], [0], [0], [1], [0, 0, 1, 1], [], []>} : vector<8x128xbf16>, vector<128x512xbf16>, vector<8x512xf32> -> vector<8x512xf32>
    %140 = arith.addf %136, %139 : vector<8x512xf32>
    %141 = vector.extract_strided_slice %134 {offsets = [0, 0], sizes = [8, 384], strides = [1, 1]} : vector<8x512xf32> to vector<8x384xf32>
    %cst_54 = arith.constant 5.000000e-01 : f32
    %142 = vector.broadcast %cst_54 : f32 to vector<8x384xf32>
    %143 = arith.mulf %142, %141 : vector<8x384xf32>
    %144 = math.tanh %143 : vector<8x384xf32>
    %cst_55 = arith.constant 5.000000e-01 : f32
    %145 = vector.broadcast %cst_55 : f32 to vector<8x384xf32>
    %146 = arith.mulf %145, %144 : vector<8x384xf32>
    %cst_56 = arith.constant 5.000000e-01 : f32
    %147 = vector.broadcast %cst_56 : f32 to vector<8x384xf32>
    %148 = arith.addf %146, %147 : vector<8x384xf32>
    %149 = vector.extract_strided_slice %148 {offsets = [0, 0], sizes = [8, 128], strides = [1, 1]} : vector<8x384xf32> to vector<8x128xf32>
    %150 = vector.extract_strided_slice %148 {offsets = [0, 128], sizes = [8, 128], strides = [1, 1]} : vector<8x384xf32> to vector<8x128xf32>
    %151 = vector.extract_strided_slice %148 {offsets = [0, 256], sizes = [8, 128], strides = [1, 1]} : vector<8x384xf32> to vector<8x128xf32>
    %152 = vector.extract_strided_slice %134 {offsets = [0, 384], sizes = [8, 128], strides = [1, 1]} : vector<8x512xf32> to vector<8x128xf32>
    %153 = math.tanh %152 : vector<8x128xf32>
    %154 = arith.mulf %150, %99 : vector<8x128xf32>
    %155 = arith.mulf %149, %153 : vector<8x128xf32>
    %156 = arith.addf %154, %155 : vector<8x128xf32>
    %157 = math.tanh %156 : vector<8x128xf32>
    %158 = arith.mulf %151, %157 : vector<8x128xf32>
    %159 = vector.extract_strided_slice %140 {offsets = [0, 0], sizes = [8, 384], strides = [1, 1]} : vector<8x512xf32> to vector<8x384xf32>
    %cst_57 = arith.constant 5.000000e-01 : f32
    %160 = vector.broadcast %cst_57 : f32 to vector<8x384xf32>
    %161 = arith.mulf %160, %159 : vector<8x384xf32>
    %162 = math.tanh %161 : vector<8x384xf32>
    %cst_58 = arith.constant 5.000000e-01 : f32
    %163 = vector.broadcast %cst_58 : f32 to vector<8x384xf32>
    %164 = arith.mulf %163, %162 : vector<8x384xf32>
    %cst_59 = arith.constant 5.000000e-01 : f32
    %165 = vector.broadcast %cst_59 : f32 to vector<8x384xf32>
    %166 = arith.addf %164, %165 : vector<8x384xf32>
    %167 = vector.extract_strided_slice %166 {offsets = [0, 0], sizes = [8, 128], strides = [1, 1]} : vector<8x384xf32> to vector<8x128xf32>
    %168 = vector.extract_strided_slice %166 {offsets = [0, 128], sizes = [8, 128], strides = [1, 1]} : vector<8x384xf32> to vector<8x128xf32>
    %169 = vector.extract_strided_slice %166 {offsets = [0, 256], sizes = [8, 128], strides = [1, 1]} : vector<8x384xf32> to vector<8x128xf32>
    %170 = vector.extract_strided_slice %140 {offsets = [0, 384], sizes = [8, 128], strides = [1, 1]} : vector<8x512xf32> to vector<8x128xf32>
    %171 = math.tanh %170 : vector<8x128xf32>
    %172 = arith.mulf %168, %117 : vector<8x128xf32>
    %173 = arith.mulf %167, %171 : vector<8x128xf32>
    %174 = arith.addf %172, %173 : vector<8x128xf32>
    %175 = math.tanh %174 : vector<8x128xf32>
    %176 = arith.mulf %169, %175 : vector<8x128xf32>
    %177 = arith.index_cast %125 : i32 to index
    %c0_60 = arith.constant 0 : index
    %178 = vector.load %arg12[%177, %c0_60] : memref<128x256xf32, #tpu.memory_space<vmem>>, vector<8x128xf32>
    tpu.vector_store %arg12[%177, %c0_60], %158 {strides = array<i32>} : memref<128x256xf32, #tpu.memory_space<vmem>>, vector<8x128xf32>,
    %179 = arith.index_cast %128 : i32 to index
    %c128_61 = arith.constant 128 : index
    %180 = vector.load %arg12[%179, %c128_61] : memref<128x256xf32, #tpu.memory_space<vmem>>, vector<8x128xf32>
    tpu.vector_store %arg12[%179, %c128_61], %176 {strides = array<i32>} : memref<128x256xf32, #tpu.memory_space<vmem>>, vector<8x128xf32>,
    %c3_i32 = arith.constant 3 : i32
    %c8_i32_62 = arith.constant 8 : i32
    %181 = arith.muli %c3_i32, %c8_i32_62 : i32
    %182 = tpu.assume_multiple %181, 8 : i32
    %c15_i32_63 = arith.constant 15 : i32
    %183 = arith.subi %c15_i32_63, %c3_i32 : i32
    %c8_i32_64 = arith.constant 8 : i32
    %184 = arith.muli %183, %c8_i32_64 : i32
    %185 = tpu.assume_multiple %184, 8 : i32
    %186 = arith.index_cast %182 : i32 to index
    %c0_65 = arith.constant 0 : index
    %187 = vector.load %arg11[%186, %c0_65] : memref<128x1024xf32, #tpu.memory_space<vmem>>, vector<8x512xf32>
    %188 = arith.truncf %158 : vector<8x128xf32> to vector<8x128xbf16>
    %c0_66 = arith.constant 0 : index
    %c0_67 = arith.constant 0 : index
    %189 = vector.load %arg4[%c0_66, %c0_67] : memref<128x512xbf16, #tpu.memory_space<vmem>>, vector<128x512xbf16>
    %cst_68 = arith.constant dense<0.000000e+00> : vector<8x512xf32>
    %190 = tpu.matmul %188, %189, %cst_68 {dimension_numbers = #tpu.dot_dimension_numbers<[1], [0], [0], [1], [0, 0, 1, 1], [], []>} : vector<8x128xbf16>, vector<128x512xbf16>, vector<8x512xf32> -> vector<8x512xf32>
    %191 = arith.addf %187, %190 : vector<8x512xf32>
    %192 = arith.index_cast %185 : i32 to index
    %c512_69 = arith.constant 512 : index
    %193 = vector.load %arg11[%192, %c512_69] : memref<128x1024xf32, #tpu.memory_space<vmem>>, vector<8x512xf32>
    %194 = arith.truncf %176 : vector<8x128xf32> to vector<8x128xbf16>
    %c0_70 = arith.constant 0 : index
    %c0_71 = arith.constant 0 : index
    %195 = vector.load %arg5[%c0_70, %c0_71] : memref<128x512xbf16, #tpu.memory_space<vmem>>, vector<128x512xbf16>
    %cst_72 = arith.constant dense<0.000000e+00> : vector<8x512xf32>
    %196 = tpu.matmul %194, %195, %cst_72 {dimension_numbers = #tpu.dot_dimension_numbers<[1], [0], [0], [1], [0, 0, 1, 1], [], []>} : vector<8x128xbf16>, vector<128x512xbf16>, vector<8x512xf32> -> vector<8x512xf32>
    %197 = arith.addf %193, %196 : vector<8x512xf32>
    %198 = vector.extract_strided_slice %191 {offsets = [0, 0], sizes = [8, 384], strides = [1, 1]} : vector<8x512xf32> to vector<8x384xf32>
    %cst_73 = arith.constant 5.000000e-01 : f32
    %199 = vector.broadcast %cst_73 : f32 to vector<8x384xf32>
    %200 = arith.mulf %199, %198 : vector<8x384xf32>
    %201 = math.tanh %200 : vector<8x384xf32>
    %cst_74 = arith.constant 5.000000e-01 : f32
    %202 = vector.broadcast %cst_74 : f32 to vector<8x384xf32>
    %203 = arith.mulf %202, %201 : vector<8x384xf32>
    %cst_75 = arith.constant 5.000000e-01 : f32
    %204 = vector.broadcast %cst_75 : f32 to vector<8x384xf32>
    %205 = arith.addf %203, %204 : vector<8x384xf32>
    %206 = vector.extract_strided_slice %205 {offsets = [0, 0], sizes = [8, 128], strides = [1, 1]} : vector<8x384xf32> to vector<8x128xf32>
    %207 = vector.extract_strided_slice %205 {offsets = [0, 128], sizes = [8, 128], strides = [1, 1]} : vector<8x384xf32> to vector<8x128xf32>
    %208 = vector.extract_strided_slice %205 {offsets = [0, 256], sizes = [8, 128], strides = [1, 1]} : vector<8x384xf32> to vector<8x128xf32>
    %209 = vector.extract_strided_slice %191 {offsets = [0, 384], sizes = [8, 128], strides = [1, 1]} : vector<8x512xf32> to vector<8x128xf32>
    %210 = math.tanh %209 : vector<8x128xf32>
    %211 = arith.mulf %207, %156 : vector<8x128xf32>
    %212 = arith.mulf %206, %210 : vector<8x128xf32>
    %213 = arith.addf %211, %212 : vector<8x128xf32>
    %214 = math.tanh %213 : vector<8x128xf32>
    %215 = arith.mulf %208, %214 : vector<8x128xf32>
    %216 = vector.extract_strided_slice %197 {offsets = [0, 0], sizes = [8, 384], strides = [1, 1]} : vector<8x512xf32> to vector<8x384xf32>
    %cst_76 = arith.constant 5.000000e-01 : f32
    %217 = vector.broadcast %cst_76 : f32 to vector<8x384xf32>
    %218 = arith.mulf %217, %216 : vector<8x384xf32>
    %219 = math.tanh %218 : vector<8x384xf32>
    %cst_77 = arith.constant 5.000000e-01 : f32
    %220 = vector.broadcast %cst_77 : f32 to vector<8x384xf32>
    %221 = arith.mulf %220, %219 : vector<8x384xf32>
    %cst_78 = arith.constant 5.000000e-01 : f32
    %222 = vector.broadcast %cst_78 : f32 to vector<8x384xf32>
    %223 = arith.addf %221, %222 : vector<8x384xf32>
    %224 = vector.extract_strided_slice %223 {offsets = [0, 0], sizes = [8, 128], strides = [1, 1]} : vector<8x384xf32> to vector<8x128xf32>
    %225 = vector.extract_strided_slice %223 {offsets = [0, 128], sizes = [8, 128], strides = [1, 1]} : vector<8x384xf32> to vector<8x128xf32>
    %226 = vector.extract_strided_slice %223 {offsets = [0, 256], sizes = [8, 128], strides = [1, 1]} : vector<8x384xf32> to vector<8x128xf32>
    %227 = vector.extract_strided_slice %197 {offsets = [0, 384], sizes = [8, 128], strides = [1, 1]} : vector<8x512xf32> to vector<8x128xf32>
    %228 = math.tanh %227 : vector<8x128xf32>
    %229 = arith.mulf %225, %174 : vector<8x128xf32>
    %230 = arith.mulf %224, %228 : vector<8x128xf32>
    %231 = arith.addf %229, %230 : vector<8x128xf32>
    %232 = math.tanh %231 : vector<8x128xf32>
    %233 = arith.mulf %226, %232 : vector<8x128xf32>
    %234 = arith.index_cast %182 : i32 to index
    %c0_79 = arith.constant 0 : index
    %235 = vector.load %arg12[%234, %c0_79] : memref<128x256xf32, #tpu.memory_space<vmem>>, vector<8x128xf32>
    tpu.vector_store %arg12[%234, %c0_79], %215 {strides = array<i32>} : memref<128x256xf32, #tpu.memory_space<vmem>>, vector<8x128xf32>,
    %236 = arith.index_cast %185 : i32 to index
    %c128_80 = arith.constant 128 : index
    %237 = vector.load %arg12[%236, %c128_80] : memref<128x256xf32, #tpu.memory_space<vmem>>, vector<8x128xf32>
    tpu.vector_store %arg12[%236, %c128_80], %233 {strides = array<i32>} : memref<128x256xf32, #tpu.memory_space<vmem>>, vector<8x128xf32>,
    %c4_i32 = arith.constant 4 : i32
    %c8_i32_81 = arith.constant 8 : i32
    %238 = arith.muli %c4_i32, %c8_i32_81 : i32
    %239 = tpu.assume_multiple %238, 8 : i32
    %c15_i32_82 = arith.constant 15 : i32
    %240 = arith.subi %c15_i32_82, %c4_i32 : i32
    %c8_i32_83 = arith.constant 8 : i32
    %241 = arith.muli %240, %c8_i32_83 : i32
    %242 = tpu.assume_multiple %241, 8 : i32
    %243 = arith.index_cast %239 : i32 to index
    %c0_84 = arith.constant 0 : index
    %244 = vector.load %arg11[%243, %c0_84] : memref<128x1024xf32, #tpu.memory_space<vmem>>, vector<8x512xf32>
    %245 = arith.truncf %215 : vector<8x128xf32> to vector<8x128xbf16>
    %c0_85 = arith.constant 0 : index
    %c0_86 = arith.constant 0 : index
    %246 = vector.load %arg4[%c0_85, %c0_86] : memref<128x512xbf16, #tpu.memory_space<vmem>>, vector<128x512xbf16>
    %cst_87 = arith.constant dense<0.000000e+00> : vector<8x512xf32>
    %247 = tpu.matmul %245, %246, %cst_87 {dimension_numbers = #tpu.dot_dimension_numbers<[1], [0], [0], [1], [0, 0, 1, 1], [], []>} : vector<8x128xbf16>, vector<128x512xbf16>, vector<8x512xf32> -> vector<8x512xf32>
    %248 = arith.addf %244, %247 : vector<8x512xf32>
    %249 = arith.index_cast %242 : i32 to index
    %c512_88 = arith.constant 512 : index
    %250 = vector.load %arg11[%249, %c512_88] : memref<128x1024xf32, #tpu.memory_space<vmem>>, vector<8x512xf32>
    %251 = arith.truncf %233 : vector<8x128xf32> to vector<8x128xbf16>
    %c0_89 = arith.constant 0 : index
    %c0_90 = arith.constant 0 : index
    %252 = vector.load %arg5[%c0_89, %c0_90] : memref<128x512xbf16, #tpu.memory_space<vmem>>, vector<128x512xbf16>
    %cst_91 = arith.constant dense<0.000000e+00> : vector<8x512xf32>
    %253 = tpu.matmul %251, %252, %cst_91 {dimension_numbers = #tpu.dot_dimension_numbers<[1], [0], [0], [1], [0, 0, 1, 1], [], []>} : vector<8x128xbf16>, vector<128x512xbf16>, vector<8x512xf32> -> vector<8x512xf32>
    %254 = arith.addf %250, %253 : vector<8x512xf32>
    %255 = vector.extract_strided_slice %248 {offsets = [0, 0], sizes = [8, 384], strides = [1, 1]} : vector<8x512xf32> to vector<8x384xf32>
    %cst_92 = arith.constant 5.000000e-01 : f32
    %256 = vector.broadcast %cst_92 : f32 to vector<8x384xf32>
    %257 = arith.mulf %256, %255 : vector<8x384xf32>
    %258 = math.tanh %257 : vector<8x384xf32>
    %cst_93 = arith.constant 5.000000e-01 : f32
    %259 = vector.broadcast %cst_93 : f32 to vector<8x384xf32>
    %260 = arith.mulf %259, %258 : vector<8x384xf32>
    %cst_94 = arith.constant 5.000000e-01 : f32
    %261 = vector.broadcast %cst_94 : f32 to vector<8x384xf32>
    %262 = arith.addf %260, %261 : vector<8x384xf32>
    %263 = vector.extract_strided_slice %262 {offsets = [0, 0], sizes = [8, 128], strides = [1, 1]} : vector<8x384xf32> to vector<8x128xf32>
    %264 = vector.extract_strided_slice %262 {offsets = [0, 128], sizes = [8, 128], strides = [1, 1]} : vector<8x384xf32> to vector<8x128xf32>
    %265 = vector.extract_strided_slice %262 {offsets = [0, 256], sizes = [8, 128], strides = [1, 1]} : vector<8x384xf32> to vector<8x128xf32>
    %266 = vector.extract_strided_slice %248 {offsets = [0, 384], sizes = [8, 128], strides = [1, 1]} : vector<8x512xf32> to vector<8x128xf32>
    %267 = math.tanh %266 : vector<8x128xf32>
    %268 = arith.mulf %264, %213 : vector<8x128xf32>
    %269 = arith.mulf %263, %267 : vector<8x128xf32>
    %270 = arith.addf %268, %269 : vector<8x128xf32>
    %271 = math.tanh %270 : vector<8x128xf32>
    %272 = arith.mulf %265, %271 : vector<8x128xf32>
    %273 = vector.extract_strided_slice %254 {offsets = [0, 0], sizes = [8, 384], strides = [1, 1]} : vector<8x512xf32> to vector<8x384xf32>
    %cst_95 = arith.constant 5.000000e-01 : f32
    %274 = vector.broadcast %cst_95 : f32 to vector<8x384xf32>
    %275 = arith.mulf %274, %273 : vector<8x384xf32>
    %276 = math.tanh %275 : vector<8x384xf32>
    %cst_96 = arith.constant 5.000000e-01 : f32
    %277 = vector.broadcast %cst_96 : f32 to vector<8x384xf32>
    %278 = arith.mulf %277, %276 : vector<8x384xf32>
    %cst_97 = arith.constant 5.000000e-01 : f32
    %279 = vector.broadcast %cst_97 : f32 to vector<8x384xf32>
    %280 = arith.addf %278, %279 : vector<8x384xf32>
    %281 = vector.extract_strided_slice %280 {offsets = [0, 0], sizes = [8, 128], strides = [1, 1]} : vector<8x384xf32> to vector<8x128xf32>
    %282 = vector.extract_strided_slice %280 {offsets = [0, 128], sizes = [8, 128], strides = [1, 1]} : vector<8x384xf32> to vector<8x128xf32>
    %283 = vector.extract_strided_slice %280 {offsets = [0, 256], sizes = [8, 128], strides = [1, 1]} : vector<8x384xf32> to vector<8x128xf32>
    %284 = vector.extract_strided_slice %254 {offsets = [0, 384], sizes = [8, 128], strides = [1, 1]} : vector<8x512xf32> to vector<8x128xf32>
    %285 = math.tanh %284 : vector<8x128xf32>
    %286 = arith.mulf %282, %231 : vector<8x128xf32>
    %287 = arith.mulf %281, %285 : vector<8x128xf32>
    %288 = arith.addf %286, %287 : vector<8x128xf32>
    %289 = math.tanh %288 : vector<8x128xf32>
    %290 = arith.mulf %283, %289 : vector<8x128xf32>
    %291 = arith.index_cast %239 : i32 to index
    %c0_98 = arith.constant 0 : index
    %292 = vector.load %arg12[%291, %c0_98] : memref<128x256xf32, #tpu.memory_space<vmem>>, vector<8x128xf32>
    tpu.vector_store %arg12[%291, %c0_98], %272 {strides = array<i32>} : memref<128x256xf32, #tpu.memory_space<vmem>>, vector<8x128xf32>,
    %293 = arith.index_cast %242 : i32 to index
    %c128_99 = arith.constant 128 : index
    %294 = vector.load %arg12[%293, %c128_99] : memref<128x256xf32, #tpu.memory_space<vmem>>, vector<8x128xf32>
    tpu.vector_store %arg12[%293, %c128_99], %290 {strides = array<i32>} : memref<128x256xf32, #tpu.memory_space<vmem>>, vector<8x128xf32>,
    %c5_i32 = arith.constant 5 : i32
    %c8_i32_100 = arith.constant 8 : i32
    %295 = arith.muli %c5_i32, %c8_i32_100 : i32
    %296 = tpu.assume_multiple %295, 8 : i32
    %c15_i32_101 = arith.constant 15 : i32
    %297 = arith.subi %c15_i32_101, %c5_i32 : i32
    %c8_i32_102 = arith.constant 8 : i32
    %298 = arith.muli %297, %c8_i32_102 : i32
    %299 = tpu.assume_multiple %298, 8 : i32
    %300 = arith.index_cast %296 : i32 to index
    %c0_103 = arith.constant 0 : index
    %301 = vector.load %arg11[%300, %c0_103] : memref<128x1024xf32, #tpu.memory_space<vmem>>, vector<8x512xf32>
    %302 = arith.truncf %272 : vector<8x128xf32> to vector<8x128xbf16>
    %c0_104 = arith.constant 0 : index
    %c0_105 = arith.constant 0 : index
    %303 = vector.load %arg4[%c0_104, %c0_105] : memref<128x512xbf16, #tpu.memory_space<vmem>>, vector<128x512xbf16>
    %cst_106 = arith.constant dense<0.000000e+00> : vector<8x512xf32>
    %304 = tpu.matmul %302, %303, %cst_106 {dimension_numbers = #tpu.dot_dimension_numbers<[1], [0], [0], [1], [0, 0, 1, 1], [], []>} : vector<8x128xbf16>, vector<128x512xbf16>, vector<8x512xf32> -> vector<8x512xf32>
    %305 = arith.addf %301, %304 : vector<8x512xf32>
    %306 = arith.index_cast %299 : i32 to index
    %c512_107 = arith.constant 512 : index
    %307 = vector.load %arg11[%306, %c512_107] : memref<128x1024xf32, #tpu.memory_space<vmem>>, vector<8x512xf32>
    %308 = arith.truncf %290 : vector<8x128xf32> to vector<8x128xbf16>
    %c0_108 = arith.constant 0 : index
    %c0_109 = arith.constant 0 : index
    %309 = vector.load %arg5[%c0_108, %c0_109] : memref<128x512xbf16, #tpu.memory_space<vmem>>, vector<128x512xbf16>
    %cst_110 = arith.constant dense<0.000000e+00> : vector<8x512xf32>
    %310 = tpu.matmul %308, %309, %cst_110 {dimension_numbers = #tpu.dot_dimension_numbers<[1], [0], [0], [1], [0, 0, 1, 1], [], []>} : vector<8x128xbf16>, vector<128x512xbf16>, vector<8x512xf32> -> vector<8x512xf32>
    %311 = arith.addf %307, %310 : vector<8x512xf32>
    %312 = vector.extract_strided_slice %305 {offsets = [0, 0], sizes = [8, 384], strides = [1, 1]} : vector<8x512xf32> to vector<8x384xf32>
    %cst_111 = arith.constant 5.000000e-01 : f32
    %313 = vector.broadcast %cst_111 : f32 to vector<8x384xf32>
    %314 = arith.mulf %313, %312 : vector<8x384xf32>
    %315 = math.tanh %314 : vector<8x384xf32>
    %cst_112 = arith.constant 5.000000e-01 : f32
    %316 = vector.broadcast %cst_112 : f32 to vector<8x384xf32>
    %317 = arith.mulf %316, %315 : vector<8x384xf32>
    %cst_113 = arith.constant 5.000000e-01 : f32
    %318 = vector.broadcast %cst_113 : f32 to vector<8x384xf32>
    %319 = arith.addf %317, %318 : vector<8x384xf32>
    %320 = vector.extract_strided_slice %319 {offsets = [0, 0], sizes = [8, 128], strides = [1, 1]} : vector<8x384xf32> to vector<8x128xf32>
    %321 = vector.extract_strided_slice %319 {offsets = [0, 128], sizes = [8, 128], strides = [1, 1]} : vector<8x384xf32> to vector<8x128xf32>
    %322 = vector.extract_strided_slice %319 {offsets = [0, 256], sizes = [8, 128], strides = [1, 1]} : vector<8x384xf32> to vector<8x128xf32>
    %323 = vector.extract_strided_slice %305 {offsets = [0, 384], sizes = [8, 128], strides = [1, 1]} : vector<8x512xf32> to vector<8x128xf32>
    %324 = math.tanh %323 : vector<8x128xf32>
    %325 = arith.mulf %321, %270 : vector<8x128xf32>
    %326 = arith.mulf %320, %324 : vector<8x128xf32>
    %327 = arith.addf %325, %326 : vector<8x128xf32>
    %328 = math.tanh %327 : vector<8x128xf32>
    %329 = arith.mulf %322, %328 : vector<8x128xf32>
    %330 = vector.extract_strided_slice %311 {offsets = [0, 0], sizes = [8, 384], strides = [1, 1]} : vector<8x512xf32> to vector<8x384xf32>
    %cst_114 = arith.constant 5.000000e-01 : f32
    %331 = vector.broadcast %cst_114 : f32 to vector<8x384xf32>
    %332 = arith.mulf %331, %330 : vector<8x384xf32>
    %333 = math.tanh %332 : vector<8x384xf32>
    %cst_115 = arith.constant 5.000000e-01 : f32
    %334 = vector.broadcast %cst_115 : f32 to vector<8x384xf32>
    %335 = arith.mulf %334, %333 : vector<8x384xf32>
    %cst_116 = arith.constant 5.000000e-01 : f32
    %336 = vector.broadcast %cst_116 : f32 to vector<8x384xf32>
    %337 = arith.addf %335, %336 : vector<8x384xf32>
    %338 = vector.extract_strided_slice %337 {offsets = [0, 0], sizes = [8, 128], strides = [1, 1]} : vector<8x384xf32> to vector<8x128xf32>
    %339 = vector.extract_strided_slice %337 {offsets = [0, 128], sizes = [8, 128], strides = [1, 1]} : vector<8x384xf32> to vector<8x128xf32>
    %340 = vector.extract_strided_slice %337 {offsets = [0, 256], sizes = [8, 128], strides = [1, 1]} : vector<8x384xf32> to vector<8x128xf32>
    %341 = vector.extract_strided_slice %311 {offsets = [0, 384], sizes = [8, 128], strides = [1, 1]} : vector<8x512xf32> to vector<8x128xf32>
    %342 = math.tanh %341 : vector<8x128xf32>
    %343 = arith.mulf %339, %288 : vector<8x128xf32>
    %344 = arith.mulf %338, %342 : vector<8x128xf32>
    %345 = arith.addf %343, %344 : vector<8x128xf32>
    %346 = math.tanh %345 : vector<8x128xf32>
    %347 = arith.mulf %340, %346 : vector<8x128xf32>
    %348 = arith.index_cast %296 : i32 to index
    %c0_117 = arith.constant 0 : index
    %349 = vector.load %arg12[%348, %c0_117] : memref<128x256xf32, #tpu.memory_space<vmem>>, vector<8x128xf32>
    tpu.vector_store %arg12[%348, %c0_117], %329 {strides = array<i32>} : memref<128x256xf32, #tpu.memory_space<vmem>>, vector<8x128xf32>,
    %350 = arith.index_cast %299 : i32 to index
    %c128_118 = arith.constant 128 : index
    %351 = vector.load %arg12[%350, %c128_118] : memref<128x256xf32, #tpu.memory_space<vmem>>, vector<8x128xf32>
    tpu.vector_store %arg12[%350, %c128_118], %347 {strides = array<i32>} : memref<128x256xf32, #tpu.memory_space<vmem>>, vector<8x128xf32>,
    %c6_i32 = arith.constant 6 : i32
    %c8_i32_119 = arith.constant 8 : i32
    %352 = arith.muli %c6_i32, %c8_i32_119 : i32
    %353 = tpu.assume_multiple %352, 8 : i32
    %c15_i32_120 = arith.constant 15 : i32
    %354 = arith.subi %c15_i32_120, %c6_i32 : i32
    %c8_i32_121 = arith.constant 8 : i32
    %355 = arith.muli %354, %c8_i32_121 : i32
    %356 = tpu.assume_multiple %355, 8 : i32
    %357 = arith.index_cast %353 : i32 to index
    %c0_122 = arith.constant 0 : index
    %358 = vector.load %arg11[%357, %c0_122] : memref<128x1024xf32, #tpu.memory_space<vmem>>, vector<8x512xf32>
    %359 = arith.truncf %329 : vector<8x128xf32> to vector<8x128xbf16>
    %c0_123 = arith.constant 0 : index
    %c0_124 = arith.constant 0 : index
    %360 = vector.load %arg4[%c0_123, %c0_124] : memref<128x512xbf16, #tpu.memory_space<vmem>>, vector<128x512xbf16>
    %cst_125 = arith.constant dense<0.000000e+00> : vector<8x512xf32>
    %361 = tpu.matmul %359, %360, %cst_125 {dimension_numbers = #tpu.dot_dimension_numbers<[1], [0], [0], [1], [0, 0, 1, 1], [], []>} : vector<8x128xbf16>, vector<128x512xbf16>, vector<8x512xf32> -> vector<8x512xf32>
    %362 = arith.addf %358, %361 : vector<8x512xf32>
    %363 = arith.index_cast %356 : i32 to index
    %c512_126 = arith.constant 512 : index
    %364 = vector.load %arg11[%363, %c512_126] : memref<128x1024xf32, #tpu.memory_space<vmem>>, vector<8x512xf32>
    %365 = arith.truncf %347 : vector<8x128xf32> to vector<8x128xbf16>
    %c0_127 = arith.constant 0 : index
    %c0_128 = arith.constant 0 : index
    %366 = vector.load %arg5[%c0_127, %c0_128] : memref<128x512xbf16, #tpu.memory_space<vmem>>, vector<128x512xbf16>
    %cst_129 = arith.constant dense<0.000000e+00> : vector<8x512xf32>
    %367 = tpu.matmul %365, %366, %cst_129 {dimension_numbers = #tpu.dot_dimension_numbers<[1], [0], [0], [1], [0, 0, 1, 1], [], []>} : vector<8x128xbf16>, vector<128x512xbf16>, vector<8x512xf32> -> vector<8x512xf32>
    %368 = arith.addf %364, %367 : vector<8x512xf32>
    %369 = vector.extract_strided_slice %362 {offsets = [0, 0], sizes = [8, 384], strides = [1, 1]} : vector<8x512xf32> to vector<8x384xf32>
    %cst_130 = arith.constant 5.000000e-01 : f32
    %370 = vector.broadcast %cst_130 : f32 to vector<8x384xf32>
    %371 = arith.mulf %370, %369 : vector<8x384xf32>
    %372 = math.tanh %371 : vector<8x384xf32>
    %cst_131 = arith.constant 5.000000e-01 : f32
    %373 = vector.broadcast %cst_131 : f32 to vector<8x384xf32>
    %374 = arith.mulf %373, %372 : vector<8x384xf32>
    %cst_132 = arith.constant 5.000000e-01 : f32
    %375 = vector.broadcast %cst_132 : f32 to vector<8x384xf32>
    %376 = arith.addf %374, %375 : vector<8x384xf32>
    %377 = vector.extract_strided_slice %376 {offsets = [0, 0], sizes = [8, 128], strides = [1, 1]} : vector<8x384xf32> to vector<8x128xf32>
    %378 = vector.extract_strided_slice %376 {offsets = [0, 128], sizes = [8, 128], strides = [1, 1]} : vector<8x384xf32> to vector<8x128xf32>
    %379 = vector.extract_strided_slice %376 {offsets = [0, 256], sizes = [8, 128], strides = [1, 1]} : vector<8x384xf32> to vector<8x128xf32>
    %380 = vector.extract_strided_slice %362 {offsets = [0, 384], sizes = [8, 128], strides = [1, 1]} : vector<8x512xf32> to vector<8x128xf32>
    %381 = math.tanh %380 : vector<8x128xf32>
    %382 = arith.mulf %378, %327 : vector<8x128xf32>
    %383 = arith.mulf %377, %381 : vector<8x128xf32>
    %384 = arith.addf %382, %383 : vector<8x128xf32>
    %385 = math.tanh %384 : vector<8x128xf32>
    %386 = arith.mulf %379, %385 : vector<8x128xf32>
    %387 = vector.extract_strided_slice %368 {offsets = [0, 0], sizes = [8, 384], strides = [1, 1]} : vector<8x512xf32> to vector<8x384xf32>
    %cst_133 = arith.constant 5.000000e-01 : f32
    %388 = vector.broadcast %cst_133 : f32 to vector<8x384xf32>
    %389 = arith.mulf %388, %387 : vector<8x384xf32>
    %390 = math.tanh %389 : vector<8x384xf32>
    %cst_134 = arith.constant 5.000000e-01 : f32
    %391 = vector.broadcast %cst_134 : f32 to vector<8x384xf32>
    %392 = arith.mulf %391, %390 : vector<8x384xf32>
    %cst_135 = arith.constant 5.000000e-01 : f32
    %393 = vector.broadcast %cst_135 : f32 to vector<8x384xf32>
    %394 = arith.addf %392, %393 : vector<8x384xf32>
    %395 = vector.extract_strided_slice %394 {offsets = [0, 0], sizes = [8, 128], strides = [1, 1]} : vector<8x384xf32> to vector<8x128xf32>
    %396 = vector.extract_strided_slice %394 {offsets = [0, 128], sizes = [8, 128], strides = [1, 1]} : vector<8x384xf32> to vector<8x128xf32>
    %397 = vector.extract_strided_slice %394 {offsets = [0, 256], sizes = [8, 128], strides = [1, 1]} : vector<8x384xf32> to vector<8x128xf32>
    %398 = vector.extract_strided_slice %368 {offsets = [0, 384], sizes = [8, 128], strides = [1, 1]} : vector<8x512xf32> to vector<8x128xf32>
    %399 = math.tanh %398 : vector<8x128xf32>
    %400 = arith.mulf %396, %345 : vector<8x128xf32>
    %401 = arith.mulf %395, %399 : vector<8x128xf32>
    %402 = arith.addf %400, %401 : vector<8x128xf32>
    %403 = math.tanh %402 : vector<8x128xf32>
    %404 = arith.mulf %397, %403 : vector<8x128xf32>
    %405 = arith.index_cast %353 : i32 to index
    %c0_136 = arith.constant 0 : index
    %406 = vector.load %arg12[%405, %c0_136] : memref<128x256xf32, #tpu.memory_space<vmem>>, vector<8x128xf32>
    tpu.vector_store %arg12[%405, %c0_136], %386 {strides = array<i32>} : memref<128x256xf32, #tpu.memory_space<vmem>>, vector<8x128xf32>,
    %407 = arith.index_cast %356 : i32 to index
    %c128_137 = arith.constant 128 : index
    %408 = vector.load %arg12[%407, %c128_137] : memref<128x256xf32, #tpu.memory_space<vmem>>, vector<8x128xf32>
    tpu.vector_store %arg12[%407, %c128_137], %404 {strides = array<i32>} : memref<128x256xf32, #tpu.memory_space<vmem>>, vector<8x128xf32>,
    %c7_i32 = arith.constant 7 : i32
    %c8_i32_138 = arith.constant 8 : i32
    %409 = arith.muli %c7_i32, %c8_i32_138 : i32
    %410 = tpu.assume_multiple %409, 8 : i32
    %c15_i32_139 = arith.constant 15 : i32
    %411 = arith.subi %c15_i32_139, %c7_i32 : i32
    %c8_i32_140 = arith.constant 8 : i32
    %412 = arith.muli %411, %c8_i32_140 : i32
    %413 = tpu.assume_multiple %412, 8 : i32
    %414 = arith.index_cast %410 : i32 to index
    %c0_141 = arith.constant 0 : index
    %415 = vector.load %arg11[%414, %c0_141] : memref<128x1024xf32, #tpu.memory_space<vmem>>, vector<8x512xf32>
    %416 = arith.truncf %386 : vector<8x128xf32> to vector<8x128xbf16>
    %c0_142 = arith.constant 0 : index
    %c0_143 = arith.constant 0 : index
    %417 = vector.load %arg4[%c0_142, %c0_143] : memref<128x512xbf16, #tpu.memory_space<vmem>>, vector<128x512xbf16>
    %cst_144 = arith.constant dense<0.000000e+00> : vector<8x512xf32>
    %418 = tpu.matmul %416, %417, %cst_144 {dimension_numbers = #tpu.dot_dimension_numbers<[1], [0], [0], [1], [0, 0, 1, 1], [], []>} : vector<8x128xbf16>, vector<128x512xbf16>, vector<8x512xf32> -> vector<8x512xf32>
    %419 = arith.addf %415, %418 : vector<8x512xf32>
    %420 = arith.index_cast %413 : i32 to index
    %c512_145 = arith.constant 512 : index
    %421 = vector.load %arg11[%420, %c512_145] : memref<128x1024xf32, #tpu.memory_space<vmem>>, vector<8x512xf32>
    %422 = arith.truncf %404 : vector<8x128xf32> to vector<8x128xbf16>
    %c0_146 = arith.constant 0 : index
    %c0_147 = arith.constant 0 : index
    %423 = vector.load %arg5[%c0_146, %c0_147] : memref<128x512xbf16, #tpu.memory_space<vmem>>, vector<128x512xbf16>
    %cst_148 = arith.constant dense<0.000000e+00> : vector<8x512xf32>
    %424 = tpu.matmul %422, %423, %cst_148 {dimension_numbers = #tpu.dot_dimension_numbers<[1], [0], [0], [1], [0, 0, 1, 1], [], []>} : vector<8x128xbf16>, vector<128x512xbf16>, vector<8x512xf32> -> vector<8x512xf32>
    %425 = arith.addf %421, %424 : vector<8x512xf32>
    %426 = vector.extract_strided_slice %419 {offsets = [0, 0], sizes = [8, 384], strides = [1, 1]} : vector<8x512xf32> to vector<8x384xf32>
    %cst_149 = arith.constant 5.000000e-01 : f32
    %427 = vector.broadcast %cst_149 : f32 to vector<8x384xf32>
    %428 = arith.mulf %427, %426 : vector<8x384xf32>
    %429 = math.tanh %428 : vector<8x384xf32>
    %cst_150 = arith.constant 5.000000e-01 : f32
    %430 = vector.broadcast %cst_150 : f32 to vector<8x384xf32>
    %431 = arith.mulf %430, %429 : vector<8x384xf32>
    %cst_151 = arith.constant 5.000000e-01 : f32
    %432 = vector.broadcast %cst_151 : f32 to vector<8x384xf32>
    %433 = arith.addf %431, %432 : vector<8x384xf32>
    %434 = vector.extract_strided_slice %433 {offsets = [0, 0], sizes = [8, 128], strides = [1, 1]} : vector<8x384xf32> to vector<8x128xf32>
    %435 = vector.extract_strided_slice %433 {offsets = [0, 128], sizes = [8, 128], strides = [1, 1]} : vector<8x384xf32> to vector<8x128xf32>
    %436 = vector.extract_strided_slice %433 {offsets = [0, 256], sizes = [8, 128], strides = [1, 1]} : vector<8x384xf32> to vector<8x128xf32>
    %437 = vector.extract_strided_slice %419 {offsets = [0, 384], sizes = [8, 128], strides = [1, 1]} : vector<8x512xf32> to vector<8x128xf32>
    %438 = math.tanh %437 : vector<8x128xf32>
    %439 = arith.mulf %435, %384 : vector<8x128xf32>
    %440 = arith.mulf %434, %438 : vector<8x128xf32>
    %441 = arith.addf %439, %440 : vector<8x128xf32>
    %442 = math.tanh %441 : vector<8x128xf32>
    %443 = arith.mulf %436, %442 : vector<8x128xf32>
    %444 = vector.extract_strided_slice %425 {offsets = [0, 0], sizes = [8, 384], strides = [1, 1]} : vector<8x512xf32> to vector<8x384xf32>
    %cst_152 = arith.constant 5.000000e-01 : f32
    %445 = vector.broadcast %cst_152 : f32 to vector<8x384xf32>
    %446 = arith.mulf %445, %444 : vector<8x384xf32>
    %447 = math.tanh %446 : vector<8x384xf32>
    %cst_153 = arith.constant 5.000000e-01 : f32
    %448 = vector.broadcast %cst_153 : f32 to vector<8x384xf32>
    %449 = arith.mulf %448, %447 : vector<8x384xf32>
    %cst_154 = arith.constant 5.000000e-01 : f32
    %450 = vector.broadcast %cst_154 : f32 to vector<8x384xf32>
    %451 = arith.addf %449, %450 : vector<8x384xf32>
    %452 = vector.extract_strided_slice %451 {offsets = [0, 0], sizes = [8, 128], strides = [1, 1]} : vector<8x384xf32> to vector<8x128xf32>
    %453 = vector.extract_strided_slice %451 {offsets = [0, 128], sizes = [8, 128], strides = [1, 1]} : vector<8x384xf32> to vector<8x128xf32>
    %454 = vector.extract_strided_slice %451 {offsets = [0, 256], sizes = [8, 128], strides = [1, 1]} : vector<8x384xf32> to vector<8x128xf32>
    %455 = vector.extract_strided_slice %425 {offsets = [0, 384], sizes = [8, 128], strides = [1, 1]} : vector<8x512xf32> to vector<8x128xf32>
    %456 = math.tanh %455 : vector<8x128xf32>
    %457 = arith.mulf %453, %402 : vector<8x128xf32>
    %458 = arith.mulf %452, %456 : vector<8x128xf32>
    %459 = arith.addf %457, %458 : vector<8x128xf32>
    %460 = math.tanh %459 : vector<8x128xf32>
    %461 = arith.mulf %454, %460 : vector<8x128xf32>
    %462 = arith.index_cast %410 : i32 to index
    %c0_155 = arith.constant 0 : index
    %463 = vector.load %arg12[%462, %c0_155] : memref<128x256xf32, #tpu.memory_space<vmem>>, vector<8x128xf32>
    tpu.vector_store %arg12[%462, %c0_155], %443 {strides = array<i32>} : memref<128x256xf32, #tpu.memory_space<vmem>>, vector<8x128xf32>,
    %464 = arith.index_cast %413 : i32 to index
    %c128_156 = arith.constant 128 : index
    %465 = vector.load %arg12[%464, %c128_156] : memref<128x256xf32, #tpu.memory_space<vmem>>, vector<8x128xf32>
    tpu.vector_store %arg12[%464, %c128_156], %461 {strides = array<i32>} : memref<128x256xf32, #tpu.memory_space<vmem>>, vector<8x128xf32>,
    %c8_i32_157 = arith.constant 8 : i32
    %c8_i32_158 = arith.constant 8 : i32
    %466 = arith.muli %c8_i32_157, %c8_i32_158 : i32
    %467 = tpu.assume_multiple %466, 8 : i32
    %c15_i32_159 = arith.constant 15 : i32
    %468 = arith.subi %c15_i32_159, %c8_i32_157 : i32
    %c8_i32_160 = arith.constant 8 : i32
    %469 = arith.muli %468, %c8_i32_160 : i32
    %470 = tpu.assume_multiple %469, 8 : i32
    %471 = arith.index_cast %467 : i32 to index
    %c0_161 = arith.constant 0 : index
    %472 = vector.load %arg11[%471, %c0_161] : memref<128x1024xf32, #tpu.memory_space<vmem>>, vector<8x512xf32>
    %473 = arith.truncf %443 : vector<8x128xf32> to vector<8x128xbf16>
    %c0_162 = arith.constant 0 : index
    %c0_163 = arith.constant 0 : index
    %474 = vector.load %arg4[%c0_162, %c0_163] : memref<128x512xbf16, #tpu.memory_space<vmem>>, vector<128x512xbf16>
    %cst_164 = arith.constant dense<0.000000e+00> : vector<8x512xf32>
    %475 = tpu.matmul %473, %474, %cst_164 {dimension_numbers = #tpu.dot_dimension_numbers<[1], [0], [0], [1], [0, 0, 1, 1], [], []>} : vector<8x128xbf16>, vector<128x512xbf16>, vector<8x512xf32> -> vector<8x512xf32>
    %476 = arith.addf %472, %475 : vector<8x512xf32>
    %477 = arith.index_cast %470 : i32 to index
    %c512_165 = arith.constant 512 : index
    %478 = vector.load %arg11[%477, %c512_165] : memref<128x1024xf32, #tpu.memory_space<vmem>>, vector<8x512xf32>
    %479 = arith.truncf %461 : vector<8x128xf32> to vector<8x128xbf16>
    %c0_166 = arith.constant 0 : index
    %c0_167 = arith.constant 0 : index
    %480 = vector.load %arg5[%c0_166, %c0_167] : memref<128x512xbf16, #tpu.memory_space<vmem>>, vector<128x512xbf16>
    %cst_168 = arith.constant dense<0.000000e+00> : vector<8x512xf32>
    %481 = tpu.matmul %479, %480, %cst_168 {dimension_numbers = #tpu.dot_dimension_numbers<[1], [0], [0], [1], [0, 0, 1, 1], [], []>} : vector<8x128xbf16>, vector<128x512xbf16>, vector<8x512xf32> -> vector<8x512xf32>
    %482 = arith.addf %478, %481 : vector<8x512xf32>
    %483 = vector.extract_strided_slice %476 {offsets = [0, 0], sizes = [8, 384], strides = [1, 1]} : vector<8x512xf32> to vector<8x384xf32>
    %cst_169 = arith.constant 5.000000e-01 : f32
    %484 = vector.broadcast %cst_169 : f32 to vector<8x384xf32>
    %485 = arith.mulf %484, %483 : vector<8x384xf32>
    %486 = math.tanh %485 : vector<8x384xf32>
    %cst_170 = arith.constant 5.000000e-01 : f32
    %487 = vector.broadcast %cst_170 : f32 to vector<8x384xf32>
    %488 = arith.mulf %487, %486 : vector<8x384xf32>
    %cst_171 = arith.constant 5.000000e-01 : f32
    %489 = vector.broadcast %cst_171 : f32 to vector<8x384xf32>
    %490 = arith.addf %488, %489 : vector<8x384xf32>
    %491 = vector.extract_strided_slice %490 {offsets = [0, 0], sizes = [8, 128], strides = [1, 1]} : vector<8x384xf32> to vector<8x128xf32>
    %492 = vector.extract_strided_slice %490 {offsets = [0, 128], sizes = [8, 128], strides = [1, 1]} : vector<8x384xf32> to vector<8x128xf32>
    %493 = vector.extract_strided_slice %490 {offsets = [0, 256], sizes = [8, 128], strides = [1, 1]} : vector<8x384xf32> to vector<8x128xf32>
    %494 = vector.extract_strided_slice %476 {offsets = [0, 384], sizes = [8, 128], strides = [1, 1]} : vector<8x512xf32> to vector<8x128xf32>
    %495 = math.tanh %494 : vector<8x128xf32>
    %496 = arith.mulf %492, %441 : vector<8x128xf32>
    %497 = arith.mulf %491, %495 : vector<8x128xf32>
    %498 = arith.addf %496, %497 : vector<8x128xf32>
    %499 = math.tanh %498 : vector<8x128xf32>
    %500 = arith.mulf %493, %499 : vector<8x128xf32>
    %501 = vector.extract_strided_slice %482 {offsets = [0, 0], sizes = [8, 384], strides = [1, 1]} : vector<8x512xf32> to vector<8x384xf32>
    %cst_172 = arith.constant 5.000000e-01 : f32
    %502 = vector.broadcast %cst_172 : f32 to vector<8x384xf32>
    %503 = arith.mulf %502, %501 : vector<8x384xf32>
    %504 = math.tanh %503 : vector<8x384xf32>
    %cst_173 = arith.constant 5.000000e-01 : f32
    %505 = vector.broadcast %cst_173 : f32 to vector<8x384xf32>
    %506 = arith.mulf %505, %504 : vector<8x384xf32>
    %cst_174 = arith.constant 5.000000e-01 : f32
    %507 = vector.broadcast %cst_174 : f32 to vector<8x384xf32>
    %508 = arith.addf %506, %507 : vector<8x384xf32>
    %509 = vector.extract_strided_slice %508 {offsets = [0, 0], sizes = [8, 128], strides = [1, 1]} : vector<8x384xf32> to vector<8x128xf32>
    %510 = vector.extract_strided_slice %508 {offsets = [0, 128], sizes = [8, 128], strides = [1, 1]} : vector<8x384xf32> to vector<8x128xf32>
    %511 = vector.extract_strided_slice %508 {offsets = [0, 256], sizes = [8, 128], strides = [1, 1]} : vector<8x384xf32> to vector<8x128xf32>
    %512 = vector.extract_strided_slice %482 {offsets = [0, 384], sizes = [8, 128], strides = [1, 1]} : vector<8x512xf32> to vector<8x128xf32>
    %513 = math.tanh %512 : vector<8x128xf32>
    %514 = arith.mulf %510, %459 : vector<8x128xf32>
    %515 = arith.mulf %509, %513 : vector<8x128xf32>
    %516 = arith.addf %514, %515 : vector<8x128xf32>
    %517 = math.tanh %516 : vector<8x128xf32>
    %518 = arith.mulf %511, %517 : vector<8x128xf32>
    %519 = arith.index_cast %467 : i32 to index
    %c0_175 = arith.constant 0 : index
    %520 = vector.load %arg12[%519, %c0_175] : memref<128x256xf32, #tpu.memory_space<vmem>>, vector<8x128xf32>
    tpu.vector_store %arg12[%519, %c0_175], %500 {strides = array<i32>} : memref<128x256xf32, #tpu.memory_space<vmem>>, vector<8x128xf32>,
    %521 = arith.index_cast %470 : i32 to index
    %c128_176 = arith.constant 128 : index
    %522 = vector.load %arg12[%521, %c128_176] : memref<128x256xf32, #tpu.memory_space<vmem>>, vector<8x128xf32>
    tpu.vector_store %arg12[%521, %c128_176], %518 {strides = array<i32>} : memref<128x256xf32, #tpu.memory_space<vmem>>, vector<8x128xf32>,
    %c9_i32 = arith.constant 9 : i32
    %c8_i32_177 = arith.constant 8 : i32
    %523 = arith.muli %c9_i32, %c8_i32_177 : i32
    %524 = tpu.assume_multiple %523, 8 : i32
    %c15_i32_178 = arith.constant 15 : i32
    %525 = arith.subi %c15_i32_178, %c9_i32 : i32
    %c8_i32_179 = arith.constant 8 : i32
    %526 = arith.muli %525, %c8_i32_179 : i32
    %527 = tpu.assume_multiple %526, 8 : i32
    %528 = arith.index_cast %524 : i32 to index
    %c0_180 = arith.constant 0 : index
    %529 = vector.load %arg11[%528, %c0_180] : memref<128x1024xf32, #tpu.memory_space<vmem>>, vector<8x512xf32>
    %530 = arith.truncf %500 : vector<8x128xf32> to vector<8x128xbf16>
    %c0_181 = arith.constant 0 : index
    %c0_182 = arith.constant 0 : index
    %531 = vector.load %arg4[%c0_181, %c0_182] : memref<128x512xbf16, #tpu.memory_space<vmem>>, vector<128x512xbf16>
    %cst_183 = arith.constant dense<0.000000e+00> : vector<8x512xf32>
    %532 = tpu.matmul %530, %531, %cst_183 {dimension_numbers = #tpu.dot_dimension_numbers<[1], [0], [0], [1], [0, 0, 1, 1], [], []>} : vector<8x128xbf16>, vector<128x512xbf16>, vector<8x512xf32> -> vector<8x512xf32>
    %533 = arith.addf %529, %532 : vector<8x512xf32>
    %534 = arith.index_cast %527 : i32 to index
    %c512_184 = arith.constant 512 : index
    %535 = vector.load %arg11[%534, %c512_184] : memref<128x1024xf32, #tpu.memory_space<vmem>>, vector<8x512xf32>
    %536 = arith.truncf %518 : vector<8x128xf32> to vector<8x128xbf16>
    %c0_185 = arith.constant 0 : index
    %c0_186 = arith.constant 0 : index
    %537 = vector.load %arg5[%c0_185, %c0_186] : memref<128x512xbf16, #tpu.memory_space<vmem>>, vector<128x512xbf16>
    %cst_187 = arith.constant dense<0.000000e+00> : vector<8x512xf32>
    %538 = tpu.matmul %536, %537, %cst_187 {dimension_numbers = #tpu.dot_dimension_numbers<[1], [0], [0], [1], [0, 0, 1, 1], [], []>} : vector<8x128xbf16>, vector<128x512xbf16>, vector<8x512xf32> -> vector<8x512xf32>
    %539 = arith.addf %535, %538 : vector<8x512xf32>
    %540 = vector.extract_strided_slice %533 {offsets = [0, 0], sizes = [8, 384], strides = [1, 1]} : vector<8x512xf32> to vector<8x384xf32>
    %cst_188 = arith.constant 5.000000e-01 : f32
    %541 = vector.broadcast %cst_188 : f32 to vector<8x384xf32>
    %542 = arith.mulf %541, %540 : vector<8x384xf32>
    %543 = math.tanh %542 : vector<8x384xf32>
    %cst_189 = arith.constant 5.000000e-01 : f32
    %544 = vector.broadcast %cst_189 : f32 to vector<8x384xf32>
    %545 = arith.mulf %544, %543 : vector<8x384xf32>
    %cst_190 = arith.constant 5.000000e-01 : f32
    %546 = vector.broadcast %cst_190 : f32 to vector<8x384xf32>
    %547 = arith.addf %545, %546 : vector<8x384xf32>
    %548 = vector.extract_strided_slice %547 {offsets = [0, 0], sizes = [8, 128], strides = [1, 1]} : vector<8x384xf32> to vector<8x128xf32>
    %549 = vector.extract_strided_slice %547 {offsets = [0, 128], sizes = [8, 128], strides = [1, 1]} : vector<8x384xf32> to vector<8x128xf32>
    %550 = vector.extract_strided_slice %547 {offsets = [0, 256], sizes = [8, 128], strides = [1, 1]} : vector<8x384xf32> to vector<8x128xf32>
    %551 = vector.extract_strided_slice %533 {offsets = [0, 384], sizes = [8, 128], strides = [1, 1]} : vector<8x512xf32> to vector<8x128xf32>
    %552 = math.tanh %551 : vector<8x128xf32>
    %553 = arith.mulf %549, %498 : vector<8x128xf32>
    %554 = arith.mulf %548, %552 : vector<8x128xf32>
    %555 = arith.addf %553, %554 : vector<8x128xf32>
    %556 = math.tanh %555 : vector<8x128xf32>
    %557 = arith.mulf %550, %556 : vector<8x128xf32>
    %558 = vector.extract_strided_slice %539 {offsets = [0, 0], sizes = [8, 384], strides = [1, 1]} : vector<8x512xf32> to vector<8x384xf32>
    %cst_191 = arith.constant 5.000000e-01 : f32
    %559 = vector.broadcast %cst_191 : f32 to vector<8x384xf32>
    %560 = arith.mulf %559, %558 : vector<8x384xf32>
    %561 = math.tanh %560 : vector<8x384xf32>
    %cst_192 = arith.constant 5.000000e-01 : f32
    %562 = vector.broadcast %cst_192 : f32 to vector<8x384xf32>
    %563 = arith.mulf %562, %561 : vector<8x384xf32>
    %cst_193 = arith.constant 5.000000e-01 : f32
    %564 = vector.broadcast %cst_193 : f32 to vector<8x384xf32>
    %565 = arith.addf %563, %564 : vector<8x384xf32>
    %566 = vector.extract_strided_slice %565 {offsets = [0, 0], sizes = [8, 128], strides = [1, 1]} : vector<8x384xf32> to vector<8x128xf32>
    %567 = vector.extract_strided_slice %565 {offsets = [0, 128], sizes = [8, 128], strides = [1, 1]} : vector<8x384xf32> to vector<8x128xf32>
    %568 = vector.extract_strided_slice %565 {offsets = [0, 256], sizes = [8, 128], strides = [1, 1]} : vector<8x384xf32> to vector<8x128xf32>
    %569 = vector.extract_strided_slice %539 {offsets = [0, 384], sizes = [8, 128], strides = [1, 1]} : vector<8x512xf32> to vector<8x128xf32>
    %570 = math.tanh %569 : vector<8x128xf32>
    %571 = arith.mulf %567, %516 : vector<8x128xf32>
    %572 = arith.mulf %566, %570 : vector<8x128xf32>
    %573 = arith.addf %571, %572 : vector<8x128xf32>
    %574 = math.tanh %573 : vector<8x128xf32>
    %575 = arith.mulf %568, %574 : vector<8x128xf32>
    %576 = arith.index_cast %524 : i32 to index
    %c0_194 = arith.constant 0 : index
    %577 = vector.load %arg12[%576, %c0_194] : memref<128x256xf32, #tpu.memory_space<vmem>>, vector<8x128xf32>
    tpu.vector_store %arg12[%576, %c0_194], %557 {strides = array<i32>} : memref<128x256xf32, #tpu.memory_space<vmem>>, vector<8x128xf32>,
    %578 = arith.index_cast %527 : i32 to index
    %c128_195 = arith.constant 128 : index
    %579 = vector.load %arg12[%578, %c128_195] : memref<128x256xf32, #tpu.memory_space<vmem>>, vector<8x128xf32>
    tpu.vector_store %arg12[%578, %c128_195], %575 {strides = array<i32>} : memref<128x256xf32, #tpu.memory_space<vmem>>, vector<8x128xf32>,
    %c10_i32 = arith.constant 10 : i32
    %c8_i32_196 = arith.constant 8 : i32
    %580 = arith.muli %c10_i32, %c8_i32_196 : i32
    %581 = tpu.assume_multiple %580, 8 : i32
    %c15_i32_197 = arith.constant 15 : i32
    %582 = arith.subi %c15_i32_197, %c10_i32 : i32
    %c8_i32_198 = arith.constant 8 : i32
    %583 = arith.muli %582, %c8_i32_198 : i32
    %584 = tpu.assume_multiple %583, 8 : i32
    %585 = arith.index_cast %581 : i32 to index
    %c0_199 = arith.constant 0 : index
    %586 = vector.load %arg11[%585, %c0_199] : memref<128x1024xf32, #tpu.memory_space<vmem>>, vector<8x512xf32>
    %587 = arith.truncf %557 : vector<8x128xf32> to vector<8x128xbf16>
    %c0_200 = arith.constant 0 : index
    %c0_201 = arith.constant 0 : index
    %588 = vector.load %arg4[%c0_200, %c0_201] : memref<128x512xbf16, #tpu.memory_space<vmem>>, vector<128x512xbf16>
    %cst_202 = arith.constant dense<0.000000e+00> : vector<8x512xf32>
    %589 = tpu.matmul %587, %588, %cst_202 {dimension_numbers = #tpu.dot_dimension_numbers<[1], [0], [0], [1], [0, 0, 1, 1], [], []>} : vector<8x128xbf16>, vector<128x512xbf16>, vector<8x512xf32> -> vector<8x512xf32>
    %590 = arith.addf %586, %589 : vector<8x512xf32>
    %591 = arith.index_cast %584 : i32 to index
    %c512_203 = arith.constant 512 : index
    %592 = vector.load %arg11[%591, %c512_203] : memref<128x1024xf32, #tpu.memory_space<vmem>>, vector<8x512xf32>
    %593 = arith.truncf %575 : vector<8x128xf32> to vector<8x128xbf16>
    %c0_204 = arith.constant 0 : index
    %c0_205 = arith.constant 0 : index
    %594 = vector.load %arg5[%c0_204, %c0_205] : memref<128x512xbf16, #tpu.memory_space<vmem>>, vector<128x512xbf16>
    %cst_206 = arith.constant dense<0.000000e+00> : vector<8x512xf32>
    %595 = tpu.matmul %593, %594, %cst_206 {dimension_numbers = #tpu.dot_dimension_numbers<[1], [0], [0], [1], [0, 0, 1, 1], [], []>} : vector<8x128xbf16>, vector<128x512xbf16>, vector<8x512xf32> -> vector<8x512xf32>
    %596 = arith.addf %592, %595 : vector<8x512xf32>
    %597 = vector.extract_strided_slice %590 {offsets = [0, 0], sizes = [8, 384], strides = [1, 1]} : vector<8x512xf32> to vector<8x384xf32>
    %cst_207 = arith.constant 5.000000e-01 : f32
    %598 = vector.broadcast %cst_207 : f32 to vector<8x384xf32>
    %599 = arith.mulf %598, %597 : vector<8x384xf32>
    %600 = math.tanh %599 : vector<8x384xf32>
    %cst_208 = arith.constant 5.000000e-01 : f32
    %601 = vector.broadcast %cst_208 : f32 to vector<8x384xf32>
    %602 = arith.mulf %601, %600 : vector<8x384xf32>
    %cst_209 = arith.constant 5.000000e-01 : f32
    %603 = vector.broadcast %cst_209 : f32 to vector<8x384xf32>
    %604 = arith.addf %602, %603 : vector<8x384xf32>
    %605 = vector.extract_strided_slice %604 {offsets = [0, 0], sizes = [8, 128], strides = [1, 1]} : vector<8x384xf32> to vector<8x128xf32>
    %606 = vector.extract_strided_slice %604 {offsets = [0, 128], sizes = [8, 128], strides = [1, 1]} : vector<8x384xf32> to vector<8x128xf32>
    %607 = vector.extract_strided_slice %604 {offsets = [0, 256], sizes = [8, 128], strides = [1, 1]} : vector<8x384xf32> to vector<8x128xf32>
    %608 = vector.extract_strided_slice %590 {offsets = [0, 384], sizes = [8, 128], strides = [1, 1]} : vector<8x512xf32> to vector<8x128xf32>
    %609 = math.tanh %608 : vector<8x128xf32>
    %610 = arith.mulf %606, %555 : vector<8x128xf32>
    %611 = arith.mulf %605, %609 : vector<8x128xf32>
    %612 = arith.addf %610, %611 : vector<8x128xf32>
    %613 = math.tanh %612 : vector<8x128xf32>
    %614 = arith.mulf %607, %613 : vector<8x128xf32>
    %615 = vector.extract_strided_slice %596 {offsets = [0, 0], sizes = [8, 384], strides = [1, 1]} : vector<8x512xf32> to vector<8x384xf32>
    %cst_210 = arith.constant 5.000000e-01 : f32
    %616 = vector.broadcast %cst_210 : f32 to vector<8x384xf32>
    %617 = arith.mulf %616, %615 : vector<8x384xf32>
    %618 = math.tanh %617 : vector<8x384xf32>
    %cst_211 = arith.constant 5.000000e-01 : f32
    %619 = vector.broadcast %cst_211 : f32 to vector<8x384xf32>
    %620 = arith.mulf %619, %618 : vector<8x384xf32>
    %cst_212 = arith.constant 5.000000e-01 : f32
    %621 = vector.broadcast %cst_212 : f32 to vector<8x384xf32>
    %622 = arith.addf %620, %621 : vector<8x384xf32>
    %623 = vector.extract_strided_slice %622 {offsets = [0, 0], sizes = [8, 128], strides = [1, 1]} : vector<8x384xf32> to vector<8x128xf32>
    %624 = vector.extract_strided_slice %622 {offsets = [0, 128], sizes = [8, 128], strides = [1, 1]} : vector<8x384xf32> to vector<8x128xf32>
    %625 = vector.extract_strided_slice %622 {offsets = [0, 256], sizes = [8, 128], strides = [1, 1]} : vector<8x384xf32> to vector<8x128xf32>
    %626 = vector.extract_strided_slice %596 {offsets = [0, 384], sizes = [8, 128], strides = [1, 1]} : vector<8x512xf32> to vector<8x128xf32>
    %627 = math.tanh %626 : vector<8x128xf32>
    %628 = arith.mulf %624, %573 : vector<8x128xf32>
    %629 = arith.mulf %623, %627 : vector<8x128xf32>
    %630 = arith.addf %628, %629 : vector<8x128xf32>
    %631 = math.tanh %630 : vector<8x128xf32>
    %632 = arith.mulf %625, %631 : vector<8x128xf32>
    %633 = arith.index_cast %581 : i32 to index
    %c0_213 = arith.constant 0 : index
    %634 = vector.load %arg12[%633, %c0_213] : memref<128x256xf32, #tpu.memory_space<vmem>>, vector<8x128xf32>
    tpu.vector_store %arg12[%633, %c0_213], %614 {strides = array<i32>} : memref<128x256xf32, #tpu.memory_space<vmem>>, vector<8x128xf32>,
    %635 = arith.index_cast %584 : i32 to index
    %c128_214 = arith.constant 128 : index
    %636 = vector.load %arg12[%635, %c128_214] : memref<128x256xf32, #tpu.memory_space<vmem>>, vector<8x128xf32>
    tpu.vector_store %arg12[%635, %c128_214], %632 {strides = array<i32>} : memref<128x256xf32, #tpu.memory_space<vmem>>, vector<8x128xf32>,
    %c11_i32 = arith.constant 11 : i32
    %c8_i32_215 = arith.constant 8 : i32
    %637 = arith.muli %c11_i32, %c8_i32_215 : i32
    %638 = tpu.assume_multiple %637, 8 : i32
    %c15_i32_216 = arith.constant 15 : i32
    %639 = arith.subi %c15_i32_216, %c11_i32 : i32
    %c8_i32_217 = arith.constant 8 : i32
    %640 = arith.muli %639, %c8_i32_217 : i32
    %641 = tpu.assume_multiple %640, 8 : i32
    %642 = arith.index_cast %638 : i32 to index
    %c0_218 = arith.constant 0 : index
    %643 = vector.load %arg11[%642, %c0_218] : memref<128x1024xf32, #tpu.memory_space<vmem>>, vector<8x512xf32>
    %644 = arith.truncf %614 : vector<8x128xf32> to vector<8x128xbf16>
    %c0_219 = arith.constant 0 : index
    %c0_220 = arith.constant 0 : index
    %645 = vector.load %arg4[%c0_219, %c0_220] : memref<128x512xbf16, #tpu.memory_space<vmem>>, vector<128x512xbf16>
    %cst_221 = arith.constant dense<0.000000e+00> : vector<8x512xf32>
    %646 = tpu.matmul %644, %645, %cst_221 {dimension_numbers = #tpu.dot_dimension_numbers<[1], [0], [0], [1], [0, 0, 1, 1], [], []>} : vector<8x128xbf16>, vector<128x512xbf16>, vector<8x512xf32> -> vector<8x512xf32>
    %647 = arith.addf %643, %646 : vector<8x512xf32>
    %648 = arith.index_cast %641 : i32 to index
    %c512_222 = arith.constant 512 : index
    %649 = vector.load %arg11[%648, %c512_222] : memref<128x1024xf32, #tpu.memory_space<vmem>>, vector<8x512xf32>
    %650 = arith.truncf %632 : vector<8x128xf32> to vector<8x128xbf16>
    %c0_223 = arith.constant 0 : index
    %c0_224 = arith.constant 0 : index
    %651 = vector.load %arg5[%c0_223, %c0_224] : memref<128x512xbf16, #tpu.memory_space<vmem>>, vector<128x512xbf16>
    %cst_225 = arith.constant dense<0.000000e+00> : vector<8x512xf32>
    %652 = tpu.matmul %650, %651, %cst_225 {dimension_numbers = #tpu.dot_dimension_numbers<[1], [0], [0], [1], [0, 0, 1, 1], [], []>} : vector<8x128xbf16>, vector<128x512xbf16>, vector<8x512xf32> -> vector<8x512xf32>
    %653 = arith.addf %649, %652 : vector<8x512xf32>
    %654 = vector.extract_strided_slice %647 {offsets = [0, 0], sizes = [8, 384], strides = [1, 1]} : vector<8x512xf32> to vector<8x384xf32>
    %cst_226 = arith.constant 5.000000e-01 : f32
    %655 = vector.broadcast %cst_226 : f32 to vector<8x384xf32>
    %656 = arith.mulf %655, %654 : vector<8x384xf32>
    %657 = math.tanh %656 : vector<8x384xf32>
    %cst_227 = arith.constant 5.000000e-01 : f32
    %658 = vector.broadcast %cst_227 : f32 to vector<8x384xf32>
    %659 = arith.mulf %658, %657 : vector<8x384xf32>
    %cst_228 = arith.constant 5.000000e-01 : f32
    %660 = vector.broadcast %cst_228 : f32 to vector<8x384xf32>
    %661 = arith.addf %659, %660 : vector<8x384xf32>
    %662 = vector.extract_strided_slice %661 {offsets = [0, 0], sizes = [8, 128], strides = [1, 1]} : vector<8x384xf32> to vector<8x128xf32>
    %663 = vector.extract_strided_slice %661 {offsets = [0, 128], sizes = [8, 128], strides = [1, 1]} : vector<8x384xf32> to vector<8x128xf32>
    %664 = vector.extract_strided_slice %661 {offsets = [0, 256], sizes = [8, 128], strides = [1, 1]} : vector<8x384xf32> to vector<8x128xf32>
    %665 = vector.extract_strided_slice %647 {offsets = [0, 384], sizes = [8, 128], strides = [1, 1]} : vector<8x512xf32> to vector<8x128xf32>
    %666 = math.tanh %665 : vector<8x128xf32>
    %667 = arith.mulf %663, %612 : vector<8x128xf32>
    %668 = arith.mulf %662, %666 : vector<8x128xf32>
    %669 = arith.addf %667, %668 : vector<8x128xf32>
    %670 = math.tanh %669 : vector<8x128xf32>
    %671 = arith.mulf %664, %670 : vector<8x128xf32>
    %672 = vector.extract_strided_slice %653 {offsets = [0, 0], sizes = [8, 384], strides = [1, 1]} : vector<8x512xf32> to vector<8x384xf32>
    %cst_229 = arith.constant 5.000000e-01 : f32
    %673 = vector.broadcast %cst_229 : f32 to vector<8x384xf32>
    %674 = arith.mulf %673, %672 : vector<8x384xf32>
    %675 = math.tanh %674 : vector<8x384xf32>
    %cst_230 = arith.constant 5.000000e-01 : f32
    %676 = vector.broadcast %cst_230 : f32 to vector<8x384xf32>
    %677 = arith.mulf %676, %675 : vector<8x384xf32>
    %cst_231 = arith.constant 5.000000e-01 : f32
    %678 = vector.broadcast %cst_231 : f32 to vector<8x384xf32>
    %679 = arith.addf %677, %678 : vector<8x384xf32>
    %680 = vector.extract_strided_slice %679 {offsets = [0, 0], sizes = [8, 128], strides = [1, 1]} : vector<8x384xf32> to vector<8x128xf32>
    %681 = vector.extract_strided_slice %679 {offsets = [0, 128], sizes = [8, 128], strides = [1, 1]} : vector<8x384xf32> to vector<8x128xf32>
    %682 = vector.extract_strided_slice %679 {offsets = [0, 256], sizes = [8, 128], strides = [1, 1]} : vector<8x384xf32> to vector<8x128xf32>
    %683 = vector.extract_strided_slice %653 {offsets = [0, 384], sizes = [8, 128], strides = [1, 1]} : vector<8x512xf32> to vector<8x128xf32>
    %684 = math.tanh %683 : vector<8x128xf32>
    %685 = arith.mulf %681, %630 : vector<8x128xf32>
    %686 = arith.mulf %680, %684 : vector<8x128xf32>
    %687 = arith.addf %685, %686 : vector<8x128xf32>
    %688 = math.tanh %687 : vector<8x128xf32>
    %689 = arith.mulf %682, %688 : vector<8x128xf32>
    %690 = arith.index_cast %638 : i32 to index
    %c0_232 = arith.constant 0 : index
    %691 = vector.load %arg12[%690, %c0_232] : memref<128x256xf32, #tpu.memory_space<vmem>>, vector<8x128xf32>
    tpu.vector_store %arg12[%690, %c0_232], %671 {strides = array<i32>} : memref<128x256xf32, #tpu.memory_space<vmem>>, vector<8x128xf32>,
    %692 = arith.index_cast %641 : i32 to index
    %c128_233 = arith.constant 128 : index
    %693 = vector.load %arg12[%692, %c128_233] : memref<128x256xf32, #tpu.memory_space<vmem>>, vector<8x128xf32>
    tpu.vector_store %arg12[%692, %c128_233], %689 {strides = array<i32>} : memref<128x256xf32, #tpu.memory_space<vmem>>, vector<8x128xf32>,
    %c12_i32 = arith.constant 12 : i32
    %c8_i32_234 = arith.constant 8 : i32
    %694 = arith.muli %c12_i32, %c8_i32_234 : i32
    %695 = tpu.assume_multiple %694, 8 : i32
    %c15_i32_235 = arith.constant 15 : i32
    %696 = arith.subi %c15_i32_235, %c12_i32 : i32
    %c8_i32_236 = arith.constant 8 : i32
    %697 = arith.muli %696, %c8_i32_236 : i32
    %698 = tpu.assume_multiple %697, 8 : i32
    %699 = arith.index_cast %695 : i32 to index
    %c0_237 = arith.constant 0 : index
    %700 = vector.load %arg11[%699, %c0_237] : memref<128x1024xf32, #tpu.memory_space<vmem>>, vector<8x512xf32>
    %701 = arith.truncf %671 : vector<8x128xf32> to vector<8x128xbf16>
    %c0_238 = arith.constant 0 : index
    %c0_239 = arith.constant 0 : index
    %702 = vector.load %arg4[%c0_238, %c0_239] : memref<128x512xbf16, #tpu.memory_space<vmem>>, vector<128x512xbf16>
    %cst_240 = arith.constant dense<0.000000e+00> : vector<8x512xf32>
    %703 = tpu.matmul %701, %702, %cst_240 {dimension_numbers = #tpu.dot_dimension_numbers<[1], [0], [0], [1], [0, 0, 1, 1], [], []>} : vector<8x128xbf16>, vector<128x512xbf16>, vector<8x512xf32> -> vector<8x512xf32>
    %704 = arith.addf %700, %703 : vector<8x512xf32>
    %705 = arith.index_cast %698 : i32 to index
    %c512_241 = arith.constant 512 : index
    %706 = vector.load %arg11[%705, %c512_241] : memref<128x1024xf32, #tpu.memory_space<vmem>>, vector<8x512xf32>
    %707 = arith.truncf %689 : vector<8x128xf32> to vector<8x128xbf16>
    %c0_242 = arith.constant 0 : index
    %c0_243 = arith.constant 0 : index
    %708 = vector.load %arg5[%c0_242, %c0_243] : memref<128x512xbf16, #tpu.memory_space<vmem>>, vector<128x512xbf16>
    %cst_244 = arith.constant dense<0.000000e+00> : vector<8x512xf32>
    %709 = tpu.matmul %707, %708, %cst_244 {dimension_numbers = #tpu.dot_dimension_numbers<[1], [0], [0], [1], [0, 0, 1, 1], [], []>} : vector<8x128xbf16>, vector<128x512xbf16>, vector<8x512xf32> -> vector<8x512xf32>
    %710 = arith.addf %706, %709 : vector<8x512xf32>
    %711 = vector.extract_strided_slice %704 {offsets = [0, 0], sizes = [8, 384], strides = [1, 1]} : vector<8x512xf32> to vector<8x384xf32>
    %cst_245 = arith.constant 5.000000e-01 : f32
    %712 = vector.broadcast %cst_245 : f32 to vector<8x384xf32>
    %713 = arith.mulf %712, %711 : vector<8x384xf32>
    %714 = math.tanh %713 : vector<8x384xf32>
    %cst_246 = arith.constant 5.000000e-01 : f32
    %715 = vector.broadcast %cst_246 : f32 to vector<8x384xf32>
    %716 = arith.mulf %715, %714 : vector<8x384xf32>
    %cst_247 = arith.constant 5.000000e-01 : f32
    %717 = vector.broadcast %cst_247 : f32 to vector<8x384xf32>
    %718 = arith.addf %716, %717 : vector<8x384xf32>
    %719 = vector.extract_strided_slice %718 {offsets = [0, 0], sizes = [8, 128], strides = [1, 1]} : vector<8x384xf32> to vector<8x128xf32>
    %720 = vector.extract_strided_slice %718 {offsets = [0, 128], sizes = [8, 128], strides = [1, 1]} : vector<8x384xf32> to vector<8x128xf32>
    %721 = vector.extract_strided_slice %718 {offsets = [0, 256], sizes = [8, 128], strides = [1, 1]} : vector<8x384xf32> to vector<8x128xf32>
    %722 = vector.extract_strided_slice %704 {offsets = [0, 384], sizes = [8, 128], strides = [1, 1]} : vector<8x512xf32> to vector<8x128xf32>
    %723 = math.tanh %722 : vector<8x128xf32>
    %724 = arith.mulf %720, %669 : vector<8x128xf32>
    %725 = arith.mulf %719, %723 : vector<8x128xf32>
    %726 = arith.addf %724, %725 : vector<8x128xf32>
    %727 = math.tanh %726 : vector<8x128xf32>
    %728 = arith.mulf %721, %727 : vector<8x128xf32>
    %729 = vector.extract_strided_slice %710 {offsets = [0, 0], sizes = [8, 384], strides = [1, 1]} : vector<8x512xf32> to vector<8x384xf32>
    %cst_248 = arith.constant 5.000000e-01 : f32
    %730 = vector.broadcast %cst_248 : f32 to vector<8x384xf32>
    %731 = arith.mulf %730, %729 : vector<8x384xf32>
    %732 = math.tanh %731 : vector<8x384xf32>
    %cst_249 = arith.constant 5.000000e-01 : f32
    %733 = vector.broadcast %cst_249 : f32 to vector<8x384xf32>
    %734 = arith.mulf %733, %732 : vector<8x384xf32>
    %cst_250 = arith.constant 5.000000e-01 : f32
    %735 = vector.broadcast %cst_250 : f32 to vector<8x384xf32>
    %736 = arith.addf %734, %735 : vector<8x384xf32>
    %737 = vector.extract_strided_slice %736 {offsets = [0, 0], sizes = [8, 128], strides = [1, 1]} : vector<8x384xf32> to vector<8x128xf32>
    %738 = vector.extract_strided_slice %736 {offsets = [0, 128], sizes = [8, 128], strides = [1, 1]} : vector<8x384xf32> to vector<8x128xf32>
    %739 = vector.extract_strided_slice %736 {offsets = [0, 256], sizes = [8, 128], strides = [1, 1]} : vector<8x384xf32> to vector<8x128xf32>
    %740 = vector.extract_strided_slice %710 {offsets = [0, 384], sizes = [8, 128], strides = [1, 1]} : vector<8x512xf32> to vector<8x128xf32>
    %741 = math.tanh %740 : vector<8x128xf32>
    %742 = arith.mulf %738, %687 : vector<8x128xf32>
    %743 = arith.mulf %737, %741 : vector<8x128xf32>
    %744 = arith.addf %742, %743 : vector<8x128xf32>
    %745 = math.tanh %744 : vector<8x128xf32>
    %746 = arith.mulf %739, %745 : vector<8x128xf32>
    %747 = arith.index_cast %695 : i32 to index
    %c0_251 = arith.constant 0 : index
    %748 = vector.load %arg12[%747, %c0_251] : memref<128x256xf32, #tpu.memory_space<vmem>>, vector<8x128xf32>
    tpu.vector_store %arg12[%747, %c0_251], %728 {strides = array<i32>} : memref<128x256xf32, #tpu.memory_space<vmem>>, vector<8x128xf32>,
    %749 = arith.index_cast %698 : i32 to index
    %c128_252 = arith.constant 128 : index
    %750 = vector.load %arg12[%749, %c128_252] : memref<128x256xf32, #tpu.memory_space<vmem>>, vector<8x128xf32>
    tpu.vector_store %arg12[%749, %c128_252], %746 {strides = array<i32>} : memref<128x256xf32, #tpu.memory_space<vmem>>, vector<8x128xf32>,
    %c13_i32 = arith.constant 13 : i32
    %c8_i32_253 = arith.constant 8 : i32
    %751 = arith.muli %c13_i32, %c8_i32_253 : i32
    %752 = tpu.assume_multiple %751, 8 : i32
    %c15_i32_254 = arith.constant 15 : i32
    %753 = arith.subi %c15_i32_254, %c13_i32 : i32
    %c8_i32_255 = arith.constant 8 : i32
    %754 = arith.muli %753, %c8_i32_255 : i32
    %755 = tpu.assume_multiple %754, 8 : i32
    %756 = arith.index_cast %752 : i32 to index
    %c0_256 = arith.constant 0 : index
    %757 = vector.load %arg11[%756, %c0_256] : memref<128x1024xf32, #tpu.memory_space<vmem>>, vector<8x512xf32>
    %758 = arith.truncf %728 : vector<8x128xf32> to vector<8x128xbf16>
    %c0_257 = arith.constant 0 : index
    %c0_258 = arith.constant 0 : index
    %759 = vector.load %arg4[%c0_257, %c0_258] : memref<128x512xbf16, #tpu.memory_space<vmem>>, vector<128x512xbf16>
    %cst_259 = arith.constant dense<0.000000e+00> : vector<8x512xf32>
    %760 = tpu.matmul %758, %759, %cst_259 {dimension_numbers = #tpu.dot_dimension_numbers<[1], [0], [0], [1], [0, 0, 1, 1], [], []>} : vector<8x128xbf16>, vector<128x512xbf16>, vector<8x512xf32> -> vector<8x512xf32>
    %761 = arith.addf %757, %760 : vector<8x512xf32>
    %762 = arith.index_cast %755 : i32 to index
    %c512_260 = arith.constant 512 : index
    %763 = vector.load %arg11[%762, %c512_260] : memref<128x1024xf32, #tpu.memory_space<vmem>>, vector<8x512xf32>
    %764 = arith.truncf %746 : vector<8x128xf32> to vector<8x128xbf16>
    %c0_261 = arith.constant 0 : index
    %c0_262 = arith.constant 0 : index
    %765 = vector.load %arg5[%c0_261, %c0_262] : memref<128x512xbf16, #tpu.memory_space<vmem>>, vector<128x512xbf16>
    %cst_263 = arith.constant dense<0.000000e+00> : vector<8x512xf32>
    %766 = tpu.matmul %764, %765, %cst_263 {dimension_numbers = #tpu.dot_dimension_numbers<[1], [0], [0], [1], [0, 0, 1, 1], [], []>} : vector<8x128xbf16>, vector<128x512xbf16>, vector<8x512xf32> -> vector<8x512xf32>
    %767 = arith.addf %763, %766 : vector<8x512xf32>
    %768 = vector.extract_strided_slice %761 {offsets = [0, 0], sizes = [8, 384], strides = [1, 1]} : vector<8x512xf32> to vector<8x384xf32>
    %cst_264 = arith.constant 5.000000e-01 : f32
    %769 = vector.broadcast %cst_264 : f32 to vector<8x384xf32>
    %770 = arith.mulf %769, %768 : vector<8x384xf32>
    %771 = math.tanh %770 : vector<8x384xf32>
    %cst_265 = arith.constant 5.000000e-01 : f32
    %772 = vector.broadcast %cst_265 : f32 to vector<8x384xf32>
    %773 = arith.mulf %772, %771 : vector<8x384xf32>
    %cst_266 = arith.constant 5.000000e-01 : f32
    %774 = vector.broadcast %cst_266 : f32 to vector<8x384xf32>
    %775 = arith.addf %773, %774 : vector<8x384xf32>
    %776 = vector.extract_strided_slice %775 {offsets = [0, 0], sizes = [8, 128], strides = [1, 1]} : vector<8x384xf32> to vector<8x128xf32>
    %777 = vector.extract_strided_slice %775 {offsets = [0, 128], sizes = [8, 128], strides = [1, 1]} : vector<8x384xf32> to vector<8x128xf32>
    %778 = vector.extract_strided_slice %775 {offsets = [0, 256], sizes = [8, 128], strides = [1, 1]} : vector<8x384xf32> to vector<8x128xf32>
    %779 = vector.extract_strided_slice %761 {offsets = [0, 384], sizes = [8, 128], strides = [1, 1]} : vector<8x512xf32> to vector<8x128xf32>
    %780 = math.tanh %779 : vector<8x128xf32>
    %781 = arith.mulf %777, %726 : vector<8x128xf32>
    %782 = arith.mulf %776, %780 : vector<8x128xf32>
    %783 = arith.addf %781, %782 : vector<8x128xf32>
    %784 = math.tanh %783 : vector<8x128xf32>
    %785 = arith.mulf %778, %784 : vector<8x128xf32>
    %786 = vector.extract_strided_slice %767 {offsets = [0, 0], sizes = [8, 384], strides = [1, 1]} : vector<8x512xf32> to vector<8x384xf32>
    %cst_267 = arith.constant 5.000000e-01 : f32
    %787 = vector.broadcast %cst_267 : f32 to vector<8x384xf32>
    %788 = arith.mulf %787, %786 : vector<8x384xf32>
    %789 = math.tanh %788 : vector<8x384xf32>
    %cst_268 = arith.constant 5.000000e-01 : f32
    %790 = vector.broadcast %cst_268 : f32 to vector<8x384xf32>
    %791 = arith.mulf %790, %789 : vector<8x384xf32>
    %cst_269 = arith.constant 5.000000e-01 : f32
    %792 = vector.broadcast %cst_269 : f32 to vector<8x384xf32>
    %793 = arith.addf %791, %792 : vector<8x384xf32>
    %794 = vector.extract_strided_slice %793 {offsets = [0, 0], sizes = [8, 128], strides = [1, 1]} : vector<8x384xf32> to vector<8x128xf32>
    %795 = vector.extract_strided_slice %793 {offsets = [0, 128], sizes = [8, 128], strides = [1, 1]} : vector<8x384xf32> to vector<8x128xf32>
    %796 = vector.extract_strided_slice %793 {offsets = [0, 256], sizes = [8, 128], strides = [1, 1]} : vector<8x384xf32> to vector<8x128xf32>
    %797 = vector.extract_strided_slice %767 {offsets = [0, 384], sizes = [8, 128], strides = [1, 1]} : vector<8x512xf32> to vector<8x128xf32>
    %798 = math.tanh %797 : vector<8x128xf32>
    %799 = arith.mulf %795, %744 : vector<8x128xf32>
    %800 = arith.mulf %794, %798 : vector<8x128xf32>
    %801 = arith.addf %799, %800 : vector<8x128xf32>
    %802 = math.tanh %801 : vector<8x128xf32>
    %803 = arith.mulf %796, %802 : vector<8x128xf32>
    %804 = arith.index_cast %752 : i32 to index
    %c0_270 = arith.constant 0 : index
    %805 = vector.load %arg12[%804, %c0_270] : memref<128x256xf32, #tpu.memory_space<vmem>>, vector<8x128xf32>
    tpu.vector_store %arg12[%804, %c0_270], %785 {strides = array<i32>} : memref<128x256xf32, #tpu.memory_space<vmem>>, vector<8x128xf32>,
    %806 = arith.index_cast %755 : i32 to index
    %c128_271 = arith.constant 128 : index
    %807 = vector.load %arg12[%806, %c128_271] : memref<128x256xf32, #tpu.memory_space<vmem>>, vector<8x128xf32>
    tpu.vector_store %arg12[%806, %c128_271], %803 {strides = array<i32>} : memref<128x256xf32, #tpu.memory_space<vmem>>, vector<8x128xf32>,
    %c14_i32 = arith.constant 14 : i32
    %c8_i32_272 = arith.constant 8 : i32
    %808 = arith.muli %c14_i32, %c8_i32_272 : i32
    %809 = tpu.assume_multiple %808, 8 : i32
    %c15_i32_273 = arith.constant 15 : i32
    %810 = arith.subi %c15_i32_273, %c14_i32 : i32
    %c8_i32_274 = arith.constant 8 : i32
    %811 = arith.muli %810, %c8_i32_274 : i32
    %812 = tpu.assume_multiple %811, 8 : i32
    %813 = arith.index_cast %809 : i32 to index
    %c0_275 = arith.constant 0 : index
    %814 = vector.load %arg11[%813, %c0_275] : memref<128x1024xf32, #tpu.memory_space<vmem>>, vector<8x512xf32>
    %815 = arith.truncf %785 : vector<8x128xf32> to vector<8x128xbf16>
    %c0_276 = arith.constant 0 : index
    %c0_277 = arith.constant 0 : index
    %816 = vector.load %arg4[%c0_276, %c0_277] : memref<128x512xbf16, #tpu.memory_space<vmem>>, vector<128x512xbf16>
    %cst_278 = arith.constant dense<0.000000e+00> : vector<8x512xf32>
    %817 = tpu.matmul %815, %816, %cst_278 {dimension_numbers = #tpu.dot_dimension_numbers<[1], [0], [0], [1], [0, 0, 1, 1], [], []>} : vector<8x128xbf16>, vector<128x512xbf16>, vector<8x512xf32> -> vector<8x512xf32>
    %818 = arith.addf %814, %817 : vector<8x512xf32>
    %819 = arith.index_cast %812 : i32 to index
    %c512_279 = arith.constant 512 : index
    %820 = vector.load %arg11[%819, %c512_279] : memref<128x1024xf32, #tpu.memory_space<vmem>>, vector<8x512xf32>
    %821 = arith.truncf %803 : vector<8x128xf32> to vector<8x128xbf16>
    %c0_280 = arith.constant 0 : index
    %c0_281 = arith.constant 0 : index
    %822 = vector.load %arg5[%c0_280, %c0_281] : memref<128x512xbf16, #tpu.memory_space<vmem>>, vector<128x512xbf16>
    %cst_282 = arith.constant dense<0.000000e+00> : vector<8x512xf32>
    %823 = tpu.matmul %821, %822, %cst_282 {dimension_numbers = #tpu.dot_dimension_numbers<[1], [0], [0], [1], [0, 0, 1, 1], [], []>} : vector<8x128xbf16>, vector<128x512xbf16>, vector<8x512xf32> -> vector<8x512xf32>
    %824 = arith.addf %820, %823 : vector<8x512xf32>
    %825 = vector.extract_strided_slice %818 {offsets = [0, 0], sizes = [8, 384], strides = [1, 1]} : vector<8x512xf32> to vector<8x384xf32>
    %cst_283 = arith.constant 5.000000e-01 : f32
    %826 = vector.broadcast %cst_283 : f32 to vector<8x384xf32>
    %827 = arith.mulf %826, %825 : vector<8x384xf32>
    %828 = math.tanh %827 : vector<8x384xf32>
    %cst_284 = arith.constant 5.000000e-01 : f32
    %829 = vector.broadcast %cst_284 : f32 to vector<8x384xf32>
    %830 = arith.mulf %829, %828 : vector<8x384xf32>
    %cst_285 = arith.constant 5.000000e-01 : f32
    %831 = vector.broadcast %cst_285 : f32 to vector<8x384xf32>
    %832 = arith.addf %830, %831 : vector<8x384xf32>
    %833 = vector.extract_strided_slice %832 {offsets = [0, 0], sizes = [8, 128], strides = [1, 1]} : vector<8x384xf32> to vector<8x128xf32>
    %834 = vector.extract_strided_slice %832 {offsets = [0, 128], sizes = [8, 128], strides = [1, 1]} : vector<8x384xf32> to vector<8x128xf32>
    %835 = vector.extract_strided_slice %832 {offsets = [0, 256], sizes = [8, 128], strides = [1, 1]} : vector<8x384xf32> to vector<8x128xf32>
    %836 = vector.extract_strided_slice %818 {offsets = [0, 384], sizes = [8, 128], strides = [1, 1]} : vector<8x512xf32> to vector<8x128xf32>
    %837 = math.tanh %836 : vector<8x128xf32>
    %838 = arith.mulf %834, %783 : vector<8x128xf32>
    %839 = arith.mulf %833, %837 : vector<8x128xf32>
    %840 = arith.addf %838, %839 : vector<8x128xf32>
    %841 = math.tanh %840 : vector<8x128xf32>
    %842 = arith.mulf %835, %841 : vector<8x128xf32>
    %843 = vector.extract_strided_slice %824 {offsets = [0, 0], sizes = [8, 384], strides = [1, 1]} : vector<8x512xf32> to vector<8x384xf32>
    %cst_286 = arith.constant 5.000000e-01 : f32
    %844 = vector.broadcast %cst_286 : f32 to vector<8x384xf32>
    %845 = arith.mulf %844, %843 : vector<8x384xf32>
    %846 = math.tanh %845 : vector<8x384xf32>
    %cst_287 = arith.constant 5.000000e-01 : f32
    %847 = vector.broadcast %cst_287 : f32 to vector<8x384xf32>
    %848 = arith.mulf %847, %846 : vector<8x384xf32>
    %cst_288 = arith.constant 5.000000e-01 : f32
    %849 = vector.broadcast %cst_288 : f32 to vector<8x384xf32>
    %850 = arith.addf %848, %849 : vector<8x384xf32>
    %851 = vector.extract_strided_slice %850 {offsets = [0, 0], sizes = [8, 128], strides = [1, 1]} : vector<8x384xf32> to vector<8x128xf32>
    %852 = vector.extract_strided_slice %850 {offsets = [0, 128], sizes = [8, 128], strides = [1, 1]} : vector<8x384xf32> to vector<8x128xf32>
    %853 = vector.extract_strided_slice %850 {offsets = [0, 256], sizes = [8, 128], strides = [1, 1]} : vector<8x384xf32> to vector<8x128xf32>
    %854 = vector.extract_strided_slice %824 {offsets = [0, 384], sizes = [8, 128], strides = [1, 1]} : vector<8x512xf32> to vector<8x128xf32>
    %855 = math.tanh %854 : vector<8x128xf32>
    %856 = arith.mulf %852, %801 : vector<8x128xf32>
    %857 = arith.mulf %851, %855 : vector<8x128xf32>
    %858 = arith.addf %856, %857 : vector<8x128xf32>
    %859 = math.tanh %858 : vector<8x128xf32>
    %860 = arith.mulf %853, %859 : vector<8x128xf32>
    %861 = arith.index_cast %809 : i32 to index
    %c0_289 = arith.constant 0 : index
    %862 = vector.load %arg12[%861, %c0_289] : memref<128x256xf32, #tpu.memory_space<vmem>>, vector<8x128xf32>
    tpu.vector_store %arg12[%861, %c0_289], %842 {strides = array<i32>} : memref<128x256xf32, #tpu.memory_space<vmem>>, vector<8x128xf32>,
    %863 = arith.index_cast %812 : i32 to index
    %c128_290 = arith.constant 128 : index
    %864 = vector.load %arg12[%863, %c128_290] : memref<128x256xf32, #tpu.memory_space<vmem>>, vector<8x128xf32>
    tpu.vector_store %arg12[%863, %c128_290], %860 {strides = array<i32>} : memref<128x256xf32, #tpu.memory_space<vmem>>, vector<8x128xf32>,
    %c15_i32_291 = arith.constant 15 : i32
    %c8_i32_292 = arith.constant 8 : i32
    %865 = arith.muli %c15_i32_291, %c8_i32_292 : i32
    %866 = tpu.assume_multiple %865, 8 : i32
    %c15_i32_293 = arith.constant 15 : i32
    %867 = arith.subi %c15_i32_293, %c15_i32_291 : i32
    %c8_i32_294 = arith.constant 8 : i32
    %868 = arith.muli %867, %c8_i32_294 : i32
    %869 = tpu.assume_multiple %868, 8 : i32
    %870 = arith.index_cast %866 : i32 to index
    %c0_295 = arith.constant 0 : index
    %871 = vector.load %arg11[%870, %c0_295] : memref<128x1024xf32, #tpu.memory_space<vmem>>, vector<8x512xf32>
    %872 = arith.truncf %842 : vector<8x128xf32> to vector<8x128xbf16>
    %c0_296 = arith.constant 0 : index
    %c0_297 = arith.constant 0 : index
    %873 = vector.load %arg4[%c0_296, %c0_297] : memref<128x512xbf16, #tpu.memory_space<vmem>>, vector<128x512xbf16>
    %cst_298 = arith.constant dense<0.000000e+00> : vector<8x512xf32>
    %874 = tpu.matmul %872, %873, %cst_298 {dimension_numbers = #tpu.dot_dimension_numbers<[1], [0], [0], [1], [0, 0, 1, 1], [], []>} : vector<8x128xbf16>, vector<128x512xbf16>, vector<8x512xf32> -> vector<8x512xf32>
    %875 = arith.addf %871, %874 : vector<8x512xf32>
    %876 = arith.index_cast %869 : i32 to index
    %c512_299 = arith.constant 512 : index
    %877 = vector.load %arg11[%876, %c512_299] : memref<128x1024xf32, #tpu.memory_space<vmem>>, vector<8x512xf32>
    %878 = arith.truncf %860 : vector<8x128xf32> to vector<8x128xbf16>
    %c0_300 = arith.constant 0 : index
    %c0_301 = arith.constant 0 : index
    %879 = vector.load %arg5[%c0_300, %c0_301] : memref<128x512xbf16, #tpu.memory_space<vmem>>, vector<128x512xbf16>
    %cst_302 = arith.constant dense<0.000000e+00> : vector<8x512xf32>
    %880 = tpu.matmul %878, %879, %cst_302 {dimension_numbers = #tpu.dot_dimension_numbers<[1], [0], [0], [1], [0, 0, 1, 1], [], []>} : vector<8x128xbf16>, vector<128x512xbf16>, vector<8x512xf32> -> vector<8x512xf32>
    %881 = arith.addf %877, %880 : vector<8x512xf32>
    %882 = vector.extract_strided_slice %875 {offsets = [0, 0], sizes = [8, 384], strides = [1, 1]} : vector<8x512xf32> to vector<8x384xf32>
    %cst_303 = arith.constant 5.000000e-01 : f32
    %883 = vector.broadcast %cst_303 : f32 to vector<8x384xf32>
    %884 = arith.mulf %883, %882 : vector<8x384xf32>
    %885 = math.tanh %884 : vector<8x384xf32>
    %cst_304 = arith.constant 5.000000e-01 : f32
    %886 = vector.broadcast %cst_304 : f32 to vector<8x384xf32>
    %887 = arith.mulf %886, %885 : vector<8x384xf32>
    %cst_305 = arith.constant 5.000000e-01 : f32
    %888 = vector.broadcast %cst_305 : f32 to vector<8x384xf32>
    %889 = arith.addf %887, %888 : vector<8x384xf32>
    %890 = vector.extract_strided_slice %889 {offsets = [0, 0], sizes = [8, 128], strides = [1, 1]} : vector<8x384xf32> to vector<8x128xf32>
    %891 = vector.extract_strided_slice %889 {offsets = [0, 128], sizes = [8, 128], strides = [1, 1]} : vector<8x384xf32> to vector<8x128xf32>
    %892 = vector.extract_strided_slice %889 {offsets = [0, 256], sizes = [8, 128], strides = [1, 1]} : vector<8x384xf32> to vector<8x128xf32>
    %893 = vector.extract_strided_slice %875 {offsets = [0, 384], sizes = [8, 128], strides = [1, 1]} : vector<8x512xf32> to vector<8x128xf32>
    %894 = math.tanh %893 : vector<8x128xf32>
    %895 = arith.mulf %891, %840 : vector<8x128xf32>
    %896 = arith.mulf %890, %894 : vector<8x128xf32>
    %897 = arith.addf %895, %896 : vector<8x128xf32>
    %898 = math.tanh %897 : vector<8x128xf32>
    %899 = arith.mulf %892, %898 : vector<8x128xf32>
    %900 = vector.extract_strided_slice %881 {offsets = [0, 0], sizes = [8, 384], strides = [1, 1]} : vector<8x512xf32> to vector<8x384xf32>
    %cst_306 = arith.constant 5.000000e-01 : f32
    %901 = vector.broadcast %cst_306 : f32 to vector<8x384xf32>
    %902 = arith.mulf %901, %900 : vector<8x384xf32>
    %903 = math.tanh %902 : vector<8x384xf32>
    %cst_307 = arith.constant 5.000000e-01 : f32
    %904 = vector.broadcast %cst_307 : f32 to vector<8x384xf32>
    %905 = arith.mulf %904, %903 : vector<8x384xf32>
    %cst_308 = arith.constant 5.000000e-01 : f32
    %906 = vector.broadcast %cst_308 : f32 to vector<8x384xf32>
    %907 = arith.addf %905, %906 : vector<8x384xf32>
    %908 = vector.extract_strided_slice %907 {offsets = [0, 0], sizes = [8, 128], strides = [1, 1]} : vector<8x384xf32> to vector<8x128xf32>
    %909 = vector.extract_strided_slice %907 {offsets = [0, 128], sizes = [8, 128], strides = [1, 1]} : vector<8x384xf32> to vector<8x128xf32>
    %910 = vector.extract_strided_slice %907 {offsets = [0, 256], sizes = [8, 128], strides = [1, 1]} : vector<8x384xf32> to vector<8x128xf32>
    %911 = vector.extract_strided_slice %881 {offsets = [0, 384], sizes = [8, 128], strides = [1, 1]} : vector<8x512xf32> to vector<8x128xf32>
    %912 = math.tanh %911 : vector<8x128xf32>
    %913 = arith.mulf %909, %858 : vector<8x128xf32>
    %914 = arith.mulf %908, %912 : vector<8x128xf32>
    %915 = arith.addf %913, %914 : vector<8x128xf32>
    %916 = math.tanh %915 : vector<8x128xf32>
    %917 = arith.mulf %910, %916 : vector<8x128xf32>
    %918 = arith.index_cast %866 : i32 to index
    %c0_309 = arith.constant 0 : index
    %919 = vector.load %arg12[%918, %c0_309] : memref<128x256xf32, #tpu.memory_space<vmem>>, vector<8x128xf32>
    tpu.vector_store %arg12[%918, %c0_309], %899 {strides = array<i32>} : memref<128x256xf32, #tpu.memory_space<vmem>>, vector<8x128xf32>,
    %920 = arith.index_cast %869 : i32 to index
    %c128_310 = arith.constant 128 : index
    %921 = vector.load %arg12[%920, %c128_310] : memref<128x256xf32, #tpu.memory_space<vmem>>, vector<8x128xf32>
    tpu.vector_store %arg12[%920, %c128_310], %917 {strides = array<i32>} : memref<128x256xf32, #tpu.memory_space<vmem>>, vector<8x128xf32>,
    %c16_i32 = arith.constant 16 : i32
    %c0_311 = arith.constant 0 : index
    %c0_312 = arith.constant 0 : index
    %922 = vector.load %arg12[%c0_311, %c0_312] : memref<128x256xf32, #tpu.memory_space<vmem>>, vector<128x256xf32>
    %923 = arith.truncf %922 : vector<128x256xf32> to vector<128x256xbf16>
    %c0_313 = arith.constant 0 : index
    %c0_314 = arith.constant 0 : index
    %924 = vector.load %arg6[%c0_313, %c0_314] : memref<256x128xbf16, #tpu.memory_space<vmem>>, vector<256x128xbf16>
    %cst_315 = arith.constant dense<0.000000e+00> : vector<128x128xf32>
    %925 = tpu.matmul %923, %924, %cst_315 {dimension_numbers = #tpu.dot_dimension_numbers<[1], [0], [0], [1], [0, 0, 1, 1], [], []>} : vector<128x256xbf16>, vector<256x128xbf16>, vector<128x128xf32> -> vector<128x128xf32>
    %c0_316 = arith.constant 0 : index
    %c0_317 = arith.constant 0 : index
    %926 = vector.load %arg7[%c0_316, %c0_317] : memref<1x128xf32, #tpu.memory_space<vmem>>, vector<1x128xf32>
    %927 = vector.broadcast %926 : vector<1x128xf32> to vector<128x128xf32>
    %928 = arith.addf %925, %927 : vector<128x128xf32>
    %c0_318 = arith.constant 0 : index
    %c0_319 = arith.constant 0 : index
    %c0_320 = arith.constant 0 : index
    %929 = vector.load %arg1[%c0_318, %c0_319, %c0_320] : memref<1x128x128xf32, #tpu.memory_space<vmem>>, vector<1x128x128xf32>
    %930 = vector.shape_cast %929 : vector<1x128x128xf32> to vector<128x128xf32>
    %931 = arith.addf %928, %930 : vector<128x128xf32>
    %cst_321 = arith.constant dense<0.000000e+00> : vector<128xf32>
    %932 = vector.multi_reduction <add>, %931, %cst_321 [1] : vector<128x128xf32> to vector<128xf32>
    %933 = vector.shape_cast %932 : vector<128xf32> to vector<128x1xf32>
    %cst_322 = arith.constant 1.280000e+02 : f32
    %934 = vector.broadcast %cst_322 : f32 to vector<128x1xf32>
    %935 = arith.divf %933, %934 : vector<128x1xf32>
    %936 = arith.mulf %931, %931 : vector<128x128xf32>
    %cst_323 = arith.constant dense<0.000000e+00> : vector<128xf32>
    %937 = vector.multi_reduction <add>, %936, %cst_323 [1] : vector<128x128xf32> to vector<128xf32>
    %938 = vector.shape_cast %937 : vector<128xf32> to vector<128x1xf32>
    %cst_324 = arith.constant 1.280000e+02 : f32
    %939 = vector.broadcast %cst_324 : f32 to vector<128x1xf32>
    %940 = arith.divf %938, %939 : vector<128x1xf32>
    %941 = arith.mulf %935, %935 : vector<128x1xf32>
    %942 = arith.subf %940, %941 : vector<128x1xf32>
    %943 = vector.broadcast %935 : vector<128x1xf32> to vector<128x128xf32>
    %944 = arith.subf %931, %943 : vector<128x128xf32>
    %cst_325 = arith.constant 9.99999974E-6 : f32
    %945 = vector.broadcast %cst_325 : f32 to vector<128x1xf32>
    %946 = arith.addf %942, %945 : vector<128x1xf32>
    %947 = math.rsqrt %946 : vector<128x1xf32>
    %948 = vector.broadcast %947 : vector<128x1xf32> to vector<128x128xf32>
    %949 = arith.mulf %944, %948 : vector<128x128xf32>
    %c0_326 = arith.constant 0 : index
    %c0_327 = arith.constant 0 : index
    %950 = vector.load %arg8[%c0_326, %c0_327] : memref<1x128xf32, #tpu.memory_space<vmem>>, vector<1x128xf32>
    %951 = vector.broadcast %950 : vector<1x128xf32> to vector<128x128xf32>
    %952 = arith.mulf %949, %951 : vector<128x128xf32>
    %c0_328 = arith.constant 0 : index
    %c0_329 = arith.constant 0 : index
    %953 = vector.load %arg9[%c0_328, %c0_329] : memref<1x128xf32, #tpu.memory_space<vmem>>, vector<1x128xf32>
    %954 = vector.broadcast %953 : vector<1x128xf32> to vector<128x128xf32>
    %955 = arith.addf %952, %954 : vector<128x128xf32>
    %c0_330 = arith.constant 0 : index
    %c0_331 = arith.constant 0 : index
    %c0_332 = arith.constant 0 : index
    %956 = vector.load %arg10[%c0_330, %c0_331, %c0_332] : memref<1x128x128xf32, #tpu.memory_space<vmem>>, vector<1x128x128xf32>
    %957 = vector.shape_cast %956 : vector<1x128x128xf32> to vector<128x128xf32>
    %958 = vector.shape_cast %955 : vector<128x128xf32> to vector<1x128x128xf32>
    tpu.vector_store %arg10[%c0_330, %c0_331, %c0_332], %958 {strides = array<i32>} : memref<1x128x128xf32, #tpu.memory_space<vmem>>, vector<1x128x128xf32>,
    return
  }
  func.func @transform_0(%arg0: i32) -> (i32, i32, i32) {
    %c0_i32 = arith.constant 0 : i32
    %c0_i32_0 = arith.constant 0 : i32
    %c0_i32_1 = arith.constant 0 : i32
    return %arg0, %c0_i32, %c0_i32_0 : i32, i32, i32
  }
  func.func @transform_1(%arg0: i32) -> (i32, i32) {
    %c0_i32 = arith.constant 0 : i32
    %c0_i32_0 = arith.constant 0 : i32
    %c0_i32_1 = arith.constant 0 : i32
    return %c0_i32, %c0_i32_0 : i32, i32
  }
  func.func @transform_2(%arg0: i32) -> (i32, i32) {
    %c0_i32 = arith.constant 0 : i32
    %c0_i32_0 = arith.constant 0 : i32
    %c0_i32_1 = arith.constant 0 : i32
    return %c0_i32, %c0_i32_0 : i32, i32
  }
  func.func @transform_3(%arg0: i32) -> (i32, i32) {
    %c0_i32 = arith.constant 0 : i32
    %c0_i32_0 = arith.constant 0 : i32
    %c0_i32_1 = arith.constant 0 : i32
    return %c0_i32, %c0_i32_0 : i32, i32
  }
  func.func @transform_4(%arg0: i32) -> (i32, i32) {
    %c0_i32 = arith.constant 0 : i32
    %c0_i32_0 = arith.constant 0 : i32
    %c0_i32_1 = arith.constant 0 : i32
    return %c0_i32, %c0_i32_0 : i32, i32
  }
  func.func @transform_5(%arg0: i32) -> (i32, i32) {
    %c0_i32 = arith.constant 0 : i32
    %c0_i32_0 = arith.constant 0 : i32
    %c0_i32_1 = arith.constant 0 : i32
    return %c0_i32, %c0_i32_0 : i32, i32
  }
  func.func @transform_6(%arg0: i32) -> (i32, i32) {
    %c0_i32 = arith.constant 0 : i32
    %c0_i32_0 = arith.constant 0 : i32
    %c0_i32_1 = arith.constant 0 : i32
    return %c0_i32, %c0_i32_0 : i32, i32
  }
  func.func @transform_7(%arg0: i32) -> (i32, i32) {
    %c0_i32 = arith.constant 0 : i32
    %c0_i32_0 = arith.constant 0 : i32
    %c0_i32_1 = arith.constant 0 : i32
    return %c0_i32, %c0_i32_0 : i32, i32
  }
  func.func @transform_8(%arg0: i32) -> (i32, i32) {
    %c0_i32 = arith.constant 0 : i32
    %c0_i32_0 = arith.constant 0 : i32
    %c0_i32_1 = arith.constant 0 : i32
    return %c0_i32, %c0_i32_0 : i32, i32
  }
  func.func @transform_9(%arg0: i32) -> (i32, i32, i32) {
    %c0_i32 = arith.constant 0 : i32
    %c0_i32_0 = arith.constant 0 : i32
    %c0_i32_1 = arith.constant 0 : i32
    return %arg0, %c0_i32, %c0_i32_0 : i32, i32, i32
  }
}

</mosaic_0001>

<bundles_post_ra>
// kernel: residual_bilstm_block.1
= control target key start
LH: loop header
LB: loop body
LE: loop exit
PB: predicated region body
PF: predicated region fallthrough
CT: control target
= control target key end

     0   :  { %14 = vsyncpa [#allocation5], 0  ;;  %s18025_s0 = inlined_call_operand.vmem [shape: f32[1,128,128], index: 0, kind: input, shape index: {}]   ;;  %s18026_s1 = inlined_call_operand.hbm [shape: bf16[128,1024], index: 1, kind: input, shape index: {}]   ;;  %s18027_s2 = inlined_call_operand.vmem [shape: f32[1,1024], index: 2, kind: input, shape index: {}]   ;;  %s18028_s3 = inlined_call_operand.vmem [shape: bf16[128,512], index: 3, kind: input, shape index: {}]   ;;  %s18029_s4 = inlined_call_operand.hbm [shape: bf16[128,512], index: 4, kind: input, shape index: {}]   ;;  %s18030_s5 = inlined_call_operand.hbm [shape: bf16[256,128], index: 5, kind: input, shape index: {}]   ;;  %s18031_s6 = inlined_call_operand.vmem [shape: f32[1,128], index: 6, kind: input, shape index: {}]   ;;  %s18032_s7 = inlined_call_operand.vmem [shape: f32[1,128], index: 7, kind: input, shape index: {}]   ;;  %s18033_s8 = inlined_call_operand.vmem [shape: f32[1,128], index: 8, kind: input, shape index: {}]   ;;  %s18034_s9 = inlined_call_operand.vmem [shape: f32[1,128,128], index: 9, kind: output, shape index: {}]  }
   0x1   :  { %15 = vsyncpa [#allocation7], 0  ;;  %s13944_s30 = smov [#allocation6]   ;;  %s13874_s13 = scalar_lea.hbm %s18029_s4, 4096 }
   0x2   :  { %s39_s10 = sshll.u32 %s13944_s30, 4  ;;  %p13875_p0 = scmp.ne.s32.totalorder %s18029_s4, %s13874_s13  ;;  %s40_s10 = int_to_ptr.vmem [resolvable:$true] %s39_s10 }
   0x3   :  { %p13878_p1 = scmp.lt.u32.totalorder %s13874_s13, %s18029_s4 }
   0x5   :  { %p13880_p2 = pnand %p13878_p1, %p13875_p0 }
   0x7   :  { %13883 = shalt.err (!%p13880_p2)
}
   0x8   :  { %s13884_s18 = scalar_lea.vmem %s40_s10, 4096  ;;  %p13889_p4 = scmp.lt.s32.totalorder %s40_s10, %s40_s10 }
   0x9   :  { %p13885_p3 = scmp.ne.s32.totalorder %s40_s10, %s13884_s18  ;;  %p13890_p5 = scmp.lt.s32.totalorder %s13884_s18, %s13884_s18 }
   0xb   :  { %p13891_p6 = por %p13890_p5, %p13889_p4 }
   0xd   :  { %p13892_p7 = pnand %p13891_p6, %p13885_p3 }
   0xf   :  { %13895 = shalt.err (!%p13892_p7)
}
  0x10   :  { %s13945_s19 = smov 256   ;;  %s13946_s20 = smov 16  }
  0x11   :  { %45 = dma.hbm_to_vmem [thread:$0]  %s18029_s4, 4096, %s40_s10, [#allocation7], %s13945_s19, %s13945_s19, %s13946_s20  }
  0x12   :  { %s13947_s23 = smov [#allocation4]   ;;  %s13896_s27 = scalar_lea.hbm %s18026_s1, 8192 }
  0x13   :  { %s23_s24 = sshll.u32 %s13947_s23, 4  ;;  %p13897_p8 = scmp.ne.s32.totalorder %s18026_s1, %s13896_s27  ;;  %s24_s24 = int_to_ptr.vmem [resolvable:$true] %s23_s24 }
  0x14   :  { %p13900_p9 = scmp.lt.u32.totalorder %s13896_s27, %s18026_s1 }
  0x16   :  { %p13902_p10 = pnand %p13900_p9, %p13897_p8 }
  0x18   :  { %13905 = shalt.err (!%p13902_p10)
}
  0x19   :  { %s13906_s12 = scalar_lea.vmem %s24_s24, 8192  ;;  %p13911_p12 = scmp.lt.s32.totalorder %s24_s24, %s24_s24 }
  0x1a   :  { %p13907_p11 = scmp.ne.s32.totalorder %s24_s24, %s13906_s12  ;;  %p13912_p13 = scmp.lt.s32.totalorder %s13906_s12, %s13906_s12 }
  0x1c   :  { %p13913_p0 = por %p13912_p13, %p13911_p12 }
  0x1e   :  { %p13914_p1 = pnand %p13913_p0, %p13907_p11 }
  0x20   :  { %13917 = shalt.err (!%p13914_p1)
}
  0x21   :  { %s13948_s4 = smov 512   ;;  %s13949_s10 = smov 32  }
  0x22   :  { %29 = dma.hbm_to_vmem [thread:$0]  %s18026_s1, 8192, %s24_s24, [#allocation5], %s13948_s4, %s13948_s4, %s13949_s10  }
  0x23   :  { %s13950_s15 = smov [#allocation8]   ;;  %s13918_s19 = scalar_lea.hbm %s18030_s5, 2048 }
  0x24   :  { %s51_s16 = sshll.u32 %s13950_s15, 4  ;;  %p13919_p2 = scmp.ne.s32.totalorder %s18030_s5, %s13918_s19  ;;  %s52_s16 = int_to_ptr.vmem [resolvable:$true] %s51_s16 }
  0x25   :  { %p13922_p3 = scmp.lt.u32.totalorder %s13918_s19, %s18030_s5 }
  0x27   :  { %p13924_p4 = pnand %p13922_p3, %p13919_p2 }
  0x29   :  { %13927 = shalt.err (!%p13924_p4)
}
  0x2a   :  { %s13928_s25 = scalar_lea.vmem %s52_s16, 2048  ;;  %p13933_p6 = scmp.lt.s32.totalorder %s52_s16, %s52_s16 }
  0x2b   :  { %p13929_p5 = scmp.ne.s32.totalorder %s52_s16, %s13928_s25  ;;  %p13934_p7 = scmp.lt.s32.totalorder %s13928_s25, %s13928_s25 }
  0x2d   :  { %p13935_p8 = por %p13934_p7, %p13933_p6 }
  0x2f   :  { %p13936_p9 = pnand %p13935_p8, %p13929_p5 }
  0x31   :  { %13939 = shalt.err (!%p13936_p9)
}
  0x32   :  { %s13951_s1 = smov 64   ;;  %s13952_s24 = smov 4  }
  0x33   :  { %57 = dma.hbm_to_vmem [thread:$0]  %s18030_s5, 2048, %s52_s16, [#allocation7], %s13951_s1, %s13951_s1, %s13952_s24  }
  0x34   :  { %13940 = dma.done.wait [#allocation5], 8192  }
  0x35   :  { %13941 = vsyncadd [#allocation5], 4294959104 }
  0x36   :  { %13942 = dma.done.wait [#allocation7], 6144  }
  0x37   :  { %13943 = vsyncadd [#allocation7], 4294961152  ;;  %v18035_v0 = vmov 0   ;;  %v98_v1 = vld [vmem:[#allocation4] sm:$0xff]  ;;  %v99_v31 = vld [vmem:[#allocation4 + $0x8] sm:$0xff] }
  0x38   :  { %556 = vmatprep.mubr.bf16.mxu0 %v18035_v0  ;;  %596 = vmatprep.mubr.bf16.mxu1 %v18035_v0  ;;  %v102_v2 = vld [vmem:[#allocation4 + $0x20] sm:$0xff]  ;;  %v103_v33 = vld [vmem:[#allocation4 + $0x28] sm:$0xff]  ;;  %v100_v34 = vld [vmem:[#allocation4 + $0x10] sm:$0xff] }
  0x39   :  { %v106_v3 = vld [vmem:[#allocation4 + $0x40] sm:$0xff]  ;;  %v11482_v4 = vcombine.high %v98_v1, %v102_v2  ;;  %v11481_v5 = vcombine.low %v98_v1, %v102_v2  ;;  %v104_v35 = vld [vmem:[#allocation4 + $0x30] sm:$0xff]  ;;  %v75_v37 = vld [vmem:[%s18025_s0 + $0x8] sm:$0xff]  ;;  %v11484_v41 = vcombine.high %v99_v31, %v103_v33  ;;  %v11483_v49 = vcombine.low %v99_v31, %v103_v33 }
  0x3a   :  { %v110_v6 = vld [vmem:[#allocation4 + $0x60] sm:$0xff]  ;;  %v83_v40 = vld [vmem:[%s18025_s0 + $0x48] sm:$0xff]  ;;  %v11486_v42 = vcombine.high %v100_v34, %v104_v35  ;;  %v108_v45 = vld [vmem:[#allocation4 + $0x50] sm:$0xff]  ;;  %v11485_v50 = vcombine.low %v100_v34, %v104_v35 }
  0x3b   :  { %v11490_v7 = vcombine.high %v106_v3, %v110_v6  ;;  %v114_v8 = vld [vmem:[#allocation4 + $0x80] sm:$0xff]  ;;  %524 = vmatprep.subr.bf16.mxu0 %v11482_v4  ;;  %12652 = vmatprep.subr.bf16.mxu1 %v11482_v4  ;;  %v11489_v10 = vcombine.low %v106_v3, %v110_v6  ;;  %v107_v43 = vld [vmem:[#allocation4 + $0x48] sm:$0xff]  ;;  %v112_v46 = vld [vmem:[#allocation4 + $0x70] sm:$0xff] }
  0x3c   :  { %v118_v9 = vld [vmem:[#allocation4 + $0xa0] sm:$0xff]  ;;  %525 = vmatpush1.bf16.msra.mxu0 %v11481_v5  ;;  %12660 = vmatpush1.bf16.msra.mxu1 %v11481_v5  ;;  %v111_v44 = vld [vmem:[#allocation4 + $0x68] sm:$0xff]  ;;  %v11494_v52 = vcombine.high %v108_v45, %v112_v46  ;;  %v76_v55 = vld [vmem:[%s18025_s0 + $0x10] sm:$0xff]  ;;  %v11493_v62 = vcombine.low %v108_v45, %v112_v46 }
  0x3d   :  { %526 = vmatprep.subr.bf16.mxu0 %v11490_v7  ;;  %12653 = vmatprep.subr.bf16.mxu1 %v11490_v7  ;;  %v11498_v11 = vcombine.high %v114_v8, %v118_v9  ;;  %v122_v12 = vld [vmem:[#allocation4 + $0xc0] sm:$0xff]  ;;  %v11497_v14 = vcombine.low %v114_v8, %v118_v9  ;;  %v11492_v51 = vcombine.high %v107_v43, %v111_v44  ;;  %v115_v53 = vld [vmem:[#allocation4 + $0x88] sm:$0xff]  ;;  %v77_v56 = vld [vmem:[%s18025_s0 + $0x18] sm:$0xff] }
  0x3e   :  { %v126_v13 = vld [vmem:[#allocation4 + $0xe0] sm:$0xff]  ;;  %v119_v54 = vld [vmem:[#allocation4 + $0xa8] sm:$0xff]  ;;  %v116_v57 = vld [vmem:[#allocation4 + $0x90] sm:$0xff]  ;;  %v11491_v61 = vcombine.low %v107_v43, %v111_v44  ;;  %v14074_v6 = vpack.c.bf16 %v77_v56, %v76_v55 }
  0x3f   :  { %v11506_v15 = vcombine.high %v122_v12, %v126_v13  ;;  %v130_v16 = vld [vmem:[#allocation4 + $0x100] sm:$0xff]  ;;  %v11505_v18 = vcombine.low %v122_v12, %v126_v13  ;;  %v120_v58 = vld [vmem:[#allocation4 + $0xb0] sm:$0xff]  ;;  %v85_v60 = vld [vmem:[%s18025_s0 + $0x58] sm:$0xff]  ;;  %v11500_v1 = vcombine.high %v115_v53, %v119_v54  ;;  %v11499_v8 = vcombine.low %v115_v53, %v119_v54 }
  0x40   :  { %527 = vmatpush1.bf16.msra.mxu0 %v11489_v10  ;;  %12661 = vmatpush1.bf16.msra.mxu1 %v11489_v10  ;;  %v134_v17 = vld [vmem:[#allocation4 + $0x120] sm:$0xff]  ;;  %v84_v59 = vld [vmem:[%s18025_s0 + $0x50] sm:$0xff]  ;;  %v123_v63 = vld [vmem:[#allocation4 + $0xc8] sm:$0xff]  ;;  %v11502_v2 = vcombine.high %v116_v57, %v120_v58  ;;  %v11501_v9 = vcombine.low %v116_v57, %v120_v58 }
  0x41   :  { %528 = vmatprep.subr.bf16.mxu0 %v11498_v11  ;;  %12654 = vmatprep.subr.bf16.mxu1 %v11498_v11  ;;  %v11514_v19 = vcombine.high %v130_v16, %v134_v17  ;;  %v138_v20 = vld [vmem:[#allocation4 + $0x140] sm:$0xff]  ;;  %v11513_v22 = vcombine.low %v130_v16, %v134_v17  ;;  %v127_v3 = vld [vmem:[#allocation4 + $0xe8] sm:$0xff]  ;;  %v124_v4 = vld [vmem:[#allocation4 + $0xd0] sm:$0xff]  ;;  %v14076_v7 = vpack.c.bf16 %v85_v60, %v84_v59 }
  0x42   :  { %v142_v21 = vld [vmem:[#allocation4 + $0x160] sm:$0xff]  ;;  %v128_v5 = vld [vmem:[#allocation4 + $0xf0] sm:$0xff]  ;;  %v131_v10 = vld [vmem:[#allocation4 + $0x108] sm:$0xff]  ;;  %v11508_v11 = vcombine.high %v123_v63, %v127_v3 }
  0x43   :  { %v11522_v23 = vcombine.high %v138_v20, %v142_v21  ;;  %v146_v24 = vld [vmem:[#allocation4 + $0x180] sm:$0xff]  ;;  %v11521_v26 = vcombine.low %v138_v20, %v142_v21  ;;  %v11510_v12 = vcombine.high %v124_v4, %v128_v5  ;;  %v135_v13 = vld [vmem:[#allocation4 + $0x128] sm:$0xff]  ;;  %v132_v16 = vld [vmem:[#allocation4 + $0x110] sm:$0xff]  ;;  %v11507_v20 = vcombine.low %v123_v63, %v127_v3 }
  0x44   :  { %529 = vmatpush1.bf16.msra.mxu0 %v11497_v14  ;;  %12662 = vmatpush1.bf16.msra.mxu1 %v11497_v14  ;;  %v150_v25 = vld [vmem:[#allocation4 + $0x1a0] sm:$0xff]  ;;  %v136_v17 = vld [vmem:[#allocation4 + $0x130] sm:$0xff]  ;;  %v11509_v21 = vcombine.low %v124_v4, %v128_v5  ;;  %v151_v35 = vld [vmem:[#allocation4 + $0x1a8] sm:$0xff] }
  0x45   :  { %530 = vmatprep.subr.bf16.mxu0 %v11506_v15  ;;  %12655 = vmatprep.subr.bf16.mxu1 %v11506_v15  ;;  %v11530_v27 = vcombine.high %v146_v24, %v150_v25  ;;  %v154_v28 = vld [vmem:[#allocation4 + $0x1c0] sm:$0xff]  ;;  %v11529_v30 = vcombine.low %v146_v24, %v150_v25  ;;  %v79_v15 = vld [vmem:[%s18025_s0 + $0x28] sm:$0xff]  ;;  %v11518_v24 = vcombine.high %v132_v16, %v136_v17  ;;  %v101_v56 = vld [vmem:[#allocation4 + $0x18] sm:$0xff] }
  0x46   :  { %v158_v29 = vld [vmem:[#allocation4 + $0x1e0] sm:$0xff]  ;;  %v143_v25 = vld [vmem:[#allocation4 + $0x168] sm:$0xff]  ;;  %v11517_v31 = vcombine.low %v132_v16, %v136_v17  ;;  %v105_v59 = vld [vmem:[#allocation4 + $0x38] sm:$0xff] }
  0x47   :  { %v11538_v32 = vcombine.high %v154_v28, %v158_v29  ;;  %v74_v36 = vld [vmem:[%s18025_s0] sm:$0xff]  ;;  %v11537_v39 = vcombine.low %v154_v28, %v158_v29  ;;  %v155_v44 = vld [vmem:[#allocation4 + $0x1c8] sm:$0xff]  ;;  %v113_v63 = vld [vmem:[#allocation4 + $0x78] sm:$0xff]  ;;  %v11487_v3 = vcombine.low %v101_v56, %v105_v59 }
  0x48   :  { %531 = vmatpush1.bf16.msra.mxu0 %v11505_v18  ;;  %12663 = vmatpush1.bf16.msra.mxu1 %v11505_v18  ;;  %v82_v38 = vld [vmem:[%s18025_s0 + $0x40] sm:$0xff]  ;;  %v14054_v47 = vpack.c.bf16 %v75_v37, %v74_v36  ;;  %v80_v36 = vld [vmem:[%s18025_s0 + $0x30] sm:$0xff]  ;;  %v81_v37 = vld [vmem:[%s18025_s0 + $0x38] sm:$0xff] }
  0x49   :  { %532 = vmatprep.subr.bf16.mxu0 %v11514_v19  ;;  %12656 = vmatprep.subr.bf16.mxu1 %v11514_v19  ;;  %v14056_v48 = vpack.c.bf16 %v83_v40, %v82_v38  ;;  %v78_v14 = vld [vmem:[%s18025_s0 + $0x20] sm:$0xff]  ;;  %v87_v19 = vld [vmem:[%s18025_s0 + $0x68] sm:$0xff]  ;;  %v148_v38 = vld [vmem:[#allocation4 + $0x190] sm:$0xff] }
  0x4a   :  { %v86_v18 = vld [vmem:[%s18025_s0 + $0x60] sm:$0xff]  ;;  %v14094_v28 = vpack.c.bf16 %v79_v15, %v78_v14  ;;  %v88_v40 = vld [vmem:[%s18025_s0 + $0x70] sm:$0xff]  ;;  %v117_v4 = vld [vmem:[#allocation4 + $0x98] sm:$0xff] }
  0x4b   :  { %v14096_v29 = vpack.c.bf16 %v87_v19, %v86_v18  ;;  %v121_v5 = vld [vmem:[#allocation4 + $0xb8] sm:$0xff]  ;;  %v12684_v16 = vld [vmem:[%s18028_s3 + $0x40] ss:$16 sps:$4 sm:$0xff]   ;;  %v12686_v17 = vld [vmem:[%s18028_s3 + $0x44] ss:$16 sps:$4 sm:$0xff]  }
  0x4c   :  { %533 = vmatpush1.bf16.msra.mxu0 %v11513_v22  ;;  %12664 = vmatpush1.bf16.msra.mxu1 %v11513_v22  ;;  %v139_v22 = vld [vmem:[#allocation4 + $0x148] sm:$0xff]  ;;  %v125_v14 = vld [vmem:[#allocation4 + $0xd8] sm:$0xff]  ;;  %v11503_v18 = vcombine.low %v117_v4, %v121_v5 }
  0x4d   :  { %534 = vmatprep.subr.bf16.mxu0 %v11522_v23  ;;  %12657 = vmatprep.subr.bf16.mxu1 %v11522_v23  ;;  %v11516_v23 = vcombine.high %v131_v10, %v135_v13  ;;  %v11524_v33 = vcombine.high %v139_v22, %v143_v25  ;;  %v129_v15 = vld [vmem:[#allocation4 + $0xf8] sm:$0xff] }
  0x4e   :  { %v133_v19 = vld [vmem:[#allocation4 + $0x118] sm:$0xff] }
  0x50   :  { %535 = vmatpush1.bf16.msra.mxu0 %v11521_v26  ;;  %12665 = vmatpush1.bf16.msra.mxu1 %v11521_v26  ;;  %v140_v26 = vld [vmem:[#allocation4 + $0x150] sm:$0xff] }
  0x51   :  { %536 = vmatprep.subr.bf16.mxu0 %v11530_v27  ;;  %12658 = vmatprep.subr.bf16.mxu1 %v11530_v27  ;;  %v144_v27 = vld [vmem:[#allocation4 + $0x170] sm:$0xff] }
  0x52   :  { %v11526_v34 = vcombine.high %v140_v26, %v144_v27  ;;  %v11525_v43 = vcombine.low %v140_v26, %v144_v27  ;;  %v145_v26 = vld [vmem:[#allocation4 + $0x178] sm:$0xff] }
  0x54   :  { %537 = vmatpush1.bf16.msra.mxu0 %v11529_v30  ;;  %12666 = vmatpush1.bf16.msra.mxu1 %v11529_v30  ;;  %v11515_v30 = vcombine.low %v131_v10, %v135_v13  ;;  %v12683_v10 = vld [vmem:[%s18028_s3 + $0x24] ss:$16 sps:$4 sm:$0xff]   ;;  %v11504_v13 = vcombine.high %v117_v4, %v121_v5  ;;  %v14252_v4 = vld [vmem:[%s18028_s3 + $0x8c] ss:$16 sps:$4 sm:$0xff]   ;;  %v12726_v5 = vld [vmem:[#allocation6 + $0x60] ss:$16 sps:$4 sm:$0xff]  }
  0x55   :  { %538 = vmatprep.subr.bf16.mxu0 %v11538_v32  ;;  %12659 = vmatprep.subr.bf16.mxu1 %v11538_v32  ;;  %v147_v32 = vld [vmem:[#allocation4 + $0x188] sm:$0xff] }
  0x56   :  { %v11532_v45 = vcombine.high %v147_v32, %v151_v35  ;;  %v11531_v54 = vcombine.low %v147_v32, %v151_v35  ;;  %v12695_v35 = vld [vmem:[%s18028_s3 + $0xa4] ss:$16 sps:$4 sm:$0xff]  }
  0x58   :  { %539 = vmatpush1.bf16.msra.mxu0 %v11537_v39  ;;  %12667 = vmatpush1.bf16.msra.mxu1 %v11537_v39  ;;  %v152_v39 = vld [vmem:[#allocation4 + $0x1b0] sm:$0xff] }
  0x59   :  { %637 = vmatprep.subr.bf16.mxu1 %v11484_v41  ;;  %750 = vmatprep.subr.bf16.mxu0 %v11486_v42  ;;  %v89_v41 = vld [vmem:[%s18025_s0 + $0x78] sm:$0xff]  ;;  %v11523_v42 = vcombine.low %v139_v22, %v143_v25  ;;  %v11534_v46 = vcombine.high %v148_v38, %v152_v39  ;;  %v11533_v55 = vcombine.low %v148_v38, %v152_v39 }
  0x5a   :  { %v14116_v53 = vpack.c.bf16 %v89_v41, %v88_v40  ;;  %v11512_v22 = vcombine.high %v125_v14, %v129_v15  ;;  %v141_v25 = vld [vmem:[#allocation4 + $0x158] sm:$0xff] }
  0x5b   :  { %557 = vmatmul.mubr.bf16.vlgmr.msra.gmra.mrb[0].mxu0 %v14054_v47  ;;  %597 = vmatmul.mubr.bf16.vlgmr.msra.gmra.mrb[0].mxu1 %v14056_v48  ;;  %v11527_v38 = vcombine.low %v141_v25, %v145_v26  ;;  %v157_v39 = vld [vmem:[#allocation4 + $0x1d8] sm:$0xff] }
  0x5c   :  { %638 = vmatpush1.bf16.msra.mxu1 %v11483_v49  ;;  %751 = vmatpush1.bf16.msra.mxu0 %v11485_v50  ;;  %v159_v49 = vld [vmem:[#allocation4 + $0x1e8] sm:$0xff]  ;;  %v156_v50 = vld [vmem:[#allocation4 + $0x1d0] sm:$0xff]  ;;  %v161_v40 = vld [vmem:[#allocation4 + $0x1f8] sm:$0xff] }
  0x5d   :  { %639 = vmatprep.subr.bf16.mxu1 %v11492_v51  ;;  %752 = vmatprep.subr.bf16.mxu0 %v11494_v52  ;;  %v160_v51 = vld [vmem:[#allocation4 + $0x1f0] sm:$0xff]  ;;  %v14114_v52 = vpack.c.bf16 %v81_v37, %v80_v36  ;;  %v11540_v57 = vcombine.high %v155_v44, %v159_v49  ;;  %v11539_v60 = vcombine.low %v155_v44, %v159_v49 }
  0x5e   :  { %566 = vmatprep.mubr.bf16.mxu0 %v18035_v0  ;;  %606 = vmatprep.mubr.bf16.mxu1 %v18035_v0  ;;  %v11542_v58 = vcombine.high %v156_v50, %v160_v51  ;;  %v11528_v36 = vcombine.high %v141_v25, %v145_v26  ;;  %v12693_v37 = vld [vmem:[%s18028_s3 + $0xa0] ss:$16 sps:$4 sm:$0xff]   ;;  %v12764_v25 = vld [vmem:[#allocation6 + $0x8c] ss:$16 sps:$4 sm:$0xff]  }
  0x5f   :  { %v12699_v49 = vld [vmem:[%s18028_s3 + $0xe0] ss:$16 sps:$4 sm:$0xff]   ;;  %v12767_v26 = vld [vmem:[#allocation6 + $0xac] ss:$16 sps:$4 sm:$0xff]  }
  0x60   :  { %640 = vmatpush1.bf16.msra.mxu1 %v11491_v61  ;;  %753 = vmatpush1.bf16.msra.mxu0 %v11493_v62  ;;  %v11541_v61 = vcombine.low %v156_v50, %v160_v51  ;;  %v109_v62 = vld [vmem:[#allocation4 + $0x58] sm:$0xff]  ;;  %v11543_v51 = vcombine.low %v157_v39, %v161_v40 }
  0x61   :  { %641 = vmatprep.subr.bf16.mxu1 %v11500_v1  ;;  %754 = vmatprep.subr.bf16.mxu0 %v11502_v2  ;;  %v12680_v1 = vld [vmem:[%s18028_s3 + $0x4] ss:$16 sps:$4 sm:$0xff]   ;;  %v11488_v2 = vcombine.high %v101_v56, %v105_v59  ;;  %v12704_v50 = vld [vmem:[%s18028_s3 + $0xc] ss:$16 sps:$4 sm:$0xff]   ;;  %v14218_v59 = vld [vmem:[%s18028_s3 + $0x28] ss:$16 sps:$4 sm:$0xff]  }
  0x62   :  { %v14213_v56 = vld [vmem:[%s18028_s3 + $0x2c] ss:$16 sps:$4 sm:$0xff]  }
  0x63   :  { %567 = vmatmul.mubr.bf16.gmra.mrb[4].mxu0 %v14074_v6  ;;  %607 = vmatmul.mubr.bf16.gmra.mrb[4].mxu1 %v14076_v7 }
  0x64   :  { %642 = vmatpush1.bf16.msra.mxu1 %v11499_v8  ;;  %755 = vmatpush1.bf16.msra.mxu0 %v11501_v9  ;;  %v12678_v8 = vld [vmem:[%s18028_s3] ss:$16 sps:$4 sm:$0xff]   ;;  %v11496_v9 = vcombine.high %v109_v62, %v113_v63 }
  0x65   :  { %643 = vmatprep.subr.bf16.mxu1 %v11508_v11  ;;  %756 = vmatprep.subr.bf16.mxu0 %v11510_v12  ;;  %v11495_v11 = vcombine.low %v109_v62, %v113_v63  ;;  %v12681_v12 = vld [vmem:[%s18028_s3 + $0x20] ss:$16 sps:$4 sm:$0xff]   ;;  %v12722_v62 = vld [vmem:[#allocation6 + $0x44] ss:$16 sps:$4 sm:$0xff]   ;;  %v14239_v63 = vld [vmem:[%s18028_s3 + $0x6c] ss:$16 sps:$4 sm:$0xff]  }
  0x66   :  { %576 = vmatprep.mubr.bf16.mxu0 %v18035_v0  ;;  %616 = vmatprep.mubr.bf16.mxu1 %v18035_v0 }
  0x68   :  { %644 = vmatpush1.bf16.msra.mxu1 %v11507_v20  ;;  %757 = vmatpush1.bf16.msra.mxu0 %v11509_v21  ;;  %v137_v20 = vld [vmem:[#allocation4 + $0x138] sm:$0xff]  ;;  %v12689_v21 = vld [vmem:[%s18028_s3 + $0x64] ss:$16 sps:$4 sm:$0xff]  }
  0x69   :  { %645 = vmatprep.subr.bf16.mxu1 %v11516_v23  ;;  %758 = vmatprep.subr.bf16.mxu0 %v11518_v24  ;;  %v12687_v23 = vld [vmem:[%s18028_s3 + $0x60] ss:$16 sps:$4 sm:$0xff]   ;;  %v11511_v24 = vcombine.low %v125_v14, %v129_v15  ;;  %v11520_v27 = vcombine.high %v133_v19, %v137_v20  ;;  %v11519_v32 = vcombine.low %v133_v19, %v137_v20  ;;  %v14278_v14 = vld [vmem:[%s18028_s3 + $0xcc] ss:$16 sps:$4 sm:$0xff]   ;;  %v12740_v15 = vld [vmem:[#allocation6 + $0xc4] ss:$16 sps:$4 sm:$0xff]  }
  0x6a   :  { %v14298_v19 = vld [vmem:[%s18028_s3 + $0xe8] ss:$16 sps:$4 sm:$0xff]   ;;  %v12744_v20 = vld [vmem:[#allocation6 + $0xe0] ss:$16 sps:$4 sm:$0xff]  }
  0x6b   :  { %577 = vmatmul.mubr.bf16.gmra.mrb[8].mxu0 %v14094_v28  ;;  %617 = vmatmul.mubr.bf16.gmra.mrb[8].mxu1 %v14096_v29 }
  0x6c   :  { %646 = vmatpush1.bf16.msra.mxu1 %v11515_v30  ;;  %759 = vmatpush1.bf16.msra.mxu0 %v11517_v31  ;;  %v12690_v30 = vld [vmem:[%s18028_s3 + $0x80] ss:$16 sps:$4 sm:$0xff]   ;;  %v12692_v31 = vld [vmem:[%s18028_s3 + $0x84] ss:$16 sps:$4 sm:$0xff]  }
  0x6d   :  { %647 = vmatprep.subr.bf16.mxu1 %v11524_v33  ;;  %760 = vmatprep.subr.bf16.mxu0 %v11526_v34  ;;  %v149_v33 = vld [vmem:[#allocation4 + $0x198] sm:$0xff] }
  0x6e   :  { %586 = vmatprep.mubr.bf16.mxu0 %v18035_v0  ;;  %626 = vmatprep.mubr.bf16.mxu1 %v18035_v0  ;;  %v153_v34 = vld [vmem:[#allocation4 + $0x1b8] sm:$0xff] }
  0x6f   :  { %v11536_v41 = vcombine.high %v149_v33, %v153_v34  ;;  %v11535_v44 = vcombine.low %v149_v33, %v153_v34  ;;  %v12771_v33 = vld [vmem:[#allocation6 + $0xe8] ss:$16 sps:$4 sm:$0xff]   ;;  %v164_v34 = vlaneseq }
  0x70   :  { %648 = vmatpush1.bf16.msra.mxu1 %v11523_v42  ;;  %761 = vmatpush1.bf16.msra.mxu0 %v11525_v43  ;;  %v12696_v42 = vld [vmem:[%s18028_s3 + $0xc0] ss:$16 sps:$4 sm:$0xff]   ;;  %v12698_v43 = vld [vmem:[%s18028_s3 + $0xc4] ss:$16 sps:$4 sm:$0xff]  }
  0x71   :  { %649 = vmatprep.subr.bf16.mxu1 %v11532_v45  ;;  %762 = vmatprep.subr.bf16.mxu0 %v11534_v46  ;;  %v12701_v45 = vld [vmem:[%s18028_s3 + $0xe4] ss:$16 sps:$4 sm:$0xff]   ;;  %v11544_v46 = vcombine.high %v157_v39, %v161_v40 }
  0x73   :  { %587 = vmatmul.mubr.bf16.gmra.mrb[12].mxu0 %v14114_v52  ;;  %627 = vmatmul.mubr.bf16.gmra.mrb[12].mxu1 %v14116_v53 }
  0x74   :  { %650 = vmatpush1.bf16.msra.mxu1 %v11531_v54  ;;  %763 = vmatpush1.bf16.msra.mxu0 %v11533_v55  ;;  %v12713_v54 = vld [vmem:[#allocation6 + $0x4] ss:$16 sps:$4 sm:$0xff]   ;;  %v14208_v55 = vld [vmem:[%s18028_s3 + $0x8] ss:$16 sps:$4 sm:$0xff]  }
  0x75   :  { %651 = vmatprep.subr.bf16.mxu1 %v11540_v57  ;;  %764 = vmatprep.subr.bf16.mxu0 %v11542_v58  ;;  %v12711_v57 = vld [vmem:[#allocation6] ss:$16 sps:$4 sm:$0xff]   ;;  %v12719_v58 = vld [vmem:[#allocation6 + $0x24] ss:$16 sps:$4 sm:$0xff]  }
  0x76   :  { %669 = vmatprep.mubr.bf16.mxu1 %v18035_v0  ;;  %782 = vmatprep.mubr.bf16.mxu0 %v18035_v0 }
  0x78   :  { %652 = vmatpush1.bf16.msra.mxu1 %v11539_v60  ;;  %765 = vmatpush1.bf16.msra.mxu0 %v11541_v61  ;;  %v14225_v60 = vld [vmem:[%s18028_s3 + $0x4c] ss:$16 sps:$4 sm:$0xff]   ;;  %v12717_v61 = vld [vmem:[#allocation6 + $0x20] ss:$16 sps:$4 sm:$0xff]  }
  0x79   :  { %863 = vmatprep.subr.bf16.mxu1 %v11488_v2  ;;  %1303 = vmatprep.subr.bf16.mxu0 %v12680_v1  ;;  %v12720_v1 = vld [vmem:[#allocation6 + $0x40] ss:$16 sps:$4 sm:$0xff]   ;;  %v12728_v2 = vld [vmem:[#allocation6 + $0x64] ss:$16 sps:$4 sm:$0xff]  }
  0x7b   :  { %670 = vmatmul.mubr.bf16.vlgmr.msra.gmra.mrb[16].mxu1 %v14054_v47  ;;  %783 = vmatmul.mubr.bf16.vlgmr.msra.gmra.mrb[16].mxu0 %v14054_v47 }
  0x7c   :  { %864 = vmatpush1.bf16.msra.mxu1 %v11487_v3  ;;  %679 = vmatprep.mubr.bf16.mxu1 %v18035_v0  ;;  %v14246_v3 = vld [vmem:[%s18028_s3 + $0x68] ss:$16 sps:$4 sm:$0xff]  }
  0x7d   :  { %792 = vmatprep.mubr.bf16.mxu0 %v18035_v0  ;;  %865 = vmatprep.subr.bf16.mxu1 %v11496_v9  ;;  %v14260_v9 = vld [vmem:[%s18028_s3 + $0x88] ss:$16 sps:$4 sm:$0xff]  }
  0x7e   :  { %1304 = vmatpush1.bf16.msra.mxu0 %v12678_v8  ;;  %v12731_v8 = vld [vmem:[#allocation6 + $0x84] ss:$16 sps:$4 sm:$0xff]  }
  0x7f   :  { %1305 = vmatprep.subr.bf16.mxu0 %v12683_v10  ;;  %v14265_v10 = vld [vmem:[%s18028_s3 + $0xac] ss:$16 sps:$4 sm:$0xff]  }
  0x80   :  { %866 = vmatpush1.bf16.msra.mxu1 %v11495_v11  ;;  %v12737_v11 = vld [vmem:[#allocation6 + $0xa4] ss:$16 sps:$4 sm:$0xff]  }
  0x81   :  { %867 = vmatprep.subr.bf16.mxu1 %v11504_v13  ;;  %v12735_v13 = vld [vmem:[#allocation6 + $0xa0] ss:$16 sps:$4 sm:$0xff]  }
  0x82   :  { %1306 = vmatpush1.bf16.msra.mxu0 %v12681_v12  ;;  %v14272_v12 = vld [vmem:[%s18028_s3 + $0xa8] ss:$16 sps:$4 sm:$0xff]  }
  0x83   :  { %680 = vmatmul.mubr.bf16.gmra.mrb[20].mxu1 %v14074_v6  ;;  %793 = vmatmul.mubr.bf16.gmra.mrb[20].mxu0 %v14074_v6 }
  0x84   :  { %689 = vmatprep.mubr.bf16.mxu1 %v18035_v0  ;;  %802 = vmatprep.mubr.bf16.mxu0 %v18035_v0 }
  0x85   :  { %868 = vmatpush1.bf16.msra.mxu1 %v11503_v18  ;;  %1307 = vmatprep.subr.bf16.mxu0 %v12686_v17  ;;  %v14291_v17 = vld [vmem:[%s18028_s3 + $0xec] ss:$16 sps:$4 sm:$0xff]   ;;  %v12746_v18 = vld [vmem:[#allocation6 + $0xe4] ss:$16 sps:$4 sm:$0xff]  }
  0x86   :  { %869 = vmatprep.subr.bf16.mxu1 %v11512_v22  ;;  %1308 = vmatpush1.bf16.msra.mxu0 %v12684_v16  ;;  %v14286_v16 = vld [vmem:[%s18028_s3 + $0xc8] ss:$16 sps:$4 sm:$0xff]  }
  0x87   :  { %1309 = vmatprep.subr.bf16.mxu0 %v12689_v21  ;;  %v14301_v21 = vld [vmem:[#allocation6 + $0xc] ss:$16 sps:$4 sm:$0xff]   ;;  %v12753_v22 = vld [vmem:[#allocation6 + $0x28] ss:$16 sps:$4 sm:$0xff]  }
  0x89   :  { %870 = vmatpush1.bf16.msra.mxu1 %v11511_v24  ;;  %v12761_v24 = vld [vmem:[#allocation6 + $0x6c] ss:$16 sps:$4 sm:$0xff]  }
  0x8a   :  { %871 = vmatprep.subr.bf16.mxu1 %v11520_v27  ;;  %1310 = vmatpush1.bf16.msra.mxu0 %v12687_v23  ;;  %v12758_v23 = vld [vmem:[#allocation6 + $0x4c] ss:$16 sps:$4 sm:$0xff]   ;;  %v12765_v27 = vld [vmem:[#allocation6 + $0xa8] ss:$16 sps:$4 sm:$0xff]  }
  0x8b   :  { %690 = vmatmul.mubr.bf16.gmra.mrb[24].mxu1 %v14094_v28  ;;  %803 = vmatmul.mubr.bf16.gmra.mrb[24].mxu0 %v14094_v28 }
  0x8c   :  { %699 = vmatprep.mubr.bf16.mxu1 %v18035_v0  ;;  %812 = vmatprep.mubr.bf16.mxu0 %v18035_v0 }
  0x8d   :  { %872 = vmatpush1.bf16.msra.mxu1 %v11519_v32  ;;  %1311 = vmatprep.subr.bf16.mxu0 %v12692_v31  ;;  %v12768_v31 = vld [vmem:[#allocation6 + $0xc8] ss:$16 sps:$4 sm:$0xff]   ;;  %v12773_v32 = vld [vmem:[#allocation6 + $0xec] ss:$16 sps:$4 sm:$0xff]  }
  0x8e   :  { %873 = vmatprep.subr.bf16.mxu1 %v11528_v36  ;;  %1312 = vmatpush1.bf16.msra.mxu0 %v12690_v30  ;;  %v12770_v30 = vld [vmem:[#allocation6 + $0xcc] ss:$16 sps:$4 sm:$0xff]   ;;  %v14324_v36 = vshrl.u32 %v164_v34, 7 }
  0x8f   :  { %1313 = vmatprep.subr.bf16.mxu0 %v12695_v35  ;;  %v13859_v35 = vld [vmem:[%s18028_s3 + $0xc] ss:$16 sps:$4 sm:$0xff]  }
  0x90   :  { %v170_v39 = vsub.s32 1, %v14324_v36 }
  0x91   :  { %874 = vmatpush1.bf16.msra.mxu1 %v11527_v38  ;;  %v14337_v38 = vld [vmem:[%s18027_s2] sm:$0xff] }
  0x92   :  { %875 = vmatprep.subr.bf16.mxu1 %v11536_v41  ;;  %1314 = vmatpush1.bf16.msra.mxu0 %v12693_v37  ;;  %v166_v37 = vsub.s32 0, %v14324_v36  ;;  %v14346_v41 = vrot.slane %v14337_v38, %v170_v39 }
  0x93   :  { %700 = vmatmul.mubr.bf16.gmra.mrb[28].mxu1 %v14114_v52  ;;  %813 = vmatmul.mubr.bf16.gmra.mrb[28].mxu0 %v14114_v52 }
  0x94   :  { %709 = vmatprep.mubr.bf16.mxu1 %v18035_v0  ;;  %822 = vmatprep.mubr.bf16.mxu0 %v18035_v0  ;;  %v14343_v40 = vrot.slane %v14337_v38, %v166_v37  ;;  %v186_v37 = vsub.s32 5, %v14324_v36 }
  0x95   :  { %876 = vmatpush1.bf16.msra.mxu1 %v11535_v44  ;;  %1315 = vmatprep.subr.bf16.mxu0 %v12698_v43 }
  0x96   :  { %877 = vmatprep.subr.bf16.mxu1 %v11544_v46  ;;  %1316 = vmatpush1.bf16.msra.mxu0 %v12696_v42 }
  0x97   :  { %1317 = vmatprep.subr.bf16.mxu0 %v12701_v45 }
  0x99   :  { %878 = vmatpush1.bf16.msra.mxu1 %v11543_v51 }
  0x9a   :  { %1318 = vmatpush1.bf16.msra.mxu0 %v12699_v49  ;;  %1344 = vmatprep.subr.bf16.mxu1 %v12704_v50 }
  0x9b   :  { %710 = vmatmul.mubr.bf16.gmra.mrb[32].mxu1 %v14056_v48  ;;  %823 = vmatmul.mubr.bf16.gmra.mrb[32].mxu0 %v14056_v48 }
  0x9c   :  { %719 = vmatprep.mubr.bf16.mxu1 %v18035_v0  ;;  %832 = vmatprep.mubr.bf16.mxu0 %v18035_v0 }
  0x9d   :  { %1588 = vmatprep.subr.bf16.mxu0 %v12713_v54 }
  0xa3   :  { %720 = vmatmul.mubr.bf16.gmra.mrb[36].mxu1 %v14076_v7  ;;  %833 = vmatmul.mubr.bf16.gmra.mrb[36].mxu0 %v14076_v7 }
  0xa4   :  { %729 = vmatprep.mubr.bf16.mxu1 %v18035_v0  ;;  %842 = vmatprep.mubr.bf16.mxu0 %v18035_v0 }
  0xab   :  { %730 = vmatmul.mubr.bf16.gmra.mrb[40].mxu1 %v14096_v29  ;;  %843 = vmatmul.mubr.bf16.gmra.mrb[40].mxu0 %v14096_v29 }
  0xac   :  { %739 = vmatprep.mubr.bf16.mxu1 %v18035_v0  ;;  %852 = vmatprep.mubr.bf16.mxu0 %v18035_v0 }
  0xb3   :  { %740 = vmatmul.mubr.bf16.gmra.mrb[44].mxu1 %v14116_v53  ;;  %853 = vmatmul.mubr.bf16.gmra.mrb[44].mxu0 %v14116_v53 }
  0xb4   :  { %895 = vmatprep.mubr.bf16.mxu1 %v18035_v0  ;;  %1335 = vmatprep.mubr.bf16.mxu0 %v18035_v0 }
  0xbb   :  { %896 = vmatmul.mubr.bf16.vlgmr.msra.gmra.mrb[48].mxu1 %v14054_v47  ;;  %1336 = vmatmul.mubr.bf16.vlgmr.msra.gmra.mrb[48].mxu0 %v18035_v0  ;;  %v14233_v47 = vld [vmem:[%s18028_s3 + $0x48] ss:$16 sps:$4 sm:$0xff]  }
  0xbc   :  { %1345 = vmatpush1.bf16.msra.mxu1 %v14208_v55  ;;  %905 = vmatprep.mubr.bf16.mxu1 %v18035_v0 }
  0xbd   :  { %1346 = vmatprep.subr.bf16.mxu1 %v14213_v56  ;;  %1589 = vmatpush1.bf16.msra.mxu0 %v12711_v57 }
  0xbe   :  { %1590 = vmatprep.subr.bf16.mxu0 %v12719_v58  ;;  %1620 = vmatprep.mubr.bf16.mxu0 %v18035_v0 }
  0xc0   :  { %1347 = vmatpush1.bf16.msra.mxu1 %v14218_v59 }
  0xc1   :  { %1348 = vmatprep.subr.bf16.mxu1 %v14225_v60  ;;  %1591 = vmatpush1.bf16.msra.mxu0 %v12717_v61 }
  0xc2   :  { %1592 = vmatprep.subr.bf16.mxu0 %v12722_v62 }
  0xc3   :  { %906 = vmatmul.mubr.bf16.gmra.mrb[52].mxu1 %v14074_v6  ;;  %v12729_v6 = vld [vmem:[#allocation6 + $0x80] ss:$16 sps:$4 sm:$0xff]  }
  0xc4   :  { %915 = vmatprep.mubr.bf16.mxu1 %v18035_v0  ;;  %1349 = vmatpush1.bf16.msra.mxu1 %v14233_v47 }
  0xc5   :  { %1350 = vmatprep.subr.bf16.mxu1 %v14239_v63  ;;  %1593 = vmatpush1.bf16.msra.mxu0 %v12720_v1 }
  0xc6   :  { %1594 = vmatprep.subr.bf16.mxu0 %v12728_v2 }
  0xc8   :  { %1351 = vmatpush1.bf16.msra.mxu1 %v14246_v3 }
  0xc9   :  { %1352 = vmatprep.subr.bf16.mxu1 %v14252_v4  ;;  %1595 = vmatpush1.bf16.msra.mxu0 %v12726_v5 }
  0xca   :  { %1596 = vmatprep.subr.bf16.mxu0 %v12731_v8 }
  0xcb   :  { %916 = vmatmul.mubr.bf16.gmra.mrb[56].mxu1 %v14094_v28  ;;  %v12738_v28 = vld [vmem:[#allocation6 + $0xc0] ss:$16 sps:$4 sm:$0xff]  }
  0xcc   :  { %925 = vmatprep.mubr.bf16.mxu1 %v18035_v0  ;;  %1353 = vmatpush1.bf16.msra.mxu1 %v14260_v9 }
  0xcd   :  { %1597 = vmatpush1.bf16.msra.mxu0 %v12729_v6  ;;  %1354 = vmatprep.subr.bf16.mxu1 %v14265_v10 }
  0xce   :  { %1598 = vmatprep.subr.bf16.mxu0 %v12737_v11 }
  0xd0   :  { %1355 = vmatpush1.bf16.msra.mxu1 %v14272_v12 }
  0xd1   :  { %1599 = vmatpush1.bf16.msra.mxu0 %v12735_v13  ;;  %1356 = vmatprep.subr.bf16.mxu1 %v14278_v14 }
  0xd2   :  { %1600 = vmatprep.subr.bf16.mxu0 %v12740_v15 }
  0xd3   :  { %926 = vmatmul.mubr.bf16.gmra.mrb[60].mxu1 %v14114_v52  ;;  %v12750_v52 = vld [vmem:[#allocation6 + $0x8] ss:$16 sps:$4 sm:$0xff]  }
  0xd4   :  { %935 = vmatprep.mubr.bf16.mxu1 %v18035_v0  ;;  %1357 = vmatpush1.bf16.msra.mxu1 %v14286_v16 }
  0xd5   :  { %1601 = vmatpush1.bf16.msra.mxu0 %v12738_v28  ;;  %1358 = vmatprep.subr.bf16.mxu1 %v14291_v17 }
  0xd6   :  { %1602 = vmatprep.subr.bf16.mxu0 %v12746_v18 }
  0xd8   :  { %1359 = vmatpush1.bf16.msra.mxu1 %v14298_v19 }
  0xd9   :  { %1603 = vmatpush1.bf16.msra.mxu0 %v12744_v20  ;;  %1629 = vmatprep.subr.bf16.mxu1 %v14301_v21 }
  0xdb   :  { %936 = vmatmul.mubr.bf16.gmra.mrb[64].mxu1 %v14056_v48  ;;  %v12755_v48 = vld [vmem:[#allocation6 + $0x2c] ss:$16 sps:$4 sm:$0xff]  }
  0xdc   :  { %945 = vmatprep.mubr.bf16.mxu1 %v18035_v0  ;;  %1621 = vmatmul.mubr.bf16.vlgmr.msra.gmra.mrb[52].mxu0 %v18035_v0 }
  0xdd   :  { %1950 = vmatprep.mubr.bf16.mxu0 %v18035_v0 }
  0xe3   :  { %946 = vmatmul.mubr.bf16.gmra.mrb[68].mxu1 %v14076_v7  ;;  %v12756_v7 = vld [vmem:[#allocation6 + $0x48] ss:$16 sps:$4 sm:$0xff]  }
  0xe4   :  { %955 = vmatprep.mubr.bf16.mxu1 %v18035_v0 }
  0xeb   :  { %956 = vmatmul.mubr.bf16.gmra.mrb[72].mxu1 %v14096_v29  ;;  %v12759_v29 = vld [vmem:[#allocation6 + $0x68] ss:$16 sps:$4 sm:$0xff]  }
  0xec   :  { %965 = vmatprep.mubr.bf16.mxu1 %v18035_v0 }
  0xf3   :  { %966 = vmatmul.mubr.bf16.gmra.mrb[76].mxu1 %v14116_v53  ;;  %v12762_v53 = vld [vmem:[#allocation6 + $0x88] ss:$16 sps:$4 sm:$0xff]  }
  0xf4   :  { %1376 = vmatprep.mubr.bf16.mxu1 %v18035_v0 }
  0xfb   :  { %1377 = vmatmul.mubr.bf16.vlgmr.msra.gmra.mrb[80].mxu1 %v18035_v0 }
  0xfc   :  { %1630 = vmatpush1.bf16.msra.mxu1 %v12750_v52  ;;  %1661 = vmatprep.mubr.bf16.mxu1 %v18035_v0 }
  0xfd   :  { %1631 = vmatprep.subr.bf16.mxu1 %v12755_v48 }
 0x100   :  { %1632 = vmatpush1.bf16.msra.mxu1 %v12753_v22 }
 0x101   :  { %1633 = vmatprep.subr.bf16.mxu1 %v12758_v23 }
 0x104   :  { %1634 = vmatpush1.bf16.msra.mxu1 %v12756_v7 }
 0x105   :  { %1635 = vmatprep.subr.bf16.mxu1 %v12761_v24 }
 0x108   :  { %1636 = vmatpush1.bf16.msra.mxu1 %v12759_v29 }
 0x109   :  { %1637 = vmatprep.subr.bf16.mxu1 %v12764_v25 }
 0x10c   :  { %1638 = vmatpush1.bf16.msra.mxu1 %v12762_v53 }
 0x10d   :  { %1639 = vmatprep.subr.bf16.mxu1 %v12767_v26 }
 0x110   :  { %1640 = vmatpush1.bf16.msra.mxu1 %v12765_v27 }
 0x111   :  { %1641 = vmatprep.subr.bf16.mxu1 %v12770_v30 }
 0x114   :  { %1642 = vmatpush1.bf16.msra.mxu1 %v12768_v31  ;;  %v182_v31 = vsub.s32 4, %v14324_v36 }
 0x115   :  { %1643 = vmatprep.subr.bf16.mxu1 %v12773_v32 }
 0x118   :  { %1644 = vmatpush1.bf16.msra.mxu1 %v12771_v33 }
 0x119   :  { %1959 = vmatprep.subr.bf16.mxu1 %v13859_v35 }
 0x11b   :  { %1662 = vmatmul.mubr.bf16.vlgmr.msra.gmra.mrb[84].mxu1 %v18035_v0 }
 0x11c   :  { %1960 = vmatpush1.bf16.msra.mxu1 %v14208_v55  ;;  %1991 = vmatprep.mubr.bf16.mxu1 %v18035_v0 }
 0x11d   :  { %1961 = vmatprep.subr.bf16.mxu1 %v14213_v56 }
 0x120   :  { %1962 = vmatpush1.bf16.msra.mxu1 %v14218_v59 }
 0x121   :  { %1963 = vmatprep.subr.bf16.mxu1 %v14225_v60 }
 0x124   :  { %1964 = vmatpush1.bf16.msra.mxu1 %v14233_v47 }
 0x125   :  { %1965 = vmatprep.subr.bf16.mxu1 %v14239_v63 }
 0x128   :  { %1966 = vmatpush1.bf16.msra.mxu1 %v14246_v3 }
 0x129   :  { %1967 = vmatprep.subr.bf16.mxu1 %v14252_v4 }
 0x12c   :  { %1968 = vmatpush1.bf16.msra.mxu1 %v14260_v9 }
 0x12d   :  { %1969 = vmatprep.subr.bf16.mxu1 %v14265_v10 }
 0x12e   :  { %v598_v42 = vpop.f32.mrb[0].mxu1  ;;  %v14350_v43 = vpop.f32.mrb[0].mxu0 }
 0x12f   :  { %v14353_v44 = vadd.f32 %v598_v42, %v14343_v40  ;;  %v600_v45 = vpop.f32.mrb[1].mxu1  ;;  %v14355_v46 = vpop.f32.mrb[1].mxu0 }
 0x130   :  { %v14358_v49 = vadd.f32 %v600_v45, %v14346_v41  ;;  %v602_v50 = vpop.f32.mrb[2].mxu1  ;;  %v562_v51 = vpop.f32.mrb[2].mxu0  ;;  %1970 = vmatpush1.bf16.msra.mxu1 %v14272_v12 }
 0x131   :  { %18136 = vst [vmem:[#allocation11_spill] sm:$0xff] %v14353_v44  ;;  %v14362_v54 = vadd.f32 %v602_v50, %v14343_v40  ;;  %v604_v55 = vpop.f32.mrb[3].mxu1  ;;  %v14365_v56 = vadd.f32 %v562_v51, %v14343_v40  ;;  %v564_v57 = vpop.f32.mrb[3].mxu0  ;;  %1971 = vmatprep.subr.bf16.mxu1 %v14278_v14 }
 0x132   :  { %18137 = vst [vmem:[#allocation12_spill] sm:$0xff] %v14358_v49  ;;  %v14369_v58 = vadd.f32 %v604_v55, %v14346_v41  ;;  %v14372_v59 = vadd.f32 %v564_v57, %v14346_v41  ;;  %v174_v57 = vsub.s32 2, %v14324_v36 }
 0x133   :  { %18138 = vst [vmem:[#allocation13_spill] sm:$0xff] %v14362_v54 }
 0x134   :  { %18139 = vst [vmem:[#allocation14_spill] sm:$0xff] %v14369_v58  ;;  %1972 = vmatpush1.bf16.msra.mxu1 %v14286_v16 }
 0x135   :  { %1973 = vmatprep.subr.bf16.mxu1 %v14291_v17 }
 0x136   :  { %v608_v60 = vpop.f32.mrb[4].mxu1  ;;  %v568_v61 = vpop.f32.mrb[4].mxu0 }
 0x137   :  { %v14377_v62 = vadd.f32 %v608_v60, %v14343_v40  ;;  %v610_v47 = vpop.f32.mrb[5].mxu1  ;;  %v14380_v63 = vadd.f32 %v568_v61, %v14343_v40  ;;  %v570_v1 = vpop.f32.mrb[5].mxu0  ;;  %v14454_v60 = vrot.slane %v14337_v38, %v182_v31  ;;  %v178_v61 = vsub.s32 3, %v14324_v36 }
 0x138   :  { %v14383_v2 = vadd.f32 %v610_v47, %v14346_v41  ;;  %v612_v3 = vpop.f32.mrb[6].mxu1  ;;  %v14386_v4 = vadd.f32 %v570_v1, %v14346_v41  ;;  %v572_v5 = vpop.f32.mrb[6].mxu0  ;;  %1974 = vmatpush1.bf16.msra.mxu1 %v14298_v19  ;;  %v14458_v47 = vrot.slane %v14337_v38, %v186_v37 }
 0x139   :  { %18140 = vst [vmem:[#allocation15_spill] sm:$0xff] %v14377_v62  ;;  %18141 = vst [vmem:[#allocation16_spill] sm:$0xff] %v14380_v63  ;;  %v14390_v8 = vadd.f32 %v612_v3, %v14343_v40  ;;  %v614_v9 = vpop.f32.mrb[7].mxu1  ;;  %v14393_v6 = vadd.f32 %v572_v5, %v14343_v40  ;;  %v574_v10 = vpop.f32.mrb[7].mxu0  ;;  %2245 = vmatprep.subr.bf16.mxu1 %v14301_v21  ;;  %v14465_v5 = vld [vmem:[%s18028_s3 + $0x4] ss:$16 sps:$4 sm:$0xff]  }
 0x13a   :  { %18142 = vst [vmem:[#allocation17_spill] sm:$0xff] %v14383_v2  ;;  %18143 = vst [vmem:[#allocation18_spill] sm:$0xff] %v14386_v4  ;;  %v14397_v11 = vadd.f32 %v614_v9, %v14346_v41  ;;  %v14400_v12 = vadd.f32 %v574_v10, %v14346_v41  ;;  %v14468_v9 = vrot.slane %v14337_v38, %v174_v57  ;;  %1918 = vmatprep.subr.bf16.mxu0 %v14465_v5 }
 0x13b   :  { %18144 = vst [vmem:[#allocation19_spill] sm:$0xff] %v14390_v8  ;;  %18145 = vst [vmem:[#allocation20_spill] sm:$0xff] %v14393_v6 }
 0x13c   :  { %18146 = vst [vmem:[#allocation21_spill] sm:$0xff] %v14397_v11  ;;  %18147 = vst [vmem:[#allocation22_spill] sm:$0xff] %v14400_v12 }
 0x13e   :  { %v618_v13 = vpop.f32.mrb[8].mxu1  ;;  %v578_v14 = vpop.f32.mrb[8].mxu0 }
 0x13f   :  { %v14403_v15 = vadd.f32 %v618_v13, %v14343_v40  ;;  %v620_v16 = vpop.f32.mrb[9].mxu1  ;;  %v14406_v28 = vadd.f32 %v578_v14, %v14343_v40  ;;  %v580_v17 = vpop.f32.mrb[9].mxu0 }
 0x140   :  { %v14409_v18 = vadd.f32 %v620_v16, %v14346_v41  ;;  %v622_v19 = vpop.f32.mrb[10].mxu1  ;;  %v14412_v20 = vadd.f32 %v580_v17, %v14346_v41  ;;  %v582_v21 = vpop.f32.mrb[10].mxu0  ;;  %v14478_v16 = vld [vmem:[%s18028_s3] ss:$16 sps:$4 sm:$0xff]   ;;  %v14481_v17 = vrot.slane %v14337_v38, %v178_v61 }
 0x141   :  { %18148 = vst [vmem:[#allocation23_spill] sm:$0xff] %v14403_v15  ;;  %18149 = vst [vmem:[#allocation24_spill] sm:$0xff] %v14406_v28  ;;  %v14415_v52 = vadd.f32 %v622_v19, %v14343_v40  ;;  %v624_v48 = vpop.f32.mrb[11].mxu1  ;;  %v14418_v22 = vadd.f32 %v582_v21, %v14343_v40  ;;  %v584_v23 = vpop.f32.mrb[11].mxu0  ;;  %1919 = vmatpush1.bf16.msra.mxu0 %v14478_v16  ;;  %v14616_v15 = vld [vmem:[%s18028_s3 + $0xc0] ss:$16 sps:$4 sm:$0xff]  }
 0x142   :  { %18150 = vst [vmem:[#allocation25_spill] sm:$0xff] %v14409_v18  ;;  %18151 = vst [vmem:[#allocation26_spill] sm:$0xff] %v14412_v20  ;;  %v14421_v7 = vadd.f32 %v624_v48, %v14346_v41  ;;  %v14424_v24 = vadd.f32 %v584_v23, %v14346_v41 }
 0x143   :  { %18152 = vst [vmem:[#allocation27_spill] sm:$0xff] %v14415_v52  ;;  %18153 = vst [vmem:[#allocation28_spill] sm:$0xff] %v14418_v22 }
 0x144   :  { %18154 = vst [vmem:[#allocation29_spill] sm:$0xff] %v14421_v7  ;;  %18155 = vst [vmem:[#allocation30_spill] sm:$0xff] %v14424_v24 }
 0x146   :  { %v628_v29 = vpop.f32.mrb[12].mxu1  ;;  %v588_v25 = vpop.f32.mrb[12].mxu0 }
 0x147   :  { %v14427_v53 = vadd.f32 %v628_v29, %v14343_v40  ;;  %v630_v26 = vpop.f32.mrb[13].mxu1  ;;  %v14430_v27 = vadd.f32 %v588_v25, %v14343_v40  ;;  %v590_v30 = vpop.f32.mrb[13].mxu0 }
 0x148   :  { %v14434_v32 = vadd.f32 %v630_v26, %v14346_v41  ;;  %v632_v33 = vpop.f32.mrb[14].mxu1  ;;  %v14437_v34 = vadd.f32 %v590_v30, %v14346_v41  ;;  %v592_v35 = vpop.f32.mrb[14].mxu0 }
 0x149   :  { %18156 = vst [vmem:[#allocation31_spill] sm:$0xff] %v14427_v53  ;;  %18157 = vst [vmem:[#allocation32_spill] sm:$0xff] %v14430_v27  ;;  %v14441_v39 = vadd.f32 %v632_v33, %v14343_v40  ;;  %v634_v42 = vpop.f32.mrb[15].mxu1  ;;  %v14444_v45 = vadd.f32 %v592_v35, %v14343_v40  ;;  %v594_v50 = vpop.f32.mrb[15].mxu0  ;;  %v14503_v33 = vld [vmem:[%s18028_s3 + $0x24] ss:$16 sps:$4 sm:$0xff]  }
 0x14a   :  { %18158 = vst [vmem:[#allocation33_spill] sm:$0xff] %v14434_v32  ;;  %18159 = vst [vmem:[#allocation34_spill] sm:$0xff] %v14437_v34  ;;  %v14447_v51 = vadd.f32 %v634_v42, %v14346_v41  ;;  %v14450_v55 = vadd.f32 %v594_v50, %v14346_v41  ;;  %v14508_v35 = vld [vmem:[%s18028_s3 + $0x20] ss:$16 sps:$4 sm:$0xff]   ;;  %1920 = vmatprep.subr.bf16.mxu0 %v14503_v33  ;;  %v14515_v50 = vld [vmem:[%s18028_s3 + $0x44] ss:$16 sps:$4 sm:$0xff]  }
 0x14b   :  { %18160 = vst [vmem:[#allocation35_spill] sm:$0xff] %v14441_v39  ;;  %18161 = vst [vmem:[#allocation36_spill] sm:$0xff] %v14444_v45  ;;  %1921 = vmatpush1.bf16.msra.mxu0 %v14508_v35  ;;  %v14574_v53 = vld [vmem:[%s18028_s3 + $0x80] ss:$16 sps:$4 sm:$0xff]  }
 0x14c   :  { %18162 = vst [vmem:[#allocation37_spill] sm:$0xff] %v14447_v51  ;;  %18163 = vst [vmem:[#allocation38_spill] sm:$0xff] %v14450_v55  ;;  %1922 = vmatprep.subr.bf16.mxu0 %v14515_v50 }
 0x14d   :  { %18178 = vst [vmem:[#allocation53_spill] sm:$0xff] %v14574_v53 }
 0x14e   :  { %v14460_v1 = vpop.f32.mrb[16].mxu1  ;;  %v784_v3 = vpop.f32.mrb[16].mxu0 }
 0x14f   :  { %v14470_v10 = vpop.f32.mrb[17].mxu1  ;;  %v14473_v13 = vadd.f32 %v784_v3, %v14454_v60  ;;  %v786_v14 = vpop.f32.mrb[17].mxu0 }
 0x150   :  { %v675_v19 = vpop.f32.mrb[18].mxu1  ;;  %v14484_v21 = vadd.f32 %v786_v14, %v14458_v47  ;;  %v788_v48 = vpop.f32.mrb[18].mxu0 }
 0x151   :  { %18164 = vst [vmem:[#allocation39_spill] sm:$0xff] %v14473_v13  ;;  %v14488_v23 = vadd.f32 %v675_v19, %v14468_v9  ;;  %v677_v29 = vpop.f32.mrb[19].mxu1  ;;  %v14491_v25 = vadd.f32 %v788_v48, %v14454_v60  ;;  %v790_v26 = vpop.f32.mrb[19].mxu0  ;;  %v14526_v19 = vld [vmem:[%s18028_s3 + $0x40] ss:$16 sps:$4 sm:$0xff]  }
 0x152   :  { %18165 = vst [vmem:[#allocation40_spill] sm:$0xff] %v14484_v21  ;;  %v14495_v30 = vadd.f32 %v677_v29, %v14481_v17  ;;  %v14498_v31 = vadd.f32 %v790_v26, %v14458_v47  ;;  %1923 = vmatpush1.bf16.msra.mxu0 %v14526_v19 }
 0x153   :  { %18166 = vst [vmem:[#allocation41_spill] sm:$0xff] %v14491_v25 }
 0x154   :  { %18167 = vst [vmem:[#allocation42_spill] sm:$0xff] %v14498_v31 }
 0x156   :  { %v681_v37 = vpop.f32.mrb[20].mxu1  ;;  %v794_v42 = vpop.f32.mrb[20].mxu0 }
 0x157   :  { %v14518_v57 = vadd.f32 %v681_v37, %v14468_v9  ;;  %v683_v61 = vpop.f32.mrb[21].mxu1  ;;  %v14521_v3 = vadd.f32 %v794_v42, %v14454_v60  ;;  %v796_v14 = vpop.f32.mrb[21].mxu0 }
 0x158   :  { %v14529_v48 = vadd.f32 %v683_v61, %v14481_v17  ;;  %v685_v29 = vpop.f32.mrb[22].mxu1  ;;  %v14532_v26 = vadd.f32 %v796_v14, %v14458_v47  ;;  %v798_v0 = vpop.f32.mrb[22].mxu0  ;;  %v14551_v14 = vld [vmem:[%s18028_s3 + $0x64] ss:$16 sps:$4 sm:$0xff]  }
 0x159   :  { %18168 = vst [vmem:[#allocation43_spill] sm:$0xff] %v14518_v57  ;;  %18169 = vst [vmem:[#allocation44_spill] sm:$0xff] %v14521_v3  ;;  %v14536_v37 = vadd.f32 %v685_v29, %v14468_v9  ;;  %v687_v42 = vpop.f32.mrb[23].mxu1  ;;  %v14539_v21 = vadd.f32 %v798_v0, %v14454_v60  ;;  %v800_v13 = vpop.f32.mrb[23].mxu0  ;;  %v14556_v29 = vld [vmem:[%s18028_s3 + $0x60] ss:$16 sps:$4 sm:$0xff]   ;;  %1924 = vmatprep.subr.bf16.mxu0 %v14551_v14 }
 0x15a   :  { %18170 = vst [vmem:[#allocation45_spill] sm:$0xff] %v14529_v48  ;;  %18171 = vst [vmem:[#allocation46_spill] sm:$0xff] %v14532_v26  ;;  %v14543_v61 = vadd.f32 %v687_v42, %v14481_v17  ;;  %v14546_v51 = vadd.f32 %v800_v13, %v14458_v47  ;;  %1925 = vmatpush1.bf16.msra.mxu0 %v14556_v29  ;;  %v14563_v13 = vld [vmem:[%s18028_s3 + $0x84] ss:$16 sps:$4 sm:$0xff]  }
 0x15b   :  { %18172 = vst [vmem:[#allocation47_spill] sm:$0xff] %v14536_v37  ;;  %18173 = vst [vmem:[#allocation48_spill] sm:$0xff] %v14539_v21  ;;  %1926 = vmatprep.subr.bf16.mxu0 %v14563_v13 }
 0x15c   :  { %18174 = vst [vmem:[#allocation49_spill] sm:$0xff] %v14543_v61  ;;  %18175 = vst [vmem:[#allocation50_spill] sm:$0xff] %v14546_v51  ;;  %v14940_v61 = vld [vmem:[#allocation6 + $0xe8] ss:$16 sps:$4 sm:$0xff]  }
 0x15e   :  { %v691_v0 = vpop.f32.mrb[24].mxu1  ;;  %v804_v42 = vpop.f32.mrb[24].mxu0  ;;  %1927 = vmatpush1.bf16.msra.mxu0 %v14574_v53 }
 0x15f   :  { %v14566_v39 = vadd.f32 %v691_v0, %v14468_v9  ;;  %v693_v31 = vpop.f32.mrb[25].mxu1  ;;  %v14569_v25 = vadd.f32 %v804_v42, %v14454_v60  ;;  %v806_v32 = vpop.f32.mrb[25].mxu0 }
 0x160   :  { %v14577_v26 = vadd.f32 %v693_v31, %v14481_v17  ;;  %v695_v3 = vpop.f32.mrb[26].mxu1  ;;  %v14580_v7 = vadd.f32 %v806_v32, %v14458_v47  ;;  %v808_v52 = vpop.f32.mrb[26].mxu0  ;;  %v14593_v31 = vld [vmem:[%s18028_s3 + $0xa0] ss:$16 sps:$4 sm:$0xff]   ;;  %v14598_v32 = vld [vmem:[%s18028_s3 + $0xa4] ss:$16 sps:$4 sm:$0xff]  }
 0x161   :  { %18176 = vst [vmem:[#allocation51_spill] sm:$0xff] %v14566_v39  ;;  %18177 = vst [vmem:[#allocation52_spill] sm:$0xff] %v14569_v25  ;;  %v14584_v0 = vadd.f32 %v695_v3, %v14468_v9  ;;  %v697_v42 = vpop.f32.mrb[27].mxu1  ;;  %v14587_v51 = vadd.f32 %v808_v52, %v14454_v60  ;;  %v810_v21 = vpop.f32.mrb[27].mxu0  ;;  %v14609_v52 = vld [vmem:[%s18028_s3 + $0xc4] ss:$16 sps:$4 sm:$0xff]   ;;  %1928 = vmatprep.subr.bf16.mxu0 %v14598_v32 }
 0x162   :  { %18179 = vst [vmem:[#allocation54_spill] sm:$0xff] %v14577_v26  ;;  %18180 = vst [vmem:[#allocation55_spill] sm:$0xff] %v14580_v7  ;;  %v14601_v3 = vadd.f32 %v697_v42, %v14481_v17  ;;  %v14604_v18 = vadd.f32 %v810_v21, %v14458_v47  ;;  %1929 = vmatpush1.bf16.msra.mxu0 %v14593_v31  ;;  %v14622_v21 = vld [vmem:[%s18028_s3 + $0xe4] ss:$16 sps:$4 sm:$0xff]  }
 0x163   :  { %18181 = vst [vmem:[#allocation56_spill] sm:$0xff] %v14584_v0  ;;  %18182 = vst [vmem:[#allocation57_spill] sm:$0xff] %v14587_v51  ;;  %1930 = vmatprep.subr.bf16.mxu0 %v14609_v52  ;;  %v194_v0 = vsub.s32 7, %v14324_v36 }
 0x164   :  { %18183 = vst [vmem:[#allocation58_spill] sm:$0xff] %v14593_v31  ;;  %18184 = vst [vmem:[#allocation59_spill] sm:$0xff] %v14598_v32 }
 0x165   :  { %18185 = vst [vmem:[#allocation60_spill] sm:$0xff] %v14601_v3  ;;  %18186 = vst [vmem:[#allocation61_spill] sm:$0xff] %v14604_v18 }
 0x166   :  { %v701_v7 = vpop.f32.mrb[28].mxu1  ;;  %v814_v42 = vpop.f32.mrb[28].mxu0  ;;  %1931 = vmatpush1.bf16.msra.mxu0 %v14616_v15 }
 0x167   :  { %v14625_v25 = vadd.f32 %v701_v7, %v14468_v9  ;;  %v703_v11 = vpop.f32.mrb[29].mxu1  ;;  %v14628_v8 = vadd.f32 %v814_v42, %v14454_v60  ;;  %v816_v18 = vpop.f32.mrb[29].mxu0  ;;  %1932 = vmatprep.subr.bf16.mxu0 %v14622_v21 }
 0x168   :  { %v14631_v51 = vadd.f32 %v703_v11, %v14481_v17  ;;  %v705_v2 = vpop.f32.mrb[30].mxu1  ;;  %v14634_v62 = vadd.f32 %v816_v18, %v14458_v47  ;;  %v818_v58 = vpop.f32.mrb[30].mxu0  ;;  %v14646_v11 = vld [vmem:[%s18028_s3 + $0xe0] ss:$16 sps:$4 sm:$0xff]  }
 0x169   :  { %18187 = vst [vmem:[#allocation62_spill] sm:$0xff] %v14625_v25  ;;  %18188 = vst [vmem:[#allocation63_spill] sm:$0xff] %v14628_v8  ;;  %v14637_v54 = vadd.f32 %v705_v2, %v14468_v9  ;;  %v707_v49 = vpop.f32.mrb[31].mxu1  ;;  %v14640_v7 = vadd.f32 %v818_v58, %v14454_v60  ;;  %v820_v44 = vpop.f32.mrb[31].mxu0 }
 0x16a   :  { %18189 = vst [vmem:[#allocation64_spill] sm:$0xff] %v14631_v51  ;;  %18190 = vst [vmem:[#allocation65_spill] sm:$0xff] %v14634_v62  ;;  %v14649_v42 = vadd.f32 %v707_v49, %v14481_v17  ;;  %v14652_v18 = vadd.f32 %v820_v44, %v14458_v47  ;;  %1933 = vmatpush1.bf16.msra.mxu0 %v14646_v11  ;;  %v14656_v62 = vld [vmem:[#allocation6 + $0x4] ss:$16 sps:$4 sm:$0xff]  }
 0x16b   :  { %18191 = vst [vmem:[#allocation66_spill] sm:$0xff] %v14637_v54  ;;  %18192 = vst [vmem:[#allocation67_spill] sm:$0xff] %v14640_v7  ;;  %2204 = vmatprep.subr.bf16.mxu0 %v14656_v62 }
 0x16c   :  { %18193 = vst [vmem:[#allocation68_spill] sm:$0xff] %v14649_v42  ;;  %18194 = vst [vmem:[#allocation69_spill] sm:$0xff] %v14652_v18 }
 0x16e   :  { %v711_v58 = vpop.f32.mrb[32].mxu1  ;;  %v824_v2 = vpop.f32.mrb[32].mxu0 }
 0x16f   :  { %v14659_v8 = vadd.f32 %v711_v58, %v14468_v9  ;;  %v713_v7 = vpop.f32.mrb[33].mxu1  ;;  %v14662_v55 = vadd.f32 %v824_v2, %v14454_v60  ;;  %v826_v49 = vpop.f32.mrb[33].mxu0 }
 0x170   :  { %v14665_v42 = vadd.f32 %v713_v7, %v14481_v17  ;;  %v715_v44 = vpop.f32.mrb[34].mxu1  ;;  %v14668_v18 = vadd.f32 %v826_v49, %v14458_v47  ;;  %v828_v54 = vpop.f32.mrb[34].mxu0 }
 0x171   :  { %18195 = vst [vmem:[#allocation70_spill] sm:$0xff] %v14659_v8  ;;  %18196 = vst [vmem:[#allocation71_spill] sm:$0xff] %v14662_v55  ;;  %v14672_v45 = vadd.f32 %v715_v44, %v14468_v9  ;;  %v717_v58 = vpop.f32.mrb[35].mxu1  ;;  %v14675_v8 = vadd.f32 %v828_v54, %v14454_v60  ;;  %v830_v2 = vpop.f32.mrb[35].mxu0 }
 0x172   :  { %18197 = vst [vmem:[#allocation72_spill] sm:$0xff] %v14665_v42  ;;  %18198 = vst [vmem:[#allocation73_spill] sm:$0xff] %v14668_v18  ;;  %v14678_v55 = vadd.f32 %v717_v58, %v14481_v17  ;;  %v14681_v7 = vadd.f32 %v830_v2, %v14458_v47 }
 0x173   :  { %18199 = vst [vmem:[#allocation74_spill] sm:$0xff] %v14672_v45  ;;  %18200 = vst [vmem:[#allocation75_spill] sm:$0xff] %v14675_v8 }
 0x174   :  { %18201 = vst [vmem:[#allocation76_spill] sm:$0xff] %v14678_v55  ;;  %18202 = vst [vmem:[#allocation77_spill] sm:$0xff] %v14681_v7 }
 0x176   :  { %v721_v42 = vpop.f32.mrb[36].mxu1  ;;  %v834_v49 = vpop.f32.mrb[36].mxu0 }
 0x177   :  { %v14684_v18 = vadd.f32 %v721_v42, %v14468_v9  ;;  %v723_v51 = vpop.f32.mrb[37].mxu1  ;;  %v14687_v44 = vadd.f32 %v834_v49, %v14454_v60  ;;  %v836_v45 = vpop.f32.mrb[37].mxu0 }
 0x178   :  { %v14690_v54 = vadd.f32 %v723_v51, %v14481_v17  ;;  %v725_v8 = vpop.f32.mrb[38].mxu1  ;;  %v14693_v58 = vadd.f32 %v836_v45, %v14458_v47  ;;  %v838_v55 = vpop.f32.mrb[38].mxu0 }
 0x179   :  { %18203 = vst [vmem:[#allocation78_spill] sm:$0xff] %v14684_v18  ;;  %18204 = vst [vmem:[#allocation79_spill] sm:$0xff] %v14687_v44  ;;  %v14696_v2 = vadd.f32 %v725_v8, %v14468_v9  ;;  %v727_v7 = vpop.f32.mrb[39].mxu1  ;;  %v14699_v42 = vadd.f32 %v838_v55, %v14454_v60  ;;  %v840_v18 = vpop.f32.mrb[39].mxu0 }
 0x17a   :  { %18205 = vst [vmem:[#allocation80_spill] sm:$0xff] %v14690_v54  ;;  %18206 = vst [vmem:[#allocation81_spill] sm:$0xff] %v14693_v58  ;;  %v14702_v49 = vadd.f32 %v727_v7, %v14481_v17  ;;  %v14705_v34 = vadd.f32 %v840_v18, %v14458_v47 }
 0x17b   :  { %18207 = vst [vmem:[#allocation82_spill] sm:$0xff] %v14696_v2  ;;  %18208 = vst [vmem:[#allocation83_spill] sm:$0xff] %v14699_v42 }
 0x17c   :  { %18209 = vst [vmem:[#allocation84_spill] sm:$0xff] %v14702_v49  ;;  %18210 = vst [vmem:[#allocation85_spill] sm:$0xff] %v14705_v34 }
 0x17e   :  { %v731_v51 = vpop.f32.mrb[40].mxu1  ;;  %v844_v54 = vpop.f32.mrb[40].mxu0 }
 0x17f   :  { %v14708_v45 = vadd.f32 %v731_v51, %v14468_v9  ;;  %v733_v25 = vpop.f32.mrb[41].mxu1  ;;  %v14711_v8 = vadd.f32 %v844_v54, %v14454_v60  ;;  %v846_v2 = vpop.f32.mrb[41].mxu0 }
 0x180   :  { %v14714_v55 = vadd.f32 %v733_v25, %v14481_v17  ;;  %v735_v27 = vpop.f32.mrb[42].mxu1  ;;  %v14717_v7 = vadd.f32 %v846_v2, %v14458_v47  ;;  %v848_v49 = vpop.f32.mrb[42].mxu0 }
 0x181   :  { %18211 = vst [vmem:[#allocation86_spill] sm:$0xff] %v14708_v45  ;;  %18212 = vst [vmem:[#allocation87_spill] sm:$0xff] %v14711_v8  ;;  %v14720_v18 = vadd.f32 %v735_v27, %v14468_v9  ;;  %v737_v58 = vpop.f32.mrb[43].mxu1  ;;  %v14723_v51 = vadd.f32 %v848_v49, %v14454_v60  ;;  %v850_v45 = vpop.f32.mrb[43].mxu0  ;;  %v190_v49 = vsub.s32 6, %v14324_v36  ;;  %v561_v36 = vadd.f32 %v14355_v46, %v14346_v41 }
 0x182   :  { %18213 = vst [vmem:[#allocation88_spill] sm:$0xff] %v14714_v55  ;;  %18214 = vst [vmem:[#allocation89_spill] sm:$0xff] %v14717_v7  ;;  %v14726_v54 = vadd.f32 %v737_v58, %v14481_v17  ;;  %v14729_v44 = vadd.f32 %v850_v45, %v14458_v47 }
 0x183   :  { %18215 = vst [vmem:[#allocation90_spill] sm:$0xff] %v14720_v18  ;;  %18216 = vst [vmem:[#allocation91_spill] sm:$0xff] %v14723_v51  ;;  %v14752_v34 = vrot.slane %v14337_v38, %v190_v49 }
 0x184   :  { %18217 = vst [vmem:[#allocation92_spill] sm:$0xff] %v14726_v54  ;;  %18218 = vst [vmem:[#allocation93_spill] sm:$0xff] %v14729_v44 }
 0x186   :  { %v741_v25 = vpop.f32.mrb[44].mxu1  ;;  %v854_v55 = vpop.f32.mrb[44].mxu0 }
 0x187   :  { %v14732_v2 = vadd.f32 %v741_v25, %v14468_v9  ;;  %v743_v3 = vpop.f32.mrb[45].mxu1  ;;  %v14735_v27 = vadd.f32 %v854_v55, %v14454_v60  ;;  %v856_v18 = vpop.f32.mrb[45].mxu0 }
 0x188   :  { %v14739_v24 = vadd.f32 %v743_v3, %v14481_v17  ;;  %v745_v58 = vpop.f32.mrb[46].mxu1  ;;  %v14742_v54 = vadd.f32 %v856_v18, %v14458_v47  ;;  %v858_v45 = vpop.f32.mrb[46].mxu0  ;;  %v14755_v3 = vrot.slane %v14337_v38, %v194_v0  ;;  %v559_v18 = vadd.f32 %v14350_v43, %v14343_v40 }
 0x189   :  { %18219 = vst [vmem:[#allocation94_spill] sm:$0xff] %v14732_v2  ;;  %v14746_v25 = vadd.f32 %v745_v58, %v14468_v9  ;;  %v747_v2 = vpop.f32.mrb[47].mxu1  ;;  %v860_v22 = vpop.f32.mrb[47].mxu0 }
 0x18a   :  { %18220 = vst [vmem:[#allocation95_spill] sm:$0xff] %v14739_v24  ;;  %v14749_v55 = vadd.f32 %v747_v2, %v14481_v17 }
 0x18b   :  { %18221 = vst [vmem:[#allocation96_spill] sm:$0xff] %v14746_v25 }
 0x18c   :  { %18222 = vst [vmem:[#allocation97_spill] sm:$0xff] %v14749_v55 }
 0x18e   :  { %v897_v24 = vpop.f32.mrb[48].mxu1  ;;  %v1337_v58 = vpop.f32.mrb[48].mxu0 }
 0x18f   :  { %v14762_v25 = vadd.f32 %v897_v24, %v14752_v34  ;;  %v14764_v42 = vadd.f32 %v1337_v58, %v559_v18  ;;  %v899_v2 = vpop.f32.mrb[49].mxu1  ;;  %v1339_v55 = vpop.f32.mrb[49].mxu0 }
 0x190   :  { %v14767_v49 = vadd.f32 %v899_v2, %v14755_v3  ;;  %v14769_v38 = vadd.f32 %v1339_v55, %v561_v36  ;;  %v901_v0 = vpop.f32.mrb[50].mxu1  ;;  %v1341_v26 = vpop.f32.mrb[50].mxu0 }
 0x191   :  { %18223 = vst [vmem:[#allocation98_spill] sm:$0xff] %v14762_v25  ;;  %v14772_v40 = vadd.f32 %v901_v0, %v14752_v34  ;;  %v903_v41 = vpop.f32.mrb[51].mxu1  ;;  %v1342_v43 = vpop.f32.mrb[51].mxu0 }
 0x192   :  { %18224 = vst [vmem:[#allocation99_spill] sm:$0xff] %v14767_v49  ;;  %v14775_v46 = vadd.f32 %v903_v41, %v14755_v3 }
 0x193   :  { %18225 = vst [vmem:[#allocation100_spill] sm:$0xff] %v14772_v40 }
 0x194   :  { %18226 = vst [vmem:[#allocation101_spill] sm:$0xff] %v14775_v46 }
 0x196   :  { %v907_v24 = vpop.f32.mrb[52].mxu1 }
 0x197   :  { %v14778_v18 = vadd.f32 %v907_v24, %v14752_v34  ;;  %v909_v58 = vpop.f32.mrb[53].mxu1 }
 0x198   :  { %v14781_v2 = vadd.f32 %v909_v58, %v14755_v3  ;;  %v911_v55 = vpop.f32.mrb[54].mxu1 }
 0x199   :  { %18227 = vst [vmem:[#allocation102_spill] sm:$0xff] %v14778_v18  ;;  %v14784_v36 = vadd.f32 %v911_v55, %v14752_v34  ;;  %v913_v26 = vpop.f32.mrb[55].mxu1 }
 0x19a   :  { %18228 = vst [vmem:[#allocation103_spill] sm:$0xff] %v14781_v2  ;;  %v14787_v0 = vadd.f32 %v913_v26, %v14755_v3 }
 0x19b   :  { %18229 = vst [vmem:[#allocation104_spill] sm:$0xff] %v14784_v36  ;;  %v859_v36 = vadd.f32 %v858_v45, %v14454_v60 }
 0x19c   :  { %18230 = vst [vmem:[#allocation105_spill] sm:$0xff] %v14787_v0 }
 0x19e   :  { %v917_v43 = vpop.f32.mrb[56].mxu1 }
 0x19f   :  { %v14790_v41 = vadd.f32 %v917_v43, %v14752_v34  ;;  %v919_v49 = vpop.f32.mrb[57].mxu1 }
 0x1a0   :  { %v14793_v24 = vadd.f32 %v919_v49, %v14755_v3  ;;  %v921_v25 = vpop.f32.mrb[58].mxu1 }
 0x1a1   :  { %18231 = vst [vmem:[#allocation106_spill] sm:$0xff] %v14790_v41  ;;  %v14796_v58 = vadd.f32 %v921_v25, %v14752_v34  ;;  %v923_v46 = vpop.f32.mrb[59].mxu1 }
 0x1a2   :  { %18232 = vst [vmem:[#allocation107_spill] sm:$0xff] %v14793_v24  ;;  %v14799_v55 = vadd.f32 %v923_v46, %v14755_v3  ;;  %v861_v46 = vadd.f32 %v860_v22, %v14458_v47 }
 0x1a3   :  { %18233 = vst [vmem:[#allocation108_spill] sm:$0xff] %v14796_v58 }
 0x1a4   :  { %18234 = vst [vmem:[#allocation109_spill] sm:$0xff] %v14799_v55 }
 0x1a6   :  { %v927_v40 = vpop.f32.mrb[60].mxu1 }
 0x1a7   :  { %v14802_v26 = vadd.f32 %v927_v40, %v14752_v34  ;;  %v929_v2 = vpop.f32.mrb[61].mxu1 }
 0x1a8   :  { %v14805_v43 = vadd.f32 %v929_v2, %v14755_v3  ;;  %v931_v18 = vpop.f32.mrb[62].mxu1 }
 0x1a9   :  { %18235 = vst [vmem:[#allocation110_spill] sm:$0xff] %v14802_v26  ;;  %v14808_v49 = vadd.f32 %v931_v18, %v14752_v34  ;;  %v933_v0 = vpop.f32.mrb[63].mxu1 }
 0x1aa   :  { %18236 = vst [vmem:[#allocation111_spill] sm:$0xff] %v14805_v43  ;;  %v14811_v25 = vadd.f32 %v933_v0, %v14755_v3 }
 0x1ab   :  { %18237 = vst [vmem:[#allocation112_spill] sm:$0xff] %v14808_v49 }
 0x1ac   :  { %18238 = vst [vmem:[#allocation113_spill] sm:$0xff] %v14811_v25 }
 0x1ae   :  { %v937_v24 = vpop.f32.mrb[64].mxu1 }
 0x1af   :  { %v14816_v40 = vadd.f32 %v937_v24, %v14752_v34  ;;  %v939_v41 = vpop.f32.mrb[65].mxu1  ;;  %v1622_v55 = vpop.f32.mrb[52].mxu0 }
 0x1b0   :  { %v14819_v2 = vadd.f32 %v939_v41, %v14755_v3  ;;  %v941_v58 = vpop.f32.mrb[66].mxu1  ;;  %v1670_v18 = vadd.f32 %v1622_v55, %v859_v36  ;;  %v1624_v43 = vpop.f32.mrb[53].mxu0 }
 0x1b1   :  { %18239 = vst [vmem:[#allocation114_spill] sm:$0xff] %v14816_v40  ;;  %v14822_v26 = vadd.f32 %v941_v58, %v14752_v34  ;;  %v943_v0 = vpop.f32.mrb[67].mxu1  ;;  %v1671_v25 = vadd.f32 %v1624_v43, %v861_v46  ;;  %v1626_v60 = vpop.f32.mrb[54].mxu0  ;;  %v1675_v40 = vmul.f32 0.5, %v14769_v38  ;;  %v674_v38 = vadd.f32 %v14470_v10, %v14481_v17 }
 0x1b2   :  { %18240 = vst [vmem:[#allocation115_spill] sm:$0xff] %v14819_v2  ;;  %v14825_v22 = vadd.f32 %v943_v0, %v14755_v3  ;;  %v1627_v47 = vpop.f32.mrb[55].mxu0 }
 0x1b3   :  { %18241 = vst [vmem:[#allocation116_spill] sm:$0xff] %v14822_v26  ;;  %13507 = vtanh.f32 %v1675_v40  ;;  %v1693_v17 = vmul.f32 0.5, %v1671_v25 }
 0x1b4   :  { %18242 = vst [vmem:[#allocation117_spill] sm:$0xff] %v14825_v22 }
 0x1b6   :  { %v947_v45 = vpop.f32.mrb[68].mxu1 }
 0x1b7   :  { %v14828_v24 = vadd.f32 %v947_v45, %v14752_v34  ;;  %v949_v49 = vpop.f32.mrb[69].mxu1 }
 0x1b8   :  { %v14831_v41 = vadd.f32 %v949_v49, %v14755_v3  ;;  %v951_v36 = vpop.f32.mrb[70].mxu1 }
 0x1b9   :  { %18243 = vst [vmem:[#allocation118_spill] sm:$0xff] %v14828_v24  ;;  %v14834_v55 = vadd.f32 %v951_v36, %v14752_v34  ;;  %v953_v58 = vpop.f32.mrb[71].mxu1 }
 0x1ba   :  { %18244 = vst [vmem:[#allocation119_spill] sm:$0xff] %v14831_v41  ;;  %v14837_v43 = vadd.f32 %v953_v58, %v14755_v3  ;;  %v1674_v58 = vmul.f32 0.5, %v14764_v42 }
 0x1bb   :  { %18245 = vst [vmem:[#allocation120_spill] sm:$0xff] %v14834_v55 }
 0x1bc   :  { %18246 = vst [vmem:[#allocation121_spill] sm:$0xff] %v14837_v43  ;;  %13509 = vtanh.f32 %v1674_v58 }
 0x1bd   :  { %v13508_v39 = vpop.eup %13507 }
 0x1be   :  { %v957_v46 = vpop.f32.mrb[72].mxu1 }
 0x1bf   :  { %v14840_v0 = vadd.f32 %v957_v46, %v14752_v34  ;;  %v959_v60 = vpop.f32.mrb[73].mxu1 }
 0x1c0   :  { %v14843_v47 = vadd.f32 %v959_v60, %v14755_v3  ;;  %v961_v45 = vpop.f32.mrb[74].mxu1 }
 0x1c1   :  { %18247 = vst [vmem:[#allocation122_spill] sm:$0xff] %v14840_v0  ;;  %v14846_v49 = vadd.f32 %v961_v45, %v14752_v34  ;;  %v963_v2 = vpop.f32.mrb[75].mxu1 }
 0x1c2   :  { %18248 = vst [vmem:[#allocation123_spill] sm:$0xff] %v14843_v47  ;;  %v14849_v36 = vadd.f32 %v963_v2, %v14755_v3  ;;  %v672_v2 = vadd.f32 %v14460_v1, %v14468_v9 }
 0x1c3   :  { %18249 = vst [vmem:[#allocation124_spill] sm:$0xff] %v14846_v49 }
 0x1c4   :  { %18250 = vst [vmem:[#allocation125_spill] sm:$0xff] %v14849_v36 }
 0x1c6   :  { %v967_v22 = vpop.f32.mrb[76].mxu1  ;;  %v13510_v40 = vpop.eup %13509 }
 0x1c7   :  { %v14854_v46 = vadd.f32 %v967_v22, %v14752_v34  ;;  %v969_v26 = vpop.f32.mrb[77].mxu1  ;;  %v1680_v47 = vmul.f32 0.5, %v13510_v40 }
 0x1c8   :  { %v14857_v60 = vadd.f32 %v969_v26, %v14755_v3  ;;  %v971_v41 = vpop.f32.mrb[78].mxu1  ;;  %v1681_v26 = vmul.f32 0.5, %v13508_v39 }
 0x1c9   :  { %v973_v45 = vpop.f32.mrb[79].mxu1  ;;  %v1683_v58 = vadd.f32 0.5, %v1680_v47  ;;  %v14869_v47 = vld [vmem:[#allocation6] ss:$16 sps:$4 sm:$0xff]  }
 0x1ca   :  { %v1684_v7 = vadd.f32 0.5, %v1681_v26  ;;  %v14880_v26 = vld [vmem:[#allocation6 + $0x44] ss:$16 sps:$4 sm:$0xff]  }
 0x1cc   :  { %v1687_v1 = vmul.f32 0.0, %v1684_v7  ;;  %v974_v7 = vadd.f32 %v973_v45, %v14755_v3  ;;  %v13861_v45 = vld [vmem:[#allocation6 + $0x2c] ss:$16 sps:$4 sm:$0xff]  }
 0x1ce   :  { %v1378_v24 = vpop.f32.mrb[80].mxu1 }
 0x1cf   :  { %v1387_v42 = vadd.f32 %v1378_v24, %v672_v2  ;;  %v1380_v43 = vpop.f32.mrb[81].mxu1  ;;  %v1692_v24 = vmul.f32 0.5, %v1670_v18 }
 0x1d0   :  { %v1388_v55 = vadd.f32 %v1380_v43, %v674_v38  ;;  %v1382_v22 = vpop.f32.mrb[82].mxu1  ;;  %v14874_v38 = vld [vmem:[#allocation6 + $0x24] ss:$16 sps:$4 sm:$0xff]  }
 0x1d1   :  { %v1383_v20 = vpop.f32.mrb[83].mxu1  ;;  %v1676_v28 = vmul.f32 0.5, %v1387_v42 }
 0x1d2   :  { %13511 = vtanh.f32 %v1388_v55 }
 0x1d3   :  { %13513 = vtanh.f32 %v1676_v28  ;;  %v972_v28 = vadd.f32 %v971_v41, %v14752_v34  ;;  %v13860_v34 = vld [vmem:[#allocation6 + $0x8] ss:$16 sps:$4 sm:$0xff]   ;;  %v14877_v41 = vld [vmem:[#allocation6 + $0x20] ss:$16 sps:$4 sm:$0xff]  }
 0x1dc   :  { %v13512_v0 = vpop.eup %13511 }
 0x1dd   :  { %v1688_v9 = vmul.f32 %v13512_v0, %v1683_v58  ;;  %v13514_v10 = vpop.eup %13513  ;;  %v18252_v58 = vmov 0  }
 0x1de   :  { %v1682_v20 = vmul.f32 0.5, %v13514_v10 }
 0x1df   :  { %v14863_v8 = vadd.f32 %v1688_v9, %v1687_v1 }
 0x1e0   :  { %v1685_v55 = vadd.f32 0.5, %v1682_v20  ;;  %v13863_v20 = vld [vmem:[#allocation6 + $0x4c] ss:$16 sps:$4 sm:$0xff]  }
 0x1e1   :  { %13515 = vtanh.f32 %v14863_v8 }
 0x1e2   :  { %13517 = vtanh.f32 %v1693_v17  ;;  %v13862_v17 = vld [vmem:[#allocation6 + $0x28] ss:$16 sps:$4 sm:$0xff]  }
 0x1e3   :  { %13519 = vtanh.f32 %v1692_v24  ;;  %v14885_v24 = vld [vmem:[#allocation6 + $0x40] ss:$16 sps:$4 sm:$0xff]  }
 0x1eb   :  { %v13516_v39 = vpop.eup %13515 }
 0x1ec   :  { %v14866_v43 = vmul.f32 %v13516_v39, %v1685_v55  ;;  %v13518_v3 = vpop.eup %13517  ;;  %v14888_v55 = vld [vmem:[#allocation6 + $0x64] ss:$16 sps:$4 sm:$0xff]  }
 0x1ed   :  { %v13520_v1 = vpop.eup %13519  ;;  %v1699_v9 = vmul.f32 0.5, %v13518_v3  ;;  %v13866_v3 = vld [vmem:[#allocation6 + $0x68] ss:$16 sps:$4 sm:$0xff]  }
 0x1ee   :  { %18251 = vst [vmem:[#allocation126_spill] sm:$0xff] %v14866_v43  ;;  %v1663_v0 = vpop.f32.mrb[84].mxu1  ;;  %v1725_v2 = vpack.c.bf16 %v14866_v43, %v14866_v43  ;;  %v1698_v39 = vmul.f32 0.5, %v13520_v1  ;;  %v14901_v1 = vld [vmem:[#allocation6 + $0x88] ss:$16 sps:$4 sm:$0xff]  }
 0x1ef   :  { %v1672_v25 = vadd.f32 %v1663_v0, %v972_v28  ;;  %v1665_v18 = vpop.f32.mrb[85].mxu1  ;;  %v1702_v28 = vadd.f32 0.5, %v1699_v9  ;;  %v14891_v0 = vld [vmem:[#allocation6 + $0x60] ss:$16 sps:$4 sm:$0xff]   ;;  %v14905_v9 = vld [vmem:[#allocation6 + $0xa4] ss:$16 sps:$4 sm:$0xff]  }
 0x1f0   :  { %v1673_v42 = vadd.f32 %v1665_v18, %v974_v7  ;;  %v1667_v22 = vpop.f32.mrb[86].mxu1  ;;  %1951 = vmatmul.mubr.bf16.vlgmr.msra.gmra.mrb[56].mxu0 %v1725_v2  ;;  %1992 = vmatmul.mubr.bf16.vlgmr.msra.gmra.mrb[88].mxu1 %v1725_v2  ;;  %v13864_v7 = vld [vmem:[#allocation6 + $0x48] ss:$16 sps:$4 sm:$0xff]   ;;  %v13865_v2 = vld [vmem:[#allocation6 + $0x6c] ss:$16 sps:$4 sm:$0xff]  }
 0x1f1   :  { %v1668_v40 = vpop.f32.mrb[87].mxu1  ;;  %2205 = vmatpush1.bf16.msra.mxu0 %v14869_v47  ;;  %2246 = vmatpush1.bf16.msra.mxu1 %v13860_v34  ;;  %v1694_v10 = vmul.f32 0.5, %v1672_v25  ;;  %v14894_v25 = vld [vmem:[#allocation6 + $0x84] ss:$16 sps:$4 sm:$0xff]   ;;  %v14896_v18 = vld [vmem:[#allocation6 + $0x8c] ss:$16 sps:$4 sm:$0xff]  }
 0x1f2   :  { %13521 = vtanh.f32 %v1673_v42  ;;  %2206 = vmatprep.subr.bf16.mxu0 %v14874_v38  ;;  %2247 = vmatprep.subr.bf16.mxu1 %v13861_v45  ;;  %v1701_v42 = vadd.f32 0.5, %v1698_v39  ;;  %v1705_v40 = vmul.f32 0.0, %v1702_v28  ;;  %v14899_v45 = vld [vmem:[#allocation6 + $0x80] ss:$16 sps:$4 sm:$0xff]   ;;  %v14916_v39 = vld [vmem:[#allocation6 + $0xa8] ss:$16 sps:$4 sm:$0xff]  }
 0x1f3   :  { %2236 = vmatprep.mubr.bf16.mxu0 %v18252_v58  ;;  %2277 = vmatprep.mubr.bf16.mxu1 %v18252_v58  ;;  %13523 = vtanh.f32 %v1694_v10  ;;  %v14907_v10 = vld [vmem:[#allocation6 + $0xac] ss:$16 sps:$4 sm:$0xff]   ;;  %v14920_v28 = vld [vmem:[#allocation6 + $0xc4] ss:$16 sps:$4 sm:$0xff]   ;;  %v14938_v43 = vld [vmem:[#allocation6 + $0xe0] ss:$16 sps:$4 sm:$0xff]  }
 0x1f5   :  { %2207 = vmatpush1.bf16.msra.mxu0 %v14877_v41  ;;  %2248 = vmatpush1.bf16.msra.mxu1 %v13862_v17 }
 0x1f6   :  { %2208 = vmatprep.subr.bf16.mxu0 %v14880_v26  ;;  %2249 = vmatprep.subr.bf16.mxu1 %v13863_v20  ;;  %v14914_v20 = vld [vmem:[#allocation6 + $0xa0] ss:$16 sps:$4 sm:$0xff]  }
 0x1f9   :  { %2209 = vmatpush1.bf16.msra.mxu0 %v14885_v24  ;;  %2250 = vmatpush1.bf16.msra.mxu1 %v13864_v7  ;;  %v14922_v7 = vld [vmem:[#allocation6 + $0xcc] ss:$16 sps:$4 sm:$0xff]  }
 0x1fa   :  { %2210 = vmatprep.subr.bf16.mxu0 %v14888_v55  ;;  %2251 = vmatprep.subr.bf16.mxu1 %v13865_v2 }
 0x1fc   :  { %v13522_v22 = vpop.eup %13521 }
 0x1fd   :  { %v1706_v34 = vmul.f32 %v13522_v22, %v1701_v42  ;;  %2211 = vmatpush1.bf16.msra.mxu0 %v14891_v0  ;;  %2252 = vmatpush1.bf16.msra.mxu1 %v13866_v3  ;;  %v13524_v2 = vpop.eup %13523  ;;  %v14926_v42 = vld [vmem:[#allocation6 + $0xc0] ss:$16 sps:$4 sm:$0xff]   ;;  %v14928_v22 = vld [vmem:[#allocation6 + $0xc8] ss:$16 sps:$4 sm:$0xff]   ;;  %v14934_v3 = vld [vmem:[#allocation6 + $0xec] ss:$16 sps:$4 sm:$0xff]  }
 0x1fe   :  { %2212 = vmatprep.subr.bf16.mxu0 %v14894_v25  ;;  %2253 = vmatprep.subr.bf16.mxu1 %v14896_v18 }
 0x1ff   :  { %v14909_v17 = vadd.f32 %v1706_v34, %v1705_v40  ;;  %v1700_v40 = vmul.f32 0.5, %v13524_v2  ;;  %v14932_v34 = vld [vmem:[#allocation6 + $0xe4] ss:$16 sps:$4 sm:$0xff]  }
 0x201   :  { %13525 = vtanh.f32 %v14909_v17  ;;  %2213 = vmatpush1.bf16.msra.mxu0 %v14899_v45  ;;  %2254 = vmatpush1.bf16.msra.mxu1 %v14901_v1  ;;  %v1703_v12 = vadd.f32 0.5, %v1700_v40  ;;  %v15065_v40 = vld [vmem:[#allocation6 + $0xc] ss:$16 sps:$4 sm:$0xff]  }
 0x202   :  { %2214 = vmatprep.subr.bf16.mxu0 %v14905_v9  ;;  %2255 = vmatprep.subr.bf16.mxu1 %v14907_v10  ;;  %18257 = vst [vmem:[#allocation131_spill] sm:$0xff] %v15065_v40 }
 0x205   :  { %2215 = vmatpush1.bf16.msra.mxu0 %v14914_v20  ;;  %2256 = vmatpush1.bf16.msra.mxu1 %v14916_v39 }
 0x206   :  { %2216 = vmatprep.subr.bf16.mxu0 %v14920_v28  ;;  %2257 = vmatprep.subr.bf16.mxu1 %v14922_v7 }
 0x209   :  { %2217 = vmatpush1.bf16.msra.mxu0 %v14926_v42  ;;  %2258 = vmatpush1.bf16.msra.mxu1 %v14928_v22 }
 0x20a   :  { %2218 = vmatprep.subr.bf16.mxu0 %v14932_v34  ;;  %2259 = vmatprep.subr.bf16.mxu1 %v14934_v3 }
 0x20b   :  { %v13526_v2 = vpop.eup %13525 }
 0x20c   :  { %v14944_v37 = vmul.f32 %v13526_v2, %v1703_v12  ;;  %v14977_v12 = vld [vmem:[%s18028_s3 + $0x8] ss:$16 sps:$4 sm:$0xff]  }
 0x20d   :  { %2219 = vmatpush1.bf16.msra.mxu0 %v14938_v43  ;;  %2260 = vmatpush1.bf16.msra.mxu1 %v14940_v61 }
 0x20e   :  { %18253 = vst [vmem:[#allocation127_spill] sm:$0xff] %v14944_v37  ;;  %v2011_v6 = vpack.c.bf16 %v14944_v37, %v14944_v37  ;;  %2534 = vmatprep.subr.bf16.mxu0 %v14465_v5  ;;  %v14996_v5 = vld [vmem:[%s18028_s3 + $0x4c] ss:$16 sps:$4 sm:$0xff]  }
 0x210   :  { %2237 = vmatmul.mubr.bf16.vlgmr.msra.gmra.mrb[60].mxu0 %v2011_v6  ;;  %2278 = vmatmul.mubr.bf16.vlgmr.msra.gmra.mrb[92].mxu1 %v2011_v6  ;;  %v14972_v6 = vld [vmem:[%s18028_s3 + $0xc] ss:$16 sps:$4 sm:$0xff]  }
 0x211   :  { %2535 = vmatpush1.bf16.msra.mxu0 %v14478_v16  ;;  %2566 = vmatprep.mubr.bf16.mxu0 %v18252_v58  ;;  %v15001_v16 = vld [vmem:[%s18028_s3 + $0x48] ss:$16 sps:$4 sm:$0xff]  }
 0x212   :  { %2536 = vmatprep.subr.bf16.mxu0 %v14503_v33  ;;  %2607 = vmatprep.mubr.bf16.mxu1 %v18252_v58  ;;  %v15008_v33 = vld [vmem:[%s18028_s3 + $0x6c] ss:$16 sps:$4 sm:$0xff]  }
 0x213   :  { %2575 = vmatprep.subr.bf16.mxu1 %v14972_v6 }
 0x214   :  { %2576 = vmatpush1.bf16.msra.mxu1 %v14977_v12 }
 0x215   :  { %2537 = vmatpush1.bf16.msra.mxu0 %v14508_v35  ;;  %v15013_v35 = vld [vmem:[%s18028_s3 + $0x68] ss:$16 sps:$4 sm:$0xff]  }
 0x216   :  { %2538 = vmatprep.subr.bf16.mxu0 %v14515_v50  ;;  %v15020_v50 = vld [vmem:[%s18028_s3 + $0x8c] ss:$16 sps:$4 sm:$0xff]  }
 0x219   :  { %2539 = vmatpush1.bf16.msra.mxu0 %v14526_v19  ;;  %v15025_v19 = vld [vmem:[%s18028_s3 + $0x88] ss:$16 sps:$4 sm:$0xff]  }
 0x21a   :  { %2540 = vmatprep.subr.bf16.mxu0 %v14551_v14  ;;  %v15032_v14 = vld [vmem:[%s18028_s3 + $0xa8] ss:$16 sps:$4 sm:$0xff]  }
 0x21d   :  { %2541 = vmatpush1.bf16.msra.mxu0 %v14556_v29  ;;  %v15037_v29 = vld [vmem:[%s18028_s3 + $0xac] ss:$16 sps:$4 sm:$0xff]  }
 0x21e   :  { %2542 = vmatprep.subr.bf16.mxu0 %v14563_v13  ;;  %v15044_v13 = vld [vmem:[%s18028_s3 + $0xcc] ss:$16 sps:$4 sm:$0xff]  }
 0x221   :  { %2543 = vmatpush1.bf16.msra.mxu0 %v14574_v53 }
 0x222   :  { %2544 = vmatprep.subr.bf16.mxu0 %v14598_v32 }
 0x225   :  { %2545 = vmatpush1.bf16.msra.mxu0 %v14593_v31 }
 0x226   :  { %2546 = vmatprep.subr.bf16.mxu0 %v14609_v52  ;;  %v15049_v52 = vld [vmem:[%s18028_s3 + $0xc8] ss:$16 sps:$4 sm:$0xff]  }
 0x227   :  { %18254 = vst [vmem:[#allocation128_spill] sm:$0xff] %v15049_v52 }
 0x229   :  { %2547 = vmatpush1.bf16.msra.mxu0 %v14616_v15  ;;  %v14984_v15 = vld [vmem:[%s18028_s3 + $0x2c] ss:$16 sps:$4 sm:$0xff]  }
 0x22a   :  { %2548 = vmatprep.subr.bf16.mxu0 %v14622_v21  ;;  %2577 = vmatprep.subr.bf16.mxu1 %v14984_v15  ;;  %v15056_v21 = vld [vmem:[%s18028_s3 + $0xec] ss:$16 sps:$4 sm:$0xff]  }
 0x22b   :  { %18255 = vst [vmem:[#allocation129_spill] sm:$0xff] %v15056_v21 }
 0x22d   :  { %2549 = vmatpush1.bf16.msra.mxu0 %v14646_v11  ;;  %v15061_v11 = vld [vmem:[%s18028_s3 + $0xe8] ss:$16 sps:$4 sm:$0xff]  }
 0x22e   :  { %2820 = vmatprep.subr.bf16.mxu0 %v14656_v62  ;;  %v14989_v62 = vld [vmem:[%s18028_s3 + $0x28] ss:$16 sps:$4 sm:$0xff]   ;;  %18256 = vst [vmem:[#allocation130_spill] sm:$0xff] %v15061_v11 }
 0x22f   :  { %2578 = vmatpush1.bf16.msra.mxu1 %v14989_v62 }
 0x230   :  { %2579 = vmatprep.subr.bf16.mxu1 %v14996_v5 }
 0x233   :  { %2580 = vmatpush1.bf16.msra.mxu1 %v15001_v16 }
 0x234   :  { %2581 = vmatprep.subr.bf16.mxu1 %v15008_v33 }
 0x237   :  { %2582 = vmatpush1.bf16.msra.mxu1 %v15013_v35 }
 0x238   :  { %2583 = vmatprep.subr.bf16.mxu1 %v15020_v50 }
 0x23b   :  { %2584 = vmatpush1.bf16.msra.mxu1 %v15025_v19 }
 0x23c   :  { %2585 = vmatprep.subr.bf16.mxu1 %v15037_v29 }
 0x23f   :  { %2586 = vmatpush1.bf16.msra.mxu1 %v15032_v14 }
 0x240   :  { %2587 = vmatprep.subr.bf16.mxu1 %v15044_v13 }
 0x243   :  { %2588 = vmatpush1.bf16.msra.mxu1 %v15049_v52 }
 0x244   :  { %2589 = vmatprep.subr.bf16.mxu1 %v15056_v21 }
 0x247   :  { %2590 = vmatpush1.bf16.msra.mxu1 %v15061_v11 }
 0x248   :  { %2861 = vmatprep.subr.bf16.mxu1 %v15065_v40 }
 0x2c3   :  { %v1952_v2 = vpop.f32.mrb[56].mxu0  ;;  %v1993_v37 = vpop.f32.mrb[88].mxu1 }
 0x2c4   :  { %v2000_v36 = vadd.f32 %v1952_v2, %v14365_v56  ;;  %v2002_v44 = vadd.f32 %v1993_v37, %v14488_v23  ;;  %v1954_v49 = vpop.f32.mrb[57].mxu0  ;;  %v1995_v51 = vpop.f32.mrb[89].mxu1 }
 0x2c5   :  { %v2001_v48 = vadd.f32 %v1954_v49, %v14372_v59  ;;  %v2003_v4 = vadd.f32 %v1995_v51, %v14495_v30  ;;  %v1956_v57 = vpop.f32.mrb[58].mxu0  ;;  %v1997_v63 = vpop.f32.mrb[90].mxu1 }
 0x2c6   :  { %v2290_v31 = vmul.f32 0.5, %v2000_v36  ;;  %v1957_v32 = vpop.f32.mrb[59].mxu0  ;;  %v1998_v53 = vpop.f32.mrb[91].mxu1  ;;  %v2292_v40 = vmul.f32 0.5, %v2002_v44 }
 0x2c7   :  { %v2291_v11 = vmul.f32 0.5, %v2001_v48 }
 0x2c8   :  { %13527 = vtanh.f32 %v2290_v31 }
 0x2c9   :  { %13529 = vtanh.f32 %v2291_v11 }
 0x2ca   :  { %13531 = vtanh.f32 %v2003_v4 }
 0x2cb   :  { %13533 = vtanh.f32 %v2292_v40 }
 0x2d2   :  { %v13528_v21 = vpop.eup %13527 }
 0x2d3   :  { %v2296_v56 = vmul.f32 0.5, %v13528_v21  ;;  %v13530_v2 = vpop.eup %13529 }
 0x2d4   :  { %v2297_v37 = vmul.f32 0.5, %v13530_v2  ;;  %v13532_v52 = vpop.eup %13531 }
 0x2d5   :  { %v2299_v23 = vadd.f32 0.5, %v2296_v56  ;;  %v13534_v53 = vpop.eup %13533 }
 0x2d6   :  { %v2300_v59 = vadd.f32 0.5, %v2297_v37  ;;  %v2298_v57 = vmul.f32 0.5, %v13534_v53 }
 0x2d7   :  { %v2304_v49 = vmul.f32 %v13532_v52, %v2299_v23 }
 0x2d8   :  { %v2303_v30 = vmul.f32 %v2300_v59, %v14863_v8  ;;  %v2301_v11 = vadd.f32 0.5, %v2298_v57 }
 0x2da   :  { %v15073_v63 = vadd.f32 %v2304_v49, %v2303_v30  ;;  %v15094_v49 = vld [vmem:[#allocation6 + $0x4c] ss:$16 sps:$4 sm:$0xff]  }
 0x2dc   :  { %13535 = vtanh.f32 %v15073_v63 }
 0x2e3   :  { %v2238_v48 = vpop.f32.mrb[60].mxu0  ;;  %v2279_v4 = vpop.f32.mrb[92].mxu1 }
 0x2e4   :  { %v2286_v31 = vadd.f32 %v2238_v48, %v14735_v27  ;;  %v2288_v32 = vadd.f32 %v2279_v4, %v14854_v46  ;;  %v2240_v44 = vpop.f32.mrb[61].mxu0  ;;  %v2281_v51 = vpop.f32.mrb[93].mxu1  ;;  %v15082_v27 = vld [vmem:[#allocation6 + $0x8] ss:$16 sps:$4 sm:$0xff]  }
 0x2e5   :  { %v2287_v36 = vadd.f32 %v2240_v44, %v14742_v54  ;;  %v2289_v52 = vadd.f32 %v2281_v51, %v14857_v60  ;;  %v2242_v21 = vpop.f32.mrb[62].mxu0  ;;  %v2283_v8 = vpop.f32.mrb[94].mxu1  ;;  %v15086_v54 = vld [vmem:[#allocation6 + $0x2c] ss:$16 sps:$4 sm:$0xff]   ;;  %v15090_v60 = vld [vmem:[#allocation6 + $0x28] ss:$16 sps:$4 sm:$0xff]  }
 0x2e6   :  { %v2308_v40 = vmul.f32 0.5, %v2286_v31  ;;  %v2243_v56 = vpop.f32.mrb[63].mxu0  ;;  %v2284_v2 = vpop.f32.mrb[95].mxu1  ;;  %v2310_v30 = vmul.f32 0.5, %v2288_v32  ;;  %v18269_v8 = vld [vmem:[#allocation18_spill] sm:$0xff] }
 0x2e7   :  { %v13536_v23 = vpop.eup %13535  ;;  %v2309_v37 = vmul.f32 0.5, %v2287_v36 }
 0x2e8   :  { %13537 = vtanh.f32 %v2308_v40  ;;  %v15080_v59 = vmul.f32 %v13536_v23, %v2301_v11  ;;  %v18270_v40 = vld [vmem:[#allocation45_spill] sm:$0xff] }
 0x2e9   :  { %13539 = vtanh.f32 %v2309_v37 }
 0x2ea   :  { %18258 = vst [vmem:[#allocation132_spill] sm:$0xff] %v15080_v59  ;;  %v2341_v46 = vpack.c.bf16 %v15080_v59, %v15080_v59  ;;  %13541 = vtanh.f32 %v2289_v52  ;;  %v18289_v59 = vld [vmem:[#allocation22_spill] sm:$0xff] }
 0x2eb   :  { %13543 = vtanh.f32 %v2310_v30 }
 0x2ec   :  { %2567 = vmatmul.mubr.bf16.vlgmr.msra.gmra.mrb[64].mxu0 %v2341_v46  ;;  %2608 = vmatmul.mubr.bf16.vlgmr.msra.gmra.mrb[96].mxu1 %v2341_v46 }
 0x2ed   :  { %2821 = vmatpush1.bf16.msra.mxu0 %v14869_v47  ;;  %2862 = vmatpush1.bf16.msra.mxu1 %v15082_v27  ;;  %v15100_v47 = vld [vmem:[#allocation6 + $0x48] ss:$16 sps:$4 sm:$0xff]  }
 0x2ee   :  { %2822 = vmatprep.subr.bf16.mxu0 %v14874_v38  ;;  %2863 = vmatprep.subr.bf16.mxu1 %v15086_v54  ;;  %v15104_v38 = vld [vmem:[#allocation6 + $0x6c] ss:$16 sps:$4 sm:$0xff]  }
 0x2ef   :  { %2852 = vmatprep.mubr.bf16.mxu0 %v18252_v58  ;;  %2893 = vmatprep.mubr.bf16.mxu1 %v18252_v58 }
 0x2f1   :  { %2823 = vmatpush1.bf16.msra.mxu0 %v14877_v41  ;;  %2864 = vmatpush1.bf16.msra.mxu1 %v15090_v60  ;;  %v15108_v41 = vld [vmem:[#allocation6 + $0x68] ss:$16 sps:$4 sm:$0xff]  }
 0x2f2   :  { %v13538_v53 = vpop.eup %13537  ;;  %2824 = vmatprep.subr.bf16.mxu0 %v14880_v26  ;;  %2865 = vmatprep.subr.bf16.mxu1 %v15094_v49 }
 0x2f3   :  { %v2314_v57 = vmul.f32 0.5, %v13538_v53  ;;  %v13540_v48 = vpop.eup %13539 }
 0x2f4   :  { %v2315_v31 = vmul.f32 0.5, %v13540_v48  ;;  %v13542_v32 = vpop.eup %13541 }
 0x2f5   :  { %v2317_v4 = vadd.f32 0.5, %v2314_v57  ;;  %2825 = vmatpush1.bf16.msra.mxu0 %v14885_v24  ;;  %2866 = vmatpush1.bf16.msra.mxu1 %v15100_v47 }
 0x2f6   :  { %2826 = vmatprep.subr.bf16.mxu0 %v14888_v55  ;;  %2867 = vmatprep.subr.bf16.mxu1 %v15104_v38  ;;  %v2318_v26 = vadd.f32 0.5, %v2315_v31  ;;  %v13544_v55 = vpop.eup %13543 }
 0x2f7   :  { %v2322_v44 = vmul.f32 %v13542_v32, %v2317_v4 }
 0x2f8   :  { %v2321_v51 = vmul.f32 %v2318_v26, %v14909_v17  ;;  %v15160_v17 = vld [vmem:[%s18028_s3 + $0x4] ss:$16 sps:$4 sm:$0xff]  }
 0x2f9   :  { %2827 = vmatpush1.bf16.msra.mxu0 %v14891_v0  ;;  %2868 = vmatpush1.bf16.msra.mxu1 %v15108_v41  ;;  %v2316_v0 = vmul.f32 0.5, %v13544_v55 }
 0x2fa   :  { %2828 = vmatprep.subr.bf16.mxu0 %v14894_v25  ;;  %2869 = vmatprep.subr.bf16.mxu1 %v14896_v18  ;;  %v15117_v24 = vadd.f32 %v2322_v44, %v2321_v51 }
 0x2fb   :  { %v2319_v25 = vadd.f32 0.5, %v2316_v0 }
 0x2fc   :  { %13545 = vtanh.f32 %v15117_v24 }
 0x2fd   :  { %2829 = vmatpush1.bf16.msra.mxu0 %v14899_v45  ;;  %2870 = vmatpush1.bf16.msra.mxu1 %v14901_v1 }
 0x2fe   :  { %2830 = vmatprep.subr.bf16.mxu0 %v14905_v9  ;;  %2871 = vmatprep.subr.bf16.mxu1 %v14907_v10  ;;  %v18262_v9 = vld [vmem:[#allocation130_spill] sm:$0xff]  ;;  %v18263_v10 = vld [vmem:[#allocation131_spill] sm:$0xff] }
 0x301   :  { %2831 = vmatpush1.bf16.msra.mxu0 %v14914_v20  ;;  %2872 = vmatpush1.bf16.msra.mxu1 %v14916_v39  ;;  %v15165_v20 = vld [vmem:[%s18028_s3] ss:$16 sps:$4 sm:$0xff]   ;;  %v13867_v39 = vld [vmem:[%s18028_s3 + $0x24] ss:$16 sps:$4 sm:$0xff]  }
 0x302   :  { %2832 = vmatprep.subr.bf16.mxu0 %v14920_v28  ;;  %2873 = vmatprep.subr.bf16.mxu1 %v14922_v7  ;;  %v13868_v28 = vld [vmem:[%s18028_s3 + $0x20] ss:$16 sps:$4 sm:$0xff]   ;;  %v13869_v7 = vld [vmem:[%s18028_s3 + $0x44] ss:$16 sps:$4 sm:$0xff]  }
 0x305   :  { %2833 = vmatpush1.bf16.msra.mxu0 %v14926_v42  ;;  %2874 = vmatpush1.bf16.msra.mxu1 %v14928_v22  ;;  %v13870_v42 = vld [vmem:[%s18028_s3 + $0x40] ss:$16 sps:$4 sm:$0xff]   ;;  %v13871_v22 = vld [vmem:[%s18028_s3 + $0x64] ss:$16 sps:$4 sm:$0xff]  }
 0x306   :  { %2834 = vmatprep.subr.bf16.mxu0 %v14932_v34  ;;  %2875 = vmatprep.subr.bf16.mxu1 %v14934_v3  ;;  %v13546_v18 = vpop.eup %13545  ;;  %v13872_v34 = vld [vmem:[%s18028_s3 + $0x60] ss:$16 sps:$4 sm:$0xff]   ;;  %v13873_v3 = vld [vmem:[%s18028_s3 + $0x84] ss:$16 sps:$4 sm:$0xff]  }
 0x307   :  { %v15132_v45 = vmul.f32 %v13546_v18, %v2319_v25 }
 0x309   :  { %18259 = vst [vmem:[#allocation133_spill] sm:$0xff] %v15132_v45  ;;  %2835 = vmatpush1.bf16.msra.mxu0 %v14938_v43  ;;  %2876 = vmatpush1.bf16.msra.mxu1 %v14940_v61  ;;  %v2627_v1 = vpack.c.bf16 %v15132_v45, %v15132_v45  ;;  %v18260_v61 = vld [vmem:[#allocation128_spill] sm:$0xff]  ;;  %v18261_v43 = vld [vmem:[#allocation129_spill] sm:$0xff] }
 0x30a   :  { %3191 = vmatprep.subr.bf16.mxu1 %v14972_v6  ;;  %3150 = vmatprep.subr.bf16.mxu0 %v15160_v17  ;;  %v18264_v6 = vld [vmem:[#allocation53_spill] sm:$0xff] }
 0x30c   :  { %2853 = vmatmul.mubr.bf16.vlgmr.msra.gmra.mrb[68].mxu0 %v2627_v1  ;;  %2894 = vmatmul.mubr.bf16.vlgmr.msra.gmra.mrb[100].mxu1 %v2627_v1 }
 0x30d   :  { %3192 = vmatpush1.bf16.msra.mxu1 %v14977_v12  ;;  %3182 = vmatprep.mubr.bf16.mxu0 %v18252_v58  ;;  %v18265_v12 = vld [vmem:[#allocation59_spill] sm:$0xff] }
 0x30e   :  { %3193 = vmatprep.subr.bf16.mxu1 %v14984_v15  ;;  %3223 = vmatprep.mubr.bf16.mxu1 %v18252_v58  ;;  %v18266_v15 = vld [vmem:[#allocation58_spill] sm:$0xff] }
 0x30f   :  { %3151 = vmatpush1.bf16.msra.mxu0 %v15165_v20 }
 0x310   :  { %3152 = vmatprep.subr.bf16.mxu0 %v13867_v39  ;;  %v18272_v39 = vld [vmem:[#allocation124_spill] sm:$0xff] }
 0x311   :  { %3194 = vmatpush1.bf16.msra.mxu1 %v14989_v62  ;;  %v15196_v62 = vld [vmem:[%s18028_s3 + $0xc4] ss:$16 sps:$4 sm:$0xff]  }
 0x312   :  { %3195 = vmatprep.subr.bf16.mxu1 %v14996_v5  ;;  %v15201_v5 = vld [vmem:[%s18028_s3 + $0xc0] ss:$16 sps:$4 sm:$0xff]  }
 0x313   :  { %3153 = vmatpush1.bf16.msra.mxu0 %v13868_v28 }
 0x314   :  { %3154 = vmatprep.subr.bf16.mxu0 %v13869_v7 }
 0x315   :  { %3196 = vmatpush1.bf16.msra.mxu1 %v15001_v16  ;;  %v15208_v16 = vld [vmem:[%s18028_s3 + $0xe4] ss:$16 sps:$4 sm:$0xff]  }
 0x316   :  { %3197 = vmatprep.subr.bf16.mxu1 %v15008_v33  ;;  %v15213_v33 = vld [vmem:[%s18028_s3 + $0xe0] ss:$16 sps:$4 sm:$0xff]  }
 0x317   :  { %3155 = vmatpush1.bf16.msra.mxu0 %v13870_v42 }
 0x318   :  { %3156 = vmatprep.subr.bf16.mxu0 %v13871_v22  ;;  %v18273_v22 = vld [vmem:[#allocation93_spill] sm:$0xff] }
 0x319   :  { %3198 = vmatpush1.bf16.msra.mxu1 %v15013_v35  ;;  %v15217_v35 = vld [vmem:[#allocation6 + $0x4] ss:$16 sps:$4 sm:$0xff]  }
 0x31a   :  { %3199 = vmatprep.subr.bf16.mxu1 %v15020_v50 }
 0x31b   :  { %3157 = vmatpush1.bf16.msra.mxu0 %v13872_v34 }
 0x31c   :  { %3158 = vmatprep.subr.bf16.mxu0 %v13873_v3  ;;  %v18274_v3 = vld [vmem:[#allocation125_spill] sm:$0xff] }
 0x31d   :  { %3200 = vmatpush1.bf16.msra.mxu1 %v15025_v19 }
 0x31e   :  { %3201 = vmatprep.subr.bf16.mxu1 %v15037_v29 }
 0x31f   :  { %3159 = vmatpush1.bf16.msra.mxu0 %v18264_v6 }
 0x320   :  { %3160 = vmatprep.subr.bf16.mxu0 %v18265_v12 }
 0x321   :  { %3202 = vmatpush1.bf16.msra.mxu1 %v15032_v14  ;;  %v18267_v14 = vld [vmem:[#allocation16_spill] sm:$0xff] }
 0x322   :  { %3203 = vmatprep.subr.bf16.mxu1 %v15044_v13  ;;  %v18268_v13 = vld [vmem:[#allocation43_spill] sm:$0xff] }
 0x323   :  { %3161 = vmatpush1.bf16.msra.mxu0 %v18266_v15 }
 0x324   :  { %3162 = vmatprep.subr.bf16.mxu0 %v15196_v62 }
 0x325   :  { %3204 = vmatpush1.bf16.msra.mxu1 %v18260_v61 }
 0x326   :  { %3205 = vmatprep.subr.bf16.mxu1 %v18261_v43 }
 0x327   :  { %3163 = vmatpush1.bf16.msra.mxu0 %v15201_v5 }
 0x328   :  { %3164 = vmatprep.subr.bf16.mxu0 %v15208_v16 }
 0x329   :  { %3206 = vmatpush1.bf16.msra.mxu1 %v18262_v9  ;;  %v18271_v9 = vld [vmem:[#allocation91_spill] sm:$0xff] }
 0x32a   :  { %3477 = vmatprep.subr.bf16.mxu1 %v18263_v10 }
 0x32b   :  { %3165 = vmatpush1.bf16.msra.mxu0 %v15213_v33 }
 0x32c   :  { %3436 = vmatprep.subr.bf16.mxu0 %v15217_v35 }
 0x3bf   :  { %v2568_v50 = vpop.f32.mrb[64].mxu0  ;;  %v2609_v19 = vpop.f32.mrb[96].mxu1 }
 0x3c0   :  { %v2616_v29 = vadd.f32 %v2568_v50, %v18267_v14  ;;  %v2618_v36 = vadd.f32 %v2609_v19, %v18268_v13  ;;  %v2570_v52 = vpop.f32.mrb[65].mxu0  ;;  %v2611_v21 = vpop.f32.mrb[97].mxu1 }
 0x3c1   :  { %v2617_v11 = vadd.f32 %v2570_v52, %v18269_v8  ;;  %v2619_v56 = vadd.f32 %v2611_v21, %v18270_v40  ;;  %v2572_v2 = vpop.f32.mrb[66].mxu0  ;;  %v2613_v23 = vpop.f32.mrb[98].mxu1  ;;  %v15234_v52 = vld [vmem:[#allocation6] ss:$16 sps:$4 sm:$0xff]   ;;  %v15238_v8 = vld [vmem:[#allocation6 + $0x24] ss:$16 sps:$4 sm:$0xff]  }
 0x3c2   :  { %v2906_v37 = vmul.f32 0.5, %v2616_v29  ;;  %v2573_v46 = vpop.f32.mrb[67].mxu0  ;;  %v2614_v30 = vpop.f32.mrb[99].mxu1  ;;  %v2908_v57 = vmul.f32 0.5, %v2618_v36  ;;  %v15246_v40 = vld [vmem:[#allocation6 + $0x44] ss:$16 sps:$4 sm:$0xff]  }
 0x3c3   :  { %v2907_v53 = vmul.f32 0.5, %v2617_v11  ;;  %v15242_v11 = vld [vmem:[#allocation6 + $0x20] ss:$16 sps:$4 sm:$0xff]   ;;  %v15256_v23 = vld [vmem:[#allocation6 + $0x64] ss:$16 sps:$4 sm:$0xff]  }
 0x3c4   :  { %13547 = vtanh.f32 %v2906_v37  ;;  %v15252_v2 = vld [vmem:[#allocation6 + $0x40] ss:$16 sps:$4 sm:$0xff]  }
 0x3c5   :  { %13549 = vtanh.f32 %v2907_v53  ;;  %v15260_v53 = vld [vmem:[#allocation6 + $0x60] ss:$16 sps:$4 sm:$0xff]  }
 0x3c6   :  { %13551 = vtanh.f32 %v2619_v56 }
 0x3c7   :  { %13553 = vtanh.f32 %v2908_v57  ;;  %v15264_v57 = vld [vmem:[#allocation6 + $0x84] ss:$16 sps:$4 sm:$0xff]  }
 0x3ce   :  { %v13548_v48 = vpop.eup %13547 }
 0x3cf   :  { %v2912_v4 = vmul.f32 0.5, %v13548_v48  ;;  %v13550_v31 = vpop.eup %13549 }
 0x3d0   :  { %v2913_v26 = vmul.f32 0.5, %v13550_v31  ;;  %v13552_v44 = vpop.eup %13551 }
 0x3d1   :  { %v2915_v32 = vadd.f32 0.5, %v2912_v4  ;;  %v13554_v18 = vpop.eup %13553 }
 0x3d2   :  { %v2916_v51 = vadd.f32 0.5, %v2913_v26  ;;  %v2914_v1 = vmul.f32 0.5, %v13554_v18  ;;  %v15279_v26 = vld [vmem:[#allocation6 + $0xac] ss:$16 sps:$4 sm:$0xff]   ;;  %v15298_v18 = vld [vmem:[#allocation6 + $0xc0] ss:$16 sps:$4 sm:$0xff]  }
 0x3d3   :  { %v2920_v55 = vmul.f32 %v13552_v44, %v2915_v32  ;;  %v15273_v32 = vld [vmem:[#allocation6 + $0x88] ss:$16 sps:$4 sm:$0xff]  }
 0x3d4   :  { %v2919_v0 = vmul.f32 %v2916_v51, %v15073_v63  ;;  %v2917_v15 = vadd.f32 0.5, %v2914_v1  ;;  %v15292_v51 = vld [vmem:[#allocation6 + $0xc4] ss:$16 sps:$4 sm:$0xff]   ;;  %v15300_v1 = vld [vmem:[#allocation6 + $0xc8] ss:$16 sps:$4 sm:$0xff]  }
 0x3d6   :  { %v15225_v25 = vadd.f32 %v2920_v55, %v2919_v0  ;;  %v15294_v55 = vld [vmem:[#allocation6 + $0xcc] ss:$16 sps:$4 sm:$0xff]  }
 0x3d8   :  { %13555 = vtanh.f32 %v15225_v25 }
 0x3df   :  { %v2854_v61 = vpop.f32.mrb[68].mxu0  ;;  %v2895_v43 = vpop.f32.mrb[100].mxu1 }
 0x3e0   :  { %v2902_v10 = vadd.f32 %v2854_v61, %v18271_v9  ;;  %v2904_v28 = vadd.f32 %v2895_v43, %v18272_v39  ;;  %v2856_v7 = vpop.f32.mrb[69].mxu0  ;;  %v2897_v42 = vpop.f32.mrb[101].mxu1  ;;  %v15304_v43 = vld [vmem:[#allocation6 + $0xe4] ss:$16 sps:$4 sm:$0xff]   ;;  %v15306_v9 = vld [vmem:[#allocation6 + $0xec] ss:$16 sps:$4 sm:$0xff]  }
 0x3e1   :  { %v2903_v34 = vadd.f32 %v2856_v7, %v18273_v22  ;;  %v2905_v6 = vadd.f32 %v2897_v42, %v18274_v3  ;;  %v2858_v12 = vpop.f32.mrb[70].mxu0  ;;  %v2899_v63 = vpop.f32.mrb[102].mxu1  ;;  %v15312_v39 = vld [vmem:[#allocation6 + $0xe8] ss:$16 sps:$4 sm:$0xff]  }
 0x3e2   :  { %v2924_v50 = vmul.f32 0.5, %v2902_v10  ;;  %v2859_v19 = vpop.f32.mrb[71].mxu0  ;;  %v2900_v14 = vpop.f32.mrb[103].mxu1  ;;  %v2926_v56 = vmul.f32 0.5, %v2904_v28  ;;  %v15310_v10 = vld [vmem:[#allocation6 + $0xe0] ss:$16 sps:$4 sm:$0xff]  }
 0x3e3   :  { %v13556_v29 = vpop.eup %13555  ;;  %v2925_v13 = vmul.f32 0.5, %v2903_v34  ;;  %v15329_v34 = vld [vmem:[%s18028_s3 + $0xc] ss:$16 sps:$4 sm:$0xff]   ;;  %v15334_v3 = vld [vmem:[%s18028_s3 + $0x8] ss:$16 sps:$4 sm:$0xff]  }
 0x3e4   :  { %13557 = vtanh.f32 %v2924_v50  ;;  %v15232_v36 = vmul.f32 %v13556_v29, %v2917_v15  ;;  %v15356_v12 = vld [vmem:[%s18028_s3 + $0x28] ss:$16 sps:$4 sm:$0xff]   ;;  %v15365_v63 = vld [vmem:[%s18028_s3 + $0x44] ss:$16 sps:$4 sm:$0xff]   ;;  %v15370_v15 = vld [vmem:[%s18028_s3 + $0x4c] ss:$16 sps:$4 sm:$0xff]  }
 0x3e5   :  { %13559 = vtanh.f32 %v2925_v13  ;;  %18279 = vst [vmem:[#allocation53_spill] sm:$0xff] %v15365_v63  ;;  %v15375_v50 = vld [vmem:[%s18028_s3 + $0x40] ss:$16 sps:$4 sm:$0xff]   ;;  %v15380_v19 = vld [vmem:[%s18028_s3 + $0x48] ss:$16 sps:$4 sm:$0xff]  }
 0x3e6   :  { %18275 = vst [vmem:[#allocation128_spill] sm:$0xff] %v15232_v36  ;;  %v2957_v21 = vpack.c.bf16 %v15232_v36, %v15232_v36  ;;  %13561 = vtanh.f32 %v2905_v6  ;;  %v15351_v6 = vld [vmem:[%s18028_s3 + $0x20] ss:$16 sps:$4 sm:$0xff]   ;;  %18280 = vst [vmem:[#allocation59_spill] sm:$0xff] %v15375_v50  ;;  %v15389_v14 = vld [vmem:[%s18028_s3 + $0x64] ss:$16 sps:$4 sm:$0xff]  }
 0x3e7   :  { %13563 = vtanh.f32 %v2926_v56  ;;  %18278 = vst [vmem:[#allocation131_spill] sm:$0xff] %v15351_v6  ;;  %18281 = vst [vmem:[#allocation58_spill] sm:$0xff] %v15389_v14  ;;  %v15394_v29 = vld [vmem:[%s18028_s3 + $0x6c] ss:$16 sps:$4 sm:$0xff]   ;;  %v15399_v13 = vld [vmem:[%s18028_s3 + $0x60] ss:$16 sps:$4 sm:$0xff]  }
 0x3e8   :  { %3183 = vmatmul.mubr.bf16.vlgmr.msra.gmra.mrb[72].mxu0 %v2957_v21  ;;  %3224 = vmatmul.mubr.bf16.vlgmr.msra.gmra.mrb[104].mxu1 %v2957_v21  ;;  %18282 = vst [vmem:[#allocation16_spill] sm:$0xff] %v15399_v13  ;;  %v15404_v21 = vld [vmem:[%s18028_s3 + $0x68] ss:$16 sps:$4 sm:$0xff]   ;;  %v15413_v56 = vld [vmem:[%s18028_s3 + $0x84] ss:$16 sps:$4 sm:$0xff]  }
 0x3e9   :  { %3437 = vmatpush1.bf16.msra.mxu0 %v15234_v52  ;;  %3478 = vmatpush1.bf16.msra.mxu1 %v15082_v27  ;;  %18283 = vst [vmem:[#allocation43_spill] sm:$0xff] %v15413_v56 }
 0x3ea   :  { %3438 = vmatprep.subr.bf16.mxu0 %v15238_v8  ;;  %3479 = vmatprep.subr.bf16.mxu1 %v15086_v54 }
 0x3eb   :  { %3468 = vmatprep.mubr.bf16.mxu0 %v18252_v58  ;;  %3509 = vmatprep.mubr.bf16.mxu1 %v18252_v58 }
 0x3ed   :  { %3439 = vmatpush1.bf16.msra.mxu0 %v15242_v11  ;;  %3480 = vmatpush1.bf16.msra.mxu1 %v15090_v60 }
 0x3ee   :  { %v13558_v27 = vpop.eup %13557  ;;  %3440 = vmatprep.subr.bf16.mxu0 %v15246_v40  ;;  %3481 = vmatprep.subr.bf16.mxu1 %v15094_v49  ;;  %v15266_v49 = vld [vmem:[#allocation6 + $0x8c] ss:$16 sps:$4 sm:$0xff]  }
 0x3ef   :  { %v2930_v54 = vmul.f32 0.5, %v13558_v27  ;;  %v13560_v37 = vpop.eup %13559  ;;  %v15418_v27 = vld [vmem:[%s18028_s3 + $0x8c] ss:$16 sps:$4 sm:$0xff]  }
 0x3f0   :  { %v2931_v30 = vmul.f32 0.5, %v13560_v37  ;;  %v13562_v60 = vpop.eup %13561  ;;  %v15428_v37 = vld [vmem:[%s18028_s3 + $0x88] ss:$16 sps:$4 sm:$0xff]  }
 0x3f1   :  { %v2933_v46 = vadd.f32 0.5, %v2930_v54  ;;  %3441 = vmatpush1.bf16.msra.mxu0 %v15252_v2  ;;  %3482 = vmatpush1.bf16.msra.mxu1 %v15100_v47  ;;  %v15271_v47 = vld [vmem:[#allocation6 + $0x80] ss:$16 sps:$4 sm:$0xff]   ;;  %v13564_v0 = vpop.eup %13563 }
 0x3f2   :  { %3442 = vmatprep.subr.bf16.mxu0 %v15256_v23  ;;  %3483 = vmatprep.subr.bf16.mxu1 %v15104_v38  ;;  %v2934_v48 = vadd.f32 0.5, %v2931_v30  ;;  %v15277_v38 = vld [vmem:[#allocation6 + $0xa4] ss:$16 sps:$4 sm:$0xff]   ;;  %v2932_v61 = vmul.f32 0.5, %v13564_v0  ;;  %v15423_v54 = vld [vmem:[%s18028_s3 + $0x80] ss:$16 sps:$4 sm:$0xff]  }
 0x3f3   :  { %v2938_v4 = vmul.f32 %v13562_v60, %v2933_v46  ;;  %18284 = vst [vmem:[#allocation18_spill] sm:$0xff] %v15423_v54  ;;  %v15437_v46 = vld [vmem:[%s18028_s3 + $0xa0] ss:$16 sps:$4 sm:$0xff]   ;;  %v15442_v30 = vld [vmem:[%s18028_s3 + $0xa4] ss:$16 sps:$4 sm:$0xff]  }
 0x3f4   :  { %v2937_v31 = vmul.f32 %v2934_v48, %v15117_v24  ;;  %v15288_v24 = vld [vmem:[#allocation6 + $0xa8] ss:$16 sps:$4 sm:$0xff]   ;;  %v2935_v28 = vadd.f32 0.5, %v2932_v61  ;;  %18285 = vst [vmem:[#allocation45_spill] sm:$0xff] %v15437_v46  ;;  %18286 = vst [vmem:[#allocation91_spill] sm:$0xff] %v15442_v30 }
 0x3f5   :  { %3443 = vmatpush1.bf16.msra.mxu0 %v15260_v53  ;;  %3484 = vmatpush1.bf16.msra.mxu1 %v15108_v41  ;;  %v15286_v41 = vld [vmem:[#allocation6 + $0xa0] ss:$16 sps:$4 sm:$0xff]   ;;  %v15447_v60 = vld [vmem:[%s18028_s3 + $0xa8] ss:$16 sps:$4 sm:$0xff]   ;;  %v15452_v48 = vld [vmem:[%s18028_s3 + $0xac] ss:$16 sps:$4 sm:$0xff]  }
 0x3f6   :  { %3444 = vmatprep.subr.bf16.mxu0 %v15264_v57  ;;  %3485 = vmatprep.subr.bf16.mxu1 %v15266_v49  ;;  %v15281_v44 = vadd.f32 %v2938_v4, %v2937_v31  ;;  %v15462_v4 = vld [vmem:[%s18028_s3 + $0xcc] ss:$16 sps:$4 sm:$0xff]   ;;  %v15467_v31 = vld [vmem:[%s18028_s3 + $0xc8] ss:$16 sps:$4 sm:$0xff]  }
 0x3f7   :  { %v15481_v0 = vld [vmem:[%s18028_s3 + $0xe8] ss:$16 sps:$4 sm:$0xff]  }
 0x3f8   :  { %13565 = vtanh.f32 %v15281_v44 }
 0x3f9   :  { %3445 = vmatpush1.bf16.msra.mxu0 %v15271_v47  ;;  %3486 = vmatpush1.bf16.msra.mxu1 %v15273_v32 }
 0x3fa   :  { %3446 = vmatprep.subr.bf16.mxu0 %v15277_v38  ;;  %3487 = vmatprep.subr.bf16.mxu1 %v15279_v26 }
 0x3fd   :  { %3447 = vmatpush1.bf16.msra.mxu0 %v15286_v41  ;;  %3488 = vmatpush1.bf16.msra.mxu1 %v15288_v24 }
 0x3fe   :  { %3448 = vmatprep.subr.bf16.mxu0 %v15292_v51  ;;  %3489 = vmatprep.subr.bf16.mxu1 %v15294_v55 }
 0x401   :  { %3449 = vmatpush1.bf16.msra.mxu0 %v15298_v18  ;;  %3490 = vmatpush1.bf16.msra.mxu1 %v15300_v1 }
 0x402   :  { %3450 = vmatprep.subr.bf16.mxu0 %v15304_v43  ;;  %3491 = vmatprep.subr.bf16.mxu1 %v15306_v9  ;;  %v13566_v7 = vpop.eup %13565 }
 0x403   :  { %v15316_v42 = vmul.f32 %v13566_v7, %v2935_v28  ;;  %v18287_v28 = vld [vmem:[#allocation20_spill] sm:$0xff] }
 0x405   :  { %18276 = vst [vmem:[#allocation129_spill] sm:$0xff] %v15316_v42  ;;  %3451 = vmatpush1.bf16.msra.mxu0 %v15310_v10  ;;  %3492 = vmatpush1.bf16.msra.mxu1 %v15312_v39  ;;  %v3243_v22 = vpack.c.bf16 %v15316_v42, %v15316_v42 }
 0x406   :  { %3766 = vmatprep.subr.bf16.mxu0 %v15160_v17  ;;  %3807 = vmatprep.subr.bf16.mxu1 %v15329_v34  ;;  %v15341_v17 = vld [vmem:[%s18028_s3 + $0x24] ss:$16 sps:$4 sm:$0xff]  }
 0x407   :  { %18277 = vst [vmem:[#allocation130_spill] sm:$0xff] %v15341_v17 }
 0x408   :  { %3469 = vmatmul.mubr.bf16.vlgmr.msra.gmra.mrb[76].mxu0 %v3243_v22  ;;  %3510 = vmatmul.mubr.bf16.vlgmr.msra.gmra.mrb[108].mxu1 %v3243_v22  ;;  %v18288_v22 = vld [vmem:[#allocation47_spill] sm:$0xff] }
 0x409   :  { %3767 = vmatpush1.bf16.msra.mxu0 %v15165_v20  ;;  %3798 = vmatprep.mubr.bf16.mxu0 %v18252_v58  ;;  %v15346_v20 = vld [vmem:[%s18028_s3 + $0x2c] ss:$16 sps:$4 sm:$0xff]  }
 0x40a   :  { %3839 = vmatprep.mubr.bf16.mxu1 %v18252_v58  ;;  %3808 = vmatpush1.bf16.msra.mxu1 %v15334_v3 }
 0x40b   :  { %3768 = vmatprep.subr.bf16.mxu0 %v15341_v17  ;;  %3809 = vmatprep.subr.bf16.mxu1 %v15346_v20 }
 0x40d   :  { %3769 = vmatpush1.bf16.msra.mxu0 %v15351_v6 }
 0x40e   :  { %3810 = vmatpush1.bf16.msra.mxu1 %v15356_v12  ;;  %3770 = vmatprep.subr.bf16.mxu0 %v15365_v63 }
 0x40f   :  { %3811 = vmatprep.subr.bf16.mxu1 %v15370_v15 }
 0x411   :  { %3771 = vmatpush1.bf16.msra.mxu0 %v15375_v50 }
 0x412   :  { %3812 = vmatpush1.bf16.msra.mxu1 %v15380_v19  ;;  %3772 = vmatprep.subr.bf16.mxu0 %v15389_v14 }
 0x413   :  { %3813 = vmatprep.subr.bf16.mxu1 %v15394_v29 }
 0x415   :  { %3773 = vmatpush1.bf16.msra.mxu0 %v15399_v13 }
 0x416   :  { %3814 = vmatpush1.bf16.msra.mxu1 %v15404_v21  ;;  %3774 = vmatprep.subr.bf16.mxu0 %v15413_v56 }
 0x417   :  { %3815 = vmatprep.subr.bf16.mxu1 %v15418_v27 }
 0x419   :  { %3775 = vmatpush1.bf16.msra.mxu0 %v15423_v54 }
 0x41a   :  { %3816 = vmatpush1.bf16.msra.mxu1 %v15428_v37  ;;  %3776 = vmatprep.subr.bf16.mxu0 %v15442_v30  ;;  %v18290_v30 = vld [vmem:[#allocation49_spill] sm:$0xff] }
 0x41b   :  { %3817 = vmatprep.subr.bf16.mxu1 %v15452_v48 }
 0x41d   :  { %3777 = vmatpush1.bf16.msra.mxu0 %v15437_v46 }
 0x41e   :  { %3818 = vmatpush1.bf16.msra.mxu1 %v15447_v60  ;;  %3778 = vmatprep.subr.bf16.mxu0 %v15196_v62  ;;  %v15476_v62 = vld [vmem:[%s18028_s3 + $0xec] ss:$16 sps:$4 sm:$0xff]  }
 0x41f   :  { %3819 = vmatprep.subr.bf16.mxu1 %v15462_v4 }
 0x421   :  { %3779 = vmatpush1.bf16.msra.mxu0 %v15201_v5  ;;  %v15487_v5 = vld [vmem:[#allocation6 + $0xc] ss:$16 sps:$4 sm:$0xff]  }
 0x422   :  { %3820 = vmatpush1.bf16.msra.mxu1 %v15467_v31  ;;  %3780 = vmatprep.subr.bf16.mxu0 %v15208_v16 }
 0x423   :  { %3821 = vmatprep.subr.bf16.mxu1 %v15476_v62 }
 0x425   :  { %3781 = vmatpush1.bf16.msra.mxu0 %v15213_v33 }
 0x426   :  { %3822 = vmatpush1.bf16.msra.mxu1 %v15481_v0  ;;  %4052 = vmatprep.subr.bf16.mxu0 %v15217_v35 }
 0x427   :  { %4093 = vmatprep.subr.bf16.mxu1 %v15487_v5 }
 0x4bb   :  { %v3184_v16 = vpop.f32.mrb[72].mxu0  ;;  %v3225_v61 = vpop.f32.mrb[104].mxu1 }
 0x4bc   :  { %v3232_v7 = vadd.f32 %v3184_v16, %v18287_v28  ;;  %v3234_v45 = vadd.f32 %v3225_v61, %v18288_v22  ;;  %v3186_v42 = vpop.f32.mrb[73].mxu0  ;;  %v3227_v36 = vpop.f32.mrb[105].mxu1 }
 0x4bd   :  { %v3233_v46 = vadd.f32 %v3186_v42, %v18289_v59  ;;  %v3235_v33 = vadd.f32 %v3227_v36, %v18290_v30  ;;  %v3188_v54 = vpop.f32.mrb[74].mxu0  ;;  %v3229_v56 = vpop.f32.mrb[106].mxu1 }
 0x4be   :  { %v3522_v13 = vmul.f32 0.5, %v3232_v7  ;;  %v3189_v35 = vpop.f32.mrb[75].mxu0  ;;  %v3230_v14 = vpop.f32.mrb[107].mxu1  ;;  %v3524_v63 = vmul.f32 0.5, %v3234_v45  ;;  %v18292_v45 = vld [vmem:[#allocation87_spill] sm:$0xff] }
 0x4bf   :  { %v3523_v50 = vmul.f32 0.5, %v3233_v46 }
 0x4c0   :  { %13567 = vtanh.f32 %v3522_v13 }
 0x4c1   :  { %13569 = vtanh.f32 %v3523_v50 }
 0x4c2   :  { %13571 = vtanh.f32 %v3235_v33  ;;  %v18294_v33 = vld [vmem:[#allocation89_spill] sm:$0xff] }
 0x4c3   :  { %13573 = vtanh.f32 %v3524_v63 }
 0x4ca   :  { %v13568_v6 = vpop.eup %13567 }
 0x4cb   :  { %v3528_v16 = vmul.f32 0.5, %v13568_v6  ;;  %v13570_v28 = vpop.eup %13569  ;;  %v18293_v6 = vld [vmem:[#allocation122_spill] sm:$0xff] }
 0x4cc   :  { %v3529_v22 = vmul.f32 0.5, %v13570_v28  ;;  %v13572_v17 = vpop.eup %13571 }
 0x4cd   :  { %v3531_v61 = vadd.f32 0.5, %v3528_v16  ;;  %v13574_v14 = vpop.eup %13573  ;;  %v18295_v16 = vld [vmem:[#allocation123_spill] sm:$0xff] }
 0x4ce   :  { %v3532_v59 = vadd.f32 0.5, %v3529_v22  ;;  %v3530_v13 = vmul.f32 0.5, %v13574_v14 }
 0x4cf   :  { %v3536_v42 = vmul.f32 %v13572_v17, %v3531_v61 }
 0x4d0   :  { %v3535_v36 = vmul.f32 %v3532_v59, %v15225_v25  ;;  %v3533_v61 = vadd.f32 0.5, %v3530_v13  ;;  %v15512_v13 = vld [vmem:[#allocation6 + $0x28] ss:$16 sps:$4 sm:$0xff]  }
 0x4d2   :  { %v15495_v56 = vadd.f32 %v3536_v42, %v3535_v36 }
 0x4d4   :  { %18291 = vst [vmem:[#allocation124_spill] sm:$0xff] %v15495_v56  ;;  %13575 = vtanh.f32 %v15495_v56 }
 0x4db   :  { %v3470_v50 = vpop.f32.mrb[76].mxu0  ;;  %v3511_v54 = vpop.f32.mrb[108].mxu1 }
 0x4dc   :  { %v3518_v46 = vadd.f32 %v3470_v50, %v18292_v45  ;;  %v3520_v30 = vadd.f32 %v3511_v54, %v18293_v6  ;;  %v3472_v7 = vpop.f32.mrb[77].mxu0  ;;  %v3513_v63 = vpop.f32.mrb[109].mxu1  ;;  %v15504_v50 = vld [vmem:[#allocation6 + $0x8] ss:$16 sps:$4 sm:$0xff]   ;;  %v15508_v45 = vld [vmem:[#allocation6 + $0x2c] ss:$16 sps:$4 sm:$0xff]  }
 0x4dd   :  { %v3519_v35 = vadd.f32 %v3472_v7, %v18294_v33  ;;  %v3521_v17 = vadd.f32 %v3513_v63, %v18295_v16  ;;  %v3474_v28 = vpop.f32.mrb[78].mxu0  ;;  %v3515_v25 = vpop.f32.mrb[110].mxu1 }
 0x4de   :  { %v3540_v22 = vmul.f32 0.5, %v3518_v46  ;;  %v3475_v59 = vpop.f32.mrb[79].mxu0  ;;  %v3516_v42 = vpop.f32.mrb[111].mxu1  ;;  %v15516_v46 = vld [vmem:[#allocation6 + $0x4c] ss:$16 sps:$4 sm:$0xff]   ;;  %v3542_v6 = vmul.f32 0.5, %v3520_v30 }
 0x4df   :  { %v13576_v36 = vpop.eup %13575  ;;  %v3541_v14 = vmul.f32 0.5, %v3519_v35 }
 0x4e0   :  { %13577 = vtanh.f32 %v3540_v22  ;;  %v15502_v56 = vmul.f32 %v13576_v36, %v3533_v61 }
 0x4e1   :  { %13579 = vtanh.f32 %v3541_v14 }
 0x4e2   :  { %18296 = vst [vmem:[#allocation93_spill] sm:$0xff] %v15502_v56  ;;  %v3573_v54 = vpack.c.bf16 %v15502_v56, %v15502_v56  ;;  %13581 = vtanh.f32 %v3521_v17  ;;  %v18331_v56 = vld [vmem:[#allocation30_spill] sm:$0xff] }
 0x4e3   :  { %13583 = vtanh.f32 %v3542_v6 }
 0x4e4   :  { %3799 = vmatmul.mubr.bf16.vlgmr.msra.gmra.mrb[80].mxu0 %v3573_v54  ;;  %3840 = vmatmul.mubr.bf16.vlgmr.msra.gmra.mrb[112].mxu1 %v3573_v54 }
 0x4e5   :  { %4053 = vmatpush1.bf16.msra.mxu0 %v15234_v52  ;;  %4094 = vmatpush1.bf16.msra.mxu1 %v15504_v50  ;;  %v15522_v52 = vld [vmem:[#allocation6 + $0x48] ss:$16 sps:$4 sm:$0xff]  }
 0x4e6   :  { %4054 = vmatprep.subr.bf16.mxu0 %v15238_v8  ;;  %4095 = vmatprep.subr.bf16.mxu1 %v15508_v45  ;;  %v15526_v8 = vld [vmem:[#allocation6 + $0x6c] ss:$16 sps:$4 sm:$0xff]  }
 0x4e7   :  { %4084 = vmatprep.mubr.bf16.mxu0 %v18252_v58  ;;  %4125 = vmatprep.mubr.bf16.mxu1 %v18252_v58 }
 0x4e9   :  { %4055 = vmatpush1.bf16.msra.mxu0 %v15242_v11  ;;  %4096 = vmatpush1.bf16.msra.mxu1 %v15512_v13  ;;  %v15530_v11 = vld [vmem:[#allocation6 + $0x68] ss:$16 sps:$4 sm:$0xff]  }
 0x4ea   :  { %v13578_v7 = vpop.eup %13577  ;;  %4056 = vmatprep.subr.bf16.mxu0 %v15246_v40  ;;  %4097 = vmatprep.subr.bf16.mxu1 %v15516_v46 }
 0x4eb   :  { %v3546_v63 = vmul.f32 0.5, %v13578_v7  ;;  %v13580_v33 = vpop.eup %13579 }
 0x4ec   :  { %v3547_v16 = vmul.f32 0.5, %v13580_v33  ;;  %v13582_v30 = vpop.eup %13581 }
 0x4ed   :  { %v3549_v35 = vadd.f32 0.5, %v3546_v63  ;;  %4057 = vmatpush1.bf16.msra.mxu0 %v15252_v2  ;;  %4098 = vmatpush1.bf16.msra.mxu1 %v15522_v52 }
 0x4ee   :  { %4058 = vmatprep.subr.bf16.mxu0 %v15256_v23  ;;  %4099 = vmatprep.subr.bf16.mxu1 %v15526_v8  ;;  %v3550_v40 = vadd.f32 0.5, %v3547_v16  ;;  %v13584_v23 = vpop.eup %13583 }
 0x4ef   :  { %v3554_v17 = vmul.f32 %v13582_v30, %v3549_v35  ;;  %v18312_v30 = vld [vmem:[#allocation124_spill] sm:$0xff] }
 0x4f0   :  { %v3553_v28 = vmul.f32 %v3550_v40, %v15281_v44  ;;  %v18298_v44 = vld [vmem:[#allocation130_spill] sm:$0xff] }
 0x4f1   :  { %4059 = vmatpush1.bf16.msra.mxu0 %v15260_v53  ;;  %4100 = vmatpush1.bf16.msra.mxu1 %v15530_v11  ;;  %v3548_v53 = vmul.f32 0.5, %v13584_v23 }
 0x4f2   :  { %4060 = vmatprep.subr.bf16.mxu0 %v15264_v57  ;;  %4101 = vmatprep.subr.bf16.mxu1 %v15266_v49  ;;  %v15539_v2 = vadd.f32 %v3554_v17, %v3553_v28 }
 0x4f3   :  { %v3551_v57 = vadd.f32 0.5, %v3548_v53 }
 0x4f4   :  { %13585 = vtanh.f32 %v15539_v2 }
 0x4f5   :  { %4061 = vmatpush1.bf16.msra.mxu0 %v15271_v47  ;;  %4102 = vmatpush1.bf16.msra.mxu1 %v15273_v32 }
 0x4f6   :  { %4062 = vmatprep.subr.bf16.mxu0 %v15277_v38  ;;  %4103 = vmatprep.subr.bf16.mxu1 %v15279_v26  ;;  %v15582_v38 = vld [vmem:[%s18028_s3 + $0x4] ss:$16 sps:$4 sm:$0xff]   ;;  %v15587_v26 = vld [vmem:[%s18028_s3] ss:$16 sps:$4 sm:$0xff]  }
 0x4f9   :  { %4063 = vmatpush1.bf16.msra.mxu0 %v15286_v41  ;;  %4104 = vmatpush1.bf16.msra.mxu1 %v15288_v24  ;;  %v18299_v41 = vld [vmem:[#allocation131_spill] sm:$0xff]  ;;  %v18300_v24 = vld [vmem:[#allocation53_spill] sm:$0xff] }
 0x4fa   :  { %4064 = vmatprep.subr.bf16.mxu0 %v15292_v51  ;;  %4105 = vmatprep.subr.bf16.mxu1 %v15294_v55  ;;  %v18301_v51 = vld [vmem:[#allocation59_spill] sm:$0xff]  ;;  %v18302_v55 = vld [vmem:[#allocation58_spill] sm:$0xff] }
 0x4fd   :  { %4065 = vmatpush1.bf16.msra.mxu0 %v15298_v18  ;;  %4106 = vmatpush1.bf16.msra.mxu1 %v15300_v1  ;;  %v18303_v18 = vld [vmem:[#allocation16_spill] sm:$0xff]  ;;  %v18304_v1 = vld [vmem:[#allocation43_spill] sm:$0xff] }
 0x4fe   :  { %4066 = vmatprep.subr.bf16.mxu0 %v15304_v43  ;;  %4107 = vmatprep.subr.bf16.mxu1 %v15306_v9  ;;  %v13586_v49 = vpop.eup %13585  ;;  %v18305_v43 = vld [vmem:[#allocation18_spill] sm:$0xff]  ;;  %v18306_v9 = vld [vmem:[#allocation91_spill] sm:$0xff] }
 0x4ff   :  { %v15554_v47 = vmul.f32 %v13586_v49, %v3551_v57  ;;  %v18313_v49 = vld [vmem:[#allocation83_spill] sm:$0xff] }
 0x501   :  { %18297 = vst [vmem:[#allocation125_spill] sm:$0xff] %v15554_v47  ;;  %4067 = vmatpush1.bf16.msra.mxu0 %v15310_v10  ;;  %4108 = vmatpush1.bf16.msra.mxu1 %v15312_v39  ;;  %v3859_v32 = vpack.c.bf16 %v15554_v47, %v15554_v47  ;;  %v18307_v10 = vld [vmem:[#allocation45_spill] sm:$0xff] }
 0x502   :  { %4423 = vmatprep.subr.bf16.mxu1 %v15329_v34  ;;  %4382 = vmatprep.subr.bf16.mxu0 %v15582_v38  ;;  %v15604_v39 = vld [vmem:[%s18028_s3 + $0xc4] ss:$16 sps:$4 sm:$0xff]   ;;  %v15609_v34 = vld [vmem:[%s18028_s3 + $0xc0] ss:$16 sps:$4 sm:$0xff]  }
 0x504   :  { %4085 = vmatmul.mubr.bf16.vlgmr.msra.gmra.mrb[84].mxu0 %v3859_v32  ;;  %4126 = vmatmul.mubr.bf16.vlgmr.msra.gmra.mrb[116].mxu1 %v3859_v32 }
 0x505   :  { %4424 = vmatpush1.bf16.msra.mxu1 %v15334_v3  ;;  %4414 = vmatprep.mubr.bf16.mxu0 %v18252_v58  ;;  %v15616_v3 = vld [vmem:[%s18028_s3 + $0xe4] ss:$16 sps:$4 sm:$0xff]  }
 0x506   :  { %4425 = vmatprep.subr.bf16.mxu1 %v15346_v20  ;;  %4455 = vmatprep.mubr.bf16.mxu1 %v18252_v58  ;;  %v15621_v20 = vld [vmem:[%s18028_s3 + $0xe0] ss:$16 sps:$4 sm:$0xff]  }
 0x507   :  { %4383 = vmatpush1.bf16.msra.mxu0 %v15587_v26 }
 0x508   :  { %4384 = vmatprep.subr.bf16.mxu0 %v18298_v44  ;;  %v18314_v44 = vld [vmem:[#allocation120_spill] sm:$0xff] }
 0x509   :  { %4426 = vmatpush1.bf16.msra.mxu1 %v15356_v12  ;;  %v15625_v12 = vld [vmem:[#allocation6 + $0x4] ss:$16 sps:$4 sm:$0xff]  }
 0x50a   :  { %4427 = vmatprep.subr.bf16.mxu1 %v15370_v15 }
 0x50b   :  { %4385 = vmatpush1.bf16.msra.mxu0 %v18299_v41 }
 0x50c   :  { %4386 = vmatprep.subr.bf16.mxu0 %v18300_v24 }
 0x50d   :  { %4428 = vmatpush1.bf16.msra.mxu1 %v15380_v19 }
 0x50e   :  { %4429 = vmatprep.subr.bf16.mxu1 %v15394_v29  ;;  %v18308_v29 = vld [vmem:[#allocation24_spill] sm:$0xff] }
 0x50f   :  { %4387 = vmatpush1.bf16.msra.mxu0 %v18301_v51 }
 0x510   :  { %4388 = vmatprep.subr.bf16.mxu0 %v18302_v55  ;;  %v18315_v55 = vld [vmem:[#allocation85_spill] sm:$0xff] }
 0x511   :  { %4430 = vmatpush1.bf16.msra.mxu1 %v15404_v21 }
 0x512   :  { %4431 = vmatprep.subr.bf16.mxu1 %v15418_v27  ;;  %v18309_v27 = vld [vmem:[#allocation51_spill] sm:$0xff] }
 0x513   :  { %4389 = vmatpush1.bf16.msra.mxu0 %v18303_v18 }
 0x514   :  { %4390 = vmatprep.subr.bf16.mxu0 %v18304_v1  ;;  %v18316_v1 = vld [vmem:[#allocation121_spill] sm:$0xff] }
 0x515   :  { %4432 = vmatpush1.bf16.msra.mxu1 %v15428_v37 }
 0x516   :  { %4433 = vmatprep.subr.bf16.mxu1 %v15452_v48 }
 0x517   :  { %4391 = vmatpush1.bf16.msra.mxu0 %v18305_v43 }
 0x518   :  { %4392 = vmatprep.subr.bf16.mxu0 %v18306_v9 }
 0x519   :  { %4434 = vmatpush1.bf16.msra.mxu1 %v15447_v60 }
 0x51a   :  { %4435 = vmatprep.subr.bf16.mxu1 %v15462_v4  ;;  %v18310_v4 = vld [vmem:[#allocation26_spill] sm:$0xff] }
 0x51b   :  { %4393 = vmatpush1.bf16.msra.mxu0 %v18307_v10 }
 0x51c   :  { %4394 = vmatprep.subr.bf16.mxu0 %v15604_v39 }
 0x51d   :  { %4436 = vmatpush1.bf16.msra.mxu1 %v15467_v31 }
 0x51e   :  { %4437 = vmatprep.subr.bf16.mxu1 %v15476_v62  ;;  %v18311_v62 = vld [vmem:[#allocation54_spill] sm:$0xff] }
 0x51f   :  { %4395 = vmatpush1.bf16.msra.mxu0 %v15609_v34 }
 0x520   :  { %4396 = vmatprep.subr.bf16.mxu0 %v15616_v3 }
 0x521   :  { %4438 = vmatpush1.bf16.msra.mxu1 %v15481_v0 }
 0x522   :  { %4709 = vmatprep.subr.bf16.mxu1 %v15487_v5 }
 0x523   :  { %4397 = vmatpush1.bf16.msra.mxu0 %v15621_v20 }
 0x524   :  { %4668 = vmatprep.subr.bf16.mxu0 %v15625_v12 }
 0x5b7   :  { %v3800_v15 = vpop.f32.mrb[80].mxu0  ;;  %v3841_v19 = vpop.f32.mrb[112].mxu1 }
 0x5b8   :  { %v3848_v21 = vadd.f32 %v3800_v15, %v18308_v29  ;;  %v3850_v37 = vadd.f32 %v3841_v19, %v18309_v27  ;;  %v3802_v60 = vpop.f32.mrb[81].mxu0  ;;  %v3843_v48 = vpop.f32.mrb[113].mxu1 }
 0x5b9   :  { %v3849_v31 = vadd.f32 %v3802_v60, %v18310_v4  ;;  %v3851_v0 = vadd.f32 %v3843_v48, %v18311_v62  ;;  %v3804_v5 = vpop.f32.mrb[82].mxu0  ;;  %v3845_v25 = vpop.f32.mrb[114].mxu1  ;;  %v15642_v48 = vld [vmem:[#allocation6] ss:$16 sps:$4 sm:$0xff]  }
 0x5ba   :  { %v4138_v61 = vmul.f32 0.5, %v3848_v21  ;;  %v3805_v22 = vpop.f32.mrb[83].mxu0  ;;  %v3846_v59 = vpop.f32.mrb[115].mxu1  ;;  %v4140_v36 = vmul.f32 0.5, %v3850_v37  ;;  %v15650_v62 = vld [vmem:[#allocation6 + $0x20] ss:$16 sps:$4 sm:$0xff]  }
 0x5bb   :  { %v4139_v42 = vmul.f32 0.5, %v3849_v31  ;;  %v15646_v31 = vld [vmem:[#allocation6 + $0x24] ss:$16 sps:$4 sm:$0xff]   ;;  %v15660_v25 = vld [vmem:[#allocation6 + $0x40] ss:$16 sps:$4 sm:$0xff]  }
 0x5bc   :  { %13587 = vtanh.f32 %v4138_v61  ;;  %v15664_v61 = vld [vmem:[#allocation6 + $0x64] ss:$16 sps:$4 sm:$0xff]  }
 0x5bd   :  { %13589 = vtanh.f32 %v4139_v42 }
 0x5be   :  { %13591 = vtanh.f32 %v3851_v0  ;;  %v15654_v0 = vld [vmem:[#allocation6 + $0x44] ss:$16 sps:$4 sm:$0xff]  }
 0x5bf   :  { %13593 = vtanh.f32 %v4140_v36  ;;  %v15668_v36 = vld [vmem:[#allocation6 + $0x60] ss:$16 sps:$4 sm:$0xff]  }
 0x5c6   :  { %v13588_v14 = vpop.eup %13587 }
 0x5c7   :  { %v4144_v54 = vmul.f32 0.5, %v13588_v14  ;;  %v13590_v6 = vpop.eup %13589  ;;  %v15672_v14 = vld [vmem:[#allocation6 + $0x84] ss:$16 sps:$4 sm:$0xff]  }
 0x5c8   :  { %v4145_v63 = vmul.f32 0.5, %v13590_v6  ;;  %v13592_v33 = vpop.eup %13591 }
 0x5c9   :  { %v4147_v7 = vadd.f32 0.5, %v4144_v54  ;;  %v13594_v28 = vpop.eup %13593 }
 0x5ca   :  { %v4148_v35 = vadd.f32 0.5, %v4145_v63  ;;  %v4146_v23 = vmul.f32 0.5, %v13594_v28  ;;  %v15681_v63 = vld [vmem:[#allocation6 + $0x88] ss:$16 sps:$4 sm:$0xff]   ;;  %v15706_v28 = vld [vmem:[#allocation6 + $0xc0] ss:$16 sps:$4 sm:$0xff]  }
 0x5cb   :  { %v4152_v16 = vmul.f32 %v13592_v33, %v4147_v7  ;;  %v15687_v33 = vld [vmem:[#allocation6 + $0xac] ss:$16 sps:$4 sm:$0xff]  }
 0x5cc   :  { %v4151_v40 = vmul.f32 %v4148_v35, %v18312_v30  ;;  %v4149_v15 = vadd.f32 0.5, %v4146_v23  ;;  %v15702_v30 = vld [vmem:[#allocation6 + $0xcc] ss:$16 sps:$4 sm:$0xff]   ;;  %v15708_v23 = vld [vmem:[#allocation6 + $0xc8] ss:$16 sps:$4 sm:$0xff]  }
 0x5ce   :  { %v15633_v17 = vadd.f32 %v4152_v16, %v4151_v40  ;;  %v15700_v16 = vld [vmem:[#allocation6 + $0xc4] ss:$16 sps:$4 sm:$0xff]  }
 0x5d0   :  { %13595 = vtanh.f32 %v15633_v17 }
 0x5d7   :  { %v4086_v53 = vpop.f32.mrb[84].mxu0  ;;  %v4127_v57 = vpop.f32.mrb[116].mxu1 }
 0x5d8   :  { %v4134_v32 = vadd.f32 %v4086_v53, %v18313_v49  ;;  %v4136_v41 = vadd.f32 %v4127_v57, %v18314_v44  ;;  %v4088_v24 = vpop.f32.mrb[85].mxu0  ;;  %v4129_v51 = vpop.f32.mrb[117].mxu1  ;;  %v15712_v57 = vld [vmem:[#allocation6 + $0xe4] ss:$16 sps:$4 sm:$0xff]   ;;  %v15714_v49 = vld [vmem:[#allocation6 + $0xec] ss:$16 sps:$4 sm:$0xff]  }
 0x5d9   :  { %v4135_v18 = vadd.f32 %v4088_v24, %v18315_v55  ;;  %v4137_v43 = vadd.f32 %v4129_v51, %v18316_v1  ;;  %v4090_v9 = vpop.f32.mrb[86].mxu0  ;;  %v4131_v10 = vpop.f32.mrb[118].mxu1  ;;  %v15720_v44 = vld [vmem:[#allocation6 + $0xe8] ss:$16 sps:$4 sm:$0xff]  }
 0x5da   :  { %v4156_v19 = vmul.f32 0.5, %v4134_v32  ;;  %v4091_v29 = vpop.f32.mrb[87].mxu0  ;;  %v4132_v21 = vpop.f32.mrb[119].mxu1  ;;  %v4158_v5 = vmul.f32 0.5, %v4136_v41  ;;  %v15718_v32 = vld [vmem:[#allocation6 + $0xe0] ss:$16 sps:$4 sm:$0xff]  }
 0x5db   :  { %v13596_v27 = vpop.eup %13595  ;;  %v4157_v37 = vmul.f32 0.5, %v4135_v18  ;;  %v15737_v18 = vld [vmem:[%s18028_s3 + $0xc] ss:$16 sps:$4 sm:$0xff]   ;;  %v15742_v1 = vld [vmem:[%s18028_s3 + $0x8] ss:$16 sps:$4 sm:$0xff]  }
 0x5dc   :  { %13597 = vtanh.f32 %v4156_v19  ;;  %v15640_v60 = vmul.f32 %v13596_v27, %v4149_v15  ;;  %v15764_v9 = vld [vmem:[%s18028_s3 + $0x28] ss:$16 sps:$4 sm:$0xff]   ;;  %v15773_v10 = vld [vmem:[%s18028_s3 + $0x44] ss:$16 sps:$4 sm:$0xff]   ;;  %v15778_v15 = vld [vmem:[%s18028_s3 + $0x4c] ss:$16 sps:$4 sm:$0xff]  }
 0x5dd   :  { %13599 = vtanh.f32 %v4157_v37  ;;  %18321 = vst [vmem:[#allocation87_spill] sm:$0xff] %v15773_v10  ;;  %v15783_v19 = vld [vmem:[%s18028_s3 + $0x40] ss:$16 sps:$4 sm:$0xff]   ;;  %v15788_v29 = vld [vmem:[%s18028_s3 + $0x48] ss:$16 sps:$4 sm:$0xff]  }
 0x5de   :  { %18317 = vst [vmem:[#allocation20_spill] sm:$0xff] %v15640_v60  ;;  %v4189_v4 = vpack.c.bf16 %v15640_v60, %v15640_v60  ;;  %13601 = vtanh.f32 %v4137_v43  ;;  %v15759_v43 = vld [vmem:[%s18028_s3 + $0x20] ss:$16 sps:$4 sm:$0xff]   ;;  %18322 = vst [vmem:[#allocation122_spill] sm:$0xff] %v15783_v19  ;;  %v15797_v21 = vld [vmem:[%s18028_s3 + $0x64] ss:$16 sps:$4 sm:$0xff]  }
 0x5df   :  { %13603 = vtanh.f32 %v4158_v5  ;;  %18320 = vst [vmem:[#allocation49_spill] sm:$0xff] %v15759_v43  ;;  %18323 = vst [vmem:[#allocation89_spill] sm:$0xff] %v15797_v21  ;;  %v15802_v27 = vld [vmem:[%s18028_s3 + $0x6c] ss:$16 sps:$4 sm:$0xff]   ;;  %v15807_v37 = vld [vmem:[%s18028_s3 + $0x60] ss:$16 sps:$4 sm:$0xff]  }
 0x5e0   :  { %4415 = vmatmul.mubr.bf16.vlgmr.msra.gmra.mrb[88].mxu0 %v4189_v4  ;;  %4456 = vmatmul.mubr.bf16.vlgmr.msra.gmra.mrb[120].mxu1 %v4189_v4  ;;  %18324 = vst [vmem:[#allocation123_spill] sm:$0xff] %v15807_v37  ;;  %v15812_v4 = vld [vmem:[%s18028_s3 + $0x68] ss:$16 sps:$4 sm:$0xff]   ;;  %v15821_v5 = vld [vmem:[%s18028_s3 + $0x84] ss:$16 sps:$4 sm:$0xff]  }
 0x5e1   :  { %4669 = vmatpush1.bf16.msra.mxu0 %v15642_v48  ;;  %4710 = vmatpush1.bf16.msra.mxu1 %v15504_v50  ;;  %18325 = vst [vmem:[#allocation130_spill] sm:$0xff] %v15821_v5 }
 0x5e2   :  { %4670 = vmatprep.subr.bf16.mxu0 %v15646_v31  ;;  %4711 = vmatprep.subr.bf16.mxu1 %v15508_v45 }
 0x5e3   :  { %4700 = vmatprep.mubr.bf16.mxu0 %v18252_v58  ;;  %4741 = vmatprep.mubr.bf16.mxu1 %v18252_v58 }
 0x5e5   :  { %4671 = vmatpush1.bf16.msra.mxu0 %v15650_v62  ;;  %4712 = vmatpush1.bf16.msra.mxu1 %v15512_v13 }
 0x5e6   :  { %v13598_v50 = vpop.eup %13597  ;;  %4672 = vmatprep.subr.bf16.mxu0 %v15654_v0  ;;  %4713 = vmatprep.subr.bf16.mxu1 %v15516_v46  ;;  %v15674_v46 = vld [vmem:[#allocation6 + $0x8c] ss:$16 sps:$4 sm:$0xff]  }
 0x5e7   :  { %v4162_v45 = vmul.f32 0.5, %v13598_v50  ;;  %v13600_v22 = vpop.eup %13599  ;;  %v15826_v50 = vld [vmem:[%s18028_s3 + $0x8c] ss:$16 sps:$4 sm:$0xff]  }
 0x5e8   :  { %v4163_v42 = vmul.f32 0.5, %v13600_v22  ;;  %v13602_v13 = vpop.eup %13601  ;;  %v15836_v22 = vld [vmem:[%s18028_s3 + $0x88] ss:$16 sps:$4 sm:$0xff]  }
 0x5e9   :  { %v4165_v59 = vadd.f32 0.5, %v4162_v45  ;;  %4673 = vmatpush1.bf16.msra.mxu0 %v15660_v25  ;;  %4714 = vmatpush1.bf16.msra.mxu1 %v15522_v52  ;;  %v15679_v52 = vld [vmem:[#allocation6 + $0x80] ss:$16 sps:$4 sm:$0xff]   ;;  %v13604_v40 = vpop.eup %13603 }
 0x5ea   :  { %4674 = vmatprep.subr.bf16.mxu0 %v15664_v61  ;;  %4715 = vmatprep.subr.bf16.mxu1 %v15526_v8  ;;  %v4166_v54 = vadd.f32 0.5, %v4163_v42  ;;  %v15685_v8 = vld [vmem:[#allocation6 + $0xa4] ss:$16 sps:$4 sm:$0xff]   ;;  %v4164_v53 = vmul.f32 0.5, %v13604_v40  ;;  %v15831_v45 = vld [vmem:[%s18028_s3 + $0x80] ss:$16 sps:$4 sm:$0xff]  }
 0x5eb   :  { %v4170_v6 = vmul.f32 %v13602_v13, %v4165_v59  ;;  %18326 = vst [vmem:[#allocation131_spill] sm:$0xff] %v15831_v45  ;;  %v15845_v59 = vld [vmem:[%s18028_s3 + $0xa0] ss:$16 sps:$4 sm:$0xff]   ;;  %v15850_v42 = vld [vmem:[%s18028_s3 + $0xa4] ss:$16 sps:$4 sm:$0xff]  }
 0x5ec   :  { %v4169_v7 = vmul.f32 %v4166_v54, %v15539_v2  ;;  %v15696_v2 = vld [vmem:[#allocation6 + $0xa8] ss:$16 sps:$4 sm:$0xff]   ;;  %v4167_v41 = vadd.f32 0.5, %v4164_v53  ;;  %18327 = vst [vmem:[#allocation53_spill] sm:$0xff] %v15845_v59  ;;  %18328 = vst [vmem:[#allocation59_spill] sm:$0xff] %v15850_v42 }
 0x5ed   :  { %4675 = vmatpush1.bf16.msra.mxu0 %v15668_v36  ;;  %4716 = vmatpush1.bf16.msra.mxu1 %v15530_v11  ;;  %v15694_v11 = vld [vmem:[#allocation6 + $0xa0] ss:$16 sps:$4 sm:$0xff]   ;;  %v15855_v13 = vld [vmem:[%s18028_s3 + $0xa8] ss:$16 sps:$4 sm:$0xff]   ;;  %v15860_v54 = vld [vmem:[%s18028_s3 + $0xac] ss:$16 sps:$4 sm:$0xff]  }
 0x5ee   :  { %4676 = vmatprep.subr.bf16.mxu0 %v15672_v14  ;;  %4717 = vmatprep.subr.bf16.mxu1 %v15674_v46  ;;  %v15689_v35 = vadd.f32 %v4170_v6, %v4169_v7  ;;  %v15870_v6 = vld [vmem:[%s18028_s3 + $0xcc] ss:$16 sps:$4 sm:$0xff]   ;;  %v15875_v7 = vld [vmem:[%s18028_s3 + $0xc8] ss:$16 sps:$4 sm:$0xff]  }
 0x5ef   :  { %v15889_v40 = vld [vmem:[%s18028_s3 + $0xe8] ss:$16 sps:$4 sm:$0xff]  }
 0x5f0   :  { %13605 = vtanh.f32 %v15689_v35 }
 0x5f1   :  { %4677 = vmatpush1.bf16.msra.mxu0 %v15679_v52  ;;  %4718 = vmatpush1.bf16.msra.mxu1 %v15681_v63 }
 0x5f2   :  { %4678 = vmatprep.subr.bf16.mxu0 %v15685_v8  ;;  %4719 = vmatprep.subr.bf16.mxu1 %v15687_v33 }
 0x5f5   :  { %4679 = vmatpush1.bf16.msra.mxu0 %v15694_v11  ;;  %4720 = vmatpush1.bf16.msra.mxu1 %v15696_v2 }
 0x5f6   :  { %4680 = vmatprep.subr.bf16.mxu0 %v15700_v16  ;;  %4721 = vmatprep.subr.bf16.mxu1 %v15702_v30 }
 0x5f9   :  { %4681 = vmatpush1.bf16.msra.mxu0 %v15706_v28  ;;  %4722 = vmatpush1.bf16.msra.mxu1 %v15708_v23 }
 0x5fa   :  { %4682 = vmatprep.subr.bf16.mxu0 %v15712_v57  ;;  %4723 = vmatprep.subr.bf16.mxu1 %v15714_v49  ;;  %v13606_v24 = vpop.eup %13605 }
 0x5fb   :  { %v15724_v51 = vmul.f32 %v13606_v24, %v4167_v41  ;;  %v18329_v41 = vld [vmem:[#allocation28_spill] sm:$0xff] }
 0x5fd   :  { %18318 = vst [vmem:[#allocation47_spill] sm:$0xff] %v15724_v51  ;;  %4683 = vmatpush1.bf16.msra.mxu0 %v15718_v32  ;;  %4724 = vmatpush1.bf16.msra.mxu1 %v15720_v44  ;;  %v4475_v55 = vpack.c.bf16 %v15724_v51, %v15724_v51 }
 0x5fe   :  { %4998 = vmatprep.subr.bf16.mxu0 %v15582_v38  ;;  %5039 = vmatprep.subr.bf16.mxu1 %v15737_v18  ;;  %v15749_v38 = vld [vmem:[%s18028_s3 + $0x24] ss:$16 sps:$4 sm:$0xff]  }
 0x5ff   :  { %18319 = vst [vmem:[#allocation22_spill] sm:$0xff] %v15749_v38 }
 0x600   :  { %4701 = vmatmul.mubr.bf16.vlgmr.msra.gmra.mrb[92].mxu0 %v4475_v55  ;;  %4742 = vmatmul.mubr.bf16.vlgmr.msra.gmra.mrb[124].mxu1 %v4475_v55  ;;  %v18330_v55 = vld [vmem:[#allocation56_spill] sm:$0xff] }
 0x601   :  { %4999 = vmatpush1.bf16.msra.mxu0 %v15587_v26  ;;  %5030 = vmatprep.mubr.bf16.mxu0 %v18252_v58  ;;  %v15754_v26 = vld [vmem:[%s18028_s3 + $0x2c] ss:$16 sps:$4 sm:$0xff]  }
 0x602   :  { %5071 = vmatprep.mubr.bf16.mxu1 %v18252_v58  ;;  %5040 = vmatpush1.bf16.msra.mxu1 %v15742_v1 }
 0x603   :  { %5000 = vmatprep.subr.bf16.mxu0 %v15749_v38  ;;  %5041 = vmatprep.subr.bf16.mxu1 %v15754_v26 }
 0x605   :  { %5001 = vmatpush1.bf16.msra.mxu0 %v15759_v43 }
 0x606   :  { %5042 = vmatpush1.bf16.msra.mxu1 %v15764_v9  ;;  %5002 = vmatprep.subr.bf16.mxu0 %v15773_v10 }
 0x607   :  { %5043 = vmatprep.subr.bf16.mxu1 %v15778_v15 }
 0x609   :  { %5003 = vmatpush1.bf16.msra.mxu0 %v15783_v19 }
 0x60a   :  { %5044 = vmatpush1.bf16.msra.mxu1 %v15788_v29  ;;  %5004 = vmatprep.subr.bf16.mxu0 %v15797_v21 }
 0x60b   :  { %5045 = vmatprep.subr.bf16.mxu1 %v15802_v27 }
 0x60d   :  { %5005 = vmatpush1.bf16.msra.mxu0 %v15807_v37 }
 0x60e   :  { %5046 = vmatpush1.bf16.msra.mxu1 %v15812_v4  ;;  %5006 = vmatprep.subr.bf16.mxu0 %v15821_v5 }
 0x60f   :  { %5047 = vmatprep.subr.bf16.mxu1 %v15826_v50 }
 0x611   :  { %5007 = vmatpush1.bf16.msra.mxu0 %v15831_v45 }
 0x612   :  { %5048 = vmatpush1.bf16.msra.mxu1 %v15836_v22  ;;  %5008 = vmatprep.subr.bf16.mxu0 %v15850_v42  ;;  %v18332_v42 = vld [vmem:[#allocation60_spill] sm:$0xff] }
 0x613   :  { %5049 = vmatprep.subr.bf16.mxu1 %v15860_v54 }
 0x615   :  { %5009 = vmatpush1.bf16.msra.mxu0 %v15845_v59 }
 0x616   :  { %5050 = vmatpush1.bf16.msra.mxu1 %v15855_v13  ;;  %5010 = vmatprep.subr.bf16.mxu0 %v15604_v39  ;;  %v15884_v39 = vld [vmem:[%s18028_s3 + $0xec] ss:$16 sps:$4 sm:$0xff]  }
 0x617   :  { %5051 = vmatprep.subr.bf16.mxu1 %v15870_v6 }
 0x619   :  { %5011 = vmatpush1.bf16.msra.mxu0 %v15609_v34  ;;  %v15895_v34 = vld [vmem:[#allocation6 + $0xc] ss:$16 sps:$4 sm:$0xff]  }
 0x61a   :  { %5052 = vmatpush1.bf16.msra.mxu1 %v15875_v7  ;;  %5012 = vmatprep.subr.bf16.mxu0 %v15616_v3 }
 0x61b   :  { %5053 = vmatprep.subr.bf16.mxu1 %v15884_v39 }
 0x61d   :  { %5013 = vmatpush1.bf16.msra.mxu0 %v15621_v20 }
 0x61e   :  { %5054 = vmatpush1.bf16.msra.mxu1 %v15889_v40  ;;  %5284 = vmatprep.subr.bf16.mxu0 %v15625_v12 }
 0x61f   :  { %5325 = vmatprep.subr.bf16.mxu1 %v15895_v34 }
 0x6b3   :  { %v4416_v3 = vpop.f32.mrb[88].mxu0  ;;  %v4457_v53 = vpop.f32.mrb[120].mxu1 }
 0x6b4   :  { %v4464_v24 = vadd.f32 %v4416_v3, %v18329_v41  ;;  %v4466_v47 = vadd.f32 %v4457_v53, %v18330_v55  ;;  %v4418_v51 = vpop.f32.mrb[89].mxu0  ;;  %v4459_v60 = vpop.f32.mrb[121].mxu1 }
 0x6b5   :  { %v4465_v59 = vadd.f32 %v4418_v51, %v18331_v56  ;;  %v4467_v20 = vadd.f32 %v4459_v60, %v18332_v42  ;;  %v4420_v45 = vpop.f32.mrb[90].mxu0  ;;  %v4461_v5 = vpop.f32.mrb[122].mxu1 }
 0x6b6   :  { %v4754_v37 = vmul.f32 0.5, %v4464_v24  ;;  %v4421_v12 = vpop.f32.mrb[91].mxu0  ;;  %v4462_v21 = vpop.f32.mrb[123].mxu1  ;;  %v4756_v10 = vmul.f32 0.5, %v4466_v47  ;;  %v18334_v47 = vld [vmem:[#allocation79_spill] sm:$0xff] }
 0x6b7   :  { %v4755_v19 = vmul.f32 0.5, %v4465_v59 }
 0x6b8   :  { %13607 = vtanh.f32 %v4754_v37 }
 0x6b9   :  { %13609 = vtanh.f32 %v4755_v19 }
 0x6ba   :  { %13611 = vtanh.f32 %v4467_v20  ;;  %v18336_v20 = vld [vmem:[#allocation81_spill] sm:$0xff] }
 0x6bb   :  { %13613 = vtanh.f32 %v4756_v10 }
 0x6c2   :  { %v13608_v43 = vpop.eup %13607 }
 0x6c3   :  { %v4760_v3 = vmul.f32 0.5, %v13608_v43  ;;  %v13610_v41 = vpop.eup %13609  ;;  %v18335_v43 = vld [vmem:[#allocation118_spill] sm:$0xff] }
 0x6c4   :  { %v4761_v55 = vmul.f32 0.5, %v13610_v41  ;;  %v13612_v38 = vpop.eup %13611 }
 0x6c5   :  { %v4763_v53 = vadd.f32 0.5, %v4760_v3  ;;  %v13614_v21 = vpop.eup %13613  ;;  %v18337_v3 = vld [vmem:[#allocation119_spill] sm:$0xff] }
 0x6c6   :  { %v4764_v56 = vadd.f32 0.5, %v4761_v55  ;;  %v4762_v37 = vmul.f32 0.5, %v13614_v21 }
 0x6c7   :  { %v4768_v51 = vmul.f32 %v13612_v38, %v4763_v53 }
 0x6c8   :  { %v4767_v60 = vmul.f32 %v4764_v56, %v15633_v17  ;;  %v4765_v53 = vadd.f32 0.5, %v4762_v37  ;;  %v15920_v37 = vld [vmem:[#allocation6 + $0x28] ss:$16 sps:$4 sm:$0xff]  }
 0x6ca   :  { %v15903_v5 = vadd.f32 %v4768_v51, %v4767_v60 }
 0x6cc   :  { %18333 = vst [vmem:[#allocation58_spill] sm:$0xff] %v15903_v5  ;;  %13615 = vtanh.f32 %v15903_v5 }
 0x6d3   :  { %v4702_v19 = vpop.f32.mrb[92].mxu0  ;;  %v4743_v45 = vpop.f32.mrb[124].mxu1 }
 0x6d4   :  { %v4750_v59 = vadd.f32 %v4702_v19, %v18334_v47  ;;  %v4752_v42 = vadd.f32 %v4743_v45, %v18335_v43  ;;  %v4704_v24 = vpop.f32.mrb[93].mxu0  ;;  %v4745_v10 = vpop.f32.mrb[125].mxu1  ;;  %v15912_v19 = vld [vmem:[#allocation6 + $0x8] ss:$16 sps:$4 sm:$0xff]   ;;  %v15916_v47 = vld [vmem:[#allocation6 + $0x2c] ss:$16 sps:$4 sm:$0xff]  }
 0x6d5   :  { %v4751_v12 = vadd.f32 %v4704_v24, %v18336_v20  ;;  %v4753_v38 = vadd.f32 %v4745_v10, %v18337_v3  ;;  %v4706_v41 = vpop.f32.mrb[94].mxu0  ;;  %v4747_v17 = vpop.f32.mrb[126].mxu1 }
 0x6d6   :  { %v4772_v55 = vmul.f32 0.5, %v4750_v59  ;;  %v4707_v56 = vpop.f32.mrb[95].mxu0  ;;  %v4748_v51 = vpop.f32.mrb[127].mxu1  ;;  %v15924_v59 = vld [vmem:[#allocation6 + $0x4c] ss:$16 sps:$4 sm:$0xff]   ;;  %v4774_v43 = vmul.f32 0.5, %v4752_v42 }
 0x6d7   :  { %v13616_v60 = vpop.eup %13615  ;;  %v4773_v21 = vmul.f32 0.5, %v4751_v12 }
 0x6d8   :  { %13617 = vtanh.f32 %v4772_v55  ;;  %v15910_v5 = vmul.f32 %v13616_v60, %v4765_v53 }
 0x6d9   :  { %13619 = vtanh.f32 %v4773_v21 }
 0x6da   :  { %18338 = vst [vmem:[#allocation16_spill] sm:$0xff] %v15910_v5  ;;  %v4805_v45 = vpack.c.bf16 %v15910_v5, %v15910_v5  ;;  %13621 = vtanh.f32 %v4753_v38  ;;  %v18373_v5 = vld [vmem:[#allocation38_spill] sm:$0xff] }
 0x6db   :  { %13623 = vtanh.f32 %v4774_v43 }
 0x6dc   :  { %5031 = vmatmul.mubr.bf16.vlgmr.msra.gmra.mrb[96].mxu0 %v4805_v45  ;;  %5072 = vmatmul.mubr.bf16.vlgmr.msra.gmra.mrb[128].mxu1 %v4805_v45 }
 0x6dd   :  { %5285 = vmatpush1.bf16.msra.mxu0 %v15642_v48  ;;  %5326 = vmatpush1.bf16.msra.mxu1 %v15912_v19  ;;  %v15930_v48 = vld [vmem:[#allocation6 + $0x48] ss:$16 sps:$4 sm:$0xff]  }
 0x6de   :  { %5286 = vmatprep.subr.bf16.mxu0 %v15646_v31  ;;  %5327 = vmatprep.subr.bf16.mxu1 %v15916_v47  ;;  %v15934_v31 = vld [vmem:[#allocation6 + $0x6c] ss:$16 sps:$4 sm:$0xff]  }
 0x6df   :  { %5316 = vmatprep.mubr.bf16.mxu0 %v18252_v58  ;;  %5357 = vmatprep.mubr.bf16.mxu1 %v18252_v58 }
 0x6e1   :  { %5287 = vmatpush1.bf16.msra.mxu0 %v15650_v62  ;;  %5328 = vmatpush1.bf16.msra.mxu1 %v15920_v37  ;;  %v15938_v62 = vld [vmem:[#allocation6 + $0x68] ss:$16 sps:$4 sm:$0xff]  }
 0x6e2   :  { %v13618_v24 = vpop.eup %13617  ;;  %5288 = vmatprep.subr.bf16.mxu0 %v15654_v0  ;;  %5329 = vmatprep.subr.bf16.mxu1 %v15924_v59 }
 0x6e3   :  { %v4778_v10 = vmul.f32 0.5, %v13618_v24  ;;  %v13620_v20 = vpop.eup %13619 }
 0x6e4   :  { %v4779_v3 = vmul.f32 0.5, %v13620_v20  ;;  %v13622_v42 = vpop.eup %13621 }
 0x6e5   :  { %v4781_v12 = vadd.f32 0.5, %v4778_v10  ;;  %5289 = vmatpush1.bf16.msra.mxu0 %v15660_v25  ;;  %5330 = vmatpush1.bf16.msra.mxu1 %v15930_v48 }
 0x6e6   :  { %5290 = vmatprep.subr.bf16.mxu0 %v15664_v61  ;;  %5331 = vmatprep.subr.bf16.mxu1 %v15934_v31  ;;  %v4782_v0 = vadd.f32 0.5, %v4779_v3  ;;  %v13624_v61 = vpop.eup %13623 }
 0x6e7   :  { %v4786_v38 = vmul.f32 %v13622_v42, %v4781_v12  ;;  %v18354_v42 = vld [vmem:[#allocation58_spill] sm:$0xff] }
 0x6e8   :  { %v4785_v41 = vmul.f32 %v4782_v0, %v15689_v35  ;;  %v18340_v35 = vld [vmem:[#allocation22_spill] sm:$0xff] }
 0x6e9   :  { %5291 = vmatpush1.bf16.msra.mxu0 %v15668_v36  ;;  %5332 = vmatpush1.bf16.msra.mxu1 %v15938_v62  ;;  %v4780_v36 = vmul.f32 0.5, %v13624_v61 }
 0x6ea   :  { %5292 = vmatprep.subr.bf16.mxu0 %v15672_v14  ;;  %5333 = vmatprep.subr.bf16.mxu1 %v15674_v46  ;;  %v15947_v25 = vadd.f32 %v4786_v38, %v4785_v41 }
 0x6eb   :  { %v4783_v14 = vadd.f32 0.5, %v4780_v36 }
 0x6ec   :  { %13625 = vtanh.f32 %v15947_v25 }
 0x6ed   :  { %5293 = vmatpush1.bf16.msra.mxu0 %v15679_v52  ;;  %5334 = vmatpush1.bf16.msra.mxu1 %v15681_v63 }
 0x6ee   :  { %5294 = vmatprep.subr.bf16.mxu0 %v15685_v8  ;;  %5335 = vmatprep.subr.bf16.mxu1 %v15687_v33  ;;  %v15990_v8 = vld [vmem:[%s18028_s3 + $0x4] ss:$16 sps:$4 sm:$0xff]   ;;  %v15995_v33 = vld [vmem:[%s18028_s3] ss:$16 sps:$4 sm:$0xff]  }
 0x6f1   :  { %5295 = vmatpush1.bf16.msra.mxu0 %v15694_v11  ;;  %5336 = vmatpush1.bf16.msra.mxu1 %v15696_v2  ;;  %v18341_v11 = vld [vmem:[#allocation49_spill] sm:$0xff]  ;;  %v18342_v2 = vld [vmem:[#allocation87_spill] sm:$0xff] }
 0x6f2   :  { %5296 = vmatprep.subr.bf16.mxu0 %v15700_v16  ;;  %5337 = vmatprep.subr.bf16.mxu1 %v15702_v30  ;;  %v18343_v16 = vld [vmem:[#allocation122_spill] sm:$0xff]  ;;  %v18344_v30 = vld [vmem:[#allocation89_spill] sm:$0xff] }
 0x6f5   :  { %5297 = vmatpush1.bf16.msra.mxu0 %v15706_v28  ;;  %5338 = vmatpush1.bf16.msra.mxu1 %v15708_v23  ;;  %v18345_v28 = vld [vmem:[#allocation123_spill] sm:$0xff]  ;;  %v18346_v23 = vld [vmem:[#allocation130_spill] sm:$0xff] }
 0x6f6   :  { %5298 = vmatprep.subr.bf16.mxu0 %v15712_v57  ;;  %5339 = vmatprep.subr.bf16.mxu1 %v15714_v49  ;;  %v13626_v46 = vpop.eup %13625  ;;  %v18347_v57 = vld [vmem:[#allocation131_spill] sm:$0xff] }
 0x6f7   :  { %v15962_v52 = vmul.f32 %v13626_v46, %v4783_v14  ;;  %v18348_v49 = vld [vmem:[#allocation59_spill] sm:$0xff] }
 0x6f8   :  { %v18355_v46 = vld [vmem:[#allocation75_spill] sm:$0xff] }
 0x6f9   :  { %18339 = vst [vmem:[#allocation43_spill] sm:$0xff] %v15962_v52  ;;  %5299 = vmatpush1.bf16.msra.mxu0 %v15718_v32  ;;  %5340 = vmatpush1.bf16.msra.mxu1 %v15720_v44  ;;  %v5091_v63 = vpack.c.bf16 %v15962_v52, %v15962_v52  ;;  %v18349_v32 = vld [vmem:[#allocation53_spill] sm:$0xff] }
 0x6fa   :  { %5655 = vmatprep.subr.bf16.mxu1 %v15737_v18  ;;  %5614 = vmatprep.subr.bf16.mxu0 %v15990_v8  ;;  %v16012_v44 = vld [vmem:[%s18028_s3 + $0xc4] ss:$16 sps:$4 sm:$0xff]   ;;  %v16017_v18 = vld [vmem:[%s18028_s3 + $0xc0] ss:$16 sps:$4 sm:$0xff]  }
 0x6fc   :  { %5317 = vmatmul.mubr.bf16.vlgmr.msra.gmra.mrb[100].mxu0 %v5091_v63  ;;  %5358 = vmatmul.mubr.bf16.vlgmr.msra.gmra.mrb[132].mxu1 %v5091_v63 }
 0x6fd   :  { %5656 = vmatpush1.bf16.msra.mxu1 %v15742_v1  ;;  %5646 = vmatprep.mubr.bf16.mxu0 %v18252_v58  ;;  %v16024_v1 = vld [vmem:[%s18028_s3 + $0xe4] ss:$16 sps:$4 sm:$0xff]  }
 0x6fe   :  { %5657 = vmatprep.subr.bf16.mxu1 %v15754_v26  ;;  %5687 = vmatprep.mubr.bf16.mxu1 %v18252_v58  ;;  %v16029_v26 = vld [vmem:[%s18028_s3 + $0xe0] ss:$16 sps:$4 sm:$0xff]  }
 0x6ff   :  { %5615 = vmatpush1.bf16.msra.mxu0 %v15995_v33 }
 0x700   :  { %5616 = vmatprep.subr.bf16.mxu0 %v18340_v35  ;;  %v18356_v35 = vld [vmem:[#allocation116_spill] sm:$0xff] }
 0x701   :  { %5658 = vmatpush1.bf16.msra.mxu1 %v15764_v9  ;;  %v16033_v9 = vld [vmem:[#allocation6 + $0x4] ss:$16 sps:$4 sm:$0xff]  }
 0x702   :  { %5659 = vmatprep.subr.bf16.mxu1 %v15778_v15 }
 0x703   :  { %5617 = vmatpush1.bf16.msra.mxu0 %v18341_v11 }
 0x704   :  { %5618 = vmatprep.subr.bf16.mxu0 %v18342_v2 }
 0x705   :  { %5660 = vmatpush1.bf16.msra.mxu1 %v15788_v29 }
 0x706   :  { %5661 = vmatprep.subr.bf16.mxu1 %v15802_v27  ;;  %v18350_v27 = vld [vmem:[#allocation32_spill] sm:$0xff] }
 0x707   :  { %5619 = vmatpush1.bf16.msra.mxu0 %v18343_v16 }
 0x708   :  { %5620 = vmatprep.subr.bf16.mxu0 %v18344_v30  ;;  %v18357_v30 = vld [vmem:[#allocation77_spill] sm:$0xff] }
 0x709   :  { %5662 = vmatpush1.bf16.msra.mxu1 %v15812_v4 }
 0x70a   :  { %5663 = vmatprep.subr.bf16.mxu1 %v15826_v50  ;;  %v18351_v50 = vld [vmem:[#allocation62_spill] sm:$0xff] }
 0x70b   :  { %5621 = vmatpush1.bf16.msra.mxu0 %v18345_v28 }
 0x70c   :  { %5622 = vmatprep.subr.bf16.mxu0 %v18346_v23  ;;  %v18358_v23 = vld [vmem:[#allocation117_spill] sm:$0xff] }
 0x70d   :  { %5664 = vmatpush1.bf16.msra.mxu1 %v15836_v22 }
 0x70e   :  { %5665 = vmatprep.subr.bf16.mxu1 %v15860_v54 }
 0x70f   :  { %5623 = vmatpush1.bf16.msra.mxu0 %v18347_v57 }
 0x710   :  { %5624 = vmatprep.subr.bf16.mxu0 %v18348_v49 }
 0x711   :  { %5666 = vmatpush1.bf16.msra.mxu1 %v15855_v13 }
 0x712   :  { %5667 = vmatprep.subr.bf16.mxu1 %v15870_v6  ;;  %v18352_v6 = vld [vmem:[#allocation34_spill] sm:$0xff] }
 0x713   :  { %5625 = vmatpush1.bf16.msra.mxu0 %v18349_v32 }
 0x714   :  { %5626 = vmatprep.subr.bf16.mxu0 %v16012_v44 }
 0x715   :  { %5668 = vmatpush1.bf16.msra.mxu1 %v15875_v7 }
 0x716   :  { %5669 = vmatprep.subr.bf16.mxu1 %v15884_v39  ;;  %v18353_v39 = vld [vmem:[#allocation64_spill] sm:$0xff] }
 0x717   :  { %5627 = vmatpush1.bf16.msra.mxu0 %v16017_v18 }
 0x718   :  { %5628 = vmatprep.subr.bf16.mxu0 %v16024_v1 }
 0x719   :  { %5670 = vmatpush1.bf16.msra.mxu1 %v15889_v40 }
 0x71a   :  { %5941 = vmatprep.subr.bf16.mxu1 %v15895_v34 }
 0x71b   :  { %5629 = vmatpush1.bf16.msra.mxu0 %v16029_v26 }
 0x71c   :  { %5900 = vmatprep.subr.bf16.mxu0 %v16033_v9 }
 0x7af   :  { %v5032_v15 = vpop.f32.mrb[96].mxu0  ;;  %v5073_v29 = vpop.f32.mrb[128].mxu1 }
 0x7b0   :  { %v5080_v4 = vadd.f32 %v5032_v15, %v18350_v27  ;;  %v5082_v22 = vadd.f32 %v5073_v29, %v18351_v50  ;;  %v5034_v13 = vpop.f32.mrb[97].mxu0  ;;  %v5075_v54 = vpop.f32.mrb[129].mxu1 }
 0x7b1   :  { %v5081_v7 = vadd.f32 %v5034_v13, %v18352_v6  ;;  %v5083_v40 = vadd.f32 %v5075_v54, %v18353_v39  ;;  %v5036_v34 = vpop.f32.mrb[98].mxu0  ;;  %v5077_v17 = vpop.f32.mrb[130].mxu1  ;;  %v16050_v54 = vld [vmem:[#allocation6] ss:$16 sps:$4 sm:$0xff]  }
 0x7b2   :  { %v5370_v53 = vmul.f32 0.5, %v5080_v4  ;;  %v5037_v55 = vpop.f32.mrb[99].mxu0  ;;  %v5078_v56 = vpop.f32.mrb[131].mxu1  ;;  %v5372_v60 = vmul.f32 0.5, %v5082_v22  ;;  %v16058_v39 = vld [vmem:[#allocation6 + $0x20] ss:$16 sps:$4 sm:$0xff]  }
 0x7b3   :  { %v5371_v51 = vmul.f32 0.5, %v5081_v7  ;;  %v16054_v7 = vld [vmem:[#allocation6 + $0x24] ss:$16 sps:$4 sm:$0xff]   ;;  %v16068_v17 = vld [vmem:[#allocation6 + $0x40] ss:$16 sps:$4 sm:$0xff]  }
 0x7b4   :  { %13627 = vtanh.f32 %v5370_v53  ;;  %v16072_v53 = vld [vmem:[#allocation6 + $0x64] ss:$16 sps:$4 sm:$0xff]  }
 0x7b5   :  { %13629 = vtanh.f32 %v5371_v51 }
 0x7b6   :  { %13631 = vtanh.f32 %v5083_v40  ;;  %v16062_v40 = vld [vmem:[#allocation6 + $0x44] ss:$16 sps:$4 sm:$0xff]  }
 0x7b7   :  { %13633 = vtanh.f32 %v5372_v60  ;;  %v16076_v60 = vld [vmem:[#allocation6 + $0x60] ss:$16 sps:$4 sm:$0xff]  }
 0x7be   :  { %v13628_v21 = vpop.eup %13627 }
 0x7bf   :  { %v5376_v45 = vmul.f32 0.5, %v13628_v21  ;;  %v13630_v43 = vpop.eup %13629  ;;  %v16080_v21 = vld [vmem:[#allocation6 + $0x84] ss:$16 sps:$4 sm:$0xff]  }
 0x7c0   :  { %v5377_v10 = vmul.f32 0.5, %v13630_v43  ;;  %v13632_v20 = vpop.eup %13631 }
 0x7c1   :  { %v5379_v24 = vadd.f32 0.5, %v5376_v45  ;;  %v13634_v41 = vpop.eup %13633 }
 0x7c2   :  { %v5380_v12 = vadd.f32 0.5, %v5377_v10  ;;  %v5378_v61 = vmul.f32 0.5, %v13634_v41  ;;  %v16089_v10 = vld [vmem:[#allocation6 + $0x88] ss:$16 sps:$4 sm:$0xff]   ;;  %v16114_v41 = vld [vmem:[#allocation6 + $0xc0] ss:$16 sps:$4 sm:$0xff]  }
 0x7c3   :  { %v5384_v3 = vmul.f32 %v13632_v20, %v5379_v24  ;;  %v16095_v20 = vld [vmem:[#allocation6 + $0xac] ss:$16 sps:$4 sm:$0xff]  }
 0x7c4   :  { %v5383_v0 = vmul.f32 %v5380_v12, %v18354_v42  ;;  %v5381_v15 = vadd.f32 0.5, %v5378_v61  ;;  %v16110_v42 = vld [vmem:[#allocation6 + $0xcc] ss:$16 sps:$4 sm:$0xff]   ;;  %v16116_v61 = vld [vmem:[#allocation6 + $0xc8] ss:$16 sps:$4 sm:$0xff]  }
 0x7c6   :  { %v16041_v38 = vadd.f32 %v5384_v3, %v5383_v0  ;;  %v16108_v3 = vld [vmem:[#allocation6 + $0xc4] ss:$16 sps:$4 sm:$0xff]  }
 0x7c8   :  { %13635 = vtanh.f32 %v16041_v38 }
 0x7cf   :  { %v5318_v36 = vpop.f32.mrb[100].mxu0  ;;  %v5359_v14 = vpop.f32.mrb[132].mxu1 }
 0x7d0   :  { %v5366_v63 = vadd.f32 %v5318_v36, %v18355_v46  ;;  %v5368_v11 = vadd.f32 %v5359_v14, %v18356_v35  ;;  %v5320_v2 = vpop.f32.mrb[101].mxu0  ;;  %v5361_v16 = vpop.f32.mrb[133].mxu1  ;;  %v16120_v14 = vld [vmem:[#allocation6 + $0xe4] ss:$16 sps:$4 sm:$0xff]   ;;  %v16122_v46 = vld [vmem:[#allocation6 + $0xec] ss:$16 sps:$4 sm:$0xff]  }
 0x7d1   :  { %v5367_v28 = vadd.f32 %v5320_v2, %v18357_v30  ;;  %v5369_v57 = vadd.f32 %v5361_v16, %v18358_v23  ;;  %v5322_v49 = vpop.f32.mrb[102].mxu0  ;;  %v5363_v32 = vpop.f32.mrb[134].mxu1  ;;  %v16128_v35 = vld [vmem:[#allocation6 + $0xe8] ss:$16 sps:$4 sm:$0xff]  }
 0x7d2   :  { %v5388_v29 = vmul.f32 0.5, %v5366_v63  ;;  %v5323_v27 = vpop.f32.mrb[103].mxu0  ;;  %v5364_v4 = vpop.f32.mrb[135].mxu1  ;;  %v5390_v34 = vmul.f32 0.5, %v5368_v11  ;;  %v16126_v63 = vld [vmem:[#allocation6 + $0xe0] ss:$16 sps:$4 sm:$0xff]  }
 0x7d3   :  { %v13636_v50 = vpop.eup %13635  ;;  %v5389_v22 = vmul.f32 0.5, %v5367_v28  ;;  %v16145_v28 = vld [vmem:[%s18028_s3 + $0xc] ss:$16 sps:$4 sm:$0xff]   ;;  %v16150_v23 = vld [vmem:[%s18028_s3 + $0x8] ss:$16 sps:$4 sm:$0xff]  }
 0x7d4   :  { %13637 = vtanh.f32 %v5388_v29  ;;  %v16048_v13 = vmul.f32 %v13636_v50, %v5381_v15  ;;  %v16172_v49 = vld [vmem:[%s18028_s3 + $0x28] ss:$16 sps:$4 sm:$0xff]   ;;  %v16181_v32 = vld [vmem:[%s18028_s3 + $0x44] ss:$16 sps:$4 sm:$0xff]   ;;  %v16186_v15 = vld [vmem:[%s18028_s3 + $0x4c] ss:$16 sps:$4 sm:$0xff]  }
 0x7d5   :  { %13639 = vtanh.f32 %v5389_v22  ;;  %18363 = vst [vmem:[#allocation51_spill] sm:$0xff] %v16181_v32  ;;  %v16191_v29 = vld [vmem:[%s18028_s3 + $0x40] ss:$16 sps:$4 sm:$0xff]   ;;  %v16196_v27 = vld [vmem:[%s18028_s3 + $0x48] ss:$16 sps:$4 sm:$0xff]  }
 0x7d6   :  { %18359 = vst [vmem:[#allocation18_spill] sm:$0xff] %v16048_v13  ;;  %v5421_v6 = vpack.c.bf16 %v16048_v13, %v16048_v13  ;;  %13641 = vtanh.f32 %v5369_v57  ;;  %v16167_v57 = vld [vmem:[%s18028_s3 + $0x20] ss:$16 sps:$4 sm:$0xff]   ;;  %18364 = vst [vmem:[#allocation26_spill] sm:$0xff] %v16191_v29  ;;  %v16205_v4 = vld [vmem:[%s18028_s3 + $0x64] ss:$16 sps:$4 sm:$0xff]  }
 0x7d7   :  { %13643 = vtanh.f32 %v5390_v34  ;;  %18362 = vst [vmem:[#allocation24_spill] sm:$0xff] %v16167_v57  ;;  %18365 = vst [vmem:[#allocation54_spill] sm:$0xff] %v16205_v4  ;;  %v16210_v50 = vld [vmem:[%s18028_s3 + $0x6c] ss:$16 sps:$4 sm:$0xff]   ;;  %v16215_v22 = vld [vmem:[%s18028_s3 + $0x60] ss:$16 sps:$4 sm:$0xff]  }
 0x7d8   :  { %5647 = vmatmul.mubr.bf16.vlgmr.msra.gmra.mrb[104].mxu0 %v5421_v6  ;;  %5688 = vmatmul.mubr.bf16.vlgmr.msra.gmra.mrb[136].mxu1 %v5421_v6  ;;  %18366 = vst [vmem:[#allocation124_spill] sm:$0xff] %v16215_v22  ;;  %v16220_v6 = vld [vmem:[%s18028_s3 + $0x68] ss:$16 sps:$4 sm:$0xff]   ;;  %v16229_v34 = vld [vmem:[%s18028_s3 + $0x84] ss:$16 sps:$4 sm:$0xff]  }
 0x7d9   :  { %5901 = vmatpush1.bf16.msra.mxu0 %v16050_v54  ;;  %5942 = vmatpush1.bf16.msra.mxu1 %v15912_v19  ;;  %18367 = vst [vmem:[#allocation83_spill] sm:$0xff] %v16229_v34 }
 0x7da   :  { %5902 = vmatprep.subr.bf16.mxu0 %v16054_v7  ;;  %5943 = vmatprep.subr.bf16.mxu1 %v15916_v47 }
 0x7db   :  { %5932 = vmatprep.mubr.bf16.mxu0 %v18252_v58  ;;  %5973 = vmatprep.mubr.bf16.mxu1 %v18252_v58 }
 0x7dd   :  { %5903 = vmatpush1.bf16.msra.mxu0 %v16058_v39  ;;  %5944 = vmatpush1.bf16.msra.mxu1 %v15920_v37 }
 0x7de   :  { %v13638_v19 = vpop.eup %13637  ;;  %5904 = vmatprep.subr.bf16.mxu0 %v16062_v40  ;;  %5945 = vmatprep.subr.bf16.mxu1 %v15924_v59  ;;  %v16082_v59 = vld [vmem:[#allocation6 + $0x8c] ss:$16 sps:$4 sm:$0xff]  }
 0x7df   :  { %v5394_v47 = vmul.f32 0.5, %v13638_v19  ;;  %v13640_v55 = vpop.eup %13639  ;;  %v16234_v19 = vld [vmem:[%s18028_s3 + $0x8c] ss:$16 sps:$4 sm:$0xff]  }
 0x7e0   :  { %v5395_v51 = vmul.f32 0.5, %v13640_v55  ;;  %v13642_v37 = vpop.eup %13641  ;;  %v16244_v55 = vld [vmem:[%s18028_s3 + $0x88] ss:$16 sps:$4 sm:$0xff]  }
 0x7e1   :  { %v5397_v56 = vadd.f32 0.5, %v5394_v47  ;;  %5905 = vmatpush1.bf16.msra.mxu0 %v16068_v17  ;;  %5946 = vmatpush1.bf16.msra.mxu1 %v15930_v48  ;;  %v16087_v48 = vld [vmem:[#allocation6 + $0x80] ss:$16 sps:$4 sm:$0xff]   ;;  %v13644_v0 = vpop.eup %13643 }
 0x7e2   :  { %5906 = vmatprep.subr.bf16.mxu0 %v16072_v53  ;;  %5947 = vmatprep.subr.bf16.mxu1 %v15934_v31  ;;  %v5398_v45 = vadd.f32 0.5, %v5395_v51  ;;  %v16093_v31 = vld [vmem:[#allocation6 + $0xa4] ss:$16 sps:$4 sm:$0xff]   ;;  %v5396_v36 = vmul.f32 0.5, %v13644_v0  ;;  %v16239_v47 = vld [vmem:[%s18028_s3 + $0x80] ss:$16 sps:$4 sm:$0xff]  }
 0x7e3   :  { %v5402_v43 = vmul.f32 %v13642_v37, %v5397_v56  ;;  %18368 = vst [vmem:[#allocation120_spill] sm:$0xff] %v16239_v47  ;;  %v16253_v56 = vld [vmem:[%s18028_s3 + $0xa0] ss:$16 sps:$4 sm:$0xff]   ;;  %v16258_v51 = vld [vmem:[%s18028_s3 + $0xa4] ss:$16 sps:$4 sm:$0xff]  }
 0x7e4   :  { %v5401_v24 = vmul.f32 %v5398_v45, %v15947_v25  ;;  %v16104_v25 = vld [vmem:[#allocation6 + $0xa8] ss:$16 sps:$4 sm:$0xff]   ;;  %v5399_v11 = vadd.f32 0.5, %v5396_v36  ;;  %18369 = vst [vmem:[#allocation85_spill] sm:$0xff] %v16253_v56  ;;  %18370 = vst [vmem:[#allocation121_spill] sm:$0xff] %v16258_v51 }
 0x7e5   :  { %5907 = vmatpush1.bf16.msra.mxu0 %v16076_v60  ;;  %5948 = vmatpush1.bf16.msra.mxu1 %v15938_v62  ;;  %v16102_v62 = vld [vmem:[#allocation6 + $0xa0] ss:$16 sps:$4 sm:$0xff]   ;;  %v16263_v37 = vld [vmem:[%s18028_s3 + $0xa8] ss:$16 sps:$4 sm:$0xff]   ;;  %v16268_v45 = vld [vmem:[%s18028_s3 + $0xac] ss:$16 sps:$4 sm:$0xff]  }
 0x7e6   :  { %5908 = vmatprep.subr.bf16.mxu0 %v16080_v21  ;;  %5949 = vmatprep.subr.bf16.mxu1 %v16082_v59  ;;  %v16097_v12 = vadd.f32 %v5402_v43, %v5401_v24  ;;  %v16278_v43 = vld [vmem:[%s18028_s3 + $0xcc] ss:$16 sps:$4 sm:$0xff]   ;;  %v16283_v24 = vld [vmem:[%s18028_s3 + $0xc8] ss:$16 sps:$4 sm:$0xff]  }
 0x7e7   :  { %v16297_v0 = vld [vmem:[%s18028_s3 + $0xe8] ss:$16 sps:$4 sm:$0xff]  }
 0x7e8   :  { %13645 = vtanh.f32 %v16097_v12 }
 0x7e9   :  { %5909 = vmatpush1.bf16.msra.mxu0 %v16087_v48  ;;  %5950 = vmatpush1.bf16.msra.mxu1 %v16089_v10 }
 0x7ea   :  { %5910 = vmatprep.subr.bf16.mxu0 %v16093_v31  ;;  %5951 = vmatprep.subr.bf16.mxu1 %v16095_v20 }
 0x7ed   :  { %5911 = vmatpush1.bf16.msra.mxu0 %v16102_v62  ;;  %5952 = vmatpush1.bf16.msra.mxu1 %v16104_v25 }
 0x7ee   :  { %5912 = vmatprep.subr.bf16.mxu0 %v16108_v3  ;;  %5953 = vmatprep.subr.bf16.mxu1 %v16110_v42 }
 0x7f1   :  { %5913 = vmatpush1.bf16.msra.mxu0 %v16114_v41  ;;  %5954 = vmatpush1.bf16.msra.mxu1 %v16116_v61 }
 0x7f2   :  { %5914 = vmatprep.subr.bf16.mxu0 %v16120_v14  ;;  %5955 = vmatprep.subr.bf16.mxu1 %v16122_v46  ;;  %v13646_v2 = vpop.eup %13645 }
 0x7f3   :  { %v16132_v16 = vmul.f32 %v13646_v2, %v5399_v11  ;;  %v18371_v11 = vld [vmem:[#allocation36_spill] sm:$0xff] }
 0x7f5   :  { %18360 = vst [vmem:[#allocation91_spill] sm:$0xff] %v16132_v16  ;;  %5915 = vmatpush1.bf16.msra.mxu0 %v16126_v63  ;;  %5956 = vmatpush1.bf16.msra.mxu1 %v16128_v35  ;;  %v5707_v30 = vpack.c.bf16 %v16132_v16, %v16132_v16 }
 0x7f6   :  { %6227 = vmatprep.subr.bf16.mxu0 %v15990_v8  ;;  %6268 = vmatprep.subr.bf16.mxu1 %v16145_v28  ;;  %v16157_v8 = vld [vmem:[%s18028_s3 + $0x24] ss:$16 sps:$4 sm:$0xff]  }
 0x7f7   :  { %18361 = vst [vmem:[#allocation45_spill] sm:$0xff] %v16157_v8 }
 0x7f8   :  { %5933 = vmatmul.mubr.bf16.vlgmr.msra.gmra.mrb[108].mxu0 %v5707_v30  ;;  %5974 = vmatmul.mubr.bf16.vlgmr.msra.gmra.mrb[140].mxu1 %v5707_v30  ;;  %v18372_v30 = vld [vmem:[#allocation66_spill] sm:$0xff] }
 0x7f9   :  { %6228 = vmatpush1.bf16.msra.mxu0 %v15995_v33  ;;  %6259 = vmatprep.mubr.bf16.mxu0 %v18252_v58  ;;  %v16162_v33 = vld [vmem:[%s18028_s3 + $0x2c] ss:$16 sps:$4 sm:$0xff]  }
 0x7fa   :  { %6300 = vmatprep.mubr.bf16.mxu1 %v18252_v58  ;;  %6269 = vmatpush1.bf16.msra.mxu1 %v16150_v23 }
 0x7fb   :  { %6229 = vmatprep.subr.bf16.mxu0 %v16157_v8  ;;  %6270 = vmatprep.subr.bf16.mxu1 %v16162_v33 }
 0x7fd   :  { %6230 = vmatpush1.bf16.msra.mxu0 %v16167_v57 }
 0x7fe   :  { %6271 = vmatpush1.bf16.msra.mxu1 %v16172_v49  ;;  %6231 = vmatprep.subr.bf16.mxu0 %v16181_v32 }
 0x7ff   :  { %6272 = vmatprep.subr.bf16.mxu1 %v16186_v15 }
 0x801   :  { %6232 = vmatpush1.bf16.msra.mxu0 %v16191_v29 }
 0x802   :  { %6273 = vmatpush1.bf16.msra.mxu1 %v16196_v27  ;;  %6233 = vmatprep.subr.bf16.mxu0 %v16205_v4 }
 0x803   :  { %6274 = vmatprep.subr.bf16.mxu1 %v16210_v50 }
 0x805   :  { %6234 = vmatpush1.bf16.msra.mxu0 %v16215_v22 }
 0x806   :  { %6275 = vmatpush1.bf16.msra.mxu1 %v16220_v6  ;;  %6235 = vmatprep.subr.bf16.mxu0 %v16229_v34 }
 0x807   :  { %6276 = vmatprep.subr.bf16.mxu1 %v16234_v19 }
 0x809   :  { %6236 = vmatpush1.bf16.msra.mxu0 %v16239_v47 }
 0x80a   :  { %6277 = vmatpush1.bf16.msra.mxu1 %v16244_v55  ;;  %6237 = vmatprep.subr.bf16.mxu0 %v16258_v51  ;;  %v18374_v51 = vld [vmem:[#allocation68_spill] sm:$0xff] }
 0x80b   :  { %6278 = vmatprep.subr.bf16.mxu1 %v16268_v45 }
 0x80d   :  { %6238 = vmatpush1.bf16.msra.mxu0 %v16253_v56 }
 0x80e   :  { %6279 = vmatpush1.bf16.msra.mxu1 %v16263_v37  ;;  %6239 = vmatprep.subr.bf16.mxu0 %v16012_v44  ;;  %v16292_v44 = vld [vmem:[%s18028_s3 + $0xec] ss:$16 sps:$4 sm:$0xff]  }
 0x80f   :  { %6280 = vmatprep.subr.bf16.mxu1 %v16278_v43 }
 0x811   :  { %6240 = vmatpush1.bf16.msra.mxu0 %v16017_v18  ;;  %v16303_v18 = vld [vmem:[#allocation6 + $0xc] ss:$16 sps:$4 sm:$0xff]  }
 0x812   :  { %6281 = vmatpush1.bf16.msra.mxu1 %v16283_v24  ;;  %6241 = vmatprep.subr.bf16.mxu0 %v16024_v1 }
 0x813   :  { %6282 = vmatprep.subr.bf16.mxu1 %v16292_v44 }
 0x815   :  { %6242 = vmatpush1.bf16.msra.mxu0 %v16029_v26 }
 0x816   :  { %6283 = vmatpush1.bf16.msra.mxu1 %v16297_v0  ;;  %6510 = vmatprep.subr.bf16.mxu0 %v16033_v9 }
 0x817   :  { %6551 = vmatprep.subr.bf16.mxu1 %v16303_v18 }
 0x8ab   :  { %v5648_v1 = vpop.f32.mrb[104].mxu0  ;;  %v5689_v36 = vpop.f32.mrb[136].mxu1 }
 0x8ac   :  { %v5696_v2 = vadd.f32 %v5648_v1, %v18371_v11  ;;  %v5698_v52 = vadd.f32 %v5689_v36, %v18372_v30  ;;  %v5650_v16 = vpop.f32.mrb[105].mxu0  ;;  %v5691_v13 = vpop.f32.mrb[137].mxu1 }
 0x8ad   :  { %v5697_v56 = vadd.f32 %v5650_v16, %v18373_v5  ;;  %v5699_v26 = vadd.f32 %v5691_v13, %v18374_v51  ;;  %v5652_v47 = vpop.f32.mrb[106].mxu0  ;;  %v5693_v34 = vpop.f32.mrb[138].mxu1 }
 0x8ae   :  { %v5986_v22 = vmul.f32 0.5, %v5696_v2  ;;  %v5653_v9 = vpop.f32.mrb[107].mxu0  ;;  %v5694_v4 = vpop.f32.mrb[139].mxu1  ;;  %v5988_v32 = vmul.f32 0.5, %v5698_v52  ;;  %v18376_v52 = vld [vmem:[#allocation71_spill] sm:$0xff] }
 0x8af   :  { %v5987_v29 = vmul.f32 0.5, %v5697_v56 }
 0x8b0   :  { %13647 = vtanh.f32 %v5986_v22 }
 0x8b1   :  { %13649 = vtanh.f32 %v5987_v29 }
 0x8b2   :  { %13651 = vtanh.f32 %v5699_v26  ;;  %v18378_v26 = vld [vmem:[#allocation73_spill] sm:$0xff] }
 0x8b3   :  { %13653 = vtanh.f32 %v5988_v32 }
 0x8ba   :  { %v13648_v57 = vpop.eup %13647 }
 0x8bb   :  { %v5992_v1 = vmul.f32 0.5, %v13648_v57  ;;  %v13650_v11 = vpop.eup %13649  ;;  %v18377_v57 = vld [vmem:[#allocation114_spill] sm:$0xff] }
 0x8bc   :  { %v5993_v30 = vmul.f32 0.5, %v13650_v11  ;;  %v13652_v8 = vpop.eup %13651 }
 0x8bd   :  { %v5995_v36 = vadd.f32 0.5, %v5992_v1  ;;  %v13654_v4 = vpop.eup %13653  ;;  %v18379_v1 = vld [vmem:[#allocation115_spill] sm:$0xff] }
 0x8be   :  { %v5996_v5 = vadd.f32 0.5, %v5993_v30  ;;  %v5994_v22 = vmul.f32 0.5, %v13654_v4 }
 0x8bf   :  { %v6000_v16 = vmul.f32 %v13652_v8, %v5995_v36 }
 0x8c0   :  { %v5999_v13 = vmul.f32 %v5996_v5, %v16041_v38  ;;  %v5997_v36 = vadd.f32 0.5, %v5994_v22  ;;  %v16328_v22 = vld [vmem:[#allocation6 + $0x28] ss:$16 sps:$4 sm:$0xff]  }
 0x8c2   :  { %v16311_v34 = vadd.f32 %v6000_v16, %v5999_v13 }
 0x8c4   :  { %18375 = vst [vmem:[#allocation28_spill] sm:$0xff] %v16311_v34  ;;  %13655 = vtanh.f32 %v16311_v34 }
 0x8cb   :  { %v5934_v29 = vpop.f32.mrb[108].mxu0  ;;  %v5975_v47 = vpop.f32.mrb[140].mxu1 }
 0x8cc   :  { %v5982_v56 = vadd.f32 %v5934_v29, %v18376_v52  ;;  %v5984_v51 = vadd.f32 %v5975_v47, %v18377_v57  ;;  %v5936_v2 = vpop.f32.mrb[109].mxu0  ;;  %v5977_v32 = vpop.f32.mrb[141].mxu1  ;;  %v16320_v29 = vld [vmem:[#allocation6 + $0x8] ss:$16 sps:$4 sm:$0xff]   ;;  %v16324_v52 = vld [vmem:[#allocation6 + $0x2c] ss:$16 sps:$4 sm:$0xff]  }
 0x8cd   :  { %v5983_v9 = vadd.f32 %v5936_v2, %v18378_v26  ;;  %v5985_v8 = vadd.f32 %v5977_v32, %v18379_v1  ;;  %v5938_v11 = vpop.f32.mrb[110].mxu0  ;;  %v5979_v38 = vpop.f32.mrb[142].mxu1 }
 0x8ce   :  { %v6004_v30 = vmul.f32 0.5, %v5982_v56  ;;  %v5939_v5 = vpop.f32.mrb[111].mxu0  ;;  %v5980_v16 = vpop.f32.mrb[143].mxu1  ;;  %v16332_v56 = vld [vmem:[#allocation6 + $0x4c] ss:$16 sps:$4 sm:$0xff]   ;;  %v6006_v57 = vmul.f32 0.5, %v5984_v51 }
 0x8cf   :  { %v13656_v13 = vpop.eup %13655  ;;  %v6005_v4 = vmul.f32 0.5, %v5983_v9 }
 0x8d0   :  { %13657 = vtanh.f32 %v6004_v30  ;;  %v16318_v34 = vmul.f32 %v13656_v13, %v5997_v36 }
 0x8d1   :  { %13659 = vtanh.f32 %v6005_v4 }
 0x8d2   :  { %18380 = vst [vmem:[#allocation56_spill] sm:$0xff] %v16318_v34  ;;  %v6034_v47 = vpack.c.bf16 %v16318_v34, %v16318_v34  ;;  %13661 = vtanh.f32 %v5985_v8 }
 0x8d3   :  { %13663 = vtanh.f32 %v6006_v57 }
 0x8d4   :  { %6260 = vmatmul.mubr.bf16.vlgmr.msra.gmra.mrb[112].mxu0 %v6034_v47  ;;  %6301 = vmatmul.mubr.bf16.vlgmr.msra.gmra.mrb[144].mxu1 %v6034_v47 }
 0x8d5   :  { %6511 = vmatpush1.bf16.msra.mxu0 %v16050_v54  ;;  %6552 = vmatpush1.bf16.msra.mxu1 %v16320_v29  ;;  %v16338_v54 = vld [vmem:[#allocation6 + $0x48] ss:$16 sps:$4 sm:$0xff]  }
 0x8d6   :  { %6512 = vmatprep.subr.bf16.mxu0 %v16054_v7  ;;  %6553 = vmatprep.subr.bf16.mxu1 %v16324_v52  ;;  %v16342_v7 = vld [vmem:[#allocation6 + $0x6c] ss:$16 sps:$4 sm:$0xff]  }
 0x8d7   :  { %6542 = vmatprep.mubr.bf16.mxu0 %v18252_v58  ;;  %6583 = vmatprep.mubr.bf16.mxu1 %v18252_v58 }
 0x8d9   :  { %6513 = vmatpush1.bf16.msra.mxu0 %v16058_v39  ;;  %6554 = vmatpush1.bf16.msra.mxu1 %v16328_v22  ;;  %v16346_v39 = vld [vmem:[#allocation6 + $0x68] ss:$16 sps:$4 sm:$0xff]  }
 0x8da   :  { %v13658_v2 = vpop.eup %13657  ;;  %6514 = vmatprep.subr.bf16.mxu0 %v16062_v40  ;;  %6555 = vmatprep.subr.bf16.mxu1 %v16332_v56 }
 0x8db   :  { %v6010_v32 = vmul.f32 0.5, %v13658_v2  ;;  %v13660_v26 = vpop.eup %13659 }
 0x8dc   :  { %v6011_v1 = vmul.f32 0.5, %v13660_v26  ;;  %v13662_v51 = vpop.eup %13661 }
 0x8dd   :  { %v6013_v9 = vadd.f32 0.5, %v6010_v32  ;;  %6515 = vmatpush1.bf16.msra.mxu0 %v16068_v17  ;;  %6556 = vmatpush1.bf16.msra.mxu1 %v16338_v54 }
 0x8de   :  { %6516 = vmatprep.subr.bf16.mxu0 %v16072_v53  ;;  %6557 = vmatprep.subr.bf16.mxu1 %v16342_v7  ;;  %v6014_v40 = vadd.f32 0.5, %v6011_v1  ;;  %v13664_v53 = vpop.eup %13663 }
 0x8df   :  { %v6018_v8 = vmul.f32 %v13662_v51, %v6013_v9  ;;  %v18396_v51 = vld [vmem:[#allocation28_spill] sm:$0xff] }
 0x8e0   :  { %v6017_v11 = vmul.f32 %v6014_v40, %v16097_v12  ;;  %v18382_v12 = vld [vmem:[#allocation45_spill] sm:$0xff] }
 0x8e1   :  { %6517 = vmatpush1.bf16.msra.mxu0 %v16076_v60  ;;  %6558 = vmatpush1.bf16.msra.mxu1 %v16346_v39  ;;  %v6012_v60 = vmul.f32 0.5, %v13664_v53 }
 0x8e2   :  { %6518 = vmatprep.subr.bf16.mxu0 %v16080_v21  ;;  %6559 = vmatprep.subr.bf16.mxu1 %v16082_v59  ;;  %v16355_v17 = vadd.f32 %v6018_v8, %v6017_v11 }
 0x8e3   :  { %v6015_v21 = vadd.f32 0.5, %v6012_v60 }
 0x8e4   :  { %13665 = vtanh.f32 %v16355_v17 }
 0x8e5   :  { %6519 = vmatpush1.bf16.msra.mxu0 %v16087_v48  ;;  %6560 = vmatpush1.bf16.msra.mxu1 %v16089_v10 }
 0x8e6   :  { %6520 = vmatprep.subr.bf16.mxu0 %v16093_v31  ;;  %6561 = vmatprep.subr.bf16.mxu1 %v16095_v20  ;;  %v16398_v31 = vld [vmem:[%s18028_s3 + $0x4] ss:$16 sps:$4 sm:$0xff]   ;;  %v16403_v20 = vld [vmem:[%s18028_s3] ss:$16 sps:$4 sm:$0xff]  }
 0x8e9   :  { %6521 = vmatpush1.bf16.msra.mxu0 %v16102_v62  ;;  %6562 = vmatpush1.bf16.msra.mxu1 %v16104_v25  ;;  %v18383_v62 = vld [vmem:[#allocation24_spill] sm:$0xff]  ;;  %v18384_v25 = vld [vmem:[#allocation51_spill] sm:$0xff] }
 0x8ea   :  { %6522 = vmatprep.subr.bf16.mxu0 %v16108_v3  ;;  %6563 = vmatprep.subr.bf16.mxu1 %v16110_v42  ;;  %v18385_v3 = vld [vmem:[#allocation26_spill] sm:$0xff] }
 0x8eb   :  { %v18386_v42 = vld [vmem:[#allocation54_spill] sm:$0xff] }
 0x8ed   :  { %6523 = vmatpush1.bf16.msra.mxu0 %v16114_v41  ;;  %6564 = vmatpush1.bf16.msra.mxu1 %v16116_v61  ;;  %v18387_v41 = vld [vmem:[#allocation124_spill] sm:$0xff]  ;;  %v18388_v61 = vld [vmem:[#allocation83_spill] sm:$0xff] }
 0x8ee   :  { %6524 = vmatprep.subr.bf16.mxu0 %v16120_v14  ;;  %6565 = vmatprep.subr.bf16.mxu1 %v16122_v46  ;;  %v13666_v59 = vpop.eup %13665  ;;  %v18389_v14 = vld [vmem:[#allocation120_spill] sm:$0xff]  ;;  %v18390_v46 = vld [vmem:[#allocation121_spill] sm:$0xff] }
 0x8ef   :  { %v16370_v48 = vmul.f32 %v13666_v59, %v6015_v21  ;;  %v18397_v59 = vld [vmem:[#allocation67_spill] sm:$0xff] }
 0x8f1   :  { %18381 = vst [vmem:[#allocation30_spill] sm:$0xff] %v16370_v48  ;;  %6525 = vmatpush1.bf16.msra.mxu0 %v16126_v63  ;;  %6566 = vmatpush1.bf16.msra.mxu1 %v16128_v35  ;;  %v6317_v10 = vpack.c.bf16 %v16370_v48, %v16370_v48  ;;  %v18391_v63 = vld [vmem:[#allocation85_spill] sm:$0xff] }
 0x8f2   :  { %6872 = vmatprep.subr.bf16.mxu1 %v16145_v28  ;;  %6831 = vmatprep.subr.bf16.mxu0 %v16398_v31  ;;  %v16420_v35 = vld [vmem:[%s18028_s3 + $0xc4] ss:$16 sps:$4 sm:$0xff]   ;;  %v16425_v28 = vld [vmem:[%s18028_s3 + $0xc0] ss:$16 sps:$4 sm:$0xff]  }
 0x8f4   :  { %6543 = vmatmul.mubr.bf16.vlgmr.msra.gmra.mrb[116].mxu0 %v6317_v10  ;;  %6584 = vmatmul.mubr.bf16.vlgmr.msra.gmra.mrb[148].mxu1 %v6317_v10 }
 0x8f5   :  { %6873 = vmatpush1.bf16.msra.mxu1 %v16150_v23  ;;  %6863 = vmatprep.mubr.bf16.mxu0 %v18252_v58  ;;  %v16432_v23 = vld [vmem:[%s18028_s3 + $0xe4] ss:$16 sps:$4 sm:$0xff]  }
 0x8f6   :  { %6874 = vmatprep.subr.bf16.mxu1 %v16162_v33  ;;  %6904 = vmatprep.mubr.bf16.mxu1 %v18252_v58  ;;  %v16437_v33 = vld [vmem:[%s18028_s3 + $0xe0] ss:$16 sps:$4 sm:$0xff]  }
 0x8f7   :  { %6832 = vmatpush1.bf16.msra.mxu0 %v16403_v20 }
 0x8f8   :  { %6833 = vmatprep.subr.bf16.mxu0 %v18382_v12  ;;  %v18398_v12 = vld [vmem:[#allocation112_spill] sm:$0xff] }
 0x8f9   :  { %6875 = vmatpush1.bf16.msra.mxu1 %v16172_v49  ;;  %v16441_v49 = vld [vmem:[#allocation6 + $0x4] ss:$16 sps:$4 sm:$0xff]  }
 0x8fa   :  { %6876 = vmatprep.subr.bf16.mxu1 %v16186_v15 }
 0x8fb   :  { %6834 = vmatpush1.bf16.msra.mxu0 %v18383_v62 }
 0x8fc   :  { %6835 = vmatprep.subr.bf16.mxu0 %v18384_v25 }
 0x8fd   :  { %6877 = vmatpush1.bf16.msra.mxu1 %v16196_v27 }
 0x8fe   :  { %6878 = vmatprep.subr.bf16.mxu1 %v16210_v50  ;;  %v18392_v50 = vld [vmem:[#allocation11_spill] sm:$0xff] }
 0x8ff   :  { %6836 = vmatpush1.bf16.msra.mxu0 %v18385_v3 }
 0x900   :  { %6837 = vmatprep.subr.bf16.mxu0 %v18386_v42  ;;  %v18399_v42 = vld [vmem:[#allocation69_spill] sm:$0xff] }
 0x901   :  { %6879 = vmatpush1.bf16.msra.mxu1 %v16220_v6 }
 0x902   :  { %6880 = vmatprep.subr.bf16.mxu1 %v16234_v19  ;;  %v18393_v19 = vld [vmem:[#allocation70_spill] sm:$0xff] }
 0x903   :  { %6838 = vmatpush1.bf16.msra.mxu0 %v18387_v41 }
 0x904   :  { %6839 = vmatprep.subr.bf16.mxu0 %v18388_v61  ;;  %v18400_v61 = vld [vmem:[#allocation113_spill] sm:$0xff] }
 0x905   :  { %6881 = vmatpush1.bf16.msra.mxu1 %v16244_v55 }
 0x906   :  { %6882 = vmatprep.subr.bf16.mxu1 %v16268_v45 }
 0x907   :  { %6840 = vmatpush1.bf16.msra.mxu0 %v18389_v14 }
 0x908   :  { %6841 = vmatprep.subr.bf16.mxu0 %v18390_v46 }
 0x909   :  { %6883 = vmatpush1.bf16.msra.mxu1 %v16263_v37 }
 0x90a   :  { %6884 = vmatprep.subr.bf16.mxu1 %v16278_v43  ;;  %v18394_v43 = vld [vmem:[#allocation12_spill] sm:$0xff] }
 0x90b   :  { %6842 = vmatpush1.bf16.msra.mxu0 %v18391_v63 }
 0x90c   :  { %6843 = vmatprep.subr.bf16.mxu0 %v16420_v35 }
 0x90d   :  { %6885 = vmatpush1.bf16.msra.mxu1 %v16283_v24 }
 0x90e   :  { %6886 = vmatprep.subr.bf16.mxu1 %v16292_v44  ;;  %v18395_v44 = vld [vmem:[#allocation72_spill] sm:$0xff] }
 0x90f   :  { %6844 = vmatpush1.bf16.msra.mxu0 %v16425_v28 }
 0x910   :  { %6845 = vmatprep.subr.bf16.mxu0 %v16432_v23 }
 0x911   :  { %6887 = vmatpush1.bf16.msra.mxu1 %v16297_v0 }
 0x912   :  { %7155 = vmatprep.subr.bf16.mxu1 %v16303_v18 }
 0x913   :  { %6846 = vmatpush1.bf16.msra.mxu0 %v16437_v33 }
 0x914   :  { %7114 = vmatprep.subr.bf16.mxu0 %v16441_v49 }
 0x9a7   :  { %v6261_v15 = vpop.f32.mrb[112].mxu0  ;;  %v6302_v27 = vpop.f32.mrb[144].mxu1 }
 0x9a8   :  { %v6309_v6 = vadd.f32 %v6261_v15, %v18392_v50  ;;  %v6311_v55 = vadd.f32 %v6302_v27, %v18393_v19  ;;  %v6263_v37 = vpop.f32.mrb[113].mxu0  ;;  %v6304_v45 = vpop.f32.mrb[145].mxu1 }
 0x9a9   :  { %v6310_v24 = vadd.f32 %v6263_v37, %v18394_v43  ;;  %v6312_v0 = vadd.f32 %v6304_v45, %v18395_v44  ;;  %v6265_v18 = vpop.f32.mrb[114].mxu0  ;;  %v6306_v38 = vpop.f32.mrb[146].mxu1  ;;  %v16458_v45 = vld [vmem:[#allocation6] ss:$16 sps:$4 sm:$0xff]  }
 0x9aa   :  { %v6596_v36 = vmul.f32 0.5, %v6309_v6  ;;  %v6266_v30 = vpop.f32.mrb[115].mxu0  ;;  %v6307_v5 = vpop.f32.mrb[147].mxu1  ;;  %v6598_v13 = vmul.f32 0.5, %v6311_v55  ;;  %v16466_v44 = vld [vmem:[#allocation6 + $0x20] ss:$16 sps:$4 sm:$0xff]  }
 0x9ab   :  { %v6597_v16 = vmul.f32 0.5, %v6310_v24  ;;  %v16462_v24 = vld [vmem:[#allocation6 + $0x24] ss:$16 sps:$4 sm:$0xff]   ;;  %v16476_v38 = vld [vmem:[#allocation6 + $0x40] ss:$16 sps:$4 sm:$0xff]  }
 0x9ac   :  { %13667 = vtanh.f32 %v6596_v36  ;;  %v16480_v36 = vld [vmem:[#allocation6 + $0x64] ss:$16 sps:$4 sm:$0xff]  }
 0x9ad   :  { %13669 = vtanh.f32 %v6597_v16 }
 0x9ae   :  { %13671 = vtanh.f32 %v6312_v0  ;;  %v16470_v0 = vld [vmem:[#allocation6 + $0x44] ss:$16 sps:$4 sm:$0xff]  }
 0x9af   :  { %13673 = vtanh.f32 %v6598_v13  ;;  %v16484_v13 = vld [vmem:[#allocation6 + $0x60] ss:$16 sps:$4 sm:$0xff]  }
 0x9b6   :  { %v13668_v4 = vpop.eup %13667 }
 0x9b7   :  { %v6602_v47 = vmul.f32 0.5, %v13668_v4  ;;  %v13670_v57 = vpop.eup %13669  ;;  %v16488_v4 = vld [vmem:[#allocation6 + $0x84] ss:$16 sps:$4 sm:$0xff]  }
 0x9b8   :  { %v6603_v32 = vmul.f32 0.5, %v13670_v57  ;;  %v13672_v26 = vpop.eup %13671 }
 0x9b9   :  { %v6605_v2 = vadd.f32 0.5, %v6602_v47  ;;  %v13674_v11 = vpop.eup %13673 }
 0x9ba   :  { %v6606_v9 = vadd.f32 0.5, %v6603_v32  ;;  %v6604_v53 = vmul.f32 0.5, %v13674_v11  ;;  %v16497_v32 = vld [vmem:[#allocation6 + $0x88] ss:$16 sps:$4 sm:$0xff]   ;;  %v16522_v11 = vld [vmem:[#allocation6 + $0xc0] ss:$16 sps:$4 sm:$0xff]  }
 0x9bb   :  { %v6610_v1 = vmul.f32 %v13672_v26, %v6605_v2  ;;  %v16503_v26 = vld [vmem:[#allocation6 + $0xac] ss:$16 sps:$4 sm:$0xff]  }
 0x9bc   :  { %v6609_v40 = vmul.f32 %v6606_v9, %v18396_v51  ;;  %v6607_v15 = vadd.f32 0.5, %v6604_v53  ;;  %v16518_v51 = vld [vmem:[#allocation6 + $0xcc] ss:$16 sps:$4 sm:$0xff]   ;;  %v16524_v53 = vld [vmem:[#allocation6 + $0xc8] ss:$16 sps:$4 sm:$0xff]  }
 0x9be   :  { %v16449_v8 = vadd.f32 %v6610_v1, %v6609_v40  ;;  %v16516_v1 = vld [vmem:[#allocation6 + $0xc4] ss:$16 sps:$4 sm:$0xff]  }
 0x9c0   :  { %13675 = vtanh.f32 %v16449_v8 }
 0x9c7   :  { %v6544_v60 = vpop.f32.mrb[116].mxu0  ;;  %v6585_v21 = vpop.f32.mrb[148].mxu1 }
 0x9c8   :  { %v6592_v10 = vadd.f32 %v6544_v60, %v18397_v59  ;;  %v6594_v62 = vadd.f32 %v6585_v21, %v18398_v12  ;;  %v6546_v25 = vpop.f32.mrb[117].mxu0  ;;  %v6587_v3 = vpop.f32.mrb[149].mxu1  ;;  %v16528_v21 = vld [vmem:[#allocation6 + $0xe4] ss:$16 sps:$4 sm:$0xff]   ;;  %v16530_v59 = vld [vmem:[#allocation6 + $0xec] ss:$16 sps:$4 sm:$0xff]  }
 0x9c9   :  { %v6593_v41 = vadd.f32 %v6546_v25, %v18399_v42  ;;  %v6595_v14 = vadd.f32 %v6587_v3, %v18400_v61  ;;  %v6548_v46 = vpop.f32.mrb[118].mxu0  ;;  %v6589_v63 = vpop.f32.mrb[150].mxu1  ;;  %v16536_v12 = vld [vmem:[#allocation6 + $0xe8] ss:$16 sps:$4 sm:$0xff]  }
 0x9ca   :  { %v6614_v27 = vmul.f32 0.5, %v6592_v10  ;;  %v6549_v50 = vpop.f32.mrb[119].mxu0  ;;  %v6590_v6 = vpop.f32.mrb[151].mxu1  ;;  %v6616_v18 = vmul.f32 0.5, %v6594_v62  ;;  %v16534_v10 = vld [vmem:[#allocation6 + $0xe0] ss:$16 sps:$4 sm:$0xff]  }
 0x9cb   :  { %v13676_v19 = vpop.eup %13675  ;;  %v6615_v55 = vmul.f32 0.5, %v6593_v41  ;;  %v16553_v41 = vld [vmem:[%s18028_s3 + $0xc] ss:$16 sps:$4 sm:$0xff]   ;;  %v16558_v61 = vld [vmem:[%s18028_s3 + $0x8] ss:$16 sps:$4 sm:$0xff]  }
 0x9cc   :  { %13677 = vtanh.f32 %v6614_v27  ;;  %v16456_v37 = vmul.f32 %v13676_v19, %v6607_v15  ;;  %v16580_v46 = vld [vmem:[%s18028_s3 + $0x28] ss:$16 sps:$4 sm:$0xff]   ;;  %v16589_v63 = vld [vmem:[%s18028_s3 + $0x44] ss:$16 sps:$4 sm:$0xff]   ;;  %v16594_v15 = vld [vmem:[%s18028_s3 + $0x4c] ss:$16 sps:$4 sm:$0xff]  }
 0x9cd   :  { %13679 = vtanh.f32 %v6615_v55  ;;  %18405 = vst [vmem:[#allocation119_spill] sm:$0xff] %v16589_v63  ;;  %v16599_v27 = vld [vmem:[%s18028_s3 + $0x40] ss:$16 sps:$4 sm:$0xff]   ;;  %v16604_v50 = vld [vmem:[%s18028_s3 + $0x48] ss:$16 sps:$4 sm:$0xff]  }
 0x9ce   :  { %18401 = vst [vmem:[#allocation60_spill] sm:$0xff] %v16456_v37  ;;  %v6638_v43 = vpack.c.bf16 %v16456_v37, %v16456_v37  ;;  %13681 = vtanh.f32 %v6595_v14  ;;  %v16575_v14 = vld [vmem:[%s18028_s3 + $0x20] ss:$16 sps:$4 sm:$0xff]   ;;  %18406 = vst [vmem:[#allocation22_spill] sm:$0xff] %v16599_v27  ;;  %v16613_v6 = vld [vmem:[%s18028_s3 + $0x64] ss:$16 sps:$4 sm:$0xff]  }
 0x9cf   :  { %13683 = vtanh.f32 %v6616_v18  ;;  %18404 = vst [vmem:[#allocation81_spill] sm:$0xff] %v16575_v14  ;;  %18407 = vst [vmem:[#allocation49_spill] sm:$0xff] %v16613_v6  ;;  %v16618_v19 = vld [vmem:[%s18028_s3 + $0x6c] ss:$16 sps:$4 sm:$0xff]   ;;  %v16623_v55 = vld [vmem:[%s18028_s3 + $0x60] ss:$16 sps:$4 sm:$0xff]  }
 0x9d0   :  { %6864 = vmatmul.mubr.bf16.vlgmr.msra.gmra.mrb[120].mxu0 %v6638_v43  ;;  %6905 = vmatmul.mubr.bf16.vlgmr.msra.gmra.mrb[152].mxu1 %v6638_v43  ;;  %18408 = vst [vmem:[#allocation87_spill] sm:$0xff] %v16623_v55  ;;  %v16628_v43 = vld [vmem:[%s18028_s3 + $0x68] ss:$16 sps:$4 sm:$0xff]   ;;  %v16637_v18 = vld [vmem:[%s18028_s3 + $0x84] ss:$16 sps:$4 sm:$0xff]  }
 0x9d1   :  { %7115 = vmatpush1.bf16.msra.mxu0 %v16458_v45  ;;  %7156 = vmatpush1.bf16.msra.mxu1 %v16320_v29  ;;  %18409 = vst [vmem:[#allocation122_spill] sm:$0xff] %v16637_v18 }
 0x9d2   :  { %7116 = vmatprep.subr.bf16.mxu0 %v16462_v24  ;;  %7157 = vmatprep.subr.bf16.mxu1 %v16324_v52 }
 0x9d3   :  { %7146 = vmatprep.mubr.bf16.mxu0 %v18252_v58  ;;  %7187 = vmatprep.mubr.bf16.mxu1 %v18252_v58 }
 0x9d5   :  { %7117 = vmatpush1.bf16.msra.mxu0 %v16466_v44  ;;  %7158 = vmatpush1.bf16.msra.mxu1 %v16328_v22 }
 0x9d6   :  { %v13678_v29 = vpop.eup %13677  ;;  %7118 = vmatprep.subr.bf16.mxu0 %v16470_v0  ;;  %7159 = vmatprep.subr.bf16.mxu1 %v16332_v56  ;;  %v16490_v56 = vld [vmem:[#allocation6 + $0x8c] ss:$16 sps:$4 sm:$0xff]  }
 0x9d7   :  { %v6620_v52 = vmul.f32 0.5, %v13678_v29  ;;  %v13680_v30 = vpop.eup %13679  ;;  %v16642_v29 = vld [vmem:[%s18028_s3 + $0x8c] ss:$16 sps:$4 sm:$0xff]  }
 0x9d8   :  { %v6621_v16 = vmul.f32 0.5, %v13680_v30  ;;  %v13682_v22 = vpop.eup %13681  ;;  %v16652_v30 = vld [vmem:[%s18028_s3 + $0x88] ss:$16 sps:$4 sm:$0xff]  }
 0x9d9   :  { %v6623_v5 = vadd.f32 0.5, %v6620_v52  ;;  %7119 = vmatpush1.bf16.msra.mxu0 %v16476_v38  ;;  %7160 = vmatpush1.bf16.msra.mxu1 %v16338_v54  ;;  %v16495_v54 = vld [vmem:[#allocation6 + $0x80] ss:$16 sps:$4 sm:$0xff]   ;;  %v13684_v40 = vpop.eup %13683 }
 0x9da   :  { %7120 = vmatprep.subr.bf16.mxu0 %v16480_v36  ;;  %7161 = vmatprep.subr.bf16.mxu1 %v16342_v7  ;;  %v6624_v47 = vadd.f32 0.5, %v6621_v16  ;;  %v16501_v7 = vld [vmem:[#allocation6 + $0xa4] ss:$16 sps:$4 sm:$0xff]   ;;  %v6622_v60 = vmul.f32 0.5, %v13684_v40  ;;  %v16647_v52 = vld [vmem:[%s18028_s3 + $0x80] ss:$16 sps:$4 sm:$0xff]  }
 0x9db   :  { %v6628_v57 = vmul.f32 %v13682_v22, %v6623_v5  ;;  %18410 = vst [vmem:[#allocation89_spill] sm:$0xff] %v16647_v52  ;;  %v16661_v5 = vld [vmem:[%s18028_s3 + $0xa0] ss:$16 sps:$4 sm:$0xff]   ;;  %v16666_v16 = vld [vmem:[%s18028_s3 + $0xa4] ss:$16 sps:$4 sm:$0xff]  }
 0x9dc   :  { %v6627_v2 = vmul.f32 %v6624_v47, %v16355_v17  ;;  %v16512_v17 = vld [vmem:[#allocation6 + $0xa8] ss:$16 sps:$4 sm:$0xff]   ;;  %v6625_v62 = vadd.f32 0.5, %v6622_v60  ;;  %18411 = vst [vmem:[#allocation123_spill] sm:$0xff] %v16661_v5  ;;  %18412 = vst [vmem:[#allocation130_spill] sm:$0xff] %v16666_v16 }
 0x9dd   :  { %7121 = vmatpush1.bf16.msra.mxu0 %v16484_v13  ;;  %7162 = vmatpush1.bf16.msra.mxu1 %v16346_v39  ;;  %v16510_v39 = vld [vmem:[#allocation6 + $0xa0] ss:$16 sps:$4 sm:$0xff]   ;;  %v16671_v22 = vld [vmem:[%s18028_s3 + $0xa8] ss:$16 sps:$4 sm:$0xff]   ;;  %v16676_v47 = vld [vmem:[%s18028_s3 + $0xac] ss:$16 sps:$4 sm:$0xff]  }
 0x9de   :  { %7122 = vmatprep.subr.bf16.mxu0 %v16488_v4  ;;  %7163 = vmatprep.subr.bf16.mxu1 %v16490_v56  ;;  %v16505_v9 = vadd.f32 %v6628_v57, %v6627_v2  ;;  %v16686_v57 = vld [vmem:[%s18028_s3 + $0xcc] ss:$16 sps:$4 sm:$0xff]   ;;  %v16691_v2 = vld [vmem:[%s18028_s3 + $0xc8] ss:$16 sps:$4 sm:$0xff]  }
 0x9df   :  { %v16705_v40 = vld [vmem:[%s18028_s3 + $0xe8] ss:$16 sps:$4 sm:$0xff]  }
 0x9e0   :  { %13685 = vtanh.f32 %v16505_v9 }
 0x9e1   :  { %7123 = vmatpush1.bf16.msra.mxu0 %v16495_v54  ;;  %7164 = vmatpush1.bf16.msra.mxu1 %v16497_v32 }
 0x9e2   :  { %7124 = vmatprep.subr.bf16.mxu0 %v16501_v7  ;;  %7165 = vmatprep.subr.bf16.mxu1 %v16503_v26 }
 0x9e5   :  { %7125 = vmatpush1.bf16.msra.mxu0 %v16510_v39  ;;  %7166 = vmatpush1.bf16.msra.mxu1 %v16512_v17 }
 0x9e6   :  { %7126 = vmatprep.subr.bf16.mxu0 %v16516_v1  ;;  %7167 = vmatprep.subr.bf16.mxu1 %v16518_v51 }
 0x9e9   :  { %7127 = vmatpush1.bf16.msra.mxu0 %v16522_v11  ;;  %7168 = vmatpush1.bf16.msra.mxu1 %v16524_v53 }
 0x9ea   :  { %7128 = vmatprep.subr.bf16.mxu0 %v16528_v21  ;;  %7169 = vmatprep.subr.bf16.mxu1 %v16530_v59  ;;  %v13686_v25 = vpop.eup %13685 }
 0x9eb   :  { %v16540_v3 = vmul.f32 %v13686_v25, %v6625_v62  ;;  %v18413_v62 = vld [vmem:[#allocation13_spill] sm:$0xff] }
 0x9ed   :  { %18402 = vst [vmem:[#allocation79_spill] sm:$0xff] %v16540_v3  ;;  %7129 = vmatpush1.bf16.msra.mxu0 %v16534_v10  ;;  %7170 = vmatpush1.bf16.msra.mxu1 %v16536_v12  ;;  %v6921_v42 = vpack.c.bf16 %v16540_v3, %v16540_v3  ;;  %v18415_v3 = vld [vmem:[#allocation14_spill] sm:$0xff] }
 0x9ee   :  { %7435 = vmatprep.subr.bf16.mxu0 %v16398_v31  ;;  %7476 = vmatprep.subr.bf16.mxu1 %v16553_v41  ;;  %v16565_v31 = vld [vmem:[%s18028_s3 + $0x24] ss:$16 sps:$4 sm:$0xff]  }
 0x9ef   :  { %18403 = vst [vmem:[#allocation118_spill] sm:$0xff] %v16565_v31 }
 0x9f0   :  { %7147 = vmatmul.mubr.bf16.vlgmr.msra.gmra.mrb[124].mxu0 %v6921_v42  ;;  %7188 = vmatmul.mubr.bf16.vlgmr.msra.gmra.mrb[156].mxu1 %v6921_v42  ;;  %v18414_v42 = vld [vmem:[#allocation74_spill] sm:$0xff] }
 0x9f1   :  { %7436 = vmatpush1.bf16.msra.mxu0 %v16403_v20  ;;  %7467 = vmatprep.mubr.bf16.mxu0 %v18252_v58  ;;  %v16570_v20 = vld [vmem:[%s18028_s3 + $0x2c] ss:$16 sps:$4 sm:$0xff]  }
 0x9f2   :  { %7508 = vmatprep.mubr.bf16.mxu1 %v18252_v58  ;;  %7477 = vmatpush1.bf16.msra.mxu1 %v16558_v61 }
 0x9f3   :  { %7437 = vmatprep.subr.bf16.mxu0 %v16565_v31  ;;  %7478 = vmatprep.subr.bf16.mxu1 %v16570_v20 }
 0x9f5   :  { %7438 = vmatpush1.bf16.msra.mxu0 %v16575_v14 }
 0x9f6   :  { %7479 = vmatpush1.bf16.msra.mxu1 %v16580_v46  ;;  %7439 = vmatprep.subr.bf16.mxu0 %v16589_v63 }
 0x9f7   :  { %7480 = vmatprep.subr.bf16.mxu1 %v16594_v15 }
 0x9f9   :  { %7440 = vmatpush1.bf16.msra.mxu0 %v16599_v27 }
 0x9fa   :  { %7481 = vmatpush1.bf16.msra.mxu1 %v16604_v50  ;;  %7441 = vmatprep.subr.bf16.mxu0 %v16613_v6 }
 0x9fb   :  { %7482 = vmatprep.subr.bf16.mxu1 %v16618_v19 }
 0x9fd   :  { %7442 = vmatpush1.bf16.msra.mxu0 %v16623_v55 }
 0x9fe   :  { %7483 = vmatpush1.bf16.msra.mxu1 %v16628_v43  ;;  %7443 = vmatprep.subr.bf16.mxu0 %v16637_v18 }
 0x9ff   :  { %7484 = vmatprep.subr.bf16.mxu1 %v16642_v29 }
 0xa01   :  { %7444 = vmatpush1.bf16.msra.mxu0 %v16647_v52 }
 0xa02   :  { %7485 = vmatpush1.bf16.msra.mxu1 %v16652_v30  ;;  %7445 = vmatprep.subr.bf16.mxu0 %v16666_v16  ;;  %v18416_v16 = vld [vmem:[#allocation76_spill] sm:$0xff] }
 0xa03   :  { %7486 = vmatprep.subr.bf16.mxu1 %v16676_v47 }
 0xa05   :  { %7446 = vmatpush1.bf16.msra.mxu0 %v16661_v5 }
 0xa06   :  { %7487 = vmatpush1.bf16.msra.mxu1 %v16671_v22  ;;  %7447 = vmatprep.subr.bf16.mxu0 %v16420_v35  ;;  %v16700_v35 = vld [vmem:[%s18028_s3 + $0xec] ss:$16 sps:$4 sm:$0xff]  }
 0xa07   :  { %7488 = vmatprep.subr.bf16.mxu1 %v16686_v57 }
 0xa09   :  { %7448 = vmatpush1.bf16.msra.mxu0 %v16425_v28  ;;  %v16711_v28 = vld [vmem:[#allocation6 + $0xc] ss:$16 sps:$4 sm:$0xff]  }
 0xa0a   :  { %7489 = vmatpush1.bf16.msra.mxu1 %v16691_v2  ;;  %7449 = vmatprep.subr.bf16.mxu0 %v16432_v23 }
 0xa0b   :  { %7490 = vmatprep.subr.bf16.mxu1 %v16700_v35 }
 0xa0d   :  { %7450 = vmatpush1.bf16.msra.mxu0 %v16437_v33 }
 0xa0e   :  { %7491 = vmatpush1.bf16.msra.mxu1 %v16705_v40  ;;  %7718 = vmatprep.subr.bf16.mxu0 %v16441_v49 }
 0xa0f   :  { %7759 = vmatprep.subr.bf16.mxu1 %v16711_v28 }
 0xaa3   :  { %v6865_v23 = vpop.f32.mrb[120].mxu0  ;;  %v6906_v60 = vpop.f32.mrb[152].mxu1 }
 0xaa4   :  { %v6913_v25 = vadd.f32 %v6865_v23, %v18413_v62  ;;  %v6915_v37 = vadd.f32 %v6906_v60, %v18414_v42  ;;  %v6867_v48 = vpop.f32.mrb[121].mxu0  ;;  %v6908_v34 = vpop.f32.mrb[153].mxu1 }
 0xaa5   :  { %v6914_v5 = vadd.f32 %v6867_v48, %v18415_v3  ;;  %v6916_v33 = vadd.f32 %v6908_v34, %v18416_v16  ;;  %v6869_v52 = vpop.f32.mrb[122].mxu0  ;;  %v6910_v18 = vpop.f32.mrb[154].mxu1 }
 0xaa6   :  { %v7200_v55 = vmul.f32 0.5, %v6913_v25  ;;  %v6870_v49 = vpop.f32.mrb[123].mxu0  ;;  %v6911_v6 = vpop.f32.mrb[155].mxu1  ;;  %v7202_v63 = vmul.f32 0.5, %v6915_v37  ;;  %v18418_v37 = vld [vmem:[#allocation63_spill] sm:$0xff] }
 0xaa7   :  { %v7201_v27 = vmul.f32 0.5, %v6914_v5 }
 0xaa8   :  { %13687 = vtanh.f32 %v7200_v55 }
 0xaa9   :  { %13689 = vtanh.f32 %v7201_v27 }
 0xaaa   :  { %13691 = vtanh.f32 %v6916_v33  ;;  %v18420_v33 = vld [vmem:[#allocation65_spill] sm:$0xff] }
 0xaab   :  { %13693 = vtanh.f32 %v7202_v63 }
 0xab2   :  { %v13688_v14 = vpop.eup %13687 }
 0xab3   :  { %v7206_v23 = vmul.f32 0.5, %v13688_v14  ;;  %v13690_v62 = vpop.eup %13689  ;;  %v18419_v14 = vld [vmem:[#allocation110_spill] sm:$0xff] }
 0xab4   :  { %v7207_v42 = vmul.f32 0.5, %v13690_v62  ;;  %v13692_v31 = vpop.eup %13691 }
 0xab5   :  { %v7209_v60 = vadd.f32 0.5, %v7206_v23  ;;  %v13694_v6 = vpop.eup %13693  ;;  %v18421_v23 = vld [vmem:[#allocation111_spill] sm:$0xff] }
 0xab6   :  { %v7210_v48 = vadd.f32 0.5, %v7207_v42  ;;  %v7208_v55 = vmul.f32 0.5, %v13694_v6 }
 0xab7   :  { %v7214_v3 = vmul.f32 %v13692_v31, %v7209_v60 }
 0xab8   :  { %v7213_v34 = vmul.f32 %v7210_v48, %v16449_v8  ;;  %v7211_v60 = vadd.f32 0.5, %v7208_v55  ;;  %v16736_v55 = vld [vmem:[#allocation6 + $0x28] ss:$16 sps:$4 sm:$0xff]  }
 0xaba   :  { %v16719_v18 = vadd.f32 %v7214_v3, %v7213_v34 }
 0xabc   :  { %18417 = vst [vmem:[#allocation131_spill] sm:$0xff] %v16719_v18  ;;  %13695 = vtanh.f32 %v16719_v18 }
 0xac3   :  { %v7148_v27 = vpop.f32.mrb[124].mxu0  ;;  %v7189_v52 = vpop.f32.mrb[156].mxu1 }
 0xac4   :  { %v7196_v5 = vadd.f32 %v7148_v27, %v18418_v37  ;;  %v7198_v16 = vadd.f32 %v7189_v52, %v18419_v14  ;;  %v7150_v25 = vpop.f32.mrb[125].mxu0  ;;  %v7191_v63 = vpop.f32.mrb[157].mxu1  ;;  %v16728_v27 = vld [vmem:[#allocation6 + $0x8] ss:$16 sps:$4 sm:$0xff]   ;;  %v16732_v37 = vld [vmem:[#allocation6 + $0x2c] ss:$16 sps:$4 sm:$0xff]  }
 0xac5   :  { %v7197_v49 = vadd.f32 %v7150_v25, %v18420_v33  ;;  %v7199_v31 = vadd.f32 %v7191_v63, %v18421_v23  ;;  %v7152_v62 = vpop.f32.mrb[126].mxu0  ;;  %v7193_v8 = vpop.f32.mrb[158].mxu1 }
 0xac6   :  { %v7218_v42 = vmul.f32 0.5, %v7196_v5  ;;  %v7153_v48 = vpop.f32.mrb[127].mxu0  ;;  %v7194_v3 = vpop.f32.mrb[159].mxu1  ;;  %v16740_v5 = vld [vmem:[#allocation6 + $0x4c] ss:$16 sps:$4 sm:$0xff]   ;;  %v7220_v14 = vmul.f32 0.5, %v7198_v16 }
 0xac7   :  { %v13696_v34 = vpop.eup %13695  ;;  %v7219_v6 = vmul.f32 0.5, %v7197_v49 }
 0xac8   :  { %13697 = vtanh.f32 %v7218_v42  ;;  %v16726_v18 = vmul.f32 %v13696_v34, %v7211_v60 }
 0xac9   :  { %13699 = vtanh.f32 %v7219_v6 }
 0xaca   :  { %18422 = vst [vmem:[#allocation59_spill] sm:$0xff] %v16726_v18  ;;  %v7242_v52 = vpack.c.bf16 %v16726_v18, %v16726_v18  ;;  %13701 = vtanh.f32 %v7199_v31 }
 0xacb   :  { %13703 = vtanh.f32 %v7220_v14 }
 0xacc   :  { %7468 = vmatmul.mubr.bf16.vlgmr.msra.gmra.mrb[128].mxu0 %v7242_v52  ;;  %7509 = vmatmul.mubr.bf16.vlgmr.msra.gmra.mrb[160].mxu1 %v7242_v52 }
 0xacd   :  { %7719 = vmatpush1.bf16.msra.mxu0 %v16458_v45  ;;  %7760 = vmatpush1.bf16.msra.mxu1 %v16728_v27  ;;  %v16746_v45 = vld [vmem:[#allocation6 + $0x48] ss:$16 sps:$4 sm:$0xff]  }
 0xace   :  { %7720 = vmatprep.subr.bf16.mxu0 %v16462_v24  ;;  %7761 = vmatprep.subr.bf16.mxu1 %v16732_v37  ;;  %v16750_v24 = vld [vmem:[#allocation6 + $0x6c] ss:$16 sps:$4 sm:$0xff]  }
 0xacf   :  { %7750 = vmatprep.mubr.bf16.mxu0 %v18252_v58  ;;  %7791 = vmatprep.mubr.bf16.mxu1 %v18252_v58 }
 0xad1   :  { %7721 = vmatpush1.bf16.msra.mxu0 %v16466_v44  ;;  %7762 = vmatpush1.bf16.msra.mxu1 %v16736_v55  ;;  %v16754_v44 = vld [vmem:[#allocation6 + $0x68] ss:$16 sps:$4 sm:$0xff]  }
 0xad2   :  { %v13698_v25 = vpop.eup %13697  ;;  %7722 = vmatprep.subr.bf16.mxu0 %v16470_v0  ;;  %7763 = vmatprep.subr.bf16.mxu1 %v16740_v5 }
 0xad3   :  { %v7224_v63 = vmul.f32 0.5, %v13698_v25  ;;  %v13700_v33 = vpop.eup %13699 }
 0xad4   :  { %v7225_v23 = vmul.f32 0.5, %v13700_v33  ;;  %v13702_v16 = vpop.eup %13701 }
 0xad5   :  { %v7227_v49 = vadd.f32 0.5, %v7224_v63  ;;  %7723 = vmatpush1.bf16.msra.mxu0 %v16476_v38  ;;  %7764 = vmatpush1.bf16.msra.mxu1 %v16746_v45 }
 0xad6   :  { %7724 = vmatprep.subr.bf16.mxu0 %v16480_v36  ;;  %7765 = vmatprep.subr.bf16.mxu1 %v16750_v24  ;;  %v7228_v0 = vadd.f32 0.5, %v7225_v23  ;;  %v13704_v36 = vpop.eup %13703 }
 0xad7   :  { %v7232_v31 = vmul.f32 %v13702_v16, %v7227_v49  ;;  %v18438_v16 = vld [vmem:[#allocation131_spill] sm:$0xff] }
 0xad8   :  { %v7231_v62 = vmul.f32 %v7228_v0, %v16505_v9  ;;  %v18424_v9 = vld [vmem:[#allocation118_spill] sm:$0xff] }
 0xad9   :  { %7725 = vmatpush1.bf16.msra.mxu0 %v16484_v13  ;;  %7766 = vmatpush1.bf16.msra.mxu1 %v16754_v44  ;;  %v7226_v13 = vmul.f32 0.5, %v13704_v36 }
 0xada   :  { %7726 = vmatprep.subr.bf16.mxu0 %v16488_v4  ;;  %7767 = vmatprep.subr.bf16.mxu1 %v16490_v56  ;;  %v16763_v38 = vadd.f32 %v7232_v31, %v7231_v62 }
 0xadb   :  { %v7229_v4 = vadd.f32 0.5, %v7226_v13 }
 0xadc   :  { %13705 = vtanh.f32 %v16763_v38 }
 0xadd   :  { %7727 = vmatpush1.bf16.msra.mxu0 %v16495_v54  ;;  %7768 = vmatpush1.bf16.msra.mxu1 %v16497_v32 }
 0xade   :  { %7728 = vmatprep.subr.bf16.mxu0 %v16501_v7  ;;  %7769 = vmatprep.subr.bf16.mxu1 %v16503_v26  ;;  %v16806_v7 = vld [vmem:[%s18028_s3 + $0x4] ss:$16 sps:$4 sm:$0xff]   ;;  %v16811_v26 = vld [vmem:[%s18028_s3] ss:$16 sps:$4 sm:$0xff]  }
 0xae1   :  { %7729 = vmatpush1.bf16.msra.mxu0 %v16510_v39  ;;  %7770 = vmatpush1.bf16.msra.mxu1 %v16512_v17  ;;  %v18425_v39 = vld [vmem:[#allocation81_spill] sm:$0xff]  ;;  %v18426_v17 = vld [vmem:[#allocation119_spill] sm:$0xff] }
 0xae2   :  { %7730 = vmatprep.subr.bf16.mxu0 %v16516_v1  ;;  %7771 = vmatprep.subr.bf16.mxu1 %v16518_v51  ;;  %v18427_v1 = vld [vmem:[#allocation22_spill] sm:$0xff]  ;;  %v18428_v51 = vld [vmem:[#allocation49_spill] sm:$0xff] }
 0xae5   :  { %7731 = vmatpush1.bf16.msra.mxu0 %v16522_v11  ;;  %7772 = vmatpush1.bf16.msra.mxu1 %v16524_v53  ;;  %v18429_v11 = vld [vmem:[#allocation87_spill] sm:$0xff]  ;;  %v18430_v53 = vld [vmem:[#allocation122_spill] sm:$0xff] }
 0xae6   :  { %7732 = vmatprep.subr.bf16.mxu0 %v16528_v21  ;;  %7773 = vmatprep.subr.bf16.mxu1 %v16530_v59  ;;  %v13706_v56 = vpop.eup %13705  ;;  %v18431_v21 = vld [vmem:[#allocation89_spill] sm:$0xff]  ;;  %v18432_v59 = vld [vmem:[#allocation130_spill] sm:$0xff] }
 0xae7   :  { %v16778_v54 = vmul.f32 %v13706_v56, %v7229_v4  ;;  %v18439_v56 = vld [vmem:[#allocation57_spill] sm:$0xff] }
 0xae9   :  { %18423 = vst [vmem:[#allocation53_spill] sm:$0xff] %v16778_v54  ;;  %7733 = vmatpush1.bf16.msra.mxu0 %v16534_v10  ;;  %7774 = vmatpush1.bf16.msra.mxu1 %v16536_v12  ;;  %v7525_v32 = vpack.c.bf16 %v16778_v54, %v16778_v54  ;;  %v18433_v10 = vld [vmem:[#allocation123_spill] sm:$0xff] }
 0xaea   :  { %8080 = vmatprep.subr.bf16.mxu1 %v16553_v41  ;;  %8039 = vmatprep.subr.bf16.mxu0 %v16806_v7  ;;  %v16828_v12 = vld [vmem:[%s18028_s3 + $0xc4] ss:$16 sps:$4 sm:$0xff]   ;;  %v16833_v41 = vld [vmem:[%s18028_s3 + $0xc0] ss:$16 sps:$4 sm:$0xff]  }
 0xaec   :  { %7751 = vmatmul.mubr.bf16.vlgmr.msra.gmra.mrb[132].mxu0 %v7525_v32  ;;  %7792 = vmatmul.mubr.bf16.vlgmr.msra.gmra.mrb[164].mxu1 %v7525_v32 }
 0xaed   :  { %8081 = vmatpush1.bf16.msra.mxu1 %v16558_v61  ;;  %8071 = vmatprep.mubr.bf16.mxu0 %v18252_v58  ;;  %v16840_v61 = vld [vmem:[%s18028_s3 + $0xe4] ss:$16 sps:$4 sm:$0xff]  }
 0xaee   :  { %8082 = vmatprep.subr.bf16.mxu1 %v16570_v20  ;;  %8112 = vmatprep.mubr.bf16.mxu1 %v18252_v58  ;;  %v16845_v20 = vld [vmem:[%s18028_s3 + $0xe0] ss:$16 sps:$4 sm:$0xff]  }
 0xaef   :  { %8040 = vmatpush1.bf16.msra.mxu0 %v16811_v26 }
 0xaf0   :  { %8041 = vmatprep.subr.bf16.mxu0 %v18424_v9  ;;  %v18440_v9 = vld [vmem:[#allocation108_spill] sm:$0xff] }
 0xaf1   :  { %8083 = vmatpush1.bf16.msra.mxu1 %v16580_v46  ;;  %v16849_v46 = vld [vmem:[#allocation6 + $0x4] ss:$16 sps:$4 sm:$0xff]  }
 0xaf2   :  { %8084 = vmatprep.subr.bf16.mxu1 %v16594_v15 }
 0xaf3   :  { %8042 = vmatpush1.bf16.msra.mxu0 %v18425_v39 }
 0xaf4   :  { %8043 = vmatprep.subr.bf16.mxu0 %v18426_v17 }
 0xaf5   :  { %8085 = vmatpush1.bf16.msra.mxu1 %v16604_v50 }
 0xaf6   :  { %8086 = vmatprep.subr.bf16.mxu1 %v16618_v19  ;;  %v18434_v19 = vld [vmem:[#allocation15_spill] sm:$0xff] }
 0xaf7   :  { %8044 = vmatpush1.bf16.msra.mxu0 %v18427_v1 }
 0xaf8   :  { %8045 = vmatprep.subr.bf16.mxu0 %v18428_v51  ;;  %v18441_v51 = vld [vmem:[#allocation61_spill] sm:$0xff] }
 0xaf9   :  { %8087 = vmatpush1.bf16.msra.mxu1 %v16628_v43 }
 0xafa   :  { %8088 = vmatprep.subr.bf16.mxu1 %v16642_v29  ;;  %v18435_v29 = vld [vmem:[#allocation78_spill] sm:$0xff] }
 0xafb   :  { %8046 = vmatpush1.bf16.msra.mxu0 %v18429_v11 }
 0xafc   :  { %8047 = vmatprep.subr.bf16.mxu0 %v18430_v53  ;;  %v18442_v53 = vld [vmem:[#allocation109_spill] sm:$0xff] }
 0xafd   :  { %8089 = vmatpush1.bf16.msra.mxu1 %v16652_v30 }
 0xafe   :  { %8090 = vmatprep.subr.bf16.mxu1 %v16676_v47 }
 0xaff   :  { %8048 = vmatpush1.bf16.msra.mxu0 %v18431_v21 }
 0xb00   :  { %8049 = vmatprep.subr.bf16.mxu0 %v18432_v59 }
 0xb01   :  { %8091 = vmatpush1.bf16.msra.mxu1 %v16671_v22 }
 0xb02   :  { %8092 = vmatprep.subr.bf16.mxu1 %v16686_v57  ;;  %v18436_v57 = vld [vmem:[#allocation17_spill] sm:$0xff] }
 0xb03   :  { %8050 = vmatpush1.bf16.msra.mxu0 %v18433_v10 }
 0xb04   :  { %8051 = vmatprep.subr.bf16.mxu0 %v16828_v12 }
 0xb05   :  { %8093 = vmatpush1.bf16.msra.mxu1 %v16691_v2 }
 0xb06   :  { %8094 = vmatprep.subr.bf16.mxu1 %v16700_v35  ;;  %v18437_v35 = vld [vmem:[#allocation80_spill] sm:$0xff] }
 0xb07   :  { %8052 = vmatpush1.bf16.msra.mxu0 %v16833_v41 }
 0xb08   :  { %8053 = vmatprep.subr.bf16.mxu0 %v16840_v61 }
 0xb09   :  { %8095 = vmatpush1.bf16.msra.mxu1 %v16705_v40 }
 0xb0a   :  { %8363 = vmatprep.subr.bf16.mxu1 %v16711_v28 }
 0xb0b   :  { %8054 = vmatpush1.bf16.msra.mxu0 %v16845_v20 }
 0xb0c   :  { %8322 = vmatprep.subr.bf16.mxu0 %v16849_v46 }
 0xb9f   :  { %v7469_v15 = vpop.f32.mrb[128].mxu0  ;;  %v7510_v50 = vpop.f32.mrb[160].mxu1 }
 0xba0   :  { %v7517_v43 = vadd.f32 %v7469_v15, %v18434_v19  ;;  %v7519_v30 = vadd.f32 %v7510_v50, %v18435_v29  ;;  %v7471_v22 = vpop.f32.mrb[129].mxu0  ;;  %v7512_v47 = vpop.f32.mrb[161].mxu1 }
 0xba1   :  { %v7518_v2 = vadd.f32 %v7471_v22, %v18436_v57  ;;  %v7520_v40 = vadd.f32 %v7512_v47, %v18437_v35  ;;  %v7473_v28 = vpop.f32.mrb[130].mxu0  ;;  %v7514_v8 = vpop.f32.mrb[162].mxu1  ;;  %v16866_v47 = vld [vmem:[#allocation6] ss:$16 sps:$4 sm:$0xff]  }
 0xba2   :  { %v7804_v60 = vmul.f32 0.5, %v7517_v43  ;;  %v7474_v42 = vpop.f32.mrb[131].mxu0  ;;  %v7515_v48 = vpop.f32.mrb[163].mxu1  ;;  %v7806_v34 = vmul.f32 0.5, %v7519_v30  ;;  %v16874_v35 = vld [vmem:[#allocation6 + $0x20] ss:$16 sps:$4 sm:$0xff]  }
 0xba3   :  { %v7805_v3 = vmul.f32 0.5, %v7518_v2  ;;  %v16870_v2 = vld [vmem:[#allocation6 + $0x24] ss:$16 sps:$4 sm:$0xff]   ;;  %v16884_v8 = vld [vmem:[#allocation6 + $0x40] ss:$16 sps:$4 sm:$0xff]  }
 0xba4   :  { %13707 = vtanh.f32 %v7804_v60  ;;  %v16888_v60 = vld [vmem:[#allocation6 + $0x64] ss:$16 sps:$4 sm:$0xff]  }
 0xba5   :  { %13709 = vtanh.f32 %v7805_v3 }
 0xba6   :  { %13711 = vtanh.f32 %v7520_v40  ;;  %v16878_v40 = vld [vmem:[#allocation6 + $0x44] ss:$16 sps:$4 sm:$0xff]  }
 0xba7   :  { %13713 = vtanh.f32 %v7806_v34  ;;  %v16892_v34 = vld [vmem:[#allocation6 + $0x60] ss:$16 sps:$4 sm:$0xff]  }
 0xbae   :  { %v13708_v6 = vpop.eup %13707 }
 0xbaf   :  { %v7810_v52 = vmul.f32 0.5, %v13708_v6  ;;  %v13710_v14 = vpop.eup %13709  ;;  %v16896_v6 = vld [vmem:[#allocation6 + $0x84] ss:$16 sps:$4 sm:$0xff]  }
 0xbb0   :  { %v7811_v63 = vmul.f32 0.5, %v13710_v14  ;;  %v13712_v33 = vpop.eup %13711 }
 0xbb1   :  { %v7813_v25 = vadd.f32 0.5, %v7810_v52  ;;  %v13714_v62 = vpop.eup %13713 }
 0xbb2   :  { %v7814_v49 = vadd.f32 0.5, %v7811_v63  ;;  %v7812_v36 = vmul.f32 0.5, %v13714_v62  ;;  %v16905_v63 = vld [vmem:[#allocation6 + $0x88] ss:$16 sps:$4 sm:$0xff]   ;;  %v16930_v62 = vld [vmem:[#allocation6 + $0xc0] ss:$16 sps:$4 sm:$0xff]  }
 0xbb3   :  { %v7818_v23 = vmul.f32 %v13712_v33, %v7813_v25  ;;  %v16911_v33 = vld [vmem:[#allocation6 + $0xac] ss:$16 sps:$4 sm:$0xff]  }
 0xbb4   :  { %v7817_v0 = vmul.f32 %v7814_v49, %v18438_v16  ;;  %v7815_v15 = vadd.f32 0.5, %v7812_v36  ;;  %v16926_v16 = vld [vmem:[#allocation6 + $0xcc] ss:$16 sps:$4 sm:$0xff]   ;;  %v16932_v36 = vld [vmem:[#allocation6 + $0xc8] ss:$16 sps:$4 sm:$0xff]  }
 0xbb6   :  { %v16857_v31 = vadd.f32 %v7818_v23, %v7817_v0  ;;  %v16924_v23 = vld [vmem:[#allocation6 + $0xc4] ss:$16 sps:$4 sm:$0xff]  }
 0xbb8   :  { %13715 = vtanh.f32 %v16857_v31 }
 0xbbf   :  { %v7752_v13 = vpop.f32.mrb[132].mxu0  ;;  %v7793_v4 = vpop.f32.mrb[164].mxu1 }
 0xbc0   :  { %v7800_v32 = vadd.f32 %v7752_v13, %v18439_v56  ;;  %v7802_v39 = vadd.f32 %v7793_v4, %v18440_v9  ;;  %v7754_v17 = vpop.f32.mrb[133].mxu0  ;;  %v7795_v1 = vpop.f32.mrb[165].mxu1  ;;  %v16936_v4 = vld [vmem:[#allocation6 + $0xe4] ss:$16 sps:$4 sm:$0xff]   ;;  %v16938_v56 = vld [vmem:[#allocation6 + $0xec] ss:$16 sps:$4 sm:$0xff]  }
 0xbc1   :  { %v7801_v11 = vadd.f32 %v7754_v17, %v18441_v51  ;;  %v7803_v21 = vadd.f32 %v7795_v1, %v18442_v53  ;;  %v7756_v59 = vpop.f32.mrb[134].mxu0  ;;  %v7797_v10 = vpop.f32.mrb[166].mxu1  ;;  %v16944_v9 = vld [vmem:[#allocation6 + $0xe8] ss:$16 sps:$4 sm:$0xff]  }
 0xbc2   :  { %v7822_v50 = vmul.f32 0.5, %v7800_v32  ;;  %v7757_v19 = vpop.f32.mrb[135].mxu0  ;;  %v7798_v43 = vpop.f32.mrb[167].mxu1  ;;  %v7824_v28 = vmul.f32 0.5, %v7802_v39  ;;  %v16942_v32 = vld [vmem:[#allocation6 + $0xe0] ss:$16 sps:$4 sm:$0xff]  }
 0xbc3   :  { %v13716_v29 = vpop.eup %13715  ;;  %v7823_v30 = vmul.f32 0.5, %v7801_v11  ;;  %v16961_v11 = vld [vmem:[%s18028_s3 + $0xc] ss:$16 sps:$4 sm:$0xff]   ;;  %v16966_v53 = vld [vmem:[%s18028_s3 + $0x8] ss:$16 sps:$4 sm:$0xff]  }
 0xbc4   :  { %13717 = vtanh.f32 %v7822_v50  ;;  %v16864_v22 = vmul.f32 %v13716_v29, %v7815_v15  ;;  %v16988_v59 = vld [vmem:[%s18028_s3 + $0x28] ss:$16 sps:$4 sm:$0xff]   ;;  %v16997_v10 = vld [vmem:[%s18028_s3 + $0x44] ss:$16 sps:$4 sm:$0xff]   ;;  %v17002_v15 = vld [vmem:[%s18028_s3 + $0x4c] ss:$16 sps:$4 sm:$0xff]  }
 0xbc5   :  { %13719 = vtanh.f32 %v7823_v30  ;;  %18447 = vst [vmem:[#allocation58_spill] sm:$0xff] %v16997_v10  ;;  %v17007_v50 = vld [vmem:[%s18028_s3 + $0x40] ss:$16 sps:$4 sm:$0xff]   ;;  %v17012_v19 = vld [vmem:[%s18028_s3 + $0x48] ss:$16 sps:$4 sm:$0xff]  }
 0xbc6   :  { %18443 = vst [vmem:[#allocation32_spill] sm:$0xff] %v16864_v22  ;;  %v7846_v57 = vpack.c.bf16 %v16864_v22, %v16864_v22  ;;  %13721 = vtanh.f32 %v7803_v21  ;;  %v16983_v21 = vld [vmem:[%s18028_s3 + $0x20] ss:$16 sps:$4 sm:$0xff]   ;;  %18448 = vst [vmem:[#allocation75_spill] sm:$0xff] %v17007_v50  ;;  %v17021_v43 = vld [vmem:[%s18028_s3 + $0x64] ss:$16 sps:$4 sm:$0xff]  }
 0xbc7   :  { %13723 = vtanh.f32 %v7824_v28  ;;  %18446 = vst [vmem:[#allocation64_spill] sm:$0xff] %v16983_v21  ;;  %18449 = vst [vmem:[#allocation116_spill] sm:$0xff] %v17021_v43  ;;  %v17026_v29 = vld [vmem:[%s18028_s3 + $0x6c] ss:$16 sps:$4 sm:$0xff]   ;;  %v17031_v30 = vld [vmem:[%s18028_s3 + $0x60] ss:$16 sps:$4 sm:$0xff]  }
 0xbc8   :  { %8072 = vmatmul.mubr.bf16.vlgmr.msra.gmra.mrb[136].mxu0 %v7846_v57  ;;  %8113 = vmatmul.mubr.bf16.vlgmr.msra.gmra.mrb[168].mxu1 %v7846_v57  ;;  %18450 = vst [vmem:[#allocation77_spill] sm:$0xff] %v17031_v30  ;;  %v17036_v57 = vld [vmem:[%s18028_s3 + $0x68] ss:$16 sps:$4 sm:$0xff]   ;;  %v17045_v28 = vld [vmem:[%s18028_s3 + $0x84] ss:$16 sps:$4 sm:$0xff]  }
 0xbc9   :  { %8323 = vmatpush1.bf16.msra.mxu0 %v16866_v47  ;;  %8364 = vmatpush1.bf16.msra.mxu1 %v16728_v27  ;;  %18451 = vst [vmem:[#allocation117_spill] sm:$0xff] %v17045_v28 }
 0xbca   :  { %8324 = vmatprep.subr.bf16.mxu0 %v16870_v2  ;;  %8365 = vmatprep.subr.bf16.mxu1 %v16732_v37 }
 0xbcb   :  { %8354 = vmatprep.mubr.bf16.mxu0 %v18252_v58  ;;  %8395 = vmatprep.mubr.bf16.mxu1 %v18252_v58 }
 0xbcd   :  { %8325 = vmatpush1.bf16.msra.mxu0 %v16874_v35  ;;  %8366 = vmatpush1.bf16.msra.mxu1 %v16736_v55 }
 0xbce   :  { %v13718_v27 = vpop.eup %13717  ;;  %8326 = vmatprep.subr.bf16.mxu0 %v16878_v40  ;;  %8367 = vmatprep.subr.bf16.mxu1 %v16740_v5  ;;  %v16898_v5 = vld [vmem:[#allocation6 + $0x8c] ss:$16 sps:$4 sm:$0xff]  }
 0xbcf   :  { %v7828_v37 = vmul.f32 0.5, %v13718_v27  ;;  %v13720_v42 = vpop.eup %13719  ;;  %v17050_v27 = vld [vmem:[%s18028_s3 + $0x8c] ss:$16 sps:$4 sm:$0xff]  }
 0xbd0   :  { %v7829_v3 = vmul.f32 0.5, %v13720_v42  ;;  %v13722_v55 = vpop.eup %13721  ;;  %v17060_v42 = vld [vmem:[%s18028_s3 + $0x88] ss:$16 sps:$4 sm:$0xff]  }
 0xbd1   :  { %v7831_v48 = vadd.f32 0.5, %v7828_v37  ;;  %8327 = vmatpush1.bf16.msra.mxu0 %v16884_v8  ;;  %8368 = vmatpush1.bf16.msra.mxu1 %v16746_v45  ;;  %v16903_v45 = vld [vmem:[#allocation6 + $0x80] ss:$16 sps:$4 sm:$0xff]   ;;  %v13724_v0 = vpop.eup %13723 }
 0xbd2   :  { %8328 = vmatprep.subr.bf16.mxu0 %v16888_v60  ;;  %8369 = vmatprep.subr.bf16.mxu1 %v16750_v24  ;;  %v7832_v52 = vadd.f32 0.5, %v7829_v3  ;;  %v16909_v24 = vld [vmem:[#allocation6 + $0xa4] ss:$16 sps:$4 sm:$0xff]   ;;  %v7830_v13 = vmul.f32 0.5, %v13724_v0  ;;  %v17055_v37 = vld [vmem:[%s18028_s3 + $0x80] ss:$16 sps:$4 sm:$0xff]  }
 0xbd3   :  { %v7836_v14 = vmul.f32 %v13722_v55, %v7831_v48  ;;  %18452 = vst [vmem:[#allocation36_spill] sm:$0xff] %v17055_v37  ;;  %v17069_v48 = vld [vmem:[%s18028_s3 + $0xa0] ss:$16 sps:$4 sm:$0xff]   ;;  %v17074_v3 = vld [vmem:[%s18028_s3 + $0xa4] ss:$16 sps:$4 sm:$0xff]  }
 0xbd4   :  { %v7835_v25 = vmul.f32 %v7832_v52, %v16763_v38  ;;  %v16920_v38 = vld [vmem:[#allocation6 + $0xa8] ss:$16 sps:$4 sm:$0xff]   ;;  %v7833_v39 = vadd.f32 0.5, %v7830_v13  ;;  %18453 = vst [vmem:[#allocation66_spill] sm:$0xff] %v17069_v48  ;;  %18454 = vst [vmem:[#allocation38_spill] sm:$0xff] %v17074_v3 }
 0xbd5   :  { %8329 = vmatpush1.bf16.msra.mxu0 %v16892_v34  ;;  %8370 = vmatpush1.bf16.msra.mxu1 %v16754_v44  ;;  %v16918_v44 = vld [vmem:[#allocation6 + $0xa0] ss:$16 sps:$4 sm:$0xff]   ;;  %v17079_v55 = vld [vmem:[%s18028_s3 + $0xa8] ss:$16 sps:$4 sm:$0xff]   ;;  %v17084_v52 = vld [vmem:[%s18028_s3 + $0xac] ss:$16 sps:$4 sm:$0xff]  }
 0xbd6   :  { %8330 = vmatprep.subr.bf16.mxu0 %v16896_v6  ;;  %8371 = vmatprep.subr.bf16.mxu1 %v16898_v5  ;;  %v16913_v49 = vadd.f32 %v7836_v14, %v7835_v25  ;;  %v17094_v14 = vld [vmem:[%s18028_s3 + $0xcc] ss:$16 sps:$4 sm:$0xff]   ;;  %v17099_v25 = vld [vmem:[%s18028_s3 + $0xc8] ss:$16 sps:$4 sm:$0xff]  }
 0xbd7   :  { %v17113_v0 = vld [vmem:[%s18028_s3 + $0xe8] ss:$16 sps:$4 sm:$0xff]  }
 0xbd8   :  { %13725 = vtanh.f32 %v16913_v49 }
 0xbd9   :  { %8331 = vmatpush1.bf16.msra.mxu0 %v16903_v45  ;;  %8372 = vmatpush1.bf16.msra.mxu1 %v16905_v63 }
 0xbda   :  { %8332 = vmatprep.subr.bf16.mxu0 %v16909_v24  ;;  %8373 = vmatprep.subr.bf16.mxu1 %v16911_v33 }
 0xbdd   :  { %8333 = vmatpush1.bf16.msra.mxu0 %v16918_v44  ;;  %8374 = vmatpush1.bf16.msra.mxu1 %v16920_v38 }
 0xbde   :  { %8334 = vmatprep.subr.bf16.mxu0 %v16924_v23  ;;  %8375 = vmatprep.subr.bf16.mxu1 %v16926_v16 }
 0xbe1   :  { %8335 = vmatpush1.bf16.msra.mxu0 %v16930_v62  ;;  %8376 = vmatpush1.bf16.msra.mxu1 %v16932_v36 }
 0xbe2   :  { %8336 = vmatprep.subr.bf16.mxu0 %v16936_v4  ;;  %8377 = vmatprep.subr.bf16.mxu1 %v16938_v56  ;;  %v13726_v17 = vpop.eup %13725 }
 0xbe3   :  { %v16948_v1 = vmul.f32 %v13726_v17, %v7833_v39  ;;  %v18455_v39 = vld [vmem:[#allocation19_spill] sm:$0xff] }
 0xbe5   :  { %18444 = vst [vmem:[#allocation62_spill] sm:$0xff] %v16948_v1  ;;  %8337 = vmatpush1.bf16.msra.mxu0 %v16942_v32  ;;  %8378 = vmatpush1.bf16.msra.mxu1 %v16944_v9  ;;  %v8129_v51 = vpack.c.bf16 %v16948_v1, %v16948_v1  ;;  %v18457_v1 = vld [vmem:[#allocation21_spill] sm:$0xff] }
 0xbe6   :  { %8643 = vmatprep.subr.bf16.mxu0 %v16806_v7  ;;  %8684 = vmatprep.subr.bf16.mxu1 %v16961_v11  ;;  %v16973_v7 = vld [vmem:[%s18028_s3 + $0x24] ss:$16 sps:$4 sm:$0xff]  }
 0xbe7   :  { %18445 = vst [vmem:[#allocation34_spill] sm:$0xff] %v16973_v7 }
 0xbe8   :  { %8355 = vmatmul.mubr.bf16.vlgmr.msra.gmra.mrb[140].mxu0 %v8129_v51  ;;  %8396 = vmatmul.mubr.bf16.vlgmr.msra.gmra.mrb[172].mxu1 %v8129_v51  ;;  %v18456_v51 = vld [vmem:[#allocation82_spill] sm:$0xff] }
 0xbe9   :  { %8644 = vmatpush1.bf16.msra.mxu0 %v16811_v26  ;;  %8675 = vmatprep.mubr.bf16.mxu0 %v18252_v58  ;;  %v16978_v26 = vld [vmem:[%s18028_s3 + $0x2c] ss:$16 sps:$4 sm:$0xff]  }
 0xbea   :  { %8716 = vmatprep.mubr.bf16.mxu1 %v18252_v58  ;;  %8685 = vmatpush1.bf16.msra.mxu1 %v16966_v53 }
 0xbeb   :  { %8645 = vmatprep.subr.bf16.mxu0 %v16973_v7  ;;  %8686 = vmatprep.subr.bf16.mxu1 %v16978_v26 }
 0xbed   :  { %8646 = vmatpush1.bf16.msra.mxu0 %v16983_v21 }
 0xbee   :  { %8687 = vmatpush1.bf16.msra.mxu1 %v16988_v59  ;;  %8647 = vmatprep.subr.bf16.mxu0 %v16997_v10 }
 0xbef   :  { %8688 = vmatprep.subr.bf16.mxu1 %v17002_v15 }
 0xbf1   :  { %8648 = vmatpush1.bf16.msra.mxu0 %v17007_v50 }
 0xbf2   :  { %8689 = vmatpush1.bf16.msra.mxu1 %v17012_v19  ;;  %8649 = vmatprep.subr.bf16.mxu0 %v17021_v43 }
 0xbf3   :  { %8690 = vmatprep.subr.bf16.mxu1 %v17026_v29 }
 0xbf5   :  { %8650 = vmatpush1.bf16.msra.mxu0 %v17031_v30 }
 0xbf6   :  { %8691 = vmatpush1.bf16.msra.mxu1 %v17036_v57  ;;  %8651 = vmatprep.subr.bf16.mxu0 %v17045_v28 }
 0xbf7   :  { %8692 = vmatprep.subr.bf16.mxu1 %v17050_v27 }
 0xbf9   :  { %8652 = vmatpush1.bf16.msra.mxu0 %v17055_v37 }
 0xbfa   :  { %8693 = vmatpush1.bf16.msra.mxu1 %v17060_v42  ;;  %8653 = vmatprep.subr.bf16.mxu0 %v17074_v3  ;;  %v18458_v3 = vld [vmem:[#allocation84_spill] sm:$0xff] }
 0xbfb   :  { %8694 = vmatprep.subr.bf16.mxu1 %v17084_v52 }
 0xbfd   :  { %8654 = vmatpush1.bf16.msra.mxu0 %v17069_v48 }
 0xbfe   :  { %8695 = vmatpush1.bf16.msra.mxu1 %v17079_v55  ;;  %8655 = vmatprep.subr.bf16.mxu0 %v16828_v12  ;;  %v17108_v12 = vld [vmem:[%s18028_s3 + $0xec] ss:$16 sps:$4 sm:$0xff]  }
 0xbff   :  { %8696 = vmatprep.subr.bf16.mxu1 %v17094_v14 }
 0xc01   :  { %8656 = vmatpush1.bf16.msra.mxu0 %v16833_v41  ;;  %v17119_v41 = vld [vmem:[#allocation6 + $0xc] ss:$16 sps:$4 sm:$0xff]  }
 0xc02   :  { %8697 = vmatpush1.bf16.msra.mxu1 %v17099_v25  ;;  %8657 = vmatprep.subr.bf16.mxu0 %v16840_v61 }
 0xc03   :  { %8698 = vmatprep.subr.bf16.mxu1 %v17108_v12 }
 0xc05   :  { %8658 = vmatpush1.bf16.msra.mxu0 %v16845_v20 }
 0xc06   :  { %8699 = vmatpush1.bf16.msra.mxu1 %v17113_v0  ;;  %8926 = vmatprep.subr.bf16.mxu0 %v16849_v46 }
 0xc07   :  { %8967 = vmatprep.subr.bf16.mxu1 %v17119_v41 }
 0xc9b   :  { %v8073_v61 = vpop.f32.mrb[136].mxu0  ;;  %v8114_v13 = vpop.f32.mrb[168].mxu1 }
 0xc9c   :  { %v8121_v17 = vadd.f32 %v8073_v61, %v18455_v39  ;;  %v8123_v22 = vadd.f32 %v8114_v13, %v18456_v51  ;;  %v8075_v18 = vpop.f32.mrb[137].mxu0  ;;  %v8116_v54 = vpop.f32.mrb[169].mxu1 }
 0xc9d   :  { %v8122_v48 = vadd.f32 %v8075_v18, %v18457_v1  ;;  %v8124_v20 = vadd.f32 %v8116_v54, %v18458_v3  ;;  %v8077_v37 = vpop.f32.mrb[138].mxu0  ;;  %v8118_v28 = vpop.f32.mrb[170].mxu1 }
 0xc9e   :  { %v8408_v30 = vmul.f32 0.5, %v8121_v17  ;;  %v8078_v46 = vpop.f32.mrb[139].mxu0  ;;  %v8119_v43 = vpop.f32.mrb[171].mxu1  ;;  %v8410_v10 = vmul.f32 0.5, %v8123_v22  ;;  %v18460_v22 = vld [vmem:[#allocation52_spill] sm:$0xff] }
 0xc9f   :  { %v8409_v50 = vmul.f32 0.5, %v8122_v48 }
 0xca0   :  { %13727 = vtanh.f32 %v8408_v30 }
 0xca1   :  { %13729 = vtanh.f32 %v8409_v50 }
 0xca2   :  { %13731 = vtanh.f32 %v8124_v20  ;;  %v18462_v20 = vld [vmem:[#allocation55_spill] sm:$0xff] }
 0xca3   :  { %13733 = vtanh.f32 %v8410_v10 }
 0xcaa   :  { %v13728_v21 = vpop.eup %13727 }
 0xcab   :  { %v8414_v61 = vmul.f32 0.5, %v13728_v21  ;;  %v13730_v39 = vpop.eup %13729  ;;  %v18461_v21 = vld [vmem:[#allocation106_spill] sm:$0xff] }
 0xcac   :  { %v8415_v51 = vmul.f32 0.5, %v13730_v39  ;;  %v13732_v7 = vpop.eup %13731 }
 0xcad   :  { %v8417_v13 = vadd.f32 0.5, %v8414_v61  ;;  %v13734_v43 = vpop.eup %13733  ;;  %v18463_v61 = vld [vmem:[#allocation107_spill] sm:$0xff] }
 0xcae   :  { %v8418_v18 = vadd.f32 0.5, %v8415_v51  ;;  %v8416_v30 = vmul.f32 0.5, %v13734_v43 }
 0xcaf   :  { %v8422_v1 = vmul.f32 %v13732_v7, %v8417_v13 }
 0xcb0   :  { %v8421_v54 = vmul.f32 %v8418_v18, %v16857_v31  ;;  %v8419_v13 = vadd.f32 0.5, %v8416_v30  ;;  %v17144_v30 = vld [vmem:[#allocation6 + $0x28] ss:$16 sps:$4 sm:$0xff]  }
 0xcb2   :  { %v17127_v28 = vadd.f32 %v8422_v1, %v8421_v54 }
 0xcb4   :  { %18459 = vst [vmem:[#allocation68_spill] sm:$0xff] %v17127_v28  ;;  %13735 = vtanh.f32 %v17127_v28 }
 0xcbb   :  { %v8356_v50 = vpop.f32.mrb[140].mxu0  ;;  %v8397_v37 = vpop.f32.mrb[172].mxu1 }
 0xcbc   :  { %v8404_v48 = vadd.f32 %v8356_v50, %v18460_v22  ;;  %v8406_v3 = vadd.f32 %v8397_v37, %v18461_v21  ;;  %v8358_v17 = vpop.f32.mrb[141].mxu0  ;;  %v8399_v10 = vpop.f32.mrb[173].mxu1  ;;  %v17136_v50 = vld [vmem:[#allocation6 + $0x8] ss:$16 sps:$4 sm:$0xff]   ;;  %v17140_v22 = vld [vmem:[#allocation6 + $0x2c] ss:$16 sps:$4 sm:$0xff]  }
 0xcbd   :  { %v8405_v46 = vadd.f32 %v8358_v17, %v18462_v20  ;;  %v8407_v7 = vadd.f32 %v8399_v10, %v18463_v61  ;;  %v8360_v39 = vpop.f32.mrb[142].mxu0  ;;  %v8401_v31 = vpop.f32.mrb[174].mxu1 }
 0xcbe   :  { %v8426_v51 = vmul.f32 0.5, %v8404_v48  ;;  %v8361_v18 = vpop.f32.mrb[143].mxu0  ;;  %v8402_v1 = vpop.f32.mrb[175].mxu1  ;;  %v17148_v48 = vld [vmem:[#allocation6 + $0x4c] ss:$16 sps:$4 sm:$0xff]   ;;  %v8428_v21 = vmul.f32 0.5, %v8406_v3 }
 0xcbf   :  { %v13736_v54 = vpop.eup %13735  ;;  %v8427_v43 = vmul.f32 0.5, %v8405_v46 }
 0xcc0   :  { %13737 = vtanh.f32 %v8426_v51  ;;  %v17134_v28 = vmul.f32 %v13736_v54, %v8419_v13 }
 0xcc1   :  { %13739 = vtanh.f32 %v8427_v43 }
 0xcc2   :  { %18464 = vst [vmem:[#allocation71_spill] sm:$0xff] %v17134_v28  ;;  %v8450_v37 = vpack.c.bf16 %v17134_v28, %v17134_v28  ;;  %13741 = vtanh.f32 %v8407_v7 }
 0xcc3   :  { %13743 = vtanh.f32 %v8428_v21 }
 0xcc4   :  { %8676 = vmatmul.mubr.bf16.vlgmr.msra.gmra.mrb[144].mxu0 %v8450_v37  ;;  %8717 = vmatmul.mubr.bf16.vlgmr.msra.gmra.mrb[176].mxu1 %v8450_v37 }
 0xcc5   :  { %8927 = vmatpush1.bf16.msra.mxu0 %v16866_v47  ;;  %8968 = vmatpush1.bf16.msra.mxu1 %v17136_v50  ;;  %v17154_v47 = vld [vmem:[#allocation6 + $0x48] ss:$16 sps:$4 sm:$0xff]  }
 0xcc6   :  { %8928 = vmatprep.subr.bf16.mxu0 %v16870_v2  ;;  %8969 = vmatprep.subr.bf16.mxu1 %v17140_v22  ;;  %v17158_v2 = vld [vmem:[#allocation6 + $0x6c] ss:$16 sps:$4 sm:$0xff]  }
 0xcc7   :  { %8958 = vmatprep.mubr.bf16.mxu0 %v18252_v58  ;;  %8999 = vmatprep.mubr.bf16.mxu1 %v18252_v58 }
 0xcc9   :  { %8929 = vmatpush1.bf16.msra.mxu0 %v16874_v35  ;;  %8970 = vmatpush1.bf16.msra.mxu1 %v17144_v30  ;;  %v17162_v35 = vld [vmem:[#allocation6 + $0x68] ss:$16 sps:$4 sm:$0xff]  }
 0xcca   :  { %v13738_v17 = vpop.eup %13737  ;;  %8930 = vmatprep.subr.bf16.mxu0 %v16878_v40  ;;  %8971 = vmatprep.subr.bf16.mxu1 %v17148_v48 }
 0xccb   :  { %v8432_v10 = vmul.f32 0.5, %v13738_v17  ;;  %v13740_v20 = vpop.eup %13739 }
 0xccc   :  { %v8433_v61 = vmul.f32 0.5, %v13740_v20  ;;  %v13742_v3 = vpop.eup %13741 }
 0xccd   :  { %v8435_v46 = vadd.f32 0.5, %v8432_v10  ;;  %8931 = vmatpush1.bf16.msra.mxu0 %v16884_v8  ;;  %8972 = vmatpush1.bf16.msra.mxu1 %v17154_v47 }
 0xcce   :  { %8932 = vmatprep.subr.bf16.mxu0 %v16888_v60  ;;  %8973 = vmatprep.subr.bf16.mxu1 %v17158_v2  ;;  %v8436_v40 = vadd.f32 0.5, %v8433_v61  ;;  %v13744_v60 = vpop.eup %13743 }
 0xccf   :  { %v8440_v7 = vmul.f32 %v13742_v3, %v8435_v46  ;;  %v18480_v3 = vld [vmem:[#allocation68_spill] sm:$0xff] }
 0xcd0   :  { %v8439_v39 = vmul.f32 %v8436_v40, %v16913_v49  ;;  %v18466_v49 = vld [vmem:[#allocation34_spill] sm:$0xff] }
 0xcd1   :  { %8933 = vmatpush1.bf16.msra.mxu0 %v16892_v34  ;;  %8974 = vmatpush1.bf16.msra.mxu1 %v17162_v35  ;;  %v8434_v34 = vmul.f32 0.5, %v13744_v60 }
 0xcd2   :  { %8934 = vmatprep.subr.bf16.mxu0 %v16896_v6  ;;  %8975 = vmatprep.subr.bf16.mxu1 %v16898_v5  ;;  %v17171_v8 = vadd.f32 %v8440_v7, %v8439_v39 }
 0xcd3   :  { %v8437_v6 = vadd.f32 0.5, %v8434_v34 }
 0xcd4   :  { %13745 = vtanh.f32 %v17171_v8 }
 0xcd5   :  { %8935 = vmatpush1.bf16.msra.mxu0 %v16903_v45  ;;  %8976 = vmatpush1.bf16.msra.mxu1 %v16905_v63 }
 0xcd6   :  { %8936 = vmatprep.subr.bf16.mxu0 %v16909_v24  ;;  %8977 = vmatprep.subr.bf16.mxu1 %v16911_v33  ;;  %v17214_v24 = vld [vmem:[%s18028_s3 + $0x4] ss:$16 sps:$4 sm:$0xff]   ;;  %v17219_v33 = vld [vmem:[%s18028_s3] ss:$16 sps:$4 sm:$0xff]  }
 0xcd9   :  { %8937 = vmatpush1.bf16.msra.mxu0 %v16918_v44  ;;  %8978 = vmatpush1.bf16.msra.mxu1 %v16920_v38  ;;  %v18467_v44 = vld [vmem:[#allocation64_spill] sm:$0xff]  ;;  %v18468_v38 = vld [vmem:[#allocation58_spill] sm:$0xff] }
 0xcda   :  { %8938 = vmatprep.subr.bf16.mxu0 %v16924_v23  ;;  %8979 = vmatprep.subr.bf16.mxu1 %v16926_v16  ;;  %v18469_v23 = vld [vmem:[#allocation75_spill] sm:$0xff]  ;;  %v18470_v16 = vld [vmem:[#allocation116_spill] sm:$0xff] }
 0xcdd   :  { %8939 = vmatpush1.bf16.msra.mxu0 %v16930_v62  ;;  %8980 = vmatpush1.bf16.msra.mxu1 %v16932_v36  ;;  %v18471_v62 = vld [vmem:[#allocation77_spill] sm:$0xff] }
 0xcde   :  { %8940 = vmatprep.subr.bf16.mxu0 %v16936_v4  ;;  %8981 = vmatprep.subr.bf16.mxu1 %v16938_v56  ;;  %v13746_v5 = vpop.eup %13745  ;;  %v18472_v36 = vld [vmem:[#allocation117_spill] sm:$0xff]  ;;  %v18473_v4 = vld [vmem:[#allocation36_spill] sm:$0xff]  ;;  %v18474_v56 = vld [vmem:[#allocation38_spill] sm:$0xff] }
 0xcdf   :  { %v17186_v45 = vmul.f32 %v13746_v5, %v8437_v6  ;;  %v18481_v5 = vld [vmem:[#allocation48_spill] sm:$0xff] }
 0xce1   :  { %18465 = vst [vmem:[#allocation114_spill] sm:$0xff] %v17186_v45  ;;  %8941 = vmatpush1.bf16.msra.mxu0 %v16942_v32  ;;  %8982 = vmatpush1.bf16.msra.mxu1 %v16944_v9  ;;  %v8733_v63 = vpack.c.bf16 %v17186_v45, %v17186_v45  ;;  %v18475_v32 = vld [vmem:[#allocation66_spill] sm:$0xff]  ;;  %v17236_v9 = vld [vmem:[%s18028_s3 + $0xc4] ss:$16 sps:$4 sm:$0xff]  }
 0xce2   :  { %9288 = vmatprep.subr.bf16.mxu1 %v16961_v11  ;;  %9247 = vmatprep.subr.bf16.mxu0 %v17214_v24  ;;  %v17241_v11 = vld [vmem:[%s18028_s3 + $0xc0] ss:$16 sps:$4 sm:$0xff]  }
 0xce4   :  { %8959 = vmatmul.mubr.bf16.vlgmr.msra.gmra.mrb[148].mxu0 %v8733_v63  ;;  %9000 = vmatmul.mubr.bf16.vlgmr.msra.gmra.mrb[180].mxu1 %v8733_v63 }
 0xce5   :  { %9289 = vmatpush1.bf16.msra.mxu1 %v16966_v53  ;;  %9279 = vmatprep.mubr.bf16.mxu0 %v18252_v58  ;;  %v17248_v53 = vld [vmem:[%s18028_s3 + $0xe4] ss:$16 sps:$4 sm:$0xff]  }
 0xce6   :  { %9290 = vmatprep.subr.bf16.mxu1 %v16978_v26  ;;  %9320 = vmatprep.mubr.bf16.mxu1 %v18252_v58  ;;  %v17253_v26 = vld [vmem:[%s18028_s3 + $0xe0] ss:$16 sps:$4 sm:$0xff]  }
 0xce7   :  { %9248 = vmatpush1.bf16.msra.mxu0 %v17219_v33 }
 0xce8   :  { %9249 = vmatprep.subr.bf16.mxu0 %v18466_v49  ;;  %v18482_v49 = vld [vmem:[#allocation104_spill] sm:$0xff] }
 0xce9   :  { %9291 = vmatpush1.bf16.msra.mxu1 %v16988_v59  ;;  %v17257_v59 = vld [vmem:[#allocation6 + $0x4] ss:$16 sps:$4 sm:$0xff]  }
 0xcea   :  { %9292 = vmatprep.subr.bf16.mxu1 %v17002_v15 }
 0xceb   :  { %9250 = vmatpush1.bf16.msra.mxu0 %v18467_v44 }
 0xcec   :  { %9251 = vmatprep.subr.bf16.mxu0 %v18468_v38 }
 0xced   :  { %9293 = vmatpush1.bf16.msra.mxu1 %v17012_v19 }
 0xcee   :  { %9294 = vmatprep.subr.bf16.mxu1 %v17026_v29  ;;  %v18476_v29 = vld [vmem:[#allocation23_spill] sm:$0xff] }
 0xcef   :  { %9252 = vmatpush1.bf16.msra.mxu0 %v18469_v23 }
 0xcf0   :  { %9253 = vmatprep.subr.bf16.mxu0 %v18470_v16  ;;  %v18483_v16 = vld [vmem:[#allocation50_spill] sm:$0xff] }
 0xcf1   :  { %9295 = vmatpush1.bf16.msra.mxu1 %v17036_v57 }
 0xcf2   :  { %9296 = vmatprep.subr.bf16.mxu1 %v17050_v27  ;;  %v18477_v27 = vld [vmem:[#allocation86_spill] sm:$0xff] }
 0xcf3   :  { %9254 = vmatpush1.bf16.msra.mxu0 %v18471_v62 }
 0xcf4   :  { %9255 = vmatprep.subr.bf16.mxu0 %v18472_v36  ;;  %v18484_v36 = vld [vmem:[#allocation105_spill] sm:$0xff] }
 0xcf5   :  { %9297 = vmatpush1.bf16.msra.mxu1 %v17060_v42 }
 0xcf6   :  { %9298 = vmatprep.subr.bf16.mxu1 %v17084_v52 }
 0xcf7   :  { %9256 = vmatpush1.bf16.msra.mxu0 %v18473_v4 }
 0xcf8   :  { %9257 = vmatprep.subr.bf16.mxu0 %v18474_v56 }
 0xcf9   :  { %9299 = vmatpush1.bf16.msra.mxu1 %v17079_v55 }
 0xcfa   :  { %9300 = vmatprep.subr.bf16.mxu1 %v17094_v14  ;;  %v18478_v14 = vld [vmem:[#allocation25_spill] sm:$0xff] }
 0xcfb   :  { %9258 = vmatpush1.bf16.msra.mxu0 %v18475_v32 }
 0xcfc   :  { %9259 = vmatprep.subr.bf16.mxu0 %v17236_v9 }
 0xcfd   :  { %9301 = vmatpush1.bf16.msra.mxu1 %v17099_v25 }
 0xcfe   :  { %9302 = vmatprep.subr.bf16.mxu1 %v17108_v12  ;;  %v18479_v12 = vld [vmem:[#allocation88_spill] sm:$0xff] }
 0xcff   :  { %9260 = vmatpush1.bf16.msra.mxu0 %v17241_v11 }
 0xd00   :  { %9261 = vmatprep.subr.bf16.mxu0 %v17248_v53 }
 0xd01   :  { %9303 = vmatpush1.bf16.msra.mxu1 %v17113_v0 }
 0xd02   :  { %9571 = vmatprep.subr.bf16.mxu1 %v17119_v41 }
 0xd03   :  { %9262 = vmatpush1.bf16.msra.mxu0 %v17253_v26 }
 0xd04   :  { %9530 = vmatprep.subr.bf16.mxu0 %v17257_v59 }
 0xd97   :  { %v8677_v15 = vpop.f32.mrb[144].mxu0  ;;  %v8718_v19 = vpop.f32.mrb[176].mxu1 }
 0xd98   :  { %v8725_v57 = vadd.f32 %v8677_v15, %v18476_v29  ;;  %v8727_v42 = vadd.f32 %v8718_v19, %v18477_v27  ;;  %v8679_v55 = vpop.f32.mrb[145].mxu0  ;;  %v8720_v52 = vpop.f32.mrb[177].mxu1 }
 0xd99   :  { %v8726_v25 = vadd.f32 %v8679_v55, %v18478_v14  ;;  %v8728_v0 = vadd.f32 %v8720_v52, %v18479_v12  ;;  %v8681_v41 = vpop.f32.mrb[146].mxu0  ;;  %v8722_v31 = vpop.f32.mrb[178].mxu1  ;;  %v17274_v52 = vld [vmem:[#allocation6] ss:$16 sps:$4 sm:$0xff]  }
 0xd9a   :  { %v9012_v13 = vmul.f32 0.5, %v8725_v57  ;;  %v8682_v51 = vpop.f32.mrb[147].mxu0  ;;  %v8723_v18 = vpop.f32.mrb[179].mxu1  ;;  %v9014_v54 = vmul.f32 0.5, %v8727_v42  ;;  %v17282_v12 = vld [vmem:[#allocation6 + $0x20] ss:$16 sps:$4 sm:$0xff]  }
 0xd9b   :  { %v9013_v1 = vmul.f32 0.5, %v8726_v25  ;;  %v17278_v25 = vld [vmem:[#allocation6 + $0x24] ss:$16 sps:$4 sm:$0xff]   ;;  %v17292_v31 = vld [vmem:[#allocation6 + $0x40] ss:$16 sps:$4 sm:$0xff]  }
 0xd9c   :  { %13747 = vtanh.f32 %v9012_v13  ;;  %v17296_v13 = vld [vmem:[#allocation6 + $0x64] ss:$16 sps:$4 sm:$0xff]  }
 0xd9d   :  { %13749 = vtanh.f32 %v9013_v1 }
 0xd9e   :  { %13751 = vtanh.f32 %v8728_v0  ;;  %v17286_v0 = vld [vmem:[#allocation6 + $0x44] ss:$16 sps:$4 sm:$0xff]  }
 0xd9f   :  { %13753 = vtanh.f32 %v9014_v54  ;;  %v17300_v54 = vld [vmem:[#allocation6 + $0x60] ss:$16 sps:$4 sm:$0xff]  }
 0xda6   :  { %v13748_v43 = vpop.eup %13747 }
 0xda7   :  { %v9018_v37 = vmul.f32 0.5, %v13748_v43  ;;  %v13750_v21 = vpop.eup %13749  ;;  %v17304_v43 = vld [vmem:[#allocation6 + $0x84] ss:$16 sps:$4 sm:$0xff]  }
 0xda8   :  { %v9019_v10 = vmul.f32 0.5, %v13750_v21  ;;  %v13752_v20 = vpop.eup %13751 }
 0xda9   :  { %v9021_v17 = vadd.f32 0.5, %v9018_v37  ;;  %v13754_v39 = vpop.eup %13753 }
 0xdaa   :  { %v9022_v46 = vadd.f32 0.5, %v9019_v10  ;;  %v9020_v60 = vmul.f32 0.5, %v13754_v39  ;;  %v17313_v10 = vld [vmem:[#allocation6 + $0x88] ss:$16 sps:$4 sm:$0xff]   ;;  %v17338_v39 = vld [vmem:[#allocation6 + $0xc0] ss:$16 sps:$4 sm:$0xff]  }
 0xdab   :  { %v9026_v61 = vmul.f32 %v13752_v20, %v9021_v17  ;;  %v17319_v20 = vld [vmem:[#allocation6 + $0xac] ss:$16 sps:$4 sm:$0xff]  }
 0xdac   :  { %v9025_v40 = vmul.f32 %v9022_v46, %v18480_v3  ;;  %v9023_v15 = vadd.f32 0.5, %v9020_v60  ;;  %v17334_v3 = vld [vmem:[#allocation6 + $0xcc] ss:$16 sps:$4 sm:$0xff]   ;;  %v17340_v60 = vld [vmem:[#allocation6 + $0xc8] ss:$16 sps:$4 sm:$0xff]  }
 0xdae   :  { %v17265_v7 = vadd.f32 %v9026_v61, %v9025_v40  ;;  %v17332_v61 = vld [vmem:[#allocation6 + $0xc4] ss:$16 sps:$4 sm:$0xff]  }
 0xdb0   :  { %13755 = vtanh.f32 %v17265_v7 }
 0xdb7   :  { %v8960_v34 = vpop.f32.mrb[148].mxu0  ;;  %v9001_v6 = vpop.f32.mrb[180].mxu1 }
 0xdb8   :  { %v9008_v63 = vadd.f32 %v8960_v34, %v18481_v5  ;;  %v9010_v44 = vadd.f32 %v9001_v6, %v18482_v49  ;;  %v8962_v38 = vpop.f32.mrb[149].mxu0  ;;  %v9003_v23 = vpop.f32.mrb[181].mxu1  ;;  %v17344_v6 = vld [vmem:[#allocation6 + $0xe4] ss:$16 sps:$4 sm:$0xff]   ;;  %v17346_v5 = vld [vmem:[#allocation6 + $0xec] ss:$16 sps:$4 sm:$0xff]  }
 0xdb9   :  { %v9009_v62 = vadd.f32 %v8962_v38, %v18483_v16  ;;  %v9011_v4 = vadd.f32 %v9003_v23, %v18484_v36  ;;  %v8964_v56 = vpop.f32.mrb[150].mxu0  ;;  %v9005_v32 = vpop.f32.mrb[182].mxu1  ;;  %v17352_v49 = vld [vmem:[#allocation6 + $0xe8] ss:$16 sps:$4 sm:$0xff]  }
 0xdba   :  { %v9030_v19 = vmul.f32 0.5, %v9008_v63  ;;  %v8965_v29 = vpop.f32.mrb[151].mxu0  ;;  %v9006_v57 = vpop.f32.mrb[183].mxu1  ;;  %v9032_v41 = vmul.f32 0.5, %v9010_v44  ;;  %v17350_v63 = vld [vmem:[#allocation6 + $0xe0] ss:$16 sps:$4 sm:$0xff]  }
 0xdbb   :  { %v13756_v27 = vpop.eup %13755  ;;  %v9031_v42 = vmul.f32 0.5, %v9009_v62  ;;  %v17369_v62 = vld [vmem:[%s18028_s3 + $0xc] ss:$16 sps:$4 sm:$0xff]   ;;  %v17374_v36 = vld [vmem:[%s18028_s3 + $0x8] ss:$16 sps:$4 sm:$0xff]  }
 0xdbc   :  { %13757 = vtanh.f32 %v9030_v19  ;;  %v17272_v55 = vmul.f32 %v13756_v27, %v9023_v15  ;;  %v17396_v56 = vld [vmem:[%s18028_s3 + $0x28] ss:$16 sps:$4 sm:$0xff]   ;;  %v17405_v32 = vld [vmem:[%s18028_s3 + $0x44] ss:$16 sps:$4 sm:$0xff]   ;;  %v17410_v15 = vld [vmem:[%s18028_s3 + $0x4c] ss:$16 sps:$4 sm:$0xff]  }
 0xdbd   :  { %13759 = vtanh.f32 %v9031_v42  ;;  %18489 = vst [vmem:[#allocation51_spill] sm:$0xff] %v17405_v32  ;;  %v17415_v19 = vld [vmem:[%s18028_s3 + $0x40] ss:$16 sps:$4 sm:$0xff]   ;;  %v17420_v29 = vld [vmem:[%s18028_s3 + $0x48] ss:$16 sps:$4 sm:$0xff]  }
 0xdbe   :  { %18485 = vst [vmem:[#allocation73_spill] sm:$0xff] %v17272_v55  ;;  %v9054_v14 = vpack.c.bf16 %v17272_v55, %v17272_v55  ;;  %13761 = vtanh.f32 %v9011_v4  ;;  %v17391_v4 = vld [vmem:[%s18028_s3 + $0x20] ss:$16 sps:$4 sm:$0xff]   ;;  %18490 = vst [vmem:[#allocation26_spill] sm:$0xff] %v17415_v19  ;;  %v17429_v57 = vld [vmem:[%s18028_s3 + $0x64] ss:$16 sps:$4 sm:$0xff]  }
 0xdbf   :  { %13763 = vtanh.f32 %v9032_v41  ;;  %18488 = vst [vmem:[#allocation24_spill] sm:$0xff] %v17391_v4  ;;  %18491 = vst [vmem:[#allocation54_spill] sm:$0xff] %v17429_v57  ;;  %v17434_v27 = vld [vmem:[%s18028_s3 + $0x6c] ss:$16 sps:$4 sm:$0xff]   ;;  %v17439_v42 = vld [vmem:[%s18028_s3 + $0x60] ss:$16 sps:$4 sm:$0xff]  }
 0xdc0   :  { %9280 = vmatmul.mubr.bf16.vlgmr.msra.gmra.mrb[152].mxu0 %v9054_v14  ;;  %9321 = vmatmul.mubr.bf16.vlgmr.msra.gmra.mrb[184].mxu1 %v9054_v14  ;;  %18492 = vst [vmem:[#allocation124_spill] sm:$0xff] %v17439_v42  ;;  %v17444_v14 = vld [vmem:[%s18028_s3 + $0x68] ss:$16 sps:$4 sm:$0xff]   ;;  %v17453_v41 = vld [vmem:[%s18028_s3 + $0x84] ss:$16 sps:$4 sm:$0xff]  }
 0xdc1   :  { %9531 = vmatpush1.bf16.msra.mxu0 %v17274_v52  ;;  %9572 = vmatpush1.bf16.msra.mxu1 %v17136_v50  ;;  %18493 = vst [vmem:[#allocation83_spill] sm:$0xff] %v17453_v41 }
 0xdc2   :  { %9532 = vmatprep.subr.bf16.mxu0 %v17278_v25  ;;  %9573 = vmatprep.subr.bf16.mxu1 %v17140_v22 }
 0xdc3   :  { %9562 = vmatprep.mubr.bf16.mxu0 %v18252_v58  ;;  %9603 = vmatprep.mubr.bf16.mxu1 %v18252_v58 }
 0xdc5   :  { %9533 = vmatpush1.bf16.msra.mxu0 %v17282_v12  ;;  %9574 = vmatpush1.bf16.msra.mxu1 %v17144_v30 }
 0xdc6   :  { %v13758_v50 = vpop.eup %13757  ;;  %9534 = vmatprep.subr.bf16.mxu0 %v17286_v0  ;;  %9575 = vmatprep.subr.bf16.mxu1 %v17148_v48  ;;  %v17306_v48 = vld [vmem:[#allocation6 + $0x8c] ss:$16 sps:$4 sm:$0xff]  }
 0xdc7   :  { %v9036_v22 = vmul.f32 0.5, %v13758_v50  ;;  %v13760_v51 = vpop.eup %13759  ;;  %v17458_v50 = vld [vmem:[%s18028_s3 + $0x8c] ss:$16 sps:$4 sm:$0xff]  }
 0xdc8   :  { %v9037_v1 = vmul.f32 0.5, %v13760_v51  ;;  %v13762_v30 = vpop.eup %13761  ;;  %v17468_v51 = vld [vmem:[%s18028_s3 + $0x88] ss:$16 sps:$4 sm:$0xff]  }
 0xdc9   :  { %v9039_v18 = vadd.f32 0.5, %v9036_v22  ;;  %9535 = vmatpush1.bf16.msra.mxu0 %v17292_v31  ;;  %9576 = vmatpush1.bf16.msra.mxu1 %v17154_v47  ;;  %v17311_v47 = vld [vmem:[#allocation6 + $0x80] ss:$16 sps:$4 sm:$0xff]   ;;  %v13764_v40 = vpop.eup %13763 }
 0xdca   :  { %9536 = vmatprep.subr.bf16.mxu0 %v17296_v13  ;;  %9577 = vmatprep.subr.bf16.mxu1 %v17158_v2  ;;  %v9040_v37 = vadd.f32 0.5, %v9037_v1  ;;  %v17317_v2 = vld [vmem:[#allocation6 + $0xa4] ss:$16 sps:$4 sm:$0xff]   ;;  %v9038_v34 = vmul.f32 0.5, %v13764_v40  ;;  %v17463_v22 = vld [vmem:[%s18028_s3 + $0x80] ss:$16 sps:$4 sm:$0xff]  }
 0xdcb   :  { %v9044_v21 = vmul.f32 %v13762_v30, %v9039_v18  ;;  %18494 = vst [vmem:[#allocation120_spill] sm:$0xff] %v17463_v22  ;;  %v17477_v18 = vld [vmem:[%s18028_s3 + $0xa0] ss:$16 sps:$4 sm:$0xff]   ;;  %v17482_v1 = vld [vmem:[%s18028_s3 + $0xa4] ss:$16 sps:$4 sm:$0xff]  }
 0xdcc   :  { %v9043_v17 = vmul.f32 %v9040_v37, %v17171_v8  ;;  %v17328_v8 = vld [vmem:[#allocation6 + $0xa8] ss:$16 sps:$4 sm:$0xff]   ;;  %v9041_v44 = vadd.f32 0.5, %v9038_v34  ;;  %18495 = vst [vmem:[#allocation121_spill] sm:$0xff] %v17477_v18  ;;  %18496 = vst [vmem:[#allocation85_spill] sm:$0xff] %v17482_v1 }
 0xdcd   :  { %9537 = vmatpush1.bf16.msra.mxu0 %v17300_v54  ;;  %9578 = vmatpush1.bf16.msra.mxu1 %v17162_v35  ;;  %v17326_v35 = vld [vmem:[#allocation6 + $0xa0] ss:$16 sps:$4 sm:$0xff]   ;;  %v17487_v30 = vld [vmem:[%s18028_s3 + $0xa8] ss:$16 sps:$4 sm:$0xff]   ;;  %v17492_v37 = vld [vmem:[%s18028_s3 + $0xac] ss:$16 sps:$4 sm:$0xff]  }
 0xdce   :  { %9538 = vmatprep.subr.bf16.mxu0 %v17304_v43  ;;  %9579 = vmatprep.subr.bf16.mxu1 %v17306_v48  ;;  %v17321_v46 = vadd.f32 %v9044_v21, %v9043_v17  ;;  %v17502_v21 = vld [vmem:[%s18028_s3 + $0xcc] ss:$16 sps:$4 sm:$0xff]   ;;  %v17507_v17 = vld [vmem:[%s18028_s3 + $0xc8] ss:$16 sps:$4 sm:$0xff]  }
 0xdcf   :  { %v17521_v40 = vld [vmem:[%s18028_s3 + $0xe8] ss:$16 sps:$4 sm:$0xff]  }
 0xdd0   :  { %13765 = vtanh.f32 %v17321_v46 }
 0xdd1   :  { %9539 = vmatpush1.bf16.msra.mxu0 %v17311_v47  ;;  %9580 = vmatpush1.bf16.msra.mxu1 %v17313_v10 }
 0xdd2   :  { %9540 = vmatprep.subr.bf16.mxu0 %v17317_v2  ;;  %9581 = vmatprep.subr.bf16.mxu1 %v17319_v20 }
 0xdd5   :  { %9541 = vmatpush1.bf16.msra.mxu0 %v17326_v35  ;;  %9582 = vmatpush1.bf16.msra.mxu1 %v17328_v8 }
 0xdd6   :  { %9542 = vmatprep.subr.bf16.mxu0 %v17332_v61  ;;  %9583 = vmatprep.subr.bf16.mxu1 %v17334_v3 }
 0xdd9   :  { %9543 = vmatpush1.bf16.msra.mxu0 %v17338_v39  ;;  %9584 = vmatpush1.bf16.msra.mxu1 %v17340_v60 }
 0xdda   :  { %9544 = vmatprep.subr.bf16.mxu0 %v17344_v6  ;;  %9585 = vmatprep.subr.bf16.mxu1 %v17346_v5  ;;  %v13766_v38 = vpop.eup %13765 }
 0xddb   :  { %v17356_v23 = vmul.f32 %v13766_v38, %v9041_v44  ;;  %v18497_v44 = vld [vmem:[#allocation27_spill] sm:$0xff] }
 0xddd   :  { %18486 = vst [vmem:[#allocation115_spill] sm:$0xff] %v17356_v23  ;;  %9545 = vmatpush1.bf16.msra.mxu0 %v17350_v63  ;;  %9586 = vmatpush1.bf16.msra.mxu1 %v17352_v49  ;;  %v9337_v16 = vpack.c.bf16 %v17356_v23, %v17356_v23  ;;  %v18499_v23 = vld [vmem:[#allocation29_spill] sm:$0xff] }
 0xdde   :  { %9851 = vmatprep.subr.bf16.mxu0 %v17214_v24  ;;  %9892 = vmatprep.subr.bf16.mxu1 %v17369_v62  ;;  %v17381_v24 = vld [vmem:[%s18028_s3 + $0x24] ss:$16 sps:$4 sm:$0xff]  }
 0xddf   :  { %18487 = vst [vmem:[#allocation45_spill] sm:$0xff] %v17381_v24 }
 0xde0   :  { %9563 = vmatmul.mubr.bf16.vlgmr.msra.gmra.mrb[156].mxu0 %v9337_v16  ;;  %9604 = vmatmul.mubr.bf16.vlgmr.msra.gmra.mrb[188].mxu1 %v9337_v16  ;;  %v18498_v16 = vld [vmem:[#allocation90_spill] sm:$0xff] }
 0xde1   :  { %9852 = vmatpush1.bf16.msra.mxu0 %v17219_v33  ;;  %9883 = vmatprep.mubr.bf16.mxu0 %v18252_v58  ;;  %v17386_v33 = vld [vmem:[%s18028_s3 + $0x2c] ss:$16 sps:$4 sm:$0xff]  }
 0xde2   :  { %9924 = vmatprep.mubr.bf16.mxu1 %v18252_v58  ;;  %9893 = vmatpush1.bf16.msra.mxu1 %v17374_v36 }
 0xde3   :  { %9853 = vmatprep.subr.bf16.mxu0 %v17381_v24  ;;  %9894 = vmatprep.subr.bf16.mxu1 %v17386_v33 }
 0xde5   :  { %9854 = vmatpush1.bf16.msra.mxu0 %v17391_v4 }
 0xde6   :  { %9895 = vmatpush1.bf16.msra.mxu1 %v17396_v56  ;;  %9855 = vmatprep.subr.bf16.mxu0 %v17405_v32 }
 0xde7   :  { %9896 = vmatprep.subr.bf16.mxu1 %v17410_v15 }
 0xde9   :  { %9856 = vmatpush1.bf16.msra.mxu0 %v17415_v19 }
 0xdea   :  { %9897 = vmatpush1.bf16.msra.mxu1 %v17420_v29  ;;  %9857 = vmatprep.subr.bf16.mxu0 %v17429_v57 }
 0xdeb   :  { %9898 = vmatprep.subr.bf16.mxu1 %v17434_v27 }
 0xded   :  { %9858 = vmatpush1.bf16.msra.mxu0 %v17439_v42 }
 0xdee   :  { %9899 = vmatpush1.bf16.msra.mxu1 %v17444_v14  ;;  %9859 = vmatprep.subr.bf16.mxu0 %v17453_v41 }
 0xdef   :  { %9900 = vmatprep.subr.bf16.mxu1 %v17458_v50 }
 0xdf1   :  { %9860 = vmatpush1.bf16.msra.mxu0 %v17463_v22 }
 0xdf2   :  { %9901 = vmatpush1.bf16.msra.mxu1 %v17468_v51  ;;  %9861 = vmatprep.subr.bf16.mxu0 %v17482_v1  ;;  %v18500_v1 = vld [vmem:[#allocation92_spill] sm:$0xff] }
 0xdf3   :  { %9902 = vmatprep.subr.bf16.mxu1 %v17492_v37 }
 0xdf5   :  { %9862 = vmatpush1.bf16.msra.mxu0 %v17477_v18 }
 0xdf6   :  { %9903 = vmatpush1.bf16.msra.mxu1 %v17487_v30  ;;  %9863 = vmatprep.subr.bf16.mxu0 %v17236_v9  ;;  %v17516_v9 = vld [vmem:[%s18028_s3 + $0xec] ss:$16 sps:$4 sm:$0xff]  }
 0xdf7   :  { %9904 = vmatprep.subr.bf16.mxu1 %v17502_v21 }
 0xdf9   :  { %9864 = vmatpush1.bf16.msra.mxu0 %v17241_v11  ;;  %v17527_v11 = vld [vmem:[#allocation6 + $0xc] ss:$16 sps:$4 sm:$0xff]  }
 0xdfa   :  { %9905 = vmatpush1.bf16.msra.mxu1 %v17507_v17  ;;  %9865 = vmatprep.subr.bf16.mxu0 %v17248_v53 }
 0xdfb   :  { %9906 = vmatprep.subr.bf16.mxu1 %v17516_v9 }
 0xdfd   :  { %9866 = vmatpush1.bf16.msra.mxu0 %v17253_v26 }
 0xdfe   :  { %9907 = vmatpush1.bf16.msra.mxu1 %v17521_v40  ;;  %10134 = vmatprep.subr.bf16.mxu0 %v17257_v59 }
 0xdff   :  { %10175 = vmatprep.subr.bf16.mxu1 %v17527_v11 }
 0xe93   :  { %v9281_v53 = vpop.f32.mrb[152].mxu0  ;;  %v9322_v34 = vpop.f32.mrb[184].mxu1 }
 0xe94   :  { %v9329_v38 = vadd.f32 %v9281_v53, %v18497_v44  ;;  %v9331_v55 = vadd.f32 %v9322_v34, %v18498_v16  ;;  %v9283_v28 = vpop.f32.mrb[153].mxu0  ;;  %v9324_v45 = vpop.f32.mrb[185].mxu1 }
 0xe95   :  { %v9330_v18 = vadd.f32 %v9283_v28, %v18499_v23  ;;  %v9332_v26 = vadd.f32 %v9324_v45, %v18500_v1  ;;  %v9285_v22 = vpop.f32.mrb[154].mxu0  ;;  %v9326_v41 = vpop.f32.mrb[186].mxu1 }
 0xe96   :  { %v9616_v42 = vmul.f32 0.5, %v9329_v38  ;;  %v9286_v59 = vpop.f32.mrb[155].mxu0  ;;  %v9327_v57 = vpop.f32.mrb[187].mxu1  ;;  %v9618_v32 = vmul.f32 0.5, %v9331_v55  ;;  %v18502_v55 = vld [vmem:[#allocation44_spill] sm:$0xff] }
 0xe97   :  { %v9617_v19 = vmul.f32 0.5, %v9330_v18 }
 0xe98   :  { %13767 = vtanh.f32 %v9616_v42 }
 0xe99   :  { %13769 = vtanh.f32 %v9617_v19 }
 0xe9a   :  { %13771 = vtanh.f32 %v9332_v26  ;;  %v18504_v26 = vld [vmem:[#allocation46_spill] sm:$0xff] }
 0xe9b   :  { %13773 = vtanh.f32 %v9618_v32 }
 0xea2   :  { %v13768_v4 = vpop.eup %13767 }
 0xea3   :  { %v9622_v53 = vmul.f32 0.5, %v13768_v4  ;;  %v13770_v44 = vpop.eup %13769  ;;  %v18503_v4 = vld [vmem:[#allocation102_spill] sm:$0xff] }
 0xea4   :  { %v9623_v16 = vmul.f32 0.5, %v13770_v44  ;;  %v13772_v24 = vpop.eup %13771 }
 0xea5   :  { %v9625_v34 = vadd.f32 0.5, %v9622_v53  ;;  %v13774_v57 = vpop.eup %13773  ;;  %v18505_v53 = vld [vmem:[#allocation103_spill] sm:$0xff] }
 0xea6   :  { %v9626_v28 = vadd.f32 0.5, %v9623_v16  ;;  %v9624_v42 = vmul.f32 0.5, %v13774_v57 }
 0xea7   :  { %v9630_v23 = vmul.f32 %v13772_v24, %v9625_v34 }
 0xea8   :  { %v9629_v45 = vmul.f32 %v9626_v28, %v17265_v7  ;;  %v9627_v34 = vadd.f32 0.5, %v9624_v42  ;;  %v17552_v42 = vld [vmem:[#allocation6 + $0x28] ss:$16 sps:$4 sm:$0xff]  }
 0xeaa   :  { %v17535_v41 = vadd.f32 %v9630_v23, %v9629_v45 }
 0xeac   :  { %18501 = vst [vmem:[#allocation11_spill] sm:$0xff] %v17535_v41  ;;  %13775 = vtanh.f32 %v17535_v41 }
 0xeb3   :  { %v9564_v19 = vpop.f32.mrb[156].mxu0  ;;  %v9605_v22 = vpop.f32.mrb[188].mxu1 }
 0xeb4   :  { %v9612_v18 = vadd.f32 %v9564_v19, %v18502_v55  ;;  %v9614_v1 = vadd.f32 %v9605_v22, %v18503_v4  ;;  %v9566_v38 = vpop.f32.mrb[157].mxu0  ;;  %v9607_v32 = vpop.f32.mrb[189].mxu1  ;;  %v17544_v19 = vld [vmem:[#allocation6 + $0x8] ss:$16 sps:$4 sm:$0xff]   ;;  %v17548_v55 = vld [vmem:[#allocation6 + $0x2c] ss:$16 sps:$4 sm:$0xff]  }
 0xeb5   :  { %v9613_v59 = vadd.f32 %v9566_v38, %v18504_v26  ;;  %v9615_v24 = vadd.f32 %v9607_v32, %v18505_v53  ;;  %v9568_v44 = vpop.f32.mrb[158].mxu0  ;;  %v9609_v7 = vpop.f32.mrb[190].mxu1 }
 0xeb6   :  { %v9634_v16 = vmul.f32 0.5, %v9612_v18  ;;  %v9569_v28 = vpop.f32.mrb[159].mxu0  ;;  %v9610_v23 = vpop.f32.mrb[191].mxu1  ;;  %v17556_v18 = vld [vmem:[#allocation6 + $0x4c] ss:$16 sps:$4 sm:$0xff]   ;;  %v9636_v4 = vmul.f32 0.5, %v9614_v1 }
 0xeb7   :  { %v13776_v45 = vpop.eup %13775  ;;  %v9635_v57 = vmul.f32 0.5, %v9613_v59 }
 0xeb8   :  { %13777 = vtanh.f32 %v9634_v16  ;;  %v17542_v41 = vmul.f32 %v13776_v45, %v9627_v34 }
 0xeb9   :  { %13779 = vtanh.f32 %v9635_v57 }
 0xeba   :  { %v9658_v22 = vpack.c.bf16 %v17542_v41, %v17542_v41  ;;  %13781 = vtanh.f32 %v9615_v24 }
 0xebb   :  { %13783 = vtanh.f32 %v9636_v4 }
 0xebc   :  { %9884 = vmatmul.mubr.bf16.vlgmr.msra.gmra.mrb[160].mxu0 %v9658_v22  ;;  %9925 = vmatmul.mubr.bf16.vlgmr.msra.gmra.mrb[192].mxu1 %v9658_v22 }
 0xebd   :  { %10135 = vmatpush1.bf16.msra.mxu0 %v17274_v52  ;;  %10176 = vmatpush1.bf16.msra.mxu1 %v17544_v19  ;;  %v17562_v52 = vld [vmem:[#allocation6 + $0x48] ss:$16 sps:$4 sm:$0xff]  }
 0xebe   :  { %10136 = vmatprep.subr.bf16.mxu0 %v17278_v25  ;;  %10177 = vmatprep.subr.bf16.mxu1 %v17548_v55  ;;  %v17566_v25 = vld [vmem:[#allocation6 + $0x6c] ss:$16 sps:$4 sm:$0xff]  }
 0xebf   :  { %10166 = vmatprep.mubr.bf16.mxu0 %v18252_v58  ;;  %10207 = vmatprep.mubr.bf16.mxu1 %v18252_v58 }
 0xec1   :  { %10137 = vmatpush1.bf16.msra.mxu0 %v17282_v12  ;;  %10178 = vmatpush1.bf16.msra.mxu1 %v17552_v42  ;;  %v17570_v12 = vld [vmem:[#allocation6 + $0x68] ss:$16 sps:$4 sm:$0xff]  }
 0xec2   :  { %v13778_v38 = vpop.eup %13777  ;;  %10138 = vmatprep.subr.bf16.mxu0 %v17286_v0  ;;  %10179 = vmatprep.subr.bf16.mxu1 %v17556_v18 }
 0xec3   :  { %v9640_v32 = vmul.f32 0.5, %v13778_v38  ;;  %v13780_v26 = vpop.eup %13779 }
 0xec4   :  { %v9641_v53 = vmul.f32 0.5, %v13780_v26  ;;  %v13782_v1 = vpop.eup %13781 }
 0xec5   :  { %v9643_v59 = vadd.f32 0.5, %v9640_v32  ;;  %10139 = vmatpush1.bf16.msra.mxu0 %v17292_v31  ;;  %10180 = vmatpush1.bf16.msra.mxu1 %v17562_v52 }
 0xec6   :  { %10140 = vmatprep.subr.bf16.mxu0 %v17296_v13  ;;  %10181 = vmatprep.subr.bf16.mxu1 %v17566_v25  ;;  %v9644_v0 = vadd.f32 0.5, %v9641_v53  ;;  %v13784_v13 = vpop.eup %13783 }
 0xec7   :  { %v9648_v24 = vmul.f32 %v13782_v1, %v9643_v59  ;;  %v18520_v1 = vld [vmem:[#allocation11_spill] sm:$0xff] }
 0xec8   :  { %v9647_v44 = vmul.f32 %v9644_v0, %v17321_v46  ;;  %v18506_v46 = vld [vmem:[#allocation45_spill] sm:$0xff] }
 0xec9   :  { %10141 = vmatpush1.bf16.msra.mxu0 %v17300_v54  ;;  %10182 = vmatpush1.bf16.msra.mxu1 %v17570_v12  ;;  %v9642_v54 = vmul.f32 0.5, %v13784_v13 }
 0xeca   :  { %10142 = vmatprep.subr.bf16.mxu0 %v17304_v43  ;;  %10183 = vmatprep.subr.bf16.mxu1 %v17306_v48  ;;  %v17579_v31 = vadd.f32 %v9648_v24, %v9647_v44 }
 0xecb   :  { %v9645_v43 = vadd.f32 0.5, %v9642_v54 }
 0xecc   :  { %13785 = vtanh.f32 %v17579_v31 }
 0xecd   :  { %10143 = vmatpush1.bf16.msra.mxu0 %v17311_v47  ;;  %10184 = vmatpush1.bf16.msra.mxu1 %v17313_v10 }
 0xece   :  { %10144 = vmatprep.subr.bf16.mxu0 %v17317_v2  ;;  %10185 = vmatprep.subr.bf16.mxu1 %v17319_v20  ;;  %v13448_v2 = vld [vmem:[%s18028_s3 + $0x4] ss:$16 sps:$4 sm:$0xff]   ;;  %v13446_v20 = vld [vmem:[%s18028_s3] ss:$16 sps:$4 sm:$0xff]  }
 0xed1   :  { %10145 = vmatpush1.bf16.msra.mxu0 %v17326_v35  ;;  %10186 = vmatpush1.bf16.msra.mxu1 %v17328_v8  ;;  %v18507_v35 = vld [vmem:[#allocation24_spill] sm:$0xff]  ;;  %v18508_v8 = vld [vmem:[#allocation51_spill] sm:$0xff] }
 0xed2   :  { %10146 = vmatprep.subr.bf16.mxu0 %v17332_v61  ;;  %10187 = vmatprep.subr.bf16.mxu1 %v17334_v3  ;;  %v18509_v61 = vld [vmem:[#allocation26_spill] sm:$0xff] }
 0xed3   :  { %v18510_v3 = vld [vmem:[#allocation54_spill] sm:$0xff] }
 0xed5   :  { %10147 = vmatpush1.bf16.msra.mxu0 %v17338_v39  ;;  %10188 = vmatpush1.bf16.msra.mxu1 %v17340_v60  ;;  %v18511_v39 = vld [vmem:[#allocation124_spill] sm:$0xff]  ;;  %v18512_v60 = vld [vmem:[#allocation83_spill] sm:$0xff] }
 0xed6   :  { %10148 = vmatprep.subr.bf16.mxu0 %v17344_v6  ;;  %10189 = vmatprep.subr.bf16.mxu1 %v17346_v5  ;;  %v13786_v48 = vpop.eup %13785  ;;  %v18513_v6 = vld [vmem:[#allocation120_spill] sm:$0xff]  ;;  %v18514_v5 = vld [vmem:[#allocation85_spill] sm:$0xff] }
 0xed7   :  { %v17594_v47 = vmul.f32 %v13786_v48, %v9645_v43  ;;  %v18521_v48 = vld [vmem:[#allocation41_spill] sm:$0xff] }
 0xed9   :  { %10149 = vmatpush1.bf16.msra.mxu0 %v17350_v63  ;;  %10190 = vmatpush1.bf16.msra.mxu1 %v17352_v49  ;;  %v9941_v10 = vpack.c.bf16 %v17594_v47, %v17594_v47  ;;  %v18515_v63 = vld [vmem:[#allocation121_spill] sm:$0xff] }
 0xeda   :  { %10496 = vmatprep.subr.bf16.mxu1 %v17369_v62  ;;  %10455 = vmatprep.subr.bf16.mxu0 %v13448_v2  ;;  %v13451_v49 = vld [vmem:[%s18028_s3 + $0xc4] ss:$16 sps:$4 sm:$0xff]   ;;  %v13449_v62 = vld [vmem:[%s18028_s3 + $0xc0] ss:$16 sps:$4 sm:$0xff]   ;;  %v18522_v2 = vld [vmem:[#allocation100_spill] sm:$0xff] }
 0xedc   :  { %10167 = vmatmul.mubr.bf16.vlgmr.msra.gmra.mrb[164].mxu0 %v9941_v10  ;;  %10208 = vmatmul.mubr.bf16.vlgmr.msra.gmra.mrb[196].mxu1 %v9941_v10 }
 0xedd   :  { %10497 = vmatpush1.bf16.msra.mxu1 %v17374_v36  ;;  %10487 = vmatprep.mubr.bf16.mxu0 %v18252_v58  ;;  %v13454_v36 = vld [vmem:[%s18028_s3 + $0xe4] ss:$16 sps:$4 sm:$0xff]  }
 0xede   :  { %10498 = vmatprep.subr.bf16.mxu1 %v17386_v33  ;;  %10528 = vmatprep.mubr.bf16.mxu1 %v18252_v58  ;;  %v13452_v33 = vld [vmem:[%s18028_s3 + $0xe0] ss:$16 sps:$4 sm:$0xff]  }
 0xedf   :  { %10456 = vmatpush1.bf16.msra.mxu0 %v13446_v20 }
 0xee0   :  { %10457 = vmatprep.subr.bf16.mxu0 %v18506_v46 }
 0xee1   :  { %10499 = vmatpush1.bf16.msra.mxu1 %v17396_v56  ;;  %v13457_v56 = vld [vmem:[#allocation6 + $0x4] ss:$16 sps:$4 sm:$0xff]  }
 0xee2   :  { %10500 = vmatprep.subr.bf16.mxu1 %v17410_v15 }
 0xee3   :  { %10458 = vmatpush1.bf16.msra.mxu0 %v18507_v35 }
 0xee4   :  { %10459 = vmatprep.subr.bf16.mxu0 %v18508_v8  ;;  %v18523_v8 = vld [vmem:[#allocation42_spill] sm:$0xff] }
 0xee5   :  { %10501 = vmatpush1.bf16.msra.mxu1 %v17420_v29 }
 0xee6   :  { %10502 = vmatprep.subr.bf16.mxu1 %v17434_v27  ;;  %v18516_v27 = vld [vmem:[#allocation31_spill] sm:$0xff] }
 0xee7   :  { %10460 = vmatpush1.bf16.msra.mxu0 %v18509_v61 }
 0xee8   :  { %10461 = vmatprep.subr.bf16.mxu0 %v18510_v3  ;;  %v18524_v3 = vld [vmem:[#allocation101_spill] sm:$0xff] }
 0xee9   :  { %10503 = vmatpush1.bf16.msra.mxu1 %v17444_v14 }
 0xeea   :  { %10504 = vmatprep.subr.bf16.mxu1 %v17458_v50  ;;  %v18517_v50 = vld [vmem:[#allocation94_spill] sm:$0xff] }
 0xeeb   :  { %10462 = vmatpush1.bf16.msra.mxu0 %v18511_v39 }
 0xeec   :  { %10463 = vmatprep.subr.bf16.mxu0 %v18512_v60 }
 0xeed   :  { %10505 = vmatpush1.bf16.msra.mxu1 %v17468_v51 }
 0xeee   :  { %10506 = vmatprep.subr.bf16.mxu1 %v17492_v37 }
 0xeef   :  { %10464 = vmatpush1.bf16.msra.mxu0 %v18513_v6 }
 0xef0   :  { %10465 = vmatprep.subr.bf16.mxu0 %v18514_v5 }
 0xef1   :  { %10507 = vmatpush1.bf16.msra.mxu1 %v17487_v30 }
 0xef2   :  { %10508 = vmatprep.subr.bf16.mxu1 %v17502_v21  ;;  %v18518_v21 = vld [vmem:[#allocation33_spill] sm:$0xff] }
 0xef3   :  { %10466 = vmatpush1.bf16.msra.mxu0 %v18515_v63 }
 0xef4   :  { %10467 = vmatprep.subr.bf16.mxu0 %v13451_v49 }
 0xef5   :  { %10509 = vmatpush1.bf16.msra.mxu1 %v17507_v17 }
 0xef6   :  { %10510 = vmatprep.subr.bf16.mxu1 %v17516_v9  ;;  %v18519_v9 = vld [vmem:[#allocation95_spill] sm:$0xff] }
 0xef7   :  { %10468 = vmatpush1.bf16.msra.mxu0 %v13449_v62 }
 0xef8   :  { %10469 = vmatprep.subr.bf16.mxu0 %v13454_v36 }
 0xef9   :  { %10511 = vmatpush1.bf16.msra.mxu1 %v17521_v40 }
 0xefa   :  { %10779 = vmatprep.subr.bf16.mxu1 %v17527_v11 }
 0xefb   :  { %10470 = vmatpush1.bf16.msra.mxu0 %v13452_v33 }
 0xefc   :  { %10738 = vmatprep.subr.bf16.mxu0 %v13457_v56 }
 0xf8f   :  { %v9885_v15 = vpop.f32.mrb[160].mxu0  ;;  %v9926_v29 = vpop.f32.mrb[192].mxu1 }
 0xf90   :  { %v9933_v14 = vadd.f32 %v9885_v15, %v18516_v27  ;;  %v9935_v51 = vadd.f32 %v9926_v29, %v18517_v50  ;;  %v9887_v30 = vpop.f32.mrb[161].mxu0  ;;  %v9928_v37 = vpop.f32.mrb[193].mxu1  ;;  %v13455_v15 = vld [vmem:[#allocation6] ss:$16 sps:$4 sm:$0xff]   ;;  %v13460_v27 = vld [vmem:[#allocation6 + $0x24] ss:$16 sps:$4 sm:$0xff]  }
 0xf91   :  { %v9934_v17 = vadd.f32 %v9887_v30, %v18518_v21  ;;  %v9936_v40 = vadd.f32 %v9928_v37, %v18519_v9  ;;  %v9889_v11 = vpop.f32.mrb[162].mxu0  ;;  %v9930_v7 = vpop.f32.mrb[194].mxu1  ;;  %v13463_v50 = vld [vmem:[#allocation6 + $0x44] ss:$16 sps:$4 sm:$0xff]   ;;  %v13461_v30 = vld [vmem:[#allocation6 + $0x40] ss:$16 sps:$4 sm:$0xff]  }
 0xf92   :  { %v10220_v34 = vmul.f32 0.5, %v9933_v14  ;;  %v9890_v16 = vpop.f32.mrb[163].mxu0  ;;  %v9931_v28 = vpop.f32.mrb[195].mxu1  ;;  %v10222_v45 = vmul.f32 0.5, %v9935_v51  ;;  %v13458_v14 = vld [vmem:[#allocation6 + $0x20] ss:$16 sps:$4 sm:$0xff]  }
 0xf93   :  { %v10221_v23 = vmul.f32 0.5, %v9934_v17  ;;  %v13466_v21 = vld [vmem:[#allocation6 + $0x64] ss:$16 sps:$4 sm:$0xff]   ;;  %v13472_v11 = vld [vmem:[#allocation6 + $0x8c] ss:$16 sps:$4 sm:$0xff]  }
 0xf94   :  { %13787 = vtanh.f32 %v10220_v34  ;;  %v13467_v16 = vld [vmem:[#allocation6 + $0x80] ss:$16 sps:$4 sm:$0xff]   ;;  %v13470_v28 = vld [vmem:[#allocation6 + $0x88] ss:$16 sps:$4 sm:$0xff]  }
 0xf95   :  { %13789 = vtanh.f32 %v10221_v23  ;;  %v13475_v23 = vld [vmem:[#allocation6 + $0xa4] ss:$16 sps:$4 sm:$0xff]  }
 0xf96   :  { %13791 = vtanh.f32 %v9936_v40  ;;  %v13464_v40 = vld [vmem:[#allocation6 + $0x60] ss:$16 sps:$4 sm:$0xff]  }
 0xf97   :  { %13793 = vtanh.f32 %v10222_v45 }
 0xf9e   :  { %v13788_v57 = vpop.eup %13787 }
 0xf9f   :  { %v10226_v22 = vmul.f32 0.5, %v13788_v57  ;;  %v13790_v4 = vpop.eup %13789  ;;  %v13476_v57 = vld [vmem:[#allocation6 + $0xa8] ss:$16 sps:$4 sm:$0xff]  }
 0xfa0   :  { %v10227_v32 = vmul.f32 0.5, %v13790_v4  ;;  %v13792_v26 = vpop.eup %13791 }
 0xfa1   :  { %v10229_v38 = vadd.f32 0.5, %v10226_v22  ;;  %v13794_v44 = vpop.eup %13793  ;;  %v13484_v22 = vld [vmem:[#allocation6 + $0xcc] ss:$16 sps:$4 sm:$0xff]  }
 0xfa2   :  { %v10230_v59 = vadd.f32 0.5, %v10227_v32  ;;  %v10228_v13 = vmul.f32 0.5, %v13794_v44 }
 0xfa3   :  { %v10234_v53 = vmul.f32 %v13792_v26, %v10229_v38  ;;  %v13482_v38 = vld [vmem:[#allocation6 + $0xc8] ss:$16 sps:$4 sm:$0xff]   ;;  %v13487_v26 = vld [vmem:[#allocation6 + $0xe4] ss:$16 sps:$4 sm:$0xff]  }
 0xfa4   :  { %v10233_v0 = vmul.f32 %v10230_v59, %v18520_v1  ;;  %v10231_v5 = vadd.f32 0.5, %v10228_v13  ;;  %v13490_v59 = vld [vmem:[#allocation6 + $0xec] ss:$16 sps:$4 sm:$0xff]   ;;  %v13488_v1 = vld [vmem:[#allocation6 + $0xe8] ss:$16 sps:$4 sm:$0xff]  }
 0xfa6   :  { %v17652_v24 = vadd.f32 %v10234_v53, %v10233_v0  ;;  %v13485_v53 = vld [vmem:[#allocation6 + $0xe0] ss:$16 sps:$4 sm:$0xff]  }
 0xfa8   :  { %13795 = vtanh.f32 %v17652_v24 }
 0xfaf   :  { %v10168_v54 = vpop.f32.mrb[164].mxu0  ;;  %v10209_v43 = vpop.f32.mrb[196].mxu1 }
 0xfb0   :  { %v10216_v10 = vadd.f32 %v10168_v54, %v18521_v48  ;;  %v10218_v20 = vadd.f32 %v10209_v43, %v18522_v2  ;;  %v10170_v46 = vpop.f32.mrb[165].mxu0  ;;  %v10211_v35 = vpop.f32.mrb[197].mxu1  ;;  %v13491_v43 = vld [vmem:[#allocation8 + $0x40] sm:$0xff]   ;;  %v13494_v2 = vld [vmem:[#allocation8 + $0x8] sm:$0xff]  }
 0xfb1   :  { %v10217_v61 = vadd.f32 %v10170_v46, %v18523_v8  ;;  %v10219_v39 = vadd.f32 %v10211_v35, %v18524_v3  ;;  %v10172_v60 = vpop.f32.mrb[166].mxu0  ;;  %v10213_v6 = vpop.f32.mrb[198].mxu1  ;;  %v13492_v48 = vld [vmem:[#allocation8] sm:$0xff]   ;;  %v13496_v46 = vld [vmem:[#allocation8 + $0x10] sm:$0xff]   ;;  %v13497_v35 = vld [vmem:[#allocation8 + $0x58] sm:$0xff]  }
 0xfb2   :  { %v10238_v63 = vmul.f32 0.5, %v10216_v10  ;;  %v10173_v49 = vpop.f32.mrb[167].mxu0  ;;  %v10214_v62 = vpop.f32.mrb[199].mxu1  ;;  %v10240_v51 = vmul.f32 0.5, %v10218_v20  ;;  %v13493_v10 = vld [vmem:[#allocation8 + $0x48] sm:$0xff]   ;;  %v13495_v20 = vld [vmem:[#allocation8 + $0x50] sm:$0xff]  }
 0xfb3   :  { %v13796_v36 = vpop.eup %13795  ;;  %v10239_v33 = vmul.f32 0.5, %v10217_v61  ;;  %v13498_v8 = vld [vmem:[#allocation8 + $0x18] sm:$0xff]   ;;  %v13499_v61 = vld [vmem:[#allocation8 + $0x60] sm:$0xff]   ;;  %v13502_v60 = vld [vmem:[#allocation8 + $0x28] sm:$0xff]  }
 0xfb4   :  { %13797 = vtanh.f32 %v10238_v63  ;;  %v17659_v56 = vmul.f32 %v13796_v36, %v10231_v5  ;;  %v13500_v3 = vld [vmem:[#allocation8 + $0x20] sm:$0xff]   ;;  %v13503_v6 = vld [vmem:[#allocation8 + $0x70] sm:$0xff]   ;;  %v13505_v63 = vld [vmem:[#allocation8 + $0x78] sm:$0xff]  }
 0xfb5   :  { %13799 = vtanh.f32 %v10239_v33  ;;  %v13504_v5 = vld [vmem:[#allocation8 + $0x30] sm:$0xff]   ;;  %v13506_v49 = vld [vmem:[#allocation8 + $0x38] sm:$0xff]   ;;  %v18525_v33 = vld [vmem:[#allocation35_spill] sm:$0xff] }
 0xfb6   :  { %v10262_v29 = vpack.c.bf16 %v17659_v56, %v17659_v56  ;;  %13801 = vtanh.f32 %v10219_v39  ;;  %v13501_v39 = vld [vmem:[#allocation8 + $0x68] sm:$0xff]  }
 0xfb7   :  { %13803 = vtanh.f32 %v10240_v51  ;;  %v18527_v51 = vld [vmem:[#allocation37_spill] sm:$0xff] }
 0xfb8   :  { %10488 = vmatmul.mubr.bf16.vlgmr.msra.gmra.mrb[168].mxu0 %v10262_v29  ;;  %10529 = vmatmul.mubr.bf16.vlgmr.msra.gmra.mrb[200].mxu1 %v10262_v29  ;;  %v18526_v29 = vld [vmem:[#allocation96_spill] sm:$0xff] }
 0xfb9   :  { %10739 = vmatpush1.bf16.msra.mxu0 %v13455_v15  ;;  %10780 = vmatpush1.bf16.msra.mxu1 %v17544_v19 }
 0xfba   :  { %10740 = vmatprep.subr.bf16.mxu0 %v13460_v27  ;;  %10781 = vmatprep.subr.bf16.mxu1 %v17548_v55 }
 0xfbb   :  { %10770 = vmatprep.mubr.bf16.mxu0 %v18252_v58  ;;  %10811 = vmatprep.mubr.bf16.mxu1 %v18252_v58 }
 0xfbd   :  { %10741 = vmatpush1.bf16.msra.mxu0 %v13458_v14  ;;  %10782 = vmatpush1.bf16.msra.mxu1 %v17552_v42  ;;  %v13469_v42 = vld [vmem:[#allocation6 + $0x84] ss:$16 sps:$4 sm:$0xff]  }
 0xfbe   :  { %v13798_v37 = vpop.eup %13797  ;;  %10742 = vmatprep.subr.bf16.mxu0 %v13463_v50  ;;  %10783 = vmatprep.subr.bf16.mxu1 %v17556_v18 }
 0xfbf   :  { %v10244_v19 = vmul.f32 0.5, %v13798_v37  ;;  %v13800_v17 = vpop.eup %13799  ;;  %v18528_v37 = vld [vmem:[#allocation97_spill] sm:$0xff] }
 0xfc0   :  { %v10245_v55 = vmul.f32 0.5, %v13800_v17  ;;  %v13802_v58 = vpop.eup %13801 }
 0xfc1   :  { %v10247_v9 = vadd.f32 0.5, %v10244_v19  ;;  %10743 = vmatpush1.bf16.msra.mxu0 %v13461_v30  ;;  %10784 = vmatpush1.bf16.msra.mxu1 %v17562_v52  ;;  %v13478_v52 = vld [vmem:[#allocation6 + $0xac] ss:$16 sps:$4 sm:$0xff]   ;;  %v13804_v4 = vpop.eup %13803 }
 0xfc2   :  { %10744 = vmatprep.subr.bf16.mxu0 %v13466_v21  ;;  %10785 = vmatprep.subr.bf16.mxu1 %v17566_v25  ;;  %v10248_v7 = vadd.f32 0.5, %v10245_v55  ;;  %v13473_v25 = vld [vmem:[#allocation6 + $0xa0] ss:$16 sps:$4 sm:$0xff]   ;;  %v10246_v32 = vmul.f32 0.5, %v13804_v4 }
 0xfc3   :  { %v10252_v34 = vmul.f32 %v13802_v58, %v10247_v9 }
 0xfc4   :  { %v10251_v18 = vmul.f32 %v10248_v7, %v17579_v31  ;;  %v13481_v31 = vld [vmem:[#allocation6 + $0xc4] ss:$16 sps:$4 sm:$0xff]   ;;  %v10249_v0 = vadd.f32 0.5, %v10246_v32 }
 0xfc5   :  { %10745 = vmatpush1.bf16.msra.mxu0 %v13464_v40  ;;  %10786 = vmatpush1.bf16.msra.mxu1 %v17570_v12  ;;  %v13479_v12 = vld [vmem:[#allocation6 + $0xc0] ss:$16 sps:$4 sm:$0xff]  }
 0xfc6   :  { %10746 = vmatprep.subr.bf16.mxu0 %v13469_v42  ;;  %10787 = vmatprep.subr.bf16.mxu1 %v13472_v11  ;;  %v17673_v45 = vadd.f32 %v10252_v34, %v10251_v18 }
 0xfc8   :  { %13805 = vtanh.f32 %v17673_v45 }
 0xfc9   :  { %10747 = vmatpush1.bf16.msra.mxu0 %v13467_v16  ;;  %10788 = vmatpush1.bf16.msra.mxu1 %v13470_v28 }
 0xfca   :  { %10748 = vmatprep.subr.bf16.mxu0 %v13475_v23  ;;  %10789 = vmatprep.subr.bf16.mxu1 %v13478_v52 }
 0xfcd   :  { %10749 = vmatpush1.bf16.msra.mxu0 %v13473_v25  ;;  %10790 = vmatpush1.bf16.msra.mxu1 %v13476_v57 }
 0xfce   :  { %10750 = vmatprep.subr.bf16.mxu0 %v13481_v31  ;;  %10791 = vmatprep.subr.bf16.mxu1 %v13484_v22 }
 0xfd1   :  { %10751 = vmatpush1.bf16.msra.mxu0 %v13479_v12  ;;  %10792 = vmatpush1.bf16.msra.mxu1 %v13482_v38  ;;  %v18529_v38 = vld [vmem:[#allocation39_spill] sm:$0xff] }
 0xfd2   :  { %10752 = vmatprep.subr.bf16.mxu0 %v13487_v26  ;;  %10793 = vmatprep.subr.bf16.mxu1 %v13490_v59  ;;  %v13806_v44 = vpop.eup %13805  ;;  %v18530_v26 = vld [vmem:[#allocation98_spill] sm:$0xff] }
 0xfd3   :  { %v17676_v13 = vmul.f32 %v13806_v44, %v10249_v0  ;;  %v18531_v0 = vld [vmem:[#allocation40_spill] sm:$0xff] }
 0xfd5   :  { %10753 = vmatpush1.bf16.msra.mxu0 %v13485_v53  ;;  %10794 = vmatpush1.bf16.msra.mxu1 %v13488_v1  ;;  %v10545_v54 = vpack.c.bf16 %v17676_v13, %v17676_v13 }
 0xfd6   :  { %12588 = vmatprep.subr.bf16.mxu0 %v13491_v43 }
 0xfd8   :  { %10771 = vmatmul.mubr.bf16.vlgmr.msra.gmra.mrb[172].mxu0 %v10545_v54  ;;  %10812 = vmatmul.mubr.bf16.vlgmr.msra.gmra.mrb[204].mxu1 %v10545_v54  ;;  %v18532_v54 = vld [vmem:[#allocation99_spill] sm:$0xff] }
 0xfd9   :  { %12589 = vmatpush3.bf16.msra.mxu0 %v13492_v48 }
 0xfda   :  { %12590 = vmatprep.subr.bf16.mxu0 %v13493_v10 }
 0xfdd   :  { %12591 = vmatpush3.bf16.msra.mxu0 %v13494_v2 }
 0xfde   :  { %12592 = vmatprep.subr.bf16.mxu0 %v13495_v20 }
 0xfe1   :  { %12593 = vmatpush3.bf16.msra.mxu0 %v13496_v46 }
 0xfe2   :  { %12594 = vmatprep.subr.bf16.mxu0 %v13497_v35 }
 0xfe5   :  { %12595 = vmatpush3.bf16.msra.mxu0 %v13498_v8 }
 0xfe6   :  { %12596 = vmatprep.subr.bf16.mxu0 %v13499_v61 }
 0xfe9   :  { %12597 = vmatpush3.bf16.msra.mxu0 %v13500_v3 }
 0xfea   :  { %12598 = vmatprep.subr.bf16.mxu0 %v13501_v39 }
 0xfed   :  { %12599 = vmatpush3.bf16.msra.mxu0 %v13502_v60 }
 0xfee   :  { %12600 = vmatprep.subr.bf16.mxu0 %v13503_v6 }
 0xff1   :  { %12601 = vmatpush3.bf16.msra.mxu0 %v13504_v5 }
 0xff2   :  { %12602 = vmatprep.subr.bf16.mxu0 %v13505_v63 }
 0xff5   :  { %12603 = vmatpush3.bf16.msra.mxu0 %v13506_v49 }
0x108b   :  { %v10489_v62 = vpop.f32.mrb[168].mxu0  ;;  %v10530_v36 = vpop.f32.mrb[200].mxu1 }
0x108c   :  { %v10537_v15 = vadd.f32 %v10489_v62, %v18525_v33  ;;  %v10539_v27 = vadd.f32 %v10530_v36, %v18526_v29  ;;  %v10491_v14 = vpop.f32.mrb[169].mxu0  ;;  %v10532_v50 = vpop.f32.mrb[201].mxu1 }
0x108d   :  { %v10538_v30 = vadd.f32 %v10491_v14, %v18527_v51  ;;  %v10540_v21 = vadd.f32 %v10532_v50, %v18528_v37  ;;  %v10493_v19 = vpop.f32.mrb[170].mxu0  ;;  %v10534_v17 = vpop.f32.mrb[202].mxu1  ;;  %v18533_v37 = vld [vmem:[#allocation126_spill] sm:$0xff] }
0x108e   :  { %v10824_v9 = vmul.f32 0.5, %v10537_v15  ;;  %v10494_v55 = vpop.f32.mrb[171].mxu0  ;;  %v10535_v40 = vpop.f32.mrb[203].mxu1  ;;  %v10826_v42 = vmul.f32 0.5, %v10539_v27  ;;  %v18535_v17 = vld [vmem:[#allocation115_spill] sm:$0xff] }
0x108f   :  { %v10825_v58 = vmul.f32 0.5, %v10538_v30  ;;  %v18536_v55 = vld [vmem:[#allocation128_spill] sm:$0xff] }
0x1090   :  { %13807 = vtanh.f32 %v10824_v9  ;;  %v10897_v9 = vpack.c.bf16 %v18535_v17, %v17594_v47  ;;  %v18545_v47 = vld [vmem:[#allocation56_spill] sm:$0xff] }
0x1091   :  { %13809 = vtanh.f32 %v10825_v58  ;;  %v18538_v58 = vld [vmem:[#allocation114_spill] sm:$0xff] }
0x1092   :  { %13811 = vtanh.f32 %v10540_v21  ;;  %v18534_v21 = vld [vmem:[#allocation132_spill] sm:$0xff] }
0x1093   :  { %13813 = vtanh.f32 %v10826_v42  ;;  %v10894_v19 = vpack.c.bf16 %v18534_v21, %v18533_v37  ;;  %v18539_v42 = vld [vmem:[#allocation62_spill] sm:$0xff] }
0x109a   :  { %v13808_v11 = vpop.eup %13807 }
0x109b   :  { %v10830_v7 = vmul.f32 0.5, %v13808_v11  ;;  %v13810_v34 = vpop.eup %13809  ;;  %v10899_v11 = vpack.c.bf16 %v18539_v42, %v18538_v58 }
0x109c   :  { %v10831_v16 = vmul.f32 0.5, %v13810_v34  ;;  %v13812_v28 = vpop.eup %13811  ;;  %v18541_v34 = vld [vmem:[#allocation16_spill] sm:$0xff] }
0x109d   :  { %v10833_v18 = vadd.f32 0.5, %v10830_v7  ;;  %v13814_v31 = vpop.eup %13813  ;;  %v18540_v7 = vld [vmem:[#allocation20_spill] sm:$0xff] }
0x109e   :  { %v10834_v23 = vadd.f32 0.5, %v10831_v16  ;;  %v10832_v22 = vmul.f32 0.5, %v13814_v31  ;;  %v18543_v16 = vld [vmem:[#allocation79_spill] sm:$0xff] }
0x109f   :  { %v10838_v52 = vmul.f32 %v13812_v28, %v10833_v18  ;;  %v18542_v18 = vld [vmem:[#allocation53_spill] sm:$0xff] }
0x10a0   :  { %v10837_v25 = vmul.f32 %v10834_v23, %v17652_v24  ;;  %v10835_v2 = vadd.f32 0.5, %v10832_v22  ;;  %v10901_v28 = vpack.c.bf16 %v18543_v16, %v18542_v18  ;;  %v18544_v23 = vld [vmem:[#allocation18_spill] sm:$0xff]  ;;  %v18548_v22 = vld [vmem:[#allocation60_spill] sm:$0xff] }
0x10a2   :  { %v10839_v57 = vadd.f32 %v10838_v52, %v10837_v25  ;;  %v10900_v52 = vpack.c.bf16 %v18545_v47, %v18544_v23  ;;  %v18546_v25 = vld [vmem:[#allocation30_spill] sm:$0xff] }
0x10a4   :  { %13815 = vtanh.f32 %v10839_v57  ;;  %v18547_v57 = vld [vmem:[#allocation91_spill] sm:$0xff] }
0x10a5   :  { %v10903_v31 = vpack.c.bf16 %v18547_v57, %v18546_v25 }
0x10ab   :  { %v10772_v4 = vpop.f32.mrb[172].mxu0  ;;  %v10813_v12 = vpop.f32.mrb[204].mxu1 }
0x10ac   :  { %v10820_v32 = vadd.f32 %v10772_v4, %v18529_v38  ;;  %v10822_v59 = vadd.f32 %v10813_v12, %v18530_v26  ;;  %v10774_v53 = vpop.f32.mrb[173].mxu0  ;;  %v10815_v1 = vpop.f32.mrb[205].mxu1  ;;  %v18549_v4 = vld [vmem:[#allocation59_spill] sm:$0xff] }
0x10ad   :  { %v10821_v44 = vadd.f32 %v10774_v53, %v18531_v0  ;;  %v10823_v43 = vadd.f32 %v10815_v1, %v18532_v54  ;;  %v10776_v48 = vpop.f32.mrb[174].mxu0  ;;  %v10817_v10 = vpop.f32.mrb[206].mxu1  ;;  %v10902_v12 = vpack.c.bf16 %v18549_v4, %v18548_v22  ;;  %v18550_v38 = vld [vmem:[#allocation43_spill] sm:$0xff]  ;;  %v18554_v0 = vld [vmem:[#allocation125_spill] sm:$0xff] }
0x10ae   :  { %v10842_v24 = vmul.f32 0.5, %v10820_v32  ;;  %v10777_v20 = vpop.f32.mrb[175].mxu0  ;;  %v10818_v46 = vpop.f32.mrb[207].mxu1  ;;  %v10844_v3 = vmul.f32 0.5, %v10822_v59  ;;  %v18551_v32 = vld [vmem:[#allocation47_spill] sm:$0xff]  ;;  %v18552_v59 = vld [vmem:[#allocation32_spill] sm:$0xff] }
0x10af   :  { %v13816_v35 = vpop.eup %13815  ;;  %v10843_v8 = vmul.f32 0.5, %v10821_v44  ;;  %v10905_v26 = vpack.c.bf16 %v18551_v32, %v18550_v38  ;;  %v18553_v53 = vld [vmem:[#allocation71_spill] sm:$0xff]  ;;  %v18555_v44 = vld [vmem:[#allocation129_spill] sm:$0xff] }
0x10b0   :  { %13817 = vtanh.f32 %v10842_v24  ;;  %v10841_v61 = vmul.f32 %v13816_v35, %v10835_v2  ;;  %v10904_v1 = vpack.c.bf16 %v18553_v53, %v18552_v59  ;;  %v10907_v54 = vpack.c.bf16 %v18555_v44, %v18554_v0  ;;  %v18557_v10 = vld [vmem:[#allocation133_spill] sm:$0xff]  ;;  %v18558_v2 = vld [vmem:[#allocation127_spill] sm:$0xff]  ;;  %v11149_v53 = vld [vmem:[%s18025_s0 + $0x38] sm:$0xff] }
0x10b1   :  { %13819 = vtanh.f32 %v10843_v8  ;;  %v10909_v24 = vpack.c.bf16 %v18558_v2, %v18557_v10  ;;  %v17723_v35 = vld [vmem:[%s18031_s6] ss:$0 sm:$0xff]  ;;  %v11148_v4 = vld [vmem:[%s18025_s0 + $0x30] sm:$0xff] }
0x10b2   :  { %13821 = vtanh.f32 %v10823_v43  ;;  %v18556_v43 = vld [vmem:[#allocation73_spill] sm:$0xff]  ;;  %v10908_v20 = vpack.c.bf16 %v10841_v61, %v17659_v56  ;;  %v11143_v56 = vld [vmem:[%s18025_s0 + $0x8] sm:$0xff]  ;;  %v11150_v2 = vld [vmem:[%s18025_s0 + $0x40] sm:$0xff] }
0x10b3   :  { %13823 = vtanh.f32 %v10844_v3  ;;  %v10906_v48 = vpack.c.bf16 %v17542_v41, %v18556_v43  ;;  %v11142_v41 = vld [vmem:[%s18025_s0] sm:$0xff] }
0x10ba   :  { %v13818_v39 = vpop.eup %13817 }
0x10bb   :  { %v10848_v60 = vmul.f32 0.5, %v13818_v39  ;;  %v13820_v6 = vpop.eup %13819 }
0x10bc   :  { %v10849_v63 = vmul.f32 0.5, %v13820_v6  ;;  %v13822_v49 = vpop.eup %13821 }
0x10bd   :  { %v10851_v5 = vadd.f32 0.5, %v10848_v60  ;;  %v13824_v29 = vpop.eup %13823 }
0x10be   :  { %v10852_v62 = vadd.f32 0.5, %v10849_v63  ;;  %v10850_v27 = vmul.f32 0.5, %v13824_v29 }
0x10bf   :  { %v10856_v36 = vmul.f32 %v13822_v49, %v10851_v5 }
0x10c0   :  { %v10855_v33 = vmul.f32 %v10852_v62, %v17673_v45  ;;  %v10853_v14 = vadd.f32 0.5, %v10850_v27  ;;  %v18537_v45 = vld [vmem:[#allocation93_spill] sm:$0xff] }
0x10c1   :  { %v10896_v40 = vpack.c.bf16 %v18537_v45, %v18536_v55 }
0x10c2   :  { %v10857_v15 = vadd.f32 %v10856_v36, %v10855_v33 }
0x10c4   :  { %13825 = vtanh.f32 %v10857_v15 }
0x10ce   :  { %v13826_v50 = vpop.eup %13825 }
0x10cf   :  { %v10859_v51 = vmul.f32 %v13826_v50, %v10853_v14  ;;  %v11144_v14 = vld [vmem:[%s18025_s0 + $0x10] sm:$0xff] }
0x10d1   :  { %v10895_v30 = vpack.c.bf16 %v17676_v13, %v10859_v51  ;;  %v10898_v13 = vpack.c.bf16 %v18541_v34, %v18540_v7 }
0x10d3   :  { %11077 = vmatprep.mubr.bf16.mxu0 %v10895_v30 }
0x10d4   :  { %11078 = vmatmul.mubr.bf16.vlgmr.msra.gmra.mrb[176].mxu0 %v10894_v19  ;;  %v11145_v19 = vld [vmem:[%s18025_s0 + $0x18] sm:$0xff] }
0x10d5   :  { %11085 = vmatprep.mubr.bf16.mxu0 %v10897_v9 }
0x10dc   :  { %11086 = vmatmul.mubr.bf16.gmra.mrb[180].mxu0 %v10896_v40 }
0x10dd   :  { %11093 = vmatprep.mubr.bf16.mxu0 %v10899_v11  ;;  %v11146_v11 = vld [vmem:[%s18025_s0 + $0x20] sm:$0xff] }
0x10e4   :  { %11094 = vmatmul.mubr.bf16.gmra.mrb[184].mxu0 %v10898_v13 }
0x10e5   :  { %11101 = vmatprep.mubr.bf16.mxu0 %v10901_v28  ;;  %v11147_v28 = vld [vmem:[%s18025_s0 + $0x28] sm:$0xff] }
0x10ec   :  { %11102 = vmatmul.mubr.bf16.gmra.mrb[188].mxu0 %v10900_v52 }
0x10ed   :  { %11109 = vmatprep.mubr.bf16.mxu0 %v10903_v31 }
0x10f4   :  { %11110 = vmatmul.mubr.bf16.gmra.mrb[192].mxu0 %v10902_v12 }
0x10f5   :  { %11117 = vmatprep.mubr.bf16.mxu0 %v10905_v26 }
0x10fc   :  { %11118 = vmatmul.mubr.bf16.gmra.mrb[196].mxu0 %v10904_v1 }
0x10fd   :  { %11125 = vmatprep.mubr.bf16.mxu0 %v10907_v54 }
0x1104   :  { %11126 = vmatmul.mubr.bf16.gmra.mrb[200].mxu0 %v10906_v48 }
0x1105   :  { %11133 = vmatprep.mubr.bf16.mxu0 %v10909_v24 }
0x110c   :  { %11134 = vmatmul.mubr.bf16.gmra.mrb[204].mxu0 %v10908_v20 }
0x11a7   :  { %v12604_v46 = vpop.f32.mrb[176].mxu0 }
0x11a8   :  { %v12605_v8 = vpop.f32.mrb[177].mxu0 }
0x11a9   :  { %v12606_v3 = vadd.f32 %v12605_v8, %v12604_v46  ;;  %v12607_v39 = vpop.f32.mrb[178].mxu0 }
0x11aa   :  { %v12608_v60 = vpop.f32.mrb[179].mxu0 }
0x11ab   :  { %v11080_v6 = vadd.f32 %v12606_v3, %v17723_v35  ;;  %v12609_v5 = vadd.f32 %v12608_v60, %v12607_v39  ;;  %v11151_v39 = vld [vmem:[%s18025_s0 + $0x48] sm:$0xff] }
0x11ad   :  { %v11083_v61 = vadd.f32 %v12609_v5, %v17723_v35  ;;  %v17733_v63 = vadd.f32 %v11142_v41, %v11080_v6 }
0x11af   :  { %v12610_v49 = vpop.f32.mrb[180].mxu0  ;;  %11174 = vadd.xlane.f32.xlu0 %v17733_v63  ;;  %v17736_v62 = vadd.f32 %v11143_v56, %v11083_v61  ;;  %v11223_v21 = vmul.f32 %v17733_v63, %v17733_v63 }
0x11b0   :  { %v12611_v36 = vpop.f32.mrb[181].mxu0 }
0x11b1   :  { %v12612_v33 = vadd.f32 %v12611_v36, %v12610_v49  ;;  %v12613_v15 = vpop.f32.mrb[182].mxu0  ;;  %v11224_v29 = vmul.f32 %v17736_v62, %v17736_v62  ;;  %v11152_v36 = vld [vmem:[%s18025_s0 + $0x50] sm:$0xff] }
0x11b2   :  { %v12614_v27 = vpop.f32.mrb[183].mxu0 }
0x11b3   :  { %v11088_v50 = vadd.f32 %v12612_v33, %v17723_v35  ;;  %v12615_v51 = vadd.f32 %v12614_v27, %v12613_v15  ;;  %11241 = vadd.xlane.f32.xlu1 %v11224_v29  ;;  %11176 = vadd.xlane.f32.xlu0 %v17736_v62 }
0x11b5   :  { %v11091_v30 = vadd.f32 %v12615_v51, %v17723_v35  ;;  %v17746_v37 = vadd.f32 %v11144_v14, %v11088_v50  ;;  %v11153_v50 = vld [vmem:[%s18025_s0 + $0x58] sm:$0xff] }
0x11b7   :  { %v12616_v17 = vpop.f32.mrb[184].mxu0  ;;  %11178 = vadd.xlane.f32.xlu1 %v17746_v37  ;;  %11239 = vadd.xlane.f32.xlu0 %v11223_v21  ;;  %v17754_v40 = vadd.f32 %v11145_v19, %v11091_v30  ;;  %v11225_v58 = vmul.f32 %v17746_v37, %v17746_v37 }
0x11b8   :  { %v12617_v9 = vpop.f32.mrb[185].mxu0 }
0x11b9   :  { %v12618_v55 = vadd.f32 %v12617_v9, %v12616_v17  ;;  %v12619_v45 = vpop.f32.mrb[186].mxu0  ;;  %v11226_v18 = vmul.f32 %v17754_v40, %v17754_v40 }
0x11ba   :  { %v12620_v42 = vpop.f32.mrb[187].mxu0 }
0x11bb   :  { %v11096_v7 = vadd.f32 %v12618_v55, %v17723_v35  ;;  %v12621_v34 = vadd.f32 %v12620_v42, %v12619_v45  ;;  %11180 = vadd.xlane.f32.xlu1 %v17754_v40  ;;  %11243 = vadd.xlane.f32.xlu0 %v11225_v58  ;;  %v11154_v45 = vld [vmem:[%s18025_s0 + $0x60] sm:$0xff] }
0x11bd   :  { %v11099_v13 = vadd.f32 %v12621_v34, %v17723_v35  ;;  %v17766_v16 = vadd.f32 %v11146_v11, %v11096_v7 }
0x11bf   :  { %v12622_v23 = vpop.f32.mrb[188].mxu0  ;;  %11245 = vadd.xlane.f32.xlu1 %v11226_v18  ;;  %11182 = vadd.xlane.f32.xlu0 %v17766_v16  ;;  %v17772_v57 = vadd.f32 %v11147_v28, %v11099_v13  ;;  %v11227_v31 = vmul.f32 %v17766_v16, %v17766_v16  ;;  %v11155_v13 = vld [vmem:[%s18025_s0 + $0x68] sm:$0xff] }
0x11c0   :  { %v12623_v47 = vpop.f32.mrb[189].mxu0 }
0x11c1   :  { %v12624_v52 = vadd.f32 %v12623_v47, %v12622_v23  ;;  %v12625_v25 = vpop.f32.mrb[190].mxu0  ;;  %v11228_v26 = vmul.f32 %v17772_v57, %v17772_v57 }
0x11c2   :  { %v12626_v22 = vpop.f32.mrb[191].mxu0 }
0x11c3   :  { %v11104_v12 = vadd.f32 %v12624_v52, %v17723_v35  ;;  %v12627_v38 = vadd.f32 %v12626_v22, %v12625_v25  ;;  %11184 = vadd.xlane.f32.xlu1 %v17772_v57  ;;  %11247 = vadd.xlane.f32.xlu0 %v11227_v31  ;;  %v11156_v22 = vld [vmem:[%s18025_s0 + $0x70] sm:$0xff] }
0x11c5   :  { %v11107_v32 = vadd.f32 %v12627_v38, %v17723_v35  ;;  %v17784_v59 = vadd.f32 %v11148_v4, %v11104_v12 }
0x11c7   :  { %v12628_v1 = vpop.f32.mrb[192].mxu0  ;;  %11249 = vadd.xlane.f32.xlu1 %v11228_v26  ;;  %11186 = vadd.xlane.f32.xlu0 %v17784_v59  ;;  %v17790_v43 = vadd.f32 %v11149_v53, %v11107_v32  ;;  %v11229_v48 = vmul.f32 %v17784_v59, %v17784_v59  ;;  %v11157_v53 = vld [vmem:[%s18025_s0 + $0x78] sm:$0xff] }
0x11c8   :  { %v12629_v0 = vpop.f32.mrb[193].mxu0 }
0x11c9   :  { %v12630_v44 = vadd.f32 %v12629_v0, %v12628_v1  ;;  %v12631_v54 = vpop.f32.mrb[194].mxu0  ;;  %v11230_v8 = vmul.f32 %v17790_v43, %v17790_v43 }
0x11ca   :  { %v12632_v10 = vpop.f32.mrb[195].mxu0 }
0x11cb   :  { %v11112_v24 = vadd.f32 %v12630_v44, %v17723_v35  ;;  %v12633_v20 = vadd.f32 %v12632_v10, %v12631_v54  ;;  %11188 = vadd.xlane.f32.xlu1 %v17790_v43  ;;  %11251 = vadd.xlane.f32.xlu0 %v11229_v48 }
0x11cd   :  { %v11115_v46 = vadd.f32 %v12633_v20, %v17723_v35  ;;  %v17802_v3 = vadd.f32 %v11150_v2, %v11112_v24 }
0x11cf   :  { %v12634_v60 = vpop.f32.mrb[196].mxu0  ;;  %11253 = vadd.xlane.f32.xlu1 %v11230_v8  ;;  %11190 = vadd.xlane.f32.xlu0 %v17802_v3  ;;  %v17808_v56 = vadd.f32 %v11151_v39, %v11115_v46  ;;  %v11231_v61 = vmul.f32 %v17802_v3, %v17802_v3 }
0x11d0   :  { %v12635_v41 = vpop.f32.mrb[197].mxu0 }
0x11d1   :  { %v12636_v6 = vadd.f32 %v12635_v41, %v12634_v60  ;;  %v12637_v5 = vpop.f32.mrb[198].mxu0  ;;  %v11232_v27 = vmul.f32 %v17808_v56, %v17808_v56 }
0x11d2   :  { %v12638_v49 = vpop.f32.mrb[199].mxu0 }
0x11d3   :  { %v11120_v33 = vadd.f32 %v12636_v6, %v17723_v35  ;;  %v12639_v15 = vadd.f32 %v12638_v49, %v12637_v5  ;;  %11192 = vadd.xlane.f32.xlu1 %v17808_v56  ;;  %11255 = vadd.xlane.f32.xlu0 %v11231_v61 }
0x11d5   :  { %v11123_v29 = vadd.f32 %v12639_v15, %v17723_v35  ;;  %v17820_v14 = vadd.f32 %v11152_v36, %v11120_v33 }
0x11d7   :  { %v12640_v51 = vpop.f32.mrb[200].mxu0  ;;  %11257 = vadd.xlane.f32.xlu1 %v11232_v27  ;;  %11194 = vadd.xlane.f32.xlu0 %v17820_v14  ;;  %v17826_v17 = vadd.f32 %v11153_v50, %v11123_v29  ;;  %v11233_v9 = vmul.f32 %v17820_v14, %v17820_v14 }
0x11d8   :  { %v12641_v30 = vpop.f32.mrb[201].mxu0 }
0x11d9   :  { %v12642_v21 = vadd.f32 %v12641_v30, %v12640_v51  ;;  %v12643_v19 = vpop.f32.mrb[202].mxu0  ;;  %v11234_v7 = vmul.f32 %v17826_v17, %v17826_v17 }
0x11da   :  { %v12644_v55 = vpop.f32.mrb[203].mxu0 }
0x11db   :  { %v11128_v58 = vadd.f32 %v12642_v21, %v17723_v35  ;;  %v12645_v42 = vadd.f32 %v12644_v55, %v12643_v19  ;;  %11196 = vadd.xlane.f32.xlu1 %v17826_v17  ;;  %11259 = vadd.xlane.f32.xlu0 %v11233_v9 }
0x11dd   :  { %v11131_v11 = vadd.f32 %v12645_v42, %v17723_v35  ;;  %v17838_v34 = vadd.f32 %v11154_v45, %v11128_v58 }
0x11df   :  { %v12646_v18 = vpop.f32.mrb[204].mxu0  ;;  %11261 = vadd.xlane.f32.xlu1 %v11234_v7  ;;  %11198 = vadd.xlane.f32.xlu0 %v17838_v34  ;;  %v17844_v52 = vadd.f32 %v11155_v13, %v11131_v11  ;;  %v11235_v25 = vmul.f32 %v17838_v34, %v17838_v34 }
0x11e0   :  { %v12647_v28 = vpop.f32.mrb[205].mxu0 }
0x11e1   :  { %v12648_v23 = vadd.f32 %v12647_v28, %v12646_v18  ;;  %v12649_v47 = vpop.f32.mrb[206].mxu0  ;;  %v11236_v32 = vmul.f32 %v17844_v52, %v17844_v52 }
0x11e2   :  { %v12650_v31 = vpop.f32.mrb[207].mxu0 }
0x11e3   :  { %v11136_v4 = vadd.f32 %v12648_v23, %v17723_v35  ;;  %v12651_v12 = vadd.f32 %v12650_v31, %v12649_v47  ;;  %11200 = vadd.xlane.f32.xlu1 %v17844_v52  ;;  %11263 = vadd.xlane.f32.xlu0 %v11235_v25  ;;  %v17883_v47 = vld [vmem:[%s18032_s7] ss:$0 sm:$0xff] }
0x11e5   :  { %v11139_v38 = vadd.f32 %v12651_v12, %v17723_v35  ;;  %v17856_v26 = vadd.f32 %v11156_v22, %v11136_v4 }
0x11e7   :  { %11265 = vadd.xlane.f32.xlu1 %v11236_v32  ;;  %11202 = vadd.xlane.f32.xlu0 %v17856_v26  ;;  %v17862_v1 = vadd.f32 %v11157_v53, %v11139_v38  ;;  %v11237_v0 = vmul.f32 %v17856_v26, %v17856_v26  ;;  %v17889_v32 = vld [vmem:[%s18033_s8] ss:$0 sm:$0xff] }
0x11e9   :  { %v11238_v35 = vmul.f32 %v17862_v1, %v17862_v1 }
0x11eb   :  { %11204 = vadd.xlane.f32.xlu1 %v17862_v1  ;;  %11267 = vadd.xlane.f32.xlu0 %v11237_v0 }
0x11ef   :  { %11269 = vadd.xlane.f32.xlu1 %v11238_v35 }
0x123c   :  { %v11175_v44 = vpop.xlane.xlu0 %11174 }
0x123d   :  { %v11207_v10 = vmul.f32 0.0078125, %v11175_v44 }
0x123f   :  { %v11287_v39 = vmul.f32 %v11207_v10, %v11207_v10  ;;  %v11319_v31 = vsub.f32 %v17733_v63, %v11207_v10 }
0x1240   :  { %v11242_v54 = vpop.xlane.xlu1 %11241  ;;  %v11177_v48 = vpop.xlane.xlu0 %11176 }
0x1241   :  { %v11208_v2 = vmul.f32 0.0078125, %v11177_v48  ;;  %v11272_v24 = vmul.f32 0.0078125, %v11242_v54 }
0x1243   :  { %v11288_v20 = vmul.f32 %v11208_v2, %v11208_v2  ;;  %v11320_v28 = vsub.f32 %v17736_v62, %v11208_v2 }
0x1244   :  { %v11179_v46 = vpop.xlane.xlu1 %11178  ;;  %v11240_v8 = vpop.xlane.xlu0 %11239 }
0x1245   :  { %v11304_v60 = vsub.f32 %v11272_v24, %v11288_v20  ;;  %v11209_v41 = vmul.f32 0.0078125, %v11179_v46  ;;  %v11271_v6 = vmul.f32 0.0078125, %v11240_v8 }
0x1247   :  { %v11336_v5 = vadd.f32 1e-05, %v11304_v60  ;;  %v11303_v61 = vsub.f32 %v11271_v6, %v11287_v39  ;;  %v11289_v49 = vmul.f32 %v11209_v41, %v11209_v41  ;;  %v11321_v10 = vsub.f32 %v17746_v37, %v11209_v41 }
0x1248   :  { %v11181_v36 = vpop.xlane.xlu1 %11180  ;;  %v11244_v33 = vpop.xlane.xlu0 %11243 }
0x1249   :  { %13827 = vrsqrt.f32 %v11336_v5  ;;  %v11335_v15 = vadd.f32 1e-05, %v11303_v61  ;;  %v17869_v29 = vmul.f32 0.0078125, %v11181_v36  ;;  %v11273_v27 = vmul.f32 0.0078125, %v11244_v33 }
0x124b   :  { %13829 = vrsqrt.f32 %v11335_v15  ;;  %v11305_v50 = vsub.f32 %v11273_v27, %v11289_v49  ;;  %v11290_v21 = vmul.f32 %v17869_v29, %v17869_v29  ;;  %v11322_v41 = vsub.f32 %v17754_v40, %v17869_v29 }
0x124c   :  { %v11246_v51 = vpop.xlane.xlu1 %11245  ;;  %v11183_v30 = vpop.xlane.xlu0 %11182 }
0x124d   :  { %v11337_v19 = vadd.f32 1e-05, %v11305_v50  ;;  %v11274_v9 = vmul.f32 0.0078125, %v11246_v51  ;;  %v17873_v55 = vmul.f32 0.0078125, %v11183_v30 }
0x124f   :  { %13831 = vrsqrt.f32 %v11337_v19  ;;  %v11306_v45 = vsub.f32 %v11274_v9, %v11290_v21  ;;  %v11291_v7 = vmul.f32 %v17873_v55, %v17873_v55  ;;  %v11323_v29 = vsub.f32 %v17766_v16, %v17873_v55 }
0x1250   :  { %v11185_v58 = vpop.xlane.xlu1 %11184  ;;  %v11248_v42 = vpop.xlane.xlu0 %11247 }
0x1251   :  { %v11338_v11 = vadd.f32 1e-05, %v11306_v45  ;;  %v17877_v13 = vmul.f32 0.0078125, %v11185_v58  ;;  %v11275_v18 = vmul.f32 0.0078125, %v11248_v42 }
0x1253   :  { %v13828_v23 = vpop.eup %13827  ;;  %13833 = vrsqrt.f32 %v11338_v11  ;;  %v11307_v25 = vsub.f32 %v11275_v18, %v11291_v7  ;;  %v11292_v62 = vmul.f32 %v17877_v13, %v17877_v13  ;;  %v11324_v16 = vsub.f32 %v17772_v57, %v17877_v13 }
0x1254   :  { %v11368_v22 = vmul.f32 %v13828_v23, %v11320_v28  ;;  %v11250_v4 = vpop.xlane.xlu1 %11249  ;;  %v11187_v12 = vpop.xlane.xlu0 %11186 }
0x1255   :  { %v13830_v38 = vpop.eup %13829  ;;  %v11339_v53 = vadd.f32 1e-05, %v11307_v25  ;;  %v11276_v0 = vmul.f32 0.0078125, %v11250_v4  ;;  %v17893_v35 = vmul.f32 0.0078125, %v11187_v12 }
0x1256   :  { %v11391_v44 = vmul.f32 %v17883_v47, %v11368_v22  ;;  %v11367_v54 = vmul.f32 %v13830_v38, %v11319_v31 }
0x1257   :  { %13835 = vrsqrt.f32 %v11339_v53  ;;  %v11308_v63 = vsub.f32 %v11276_v0, %v11292_v62  ;;  %v11293_v39 = vmul.f32 %v17893_v35, %v17893_v35  ;;  %v11325_v13 = vsub.f32 %v17784_v59, %v17893_v35 }
0x1258   :  { %v11414_v48 = vadd.f32 %v17889_v32, %v11391_v44  ;;  %v11390_v2 = vmul.f32 %v17883_v47, %v11367_v54  ;;  %v11189_v24 = vpop.xlane.xlu1 %11188  ;;  %v11252_v20 = vpop.xlane.xlu0 %11251 }
0x1259   :  { %v13832_v46 = vpop.eup %13831  ;;  %v11340_v8 = vadd.f32 1e-05, %v11308_v63  ;;  %v17901_v60 = vmul.f32 0.0078125, %v11189_v24  ;;  %v11277_v6 = vmul.f32 0.0078125, %v11252_v20 }
0x125a   :  { %11430 = vst [vmem:[%s18034_s9 + $0x8] sm:$0xff] %v11414_v48  ;;  %v11413_v5 = vadd.f32 %v17889_v32, %v11390_v2  ;;  %v11369_v61 = vmul.f32 %v13832_v46, %v11321_v10 }
0x125b   :  { %13837 = vrsqrt.f32 %v11340_v8  ;;  %v11309_v37 = vsub.f32 %v11277_v6, %v11293_v39  ;;  %v11294_v27 = vmul.f32 %v17901_v60, %v17901_v60  ;;  %v11326_v59 = vsub.f32 %v17790_v43, %v17901_v60 }
0x125c   :  { %11429 = vst [vmem:[%s18034_s9] sm:$0xff] %v11413_v5  ;;  %v11392_v49 = vmul.f32 %v17883_v47, %v11369_v61  ;;  %v11254_v36 = vpop.xlane.xlu1 %11253  ;;  %v11191_v33 = vpop.xlane.xlu0 %11190 }
0x125d   :  { %v13834_v15 = vpop.eup %13833  ;;  %v11341_v50 = vadd.f32 1e-05, %v11309_v37  ;;  %v11278_v51 = vmul.f32 0.0078125, %v11254_v36  ;;  %v17915_v30 = vmul.f32 0.0078125, %v11191_v33 }
0x125e   :  { %v11415_v21 = vadd.f32 %v17889_v32, %v11392_v49  ;;  %v11370_v19 = vmul.f32 %v13834_v15, %v11322_v41 }
0x125f   :  { %13839 = vrsqrt.f32 %v11341_v50  ;;  %v11310_v9 = vsub.f32 %v11278_v51, %v11294_v27  ;;  %v11295_v7 = vmul.f32 %v17915_v30, %v17915_v30  ;;  %v11327_v60 = vsub.f32 %v17802_v3, %v17915_v30 }
0x1260   :  { %11431 = vst [vmem:[%s18034_s9 + $0x10] sm:$0xff] %v11415_v21  ;;  %v11393_v40 = vmul.f32 %v17883_v47, %v11370_v19  ;;  %v11193_v45 = vpop.xlane.xlu1 %11192  ;;  %v11256_v58 = vpop.xlane.xlu0 %11255 }
0x1261   :  { %v13836_v42 = vpop.eup %13835  ;;  %v11342_v11 = vadd.f32 1e-05, %v11310_v9  ;;  %v17926_v18 = vmul.f32 0.0078125, %v11193_v45  ;;  %v11279_v28 = vmul.f32 0.0078125, %v11256_v58 }
0x1262   :  { %v11416_v23 = vadd.f32 %v17889_v32, %v11393_v40  ;;  %v11371_v25 = vmul.f32 %v13836_v42, %v11323_v29 }
0x1263   :  { %13841 = vrsqrt.f32 %v11342_v11  ;;  %v11311_v31 = vsub.f32 %v11279_v28, %v11295_v7  ;;  %v11296_v38 = vmul.f32 %v17926_v18, %v17926_v18  ;;  %v11328_v3 = vsub.f32 %v17808_v56, %v17926_v18 }
0x1264   :  { %11432 = vst [vmem:[%s18034_s9 + $0x18] sm:$0xff] %v11416_v23  ;;  %v11394_v55 = vmul.f32 %v17883_v47, %v11371_v25  ;;  %v11258_v22 = vpop.xlane.xlu1 %11257  ;;  %v11195_v4 = vpop.xlane.xlu0 %11194 }
0x1265   :  { %v13838_v12 = vpop.eup %13837  ;;  %v11343_v62 = vadd.f32 1e-05, %v11311_v31  ;;  %v11280_v53 = vmul.f32 0.0078125, %v11258_v22  ;;  %v17937_v0 = vmul.f32 0.0078125, %v11195_v4 }
0x1266   :  { %v11417_v44 = vadd.f32 %v17889_v32, %v11394_v55  ;;  %v11372_v54 = vmul.f32 %v13838_v12, %v11324_v16 }
0x1267   :  { %13843 = vrsqrt.f32 %v11343_v62  ;;  %v11312_v63 = vsub.f32 %v11280_v53, %v11296_v38  ;;  %v11297_v20 = vmul.f32 %v17937_v0, %v17937_v0  ;;  %v11329_v18 = vsub.f32 %v17820_v14, %v17937_v0 }
0x1268   :  { %11433 = vst [vmem:[%s18034_s9 + $0x20] sm:$0xff] %v11417_v44  ;;  %v11395_v57 = vmul.f32 %v17883_v47, %v11372_v54  ;;  %v11197_v48 = vpop.xlane.xlu1 %11196  ;;  %v11260_v10 = vpop.xlane.xlu0 %11259 }
0x1269   :  { %v13840_v2 = vpop.eup %13839  ;;  %v11344_v24 = vadd.f32 1e-05, %v11312_v63  ;;  %v17948_v46 = vmul.f32 0.0078125, %v11197_v48  ;;  %v11281_v8 = vmul.f32 0.0078125, %v11260_v10 }
0x126a   :  { %v11418_v39 = vadd.f32 %v17889_v32, %v11395_v57  ;;  %v11373_v6 = vmul.f32 %v13840_v2, %v11325_v13 }
0x126b   :  { %13845 = vrsqrt.f32 %v11344_v24  ;;  %v11313_v5 = vsub.f32 %v11281_v8, %v11297_v20  ;;  %v11298_v49 = vmul.f32 %v17948_v46, %v17948_v46  ;;  %v11330_v24 = vsub.f32 %v17826_v17, %v17948_v46 }
0x126c   :  { %11434 = vst [vmem:[%s18034_s9 + $0x28] sm:$0xff] %v11418_v39  ;;  %v11396_v35 = vmul.f32 %v17883_v47, %v11373_v6  ;;  %v11262_v61 = vpop.xlane.xlu1 %11261  ;;  %v11199_v37 = vpop.xlane.xlu0 %11198 }
0x126d   :  { %v13842_v41 = vpop.eup %13841  ;;  %v11345_v36 = vadd.f32 1e-05, %v11313_v5  ;;  %v11282_v33 = vmul.f32 0.0078125, %v11262_v61  ;;  %v17959_v15 = vmul.f32 0.0078125, %v11199_v37 }
0x126e   :  { %v11419_v27 = vadd.f32 %v17889_v32, %v11396_v35  ;;  %v11374_v50 = vmul.f32 %v13842_v41, %v11326_v59 }
0x126f   :  { %13847 = vrsqrt.f32 %v11345_v36  ;;  %v11314_v51 = vsub.f32 %v11282_v33, %v11298_v49  ;;  %v11299_v29 = vmul.f32 %v17959_v15, %v17959_v15  ;;  %v11331_v17 = vsub.f32 %v17838_v34, %v17959_v15 }
0x1270   :  { %11435 = vst [vmem:[%s18034_s9 + $0x30] sm:$0xff] %v11419_v27  ;;  %v11397_v43 = vmul.f32 %v17883_v47, %v11374_v50  ;;  %v11201_v21 = vpop.xlane.xlu1 %11200  ;;  %v11264_v19 = vpop.xlane.xlu0 %11263 }
0x1271   :  { %v13844_v9 = vpop.eup %13843  ;;  %v11346_v40 = vadd.f32 1e-05, %v11314_v51  ;;  %v11220_v45 = vmul.f32 0.0078125, %v11201_v21  ;;  %v11283_v58 = vmul.f32 0.0078125, %v11264_v19 }
0x1272   :  { %v11420_v42 = vadd.f32 %v17889_v32, %v11397_v43  ;;  %v11375_v11 = vmul.f32 %v13844_v9, %v11327_v60 }
0x1273   :  { %13849 = vrsqrt.f32 %v11346_v40  ;;  %v11315_v7 = vsub.f32 %v11283_v58, %v11299_v29  ;;  %v11300_v31 = vmul.f32 %v11220_v45, %v11220_v45  ;;  %v11332_v36 = vsub.f32 %v17844_v52, %v11220_v45 }
0x1274   :  { %11436 = vst [vmem:[%s18034_s9 + $0x38] sm:$0xff] %v11420_v42  ;;  %v11398_v30 = vmul.f32 %v17883_v47, %v11375_v11  ;;  %v11266_v28 = vpop.xlane.xlu1 %11265  ;;  %v11203_v23 = vpop.xlane.xlu0 %11202 }
0x1275   :  { %v13846_v25 = vpop.eup %13845  ;;  %v11347_v16 = vadd.f32 1e-05, %v11315_v7  ;;  %v11284_v55 = vmul.f32 0.0078125, %v11266_v28  ;;  %v11221_v22 = vmul.f32 0.0078125, %v11203_v23 }
0x1276   :  { %v11421_v4 = vadd.f32 %v17889_v32, %v11398_v30  ;;  %v11376_v12 = vmul.f32 %v13846_v25, %v11328_v3 }
0x1277   :  { %13851 = vrsqrt.f32 %v11347_v16  ;;  %v11316_v38 = vsub.f32 %v11284_v55, %v11300_v31  ;;  %v11301_v63 = vmul.f32 %v11221_v22, %v11221_v22  ;;  %v11333_v15 = vsub.f32 %v17856_v26, %v11221_v22 }
0x1278   :  { %11437 = vst [vmem:[%s18034_s9 + $0x40] sm:$0xff] %v11421_v4  ;;  %v11399_v56 = vmul.f32 %v17883_v47, %v11376_v12  ;;  %v11205_v62 = vpop.xlane.xlu1 %11204  ;;  %v11268_v53 = vpop.xlane.xlu0 %11267 }
0x1279   :  { %v13848_v44 = vpop.eup %13847  ;;  %v11348_v54 = vadd.f32 1e-05, %v11316_v38  ;;  %v11222_v57 = vmul.f32 0.0078125, %v11205_v62  ;;  %v11285_v13 = vmul.f32 0.0078125, %v11268_v53 }
0x127a   :  { %v11422_v48 = vadd.f32 %v17889_v32, %v11399_v56  ;;  %v11377_v10 = vmul.f32 %v13848_v44, %v11329_v18 }
0x127b   :  { %13853 = vrsqrt.f32 %v11348_v54  ;;  %v11317_v2 = vsub.f32 %v11285_v13, %v11301_v63  ;;  %v11302_v8 = vmul.f32 %v11222_v57, %v11222_v57  ;;  %v11334_v52 = vsub.f32 %v17862_v1, %v11222_v57 }
0x127c   :  { %11438 = vst [vmem:[%s18034_s9 + $0x48] sm:$0xff] %v11422_v48  ;;  %v11400_v14 = vmul.f32 %v17883_v47, %v11377_v10  ;;  %v11270_v0 = vpop.xlane.xlu1 %11269 }
0x127d   :  { %v13850_v20 = vpop.eup %13849  ;;  %v11349_v39 = vadd.f32 1e-05, %v11317_v2  ;;  %v11286_v6 = vmul.f32 0.0078125, %v11270_v0 }
0x127e   :  { %v11423_v5 = vadd.f32 %v17889_v32, %v11400_v14  ;;  %v11378_v59 = vmul.f32 %v13850_v20, %v11330_v24 }
0x127f   :  { %13855 = vrsqrt.f32 %v11349_v39  ;;  %v11318_v35 = vsub.f32 %v11286_v6, %v11302_v8 }
0x1280   :  { %11439 = vst [vmem:[%s18034_s9 + $0x50] sm:$0xff] %v11423_v5  ;;  %v11401_v61 = vmul.f32 %v17883_v47, %v11378_v59 }
0x1281   :  { %v13852_v46 = vpop.eup %13851  ;;  %v11350_v37 = vadd.f32 1e-05, %v11318_v35 }
0x1282   :  { %v11424_v41 = vadd.f32 %v17889_v32, %v11401_v61  ;;  %v11379_v49 = vmul.f32 %v13852_v46, %v11331_v17 }
0x1283   :  { %13857 = vrsqrt.f32 %v11350_v37 }
0x1284   :  { %11440 = vst [vmem:[%s18034_s9 + $0x58] sm:$0xff] %v11424_v41  ;;  %v11402_v33 = vmul.f32 %v17883_v47, %v11379_v49 }
0x1285   :  { %v13854_v27 = vpop.eup %13853 }
0x1286   :  { %v11425_v50 = vadd.f32 %v17889_v32, %v11402_v33  ;;  %v11380_v51 = vmul.f32 %v13854_v27, %v11332_v36 }
0x1288   :  { %11441 = vst [vmem:[%s18034_s9 + $0x60] sm:$0xff] %v11425_v50  ;;  %v11403_v34 = vmul.f32 %v17883_v47, %v11380_v51 }
0x1289   :  { %v13856_v43 = vpop.eup %13855 }
0x128a   :  { %v11426_v60 = vadd.f32 %v17889_v32, %v11403_v34  ;;  %v11381_v21 = vmul.f32 %v13856_v43, %v11333_v15 }
0x128c   :  { %11442 = vst [vmem:[%s18034_s9 + $0x68] sm:$0xff] %v11426_v60  ;;  %v11404_v19 = vmul.f32 %v17883_v47, %v11381_v21 }
0x128d   :  { %v13858_v9 = vpop.eup %13857 }
0x128e   :  { %v11427_v40 = vadd.f32 %v17889_v32, %v11404_v19  ;;  %v11382_v29 = vmul.f32 %v13858_v9, %v11334_v52 }
0x1290   :  { %11443 = vst [vmem:[%s18034_s9 + $0x70] sm:$0xff] %v11427_v40  ;;  %v11405_v26 = vmul.f32 %v17883_v47, %v11382_v29 }
0x1292   :  { %v11428_v45 = vadd.f32 %v17889_v32, %v11405_v26 }
0x1294   :  { %11444 = vst [vmem:[%s18034_s9 + $0x78] sm:$0xff] %v11428_v45 }
0x1295   :  { %11449 = vsyncpa [#allocation5], 1 }
0x1296   :  { %11450 = vsyncpa [#allocation7], 1 }

</bundles_post_ra>
